<compile_context>
chip_gen: v6e
topology: v6e:2x2x1
jax: 0.10.0
libtpu: 0.0.40
codegen_flags: <defaults>
</compile_context>

<pallas_src>
import functools

import jax
import jax.numpy as jnp
from jax.experimental import pallas as pl
from jax.experimental.pallas import tpu as pltpu

EPS = 1e-5


# ---------------------------------------------------------------------------
# Kernels
# ---------------------------------------------------------------------------
def conv_bn_stats_kernel(top_ref, body_ref, bot_ref, scale_ref, shift_ref,
                         w_ref, y_ref, stats_ref, halo_ref, taps_ref,
                         *, tile_h, width, cin, cout, fuse_input_bn):
    """3x3 conv (pad=1, stride=1) on one (batch, row-tile).

    The row tile and its two 1-row halos arrive as pipelined BlockSpec blocks
    (auto double-buffered, so the halo fetch overlaps compute).  Optionally the
    previous BN affine + ReLU is applied to the input in VMEM (fuses bn1+relu
    into conv2).  The 9 taps are folded into one K=9*Cin MXU matmul.  Emits the
    pre-BN output in bf16 plus packed per-tile BN statistics.
    """
    t = pl.program_id(1)
    nt = pl.num_programs(1)

    def prep(v):
        if fuse_input_bn:                       # static flag
            v = jnp.maximum(
                v.astype(jnp.float32) * scale_ref[...] + shift_ref[...], 0.0)
        return v.astype(jnp.bfloat16)

    # Assemble the (tile_h+2, W+2, Cin) halo tile in VMEM.
    halo_ref[0:1, 1:width + 1, :] = prep(top_ref[...])
    halo_ref[1:tile_h + 1, 1:width + 1, :] = prep(body_ref[...])
    halo_ref[tile_h + 1:tile_h + 2, 1:width + 1, :] = prep(bot_ref[...])

    # Zero the padding border AFTER the affine (+ReLU): relu(0*scale+shift)!=0.
    zcol = jnp.zeros((tile_h + 2, 1, cin), jnp.bfloat16)
    halo_ref[:, 0:1, :] = zcol
    halo_ref[:, width + 1:width + 2, :] = zcol
    zrow = jnp.zeros((1, width + 2, cin), jnp.bfloat16)

    @pl.when(t == 0)
    def _():
        halo_ref[0:1, :, :] = zrow              # top image border

    @pl.when(t == nt - 1)
    def _():
        halo_ref[tile_h + 1:tile_h + 2, :, :] = zrow   # bottom image border

    # im2col in VMEM: 9 shifted views -> (tile_h, W, 9*Cin), single MXU matmul.
    # TODO(synk): for Cin >= 128 switch to 9 accumulated dots on shifted halo
    # views (frees taps_ref VMEM) or pad each tap slot to a 128-lane boundary.
    for tap in range(9):
        ky, kx = tap // 3, tap % 3
        taps_ref[:, :, tap * cin:(tap + 1) * cin] = (
            halo_ref[ky:ky + tile_h, kx:kx + width, :])

    lhs = taps_ref[...].reshape(tile_h * width, 9 * cin)          # bf16
    acc = jnp.dot(lhs, w_ref[...], preferred_element_type=jnp.float32)

    # Pre-BN output stream in bf16 (halves the largest HBM stream).
    # TODO(synk): for Cout < 128 a lane-dense (tile_h, W*Cout) store would avoid
    # masked vst; kept (tile_h*W, Cout) to avoid a lane-merging in-kernel
    # reshape (Cout >= 128 is already unmasked).
    y_ref[...] = acc.astype(jnp.bfloat16)

    # Packed per-tile BN stats from the f32 accumulator, mean-centered so the
    # host-side Chan combine avoids catastrophic cancellation.
    cnt = float(tile_h * width)
    s = jnp.sum(acc, axis=0, keepdims=True)                       # (1, Cout)
    d = acc - s / cnt
    m2 = jnp.sum(d * d, axis=0, keepdims=True)                    # (1, Cout)
    stats_ref[...] = jnp.zeros((8, cout), jnp.float32)
    stats_ref[0:1, :] = s
    stats_ref[1:2, :] = m2


def bn_add_act_kernel(y_ref, res_ref, scale_ref, shift_ref, out_ref):
    """Elementwise bn2 affine + identity residual + ReLU (lane-dense rows)."""
    v = y_ref[...].astype(jnp.float32) * scale_ref[...] + shift_ref[...]
    out_ref[...] = jnp.maximum(v + res_ref[...].astype(jnp.float32), 0.0)


# ---------------------------------------------------------------------------
# Host-side helpers
# ---------------------------------------------------------------------------
def _round_up(x, m):
    return (x + m - 1) // m * m


def _vmem_capacity_bytes():
    try:
        return int(pltpu.get_tpu_info().vmem_capacity_bytes)
    except Exception:
        return 64 << 20          # conservative (v7x-sized) fallback


def _conv_tile_bytes(th, w, cin, cout):
    """Padded-layout VMEM footprint of one conv grid step: scratch buffers plus
    double-buffered pipeline blocks (inputs, resident weights, outputs, stats)."""
    bf, f32 = 2, 4
    lc, lo = _round_up(cin, 128), _round_up(cout, 128)
    halo = (th + 2) * _round_up(w + 2, 8) * lc * bf               # scratch
    taps = th * _round_up(w, 8) * _round_up(9 * cin, 128) * bf    # scratch
    body = 2 * th * _round_up(w, 8) * lc * bf                     # 2 bufs
    rows = 2 * 2 * _round_up(w, 8) * lc * bf                      # top+bot halos
    wgt = 2 * _round_up(9 * cin, 8) * lo * bf                     # resident weights
    yout = 2 * _round_up(th * w, 8) * lo * bf                     # y block
    stats = 2 * 8 * lo * f32
    affine = 2 * 2 * 8 * lc * f32
    return halo + taps + body + rows + wgt + yout + stats + affine


def _pick_conv_tile_h(n, h, w, cin, cout, budget):
    legal = [th for th in range(1, h + 1)
             if h % th == 0 and (th * w) % 8 == 0]
    if not legal:
        legal = [h]
    fits = [th for th in legal if _conv_tile_bytes(th, w, cin, cout) <= budget]
    pool = fits or legal
    # Keep >= 2 grid steps when possible so both v7x TensorCores get work.
    multi = [th for th in pool if n * (h // th) >= 2]
    pool = multi or pool
    return max(pool)


def _largest_divisor(total, cap, multiple_of=8):
    cap = min(max(int(cap), 1), total)
    for d in range(cap, 0, -1):
        if total % d == 0 and (d % multiple_of == 0 or d == total):
            return d
    return total


def _flatten_weight(w_oihw):
    """(Cout, Cin, 3, 3) -> (9*Cin, Cout) bf16, rows ordered (ky, kx, ci)."""
    cout, cin = w_oihw.shape[0], w_oihw.shape[1]
    return (jnp.transpose(w_oihw, (2, 3, 1, 0))
            .reshape(9 * cin, cout).astype(jnp.bfloat16))


def _conv3x3_bn_stats(x_nhwc, scale_in, shift_in, w_flat, *, tile_h,
                      fuse_input_bn, vmem_limit):
    """Pre-BN 3x3 conv output (N*H*W, Cout) bf16 + packed per-tile BN stats."""
    n, h, w, cin = x_nhwc.shape
    cout = w_flat.shape[1]
    assert h % tile_h == 0, (h, tile_h)
    assert (tile_h * w) % 8 == 0, (tile_h, w)
    nt = h // tile_h

    kernel = functools.partial(conv_bn_stats_kernel, tile_h=tile_h, width=w,
                               cin=cin, cout=cout, fuse_input_bn=fuse_input_bn)
    y, stats = pl.pallas_call(
        kernel,
        out_shape=(
            jax.ShapeDtypeStruct((n * h * w, cout), jnp.bfloat16),
            jax.ShapeDtypeStruct((n * nt * 8, cout), jnp.float32),
        ),
        grid=(n, nt),
        in_specs=[
            # 1-row top halo (clamped at the image edge; zeroed in-kernel there)
            pl.BlockSpec((None, 1, w, cin),
                         lambda ni, ti: (ni, jnp.maximum(ti * tile_h - 1, 0), 0, 0)),
            # body rows of this tile
            pl.BlockSpec((None, tile_h, w, cin),
                         lambda ni, ti: (ni, ti, 0, 0)),
            # 1-row bottom halo (clamped at the image edge)
            pl.BlockSpec((None, 1, w, cin),
                         lambda ni, ti: (ni, jnp.minimum(ti * tile_h + tile_h, h - 1), 0, 0)),
            # previous-BN affine (resident; unused when fuse_input_bn=False)
            pl.BlockSpec((1, cin), lambda ni, ti: (0, 0)),
            pl.BlockSpec((1, cin), lambda ni, ti: (0, 0)),
            # flattened 3x3 weights, VMEM-resident
            # TODO(synk): pipeline_mode=pl.Buffered(1) on v7x to single-buffer
            # large resident weights.
            pl.BlockSpec((9 * cin, cout), lambda ni, ti: (0, 0)),
        ],
        out_specs=(
            pl.BlockSpec((tile_h * w, cout), lambda ni, ti: (ni * nt + ti, 0)),
            pl.BlockSpec((8, cout), lambda ni, ti: (ni * nt + ti, 0)),
        ),
        scratch_shapes=[
            pltpu.VMEM((tile_h + 2, w + 2, cin), jnp.bfloat16),   # halo tile
            pltpu.VMEM((tile_h, w, 9 * cin), jnp.bfloat16),       # im2col block
        ],
        compiler_params=pltpu.CompilerParams(
            dimension_semantics=("parallel", "parallel"),
            vmem_limit_bytes=vmem_limit),
    )(x_nhwc, x_nhwc, x_nhwc, scale_in, shift_in, w_flat)
    return y, stats


def _combine_stats(stats, *, n, h, w, cout, tile_h):
    """Chan parallel-variance combine of the packed per-tile stats."""
    nt = h // tile_h
    st = stats.reshape(n * nt, 8, cout)
    s_i = st[:, 0, :]                      # per-tile sums
    m2_i = st[:, 1, :]                     # per-tile centered sum-of-squares
    cnt = float(tile_h * w)
    total = n * h * w
    mean = jnp.sum(s_i, axis=0) / total
    mu_i = s_i / cnt
    m2 = jnp.sum(m2_i, axis=0) + cnt * jnp.sum((mu_i - mean) ** 2, axis=0)
    var = m2 / total                       # biased variance (training-mode BN)
    return mean, var


def _bn_add_act(y2d, res2d, scale_row, shift_row, *, budget, vmem_limit):
    """Lane-dense bn2 affine + residual + ReLU on (N*H, W*C) views."""
    rows, width = y2d.shape
    lane_w = _round_up(width, 128)
    per_row = 2 * lane_w * (2 + 2 + 4)     # y(bf16)+res(bf16)+out(f32), 2 bufs
    tr = _largest_divisor(rows, cap=budget // max(per_row, 1), multiple_of=8)
    row_spec = pl.BlockSpec((tr, width), lambda r: (r, 0))
    const_spec = pl.BlockSpec((1, width), lambda r: (0, 0))
    return pl.pallas_call(
        bn_add_act_kernel,
        out_shape=jax.ShapeDtypeStruct((rows, width), jnp.float32),
        grid=(rows // tr,),
        in_specs=[row_spec, row_spec, const_spec, const_spec],
        out_specs=row_spec,
        compiler_params=pltpu.CompilerParams(
            dimension_semantics=("parallel",),
            vmem_limit_bytes=vmem_limit),
    )(y2d, res2d, scale_row, shift_row)


# ---------------------------------------------------------------------------
# Forward pass
# ---------------------------------------------------------------------------
@functools.partial(jax.jit, static_argnums=(7, 8, 9))
def _forward_jit(x, w1, g1, b1, w2, g2, b2, tile_h, budget, vmem_limit):
    n, c, h, w = x.shape
    planes = w1.shape[0]

    # Single NCHW->NHWC layout copy; the bf16 NHWC buffer feeds conv1 *and* is
    # reused as the residual stream (no second NHWC copy of x).
    x_nhwc = jnp.transpose(x, (0, 2, 3, 1)).astype(jnp.bfloat16)   # (N,H,W,C)

    w1f = _flatten_weight(w1)
    w2f = _flatten_weight(w2)
    ones_c = jnp.ones((1, c), jnp.float32)
    zeros_c = jnp.zeros((1, c), jnp.float32)

    # ---- conv1 (pre-BN output + stats) --------------------------------------
    y1, st1 = _conv3x3_bn_stats(x_nhwc, ones_c, zeros_c, w1f, tile_h=tile_h,
                                fuse_input_bn=False, vmem_limit=vmem_limit)
    mean1, var1 = _combine_stats(st1, n=n, h=h, w=w, cout=planes, tile_h=tile_h)
    scale1 = g1 * jax.lax.rsqrt(var1 + EPS)
    shift1 = b1 - mean1 * scale1

    # ---- conv2 with bn1+ReLU fused into its input path ----------------------
    y1_nhwc = y1.reshape(n, h, w, planes)          # free metadata reshape
    y2, st2 = _conv3x3_bn_stats(y1_nhwc, scale1[None, :], shift1[None, :], w2f,
                                tile_h=tile_h, fuse_input_bn=True,
                                vmem_limit=vmem_limit)
    mean2, var2 = _combine_stats(st2, n=n, h=h, w=w, cout=planes, tile_h=tile_h)
    scale2 = g2 * jax.lax.rsqrt(var2 + EPS)
    shift2 = b2 - mean2 * scale2

    # ---- bn2 + identity residual + ReLU -------------------------------------
    out2d = _bn_add_act(y2.reshape(n * h, w * planes),
                        x_nhwc.reshape(n * h, w * c),
                        jnp.tile(scale2, w)[None, :],
                        jnp.tile(shift2, w)[None, :],
                        budget=budget, vmem_limit=vmem_limit)
    return jnp.transpose(out2d.reshape(n, h, w, planes), (0, 3, 1, 2))


def basic_block_forward(x_nchw, w1, g1, b1, w2, g2, b2, tile_h=None):
    """BasicBlock forward (stride=1, downsample=None, training-mode BN)."""
    n, c, h, w = x_nchw.shape
    planes = w1.shape[0]
    assert w1.shape == (planes, c, 3, 3), w1.shape
    assert w2.shape == (planes, planes, 3, 3), w2.shape
    assert planes == c, "identity residual requires inplanes == planes"
    # TODO(synk): stride>1 / non-None downsample path not implemented.

    cap = _vmem_capacity_bytes()
    budget = min(cap // 3, 40 << 20)                 # ~40 MiB on 128 MiB parts, ~21 MiB on v7x
    vmem_limit = int(min(cap * 3 // 4, budget + (24 << 20)))

    th = tile_h if tile_h is not None else _pick_conv_tile_h(
        n, h, w, max(c, planes), planes, budget)
    assert h % th == 0 and (th * w) % 8 == 0, (h, w, th)

    return _forward_jit(x_nchw, w1, g1, b1, w2, g2, b2, th, budget, vmem_limit)


# ---------------------------------------------------------------------------
# Pure-JAX reference (NCHW), PyTorch training-mode BN semantics.
# ---------------------------------------------------------------------------
def _reference_forward(x, w1, g1, b1, w2, g2, b2, mirror_kernel_precision=False):
    """mirror_kernel_precision=True rounds the MXU operands, the pre-BN conv
    output streams and the residual to bf16 (the kernel's intentional precision
    choices) while keeping accumulation and BN math in f32."""
    def q(t):
        return (t.astype(jnp.bfloat16).astype(jnp.float32)
                if mirror_kernel_precision else t)

    def conv(x_, w_):
        return jax.lax.conv_general_dilated(
            q(x_), q(w_), window_strides=(1, 1), padding=((1, 1), (1, 1)),
            dimension_numbers=("NCHW", "OIHW", "NCHW"))

    def bn(y, g, b):
        mean = y.mean(axis=(0, 2, 3), keepdims=True)
        var = ((y - mean) ** 2).mean(axis=(0, 2, 3), keepdims=True)
        scale = g.reshape(1, -1, 1, 1) * jax.lax.rsqrt(var + EPS)
        shift = b.reshape(1, -1, 1, 1) - mean * scale
        return q(y) * scale + shift       # stats from f32 y, affine on bf16 y

    hid = jax.nn.relu(bn(conv(x, w1), g1, b1))
    out = bn(conv(hid, w2), g2, b2) + q(x)
    return jax.nn.relu(out)


if __name__ == "__main__":
    # BasicBlock(inplanes=4, planes=4, stride=1, downsample=None)
    N, C, H, W = 2, 4, 16, 16
    planes = C

    key = jax.random.PRNGKey(0)
    kx, kw1, kw2, kg1, kb1, kg2, kb2 = jax.random.split(key, 7)
    x = jax.random.normal(kx, (N, C, H, W), jnp.float32)
    w1 = 0.1 * jax.random.normal(kw1, (planes, C, 3, 3), jnp.float32)
    w2 = 0.1 * jax.random.normal(kw2, (planes, planes, 3, 3), jnp.float32)
    g1 = 1.0 + 0.1 * jax.random.normal(kg1, (planes,), jnp.float32)
    b1 = 0.1 * jax.random.normal(kb1, (planes,), jnp.float32)
    g2 = 1.0 + 0.1 * jax.random.normal(kg2, (planes,), jnp.float32)
    b2 = 0.1 * jax.random.normal(kb2, (planes,), jnp.float32)

    # tile_h=8 -> (N, H/8) = (2, 2) grid: exercises interior + boundary tiles
    # and the multi-tile BN-stats combine.
    out = basic_block_forward(x, w1, g1, b1, w2, g2, b2, tile_h=8)
    out = jax.block_until_ready(out)
    assert out.shape == (N, planes, H, W), out.shape

    # Auto tile size (single tile per image here): exercises the nt == 1 path.
    out_auto = basic_block_forward(x, w1, g1, b1, w2, g2, b2)
    out_auto = jax.block_until_ready(out_auto)

    ref_q = _reference_forward(x, w1, g1, b1, w2, g2, b2,
                               mirror_kernel_precision=True)
    ref_f = _reference_forward(x, w1, g1, b1, w2, g2, b2,
                               mirror_kernel_precision=False)

    err_q = float(jnp.max(jnp.abs(out - ref_q)))
    err_q_auto = float(jnp.max(jnp.abs(out_auto - ref_q)))
    err_f = float(jnp.max(jnp.abs(out - ref_f)))

    # Tight check vs. a reference mirroring the kernel's bf16 streams
    # (small slack for bf16 rounding-boundary flips and MXU reduction order).
    assert err_q < 5e-2, f"mismatch vs bf16-mirrored reference: {err_q}"
    assert err_q_auto < 5e-2, f"mismatch (auto tile) vs reference: {err_q_auto}"
    # Loose sanity check vs. the pure-f32 reference (bf16 operand / stream
    # quantization is the only intentional deviation from f32 semantics).
    assert err_f < 0.25, f"mismatch vs f32 reference: {err_f}"
    print("KERNEL_OK")
</pallas_src>

<mosaic_0001>
module attributes {stable_mosaic.version = 11 : i64} {
  func.func @conv_bn_stats_kernel(%arg0: i32, %arg1: i32, %arg2: memref<1x1x16x4xbf16, #tpu.memory_space<vmem>>, %arg3: memref<1x8x16x4xbf16, #tpu.memory_space<vmem>>, %arg4: memref<1x1x16x4xbf16, #tpu.memory_space<vmem>>, %arg5: memref<1x4xf32, #tpu.memory_space<vmem>>, %arg6: memref<1x4xf32, #tpu.memory_space<vmem>>, %arg7: memref<36x4xbf16, #tpu.memory_space<vmem>>, %arg8: memref<128x4xbf16, #tpu.memory_space<vmem>>, %arg9: memref<8x4xf32, #tpu.memory_space<vmem>>, %arg10: memref<10x18x4xbf16, #tpu.memory_space<vmem>>, %arg11: memref<8x16x36xbf16, #tpu.memory_space<vmem>>) attributes {dimension_semantics = [#tpu.dimension_semantics<parallel>, #tpu.dimension_semantics<parallel>], iteration_bounds = array<i64: 2, 2>, scalar_prefetch = 0 : i64, scratch_operands = 2 : i64, tpu.core_type = #tpu.core_type<tc>, window_params = [{transform_indices = @transform_0, window_bounds = array<i64: 1, 1, 16, 4>}, {transform_indices = @transform_1, window_bounds = array<i64: 1, 8, 16, 4>}, {transform_indices = @transform_2, window_bounds = array<i64: 1, 1, 16, 4>}, {pipeline_mode = #tpu.pipeline_mode<synchronous>, transform_indices = @transform_3, window_bounds = array<i64: 1, 4>}, {pipeline_mode = #tpu.pipeline_mode<synchronous>, transform_indices = @transform_4, window_bounds = array<i64: 1, 4>}, {pipeline_mode = #tpu.pipeline_mode<synchronous>, transform_indices = @transform_5, window_bounds = array<i64: 36, 4>}, {transform_indices = @transform_6, window_bounds = array<i64: 128, 4>}, {transform_indices = @transform_7, window_bounds = array<i64: 8, 4>}]} {
    %c0 = arith.constant 0 : index
    %c0_0 = arith.constant 0 : index
    %c0_1 = arith.constant 0 : index
    %c0_2 = arith.constant 0 : index
    %0 = vector.load %arg2[%c0, %c0_0, %c0_1, %c0_2] : memref<1x1x16x4xbf16, #tpu.memory_space<vmem>>, vector<1x1x16x4xbf16>
    %1 = vector.shape_cast %0 : vector<1x1x16x4xbf16> to vector<1x16x4xbf16>
    %c0_3 = arith.constant 0 : index
    %c1 = arith.constant 1 : index
    %c0_4 = arith.constant 0 : index
    %2 = vector.load %arg10[%c0_3, %c1, %c0_4] : memref<10x18x4xbf16, #tpu.memory_space<vmem>>, vector<1x16x4xbf16>
    tpu.vector_store %arg10[%c0_3, %c1, %c0_4], %1 {strides = array<i32>} : memref<10x18x4xbf16, #tpu.memory_space<vmem>>, vector<1x16x4xbf16>,
    %c0_5 = arith.constant 0 : index
    %c0_6 = arith.constant 0 : index
    %c0_7 = arith.constant 0 : index
    %c0_8 = arith.constant 0 : index
    %3 = vector.load %arg3[%c0_5, %c0_6, %c0_7, %c0_8] : memref<1x8x16x4xbf16, #tpu.memory_space<vmem>>, vector<1x8x16x4xbf16>
    %4 = vector.shape_cast %3 : vector<1x8x16x4xbf16> to vector<8x16x4xbf16>
    %c1_9 = arith.constant 1 : index
    %c1_10 = arith.constant 1 : index
    %c0_11 = arith.constant 0 : index
    %5 = vector.load %arg10[%c1_9, %c1_10, %c0_11] : memref<10x18x4xbf16, #tpu.memory_space<vmem>>, vector<8x16x4xbf16>
    tpu.vector_store %arg10[%c1_9, %c1_10, %c0_11], %4 {strides = array<i32>} : memref<10x18x4xbf16, #tpu.memory_space<vmem>>, vector<8x16x4xbf16>,
    %c0_12 = arith.constant 0 : index
    %c0_13 = arith.constant 0 : index
    %c0_14 = arith.constant 0 : index
    %c0_15 = arith.constant 0 : index
    %6 = vector.load %arg4[%c0_12, %c0_13, %c0_14, %c0_15] : memref<1x1x16x4xbf16, #tpu.memory_space<vmem>>, vector<1x1x16x4xbf16>
    %7 = vector.shape_cast %6 : vector<1x1x16x4xbf16> to vector<1x16x4xbf16>
    %c9 = arith.constant 9 : index
    %c1_16 = arith.constant 1 : index
    %c0_17 = arith.constant 0 : index
    %8 = vector.load %arg10[%c9, %c1_16, %c0_17] : memref<10x18x4xbf16, #tpu.memory_space<vmem>>, vector<1x16x4xbf16>
    tpu.vector_store %arg10[%c9, %c1_16, %c0_17], %7 {strides = array<i32>} : memref<10x18x4xbf16, #tpu.memory_space<vmem>>, vector<1x16x4xbf16>,
    %cst = arith.constant 0.000000e+00 : bf16
    %9 = vector.broadcast %cst : bf16 to vector<10x1x4xbf16>
    %c0_18 = arith.constant 0 : index
    %c0_19 = arith.constant 0 : index
    %c0_20 = arith.constant 0 : index
    %10 = vector.load %arg10[%c0_18, %c0_19, %c0_20] : memref<10x18x4xbf16, #tpu.memory_space<vmem>>, vector<10x1x4xbf16>
    tpu.vector_store %arg10[%c0_18, %c0_19, %c0_20], %9 {strides = array<i32>} : memref<10x18x4xbf16, #tpu.memory_space<vmem>>, vector<10x1x4xbf16>,
    %c0_21 = arith.constant 0 : index
    %c17 = arith.constant 17 : index
    %c0_22 = arith.constant 0 : index
    %11 = vector.load %arg10[%c0_21, %c17, %c0_22] : memref<10x18x4xbf16, #tpu.memory_space<vmem>>, vector<10x1x4xbf16>
    tpu.vector_store %arg10[%c0_21, %c17, %c0_22], %9 {strides = array<i32>} : memref<10x18x4xbf16, #tpu.memory_space<vmem>>, vector<10x1x4xbf16>,
    %cst_23 = arith.constant 0.000000e+00 : bf16
    %12 = vector.broadcast %cst_23 : bf16 to vector<1x18x4xbf16>
    %c0_i32 = arith.constant 0 : i32
    %13 = arith.cmpi eq, %arg1, %c0_i32 : i32
    %14 = arith.extui %13 : i1 to i32
    %c0_i32_24 = arith.constant 0 : i32
    %15 = arith.cmpi ne, %14, %c0_i32_24 : i32
    scf.if %15 {
      %c0_89 = arith.constant 0 : index
      %c0_90 = arith.constant 0 : index
      %c0_91 = arith.constant 0 : index
      %56 = vector.load %arg10[%c0_89, %c0_90, %c0_91] : memref<10x18x4xbf16, #tpu.memory_space<vmem>>, vector<1x18x4xbf16>
      tpu.vector_store %arg10[%c0_89, %c0_90, %c0_91], %12 {strides = array<i32>} : memref<10x18x4xbf16, #tpu.memory_space<vmem>>, vector<1x18x4xbf16>,
    } else {
    }
    %c1_i32 = arith.constant 1 : i32
    %16 = arith.cmpi eq, %arg1, %c1_i32 : i32
    %17 = arith.extui %16 : i1 to i32
    %c0_i32_25 = arith.constant 0 : i32
    %18 = arith.cmpi ne, %17, %c0_i32_25 : i32
    scf.if %18 {
      %c9_89 = arith.constant 9 : index
      %c0_90 = arith.constant 0 : index
      %c0_91 = arith.constant 0 : index
      %56 = vector.load %arg10[%c9_89, %c0_90, %c0_91] : memref<10x18x4xbf16, #tpu.memory_space<vmem>>, vector<1x18x4xbf16>
      tpu.vector_store %arg10[%c9_89, %c0_90, %c0_91], %12 {strides = array<i32>} : memref<10x18x4xbf16, #tpu.memory_space<vmem>>, vector<1x18x4xbf16>,
    } else {
    }
    %c0_26 = arith.constant 0 : index
    %c0_27 = arith.constant 0 : index
    %c0_28 = arith.constant 0 : index
    %19 = vector.load %arg10[%c0_26, %c0_27, %c0_28] : memref<10x18x4xbf16, #tpu.memory_space<vmem>>, vector<8x16x4xbf16>
    %c0_29 = arith.constant 0 : index
    %c0_30 = arith.constant 0 : index
    %c0_31 = arith.constant 0 : index
    %20 = vector.load %arg11[%c0_29, %c0_30, %c0_31] : memref<8x16x36xbf16, #tpu.memory_space<vmem>>, vector<8x16x4xbf16>
    tpu.vector_store %arg11[%c0_29, %c0_30, %c0_31], %19 {strides = array<i32>} : memref<8x16x36xbf16, #tpu.memory_space<vmem>>, vector<8x16x4xbf16>,
    %c0_32 = arith.constant 0 : index
    %c1_33 = arith.constant 1 : index
    %c0_34 = arith.constant 0 : index
    %21 = vector.load %arg10[%c0_32, %c1_33, %c0_34] : memref<10x18x4xbf16, #tpu.memory_space<vmem>>, vector<8x16x4xbf16>
    %c0_35 = arith.constant 0 : index
    %c0_36 = arith.constant 0 : index
    %c4 = arith.constant 4 : index
    %22 = vector.load %arg11[%c0_35, %c0_36, %c4] : memref<8x16x36xbf16, #tpu.memory_space<vmem>>, vector<8x16x4xbf16>
    tpu.vector_store %arg11[%c0_35, %c0_36, %c4], %21 {strides = array<i32>} : memref<8x16x36xbf16, #tpu.memory_space<vmem>>, vector<8x16x4xbf16>,
    %c0_37 = arith.constant 0 : index
    %c2 = arith.constant 2 : index
    %c0_38 = arith.constant 0 : index
    %23 = vector.load %arg10[%c0_37, %c2, %c0_38] : memref<10x18x4xbf16, #tpu.memory_space<vmem>>, vector<8x16x4xbf16>
    %c0_39 = arith.constant 0 : index
    %c0_40 = arith.constant 0 : index
    %c8 = arith.constant 8 : index
    %24 = vector.load %arg11[%c0_39, %c0_40, %c8] : memref<8x16x36xbf16, #tpu.memory_space<vmem>>, vector<8x16x4xbf16>
    tpu.vector_store %arg11[%c0_39, %c0_40, %c8], %23 {strides = array<i32>} : memref<8x16x36xbf16, #tpu.memory_space<vmem>>, vector<8x16x4xbf16>,
    %c1_41 = arith.constant 1 : index
    %c0_42 = arith.constant 0 : index
    %c0_43 = arith.constant 0 : index
    %25 = vector.load %arg10[%c1_41, %c0_42, %c0_43] : memref<10x18x4xbf16, #tpu.memory_space<vmem>>, vector<8x16x4xbf16>
    %c0_44 = arith.constant 0 : index
    %c0_45 = arith.constant 0 : index
    %c12 = arith.constant 12 : index
    %26 = vector.load %arg11[%c0_44, %c0_45, %c12] : memref<8x16x36xbf16, #tpu.memory_space<vmem>>, vector<8x16x4xbf16>
    tpu.vector_store %arg11[%c0_44, %c0_45, %c12], %25 {strides = array<i32>} : memref<8x16x36xbf16, #tpu.memory_space<vmem>>, vector<8x16x4xbf16>,
    %c1_46 = arith.constant 1 : index
    %c1_47 = arith.constant 1 : index
    %c0_48 = arith.constant 0 : index
    %27 = vector.load %arg10[%c1_46, %c1_47, %c0_48] : memref<10x18x4xbf16, #tpu.memory_space<vmem>>, vector<8x16x4xbf16>
    %c0_49 = arith.constant 0 : index
    %c0_50 = arith.constant 0 : index
    %c16 = arith.constant 16 : index
    %28 = vector.load %arg11[%c0_49, %c0_50, %c16] : memref<8x16x36xbf16, #tpu.memory_space<vmem>>, vector<8x16x4xbf16>
    tpu.vector_store %arg11[%c0_49, %c0_50, %c16], %27 {strides = array<i32>} : memref<8x16x36xbf16, #tpu.memory_space<vmem>>, vector<8x16x4xbf16>,
    %c1_51 = arith.constant 1 : index
    %c2_52 = arith.constant 2 : index
    %c0_53 = arith.constant 0 : index
    %29 = vector.load %arg10[%c1_51, %c2_52, %c0_53] : memref<10x18x4xbf16, #tpu.memory_space<vmem>>, vector<8x16x4xbf16>
    %c0_54 = arith.constant 0 : index
    %c0_55 = arith.constant 0 : index
    %c20 = arith.constant 20 : index
    %30 = vector.load %arg11[%c0_54, %c0_55, %c20] : memref<8x16x36xbf16, #tpu.memory_space<vmem>>, vector<8x16x4xbf16>
    tpu.vector_store %arg11[%c0_54, %c0_55, %c20], %29 {strides = array<i32>} : memref<8x16x36xbf16, #tpu.memory_space<vmem>>, vector<8x16x4xbf16>,
    %c2_56 = arith.constant 2 : index
    %c0_57 = arith.constant 0 : index
    %c0_58 = arith.constant 0 : index
    %31 = vector.load %arg10[%c2_56, %c0_57, %c0_58] : memref<10x18x4xbf16, #tpu.memory_space<vmem>>, vector<8x16x4xbf16>
    %c0_59 = arith.constant 0 : index
    %c0_60 = arith.constant 0 : index
    %c24 = arith.constant 24 : index
    %32 = vector.load %arg11[%c0_59, %c0_60, %c24] : memref<8x16x36xbf16, #tpu.memory_space<vmem>>, vector<8x16x4xbf16>
    tpu.vector_store %arg11[%c0_59, %c0_60, %c24], %31 {strides = array<i32>} : memref<8x16x36xbf16, #tpu.memory_space<vmem>>, vector<8x16x4xbf16>,
    %c2_61 = arith.constant 2 : index
    %c1_62 = arith.constant 1 : index
    %c0_63 = arith.constant 0 : index
    %33 = vector.load %arg10[%c2_61, %c1_62, %c0_63] : memref<10x18x4xbf16, #tpu.memory_space<vmem>>, vector<8x16x4xbf16>
    %c0_64 = arith.constant 0 : index
    %c0_65 = arith.constant 0 : index
    %c28 = arith.constant 28 : index
    %34 = vector.load %arg11[%c0_64, %c0_65, %c28] : memref<8x16x36xbf16, #tpu.memory_space<vmem>>, vector<8x16x4xbf16>
    tpu.vector_store %arg11[%c0_64, %c0_65, %c28], %33 {strides = array<i32>} : memref<8x16x36xbf16, #tpu.memory_space<vmem>>, vector<8x16x4xbf16>,
    %c2_66 = arith.constant 2 : index
    %c2_67 = arith.constant 2 : index
    %c0_68 = arith.constant 0 : index
    %35 = vector.load %arg10[%c2_66, %c2_67, %c0_68] : memref<10x18x4xbf16, #tpu.memory_space<vmem>>, vector<8x16x4xbf16>
    %c0_69 = arith.constant 0 : index
    %c0_70 = arith.constant 0 : index
    %c32 = arith.constant 32 : index
    %36 = vector.load %arg11[%c0_69, %c0_70, %c32] : memref<8x16x36xbf16, #tpu.memory_space<vmem>>, vector<8x16x4xbf16>
    tpu.vector_store %arg11[%c0_69, %c0_70, %c32], %35 {strides = array<i32>} : memref<8x16x36xbf16, #tpu.memory_space<vmem>>, vector<8x16x4xbf16>,
    %c0_71 = arith.constant 0 : index
    %c0_72 = arith.constant 0 : index
    %c0_73 = arith.constant 0 : index
    %37 = vector.load %arg11[%c0_71, %c0_72, %c0_73] : memref<8x16x36xbf16, #tpu.memory_space<vmem>>, vector<8x16x36xbf16>
    %38 = vector.shape_cast %37 : vector<8x16x36xbf16> to vector<128x36xbf16>
    %c0_74 = arith.constant 0 : index
    %c0_75 = arith.constant 0 : index
    %39 = vector.load %arg7[%c0_74, %c0_75] : memref<36x4xbf16, #tpu.memory_space<vmem>>, vector<36x4xbf16>
    %cst_76 = arith.constant dense<0.000000e+00> : vector<128x4xf32>
    %40 = tpu.matmul %38, %39, %cst_76 {dimension_numbers = #tpu.dot_dimension_numbers<[1], [0], [0], [1], [0, 0, 1, 1], [], []>} : vector<128x36xbf16>, vector<36x4xbf16>, vector<128x4xf32> -> vector<128x4xf32>
    %41 = arith.truncf %40 : vector<128x4xf32> to vector<128x4xbf16>
    %c0_77 = arith.constant 0 : index
    %c0_78 = arith.constant 0 : index
    %42 = vector.load %arg8[%c0_77, %c0_78] : memref<128x4xbf16, #tpu.memory_space<vmem>>, vector<128x4xbf16>
    tpu.vector_store %arg8[%c0_77, %c0_78], %41 {strides = array<i32>} : memref<128x4xbf16, #tpu.memory_space<vmem>>, vector<128x4xbf16>,
    %cst_79 = arith.constant dense<0.000000e+00> : vector<4xf32>
    %43 = vector.multi_reduction <add>, %40, %cst_79 [0] : vector<128x4xf32> to vector<4xf32>
    %44 = vector.shape_cast %43 : vector<4xf32> to vector<1x4xf32>
    %cst_80 = arith.constant 1.280000e+02 : f32
    %45 = vector.broadcast %cst_80 : f32 to vector<1x4xf32>
    %46 = arith.divf %44, %45 : vector<1x4xf32>
    %47 = vector.broadcast %46 : vector<1x4xf32> to vector<128x4xf32>
    %48 = arith.subf %40, %47 : vector<128x4xf32>
    %49 = arith.mulf %48, %48 : vector<128x4xf32>
    %cst_81 = arith.constant dense<0.000000e+00> : vector<4xf32>
    %50 = vector.multi_reduction <add>, %49, %cst_81 [0] : vector<128x4xf32> to vector<4xf32>
    %51 = vector.shape_cast %50 : vector<4xf32> to vector<1x4xf32>
    %cst_82 = arith.constant 0.000000e+00 : f32
    %52 = vector.broadcast %cst_82 : f32 to vector<8x4xf32>
    %c0_83 = arith.constant 0 : index
    %c0_84 = arith.constant 0 : index
    %53 = vector.load %arg9[%c0_83, %c0_84] : memref<8x4xf32, #tpu.memory_space<vmem>>, vector<8x4xf32>
    tpu.vector_store %arg9[%c0_83, %c0_84], %52 {strides = array<i32>} : memref<8x4xf32, #tpu.memory_space<vmem>>, vector<8x4xf32>,
    %c0_85 = arith.constant 0 : index
    %c0_86 = arith.constant 0 : index
    %54 = vector.load %arg9[%c0_85, %c0_86] : memref<8x4xf32, #tpu.memory_space<vmem>>, vector<1x4xf32>
    tpu.vector_store %arg9[%c0_85, %c0_86], %44 {strides = array<i32>} : memref<8x4xf32, #tpu.memory_space<vmem>>, vector<1x4xf32>,
    %c1_87 = arith.constant 1 : index
    %c0_88 = arith.constant 0 : index
    %55 = vector.load %arg9[%c1_87, %c0_88] : memref<8x4xf32, #tpu.memory_space<vmem>>, vector<1x4xf32>
    tpu.vector_store %arg9[%c1_87, %c0_88], %51 {strides = array<i32>} : memref<8x4xf32, #tpu.memory_space<vmem>>, vector<1x4xf32>,
    return
  }
  func.func @transform_0(%arg0: i32, %arg1: i32) -> (i32, i32, i32, i32) {
    %c8_i32 = arith.constant 8 : i32
    %0 = arith.muli %arg1, %c8_i32 : i32
    %c1_i32 = arith.constant 1 : i32
    %1 = arith.subi %0, %c1_i32 : i32
    %c0_i32 = arith.constant 0 : i32
    %2 = arith.maxsi %1, %c0_i32 : i32
    %c0_i32_0 = arith.constant 0 : i32
    %c0_i32_1 = arith.constant 0 : i32
    %c0_i32_2 = arith.constant 0 : i32
    return %arg0, %2, %c0_i32_0, %c0_i32_1 : i32, i32, i32, i32
  }
  func.func @transform_1(%arg0: i32, %arg1: i32) -> (i32, i32, i32, i32) {
    %c0_i32 = arith.constant 0 : i32
    %c0_i32_0 = arith.constant 0 : i32
    %c0_i32_1 = arith.constant 0 : i32
    return %arg0, %arg1, %c0_i32, %c0_i32_0 : i32, i32, i32, i32
  }
  func.func @transform_2(%arg0: i32, %arg1: i32) -> (i32, i32, i32, i32) {
    %c8_i32 = arith.constant 8 : i32
    %0 = arith.muli %arg1, %c8_i32 : i32
    %c8_i32_0 = arith.constant 8 : i32
    %1 = arith.addi %0, %c8_i32_0 : i32
    %c15_i32 = arith.constant 15 : i32
    %2 = arith.minsi %1, %c15_i32 : i32
    %c0_i32 = arith.constant 0 : i32
    %c0_i32_1 = arith.constant 0 : i32
    %c0_i32_2 = arith.constant 0 : i32
    return %arg0, %2, %c0_i32, %c0_i32_1 : i32, i32, i32, i32
  }
  func.func @transform_3(%arg0: i32, %arg1: i32) -> (i32, i32) {
    %c0_i32 = arith.constant 0 : i32
    %c0_i32_0 = arith.constant 0 : i32
    %c0_i32_1 = arith.constant 0 : i32
    return %c0_i32, %c0_i32_0 : i32, i32
  }
  func.func @transform_4(%arg0: i32, %arg1: i32) -> (i32, i32) {
    %c0_i32 = arith.constant 0 : i32
    %c0_i32_0 = arith.constant 0 : i32
    %c0_i32_1 = arith.constant 0 : i32
    return %c0_i32, %c0_i32_0 : i32, i32
  }
  func.func @transform_5(%arg0: i32, %arg1: i32) -> (i32, i32) {
    %c0_i32 = arith.constant 0 : i32
    %c0_i32_0 = arith.constant 0 : i32
    %c0_i32_1 = arith.constant 0 : i32
    return %c0_i32, %c0_i32_0 : i32, i32
  }
  func.func @transform_6(%arg0: i32, %arg1: i32) -> (i32, i32) {
    %c2_i32 = arith.constant 2 : i32
    %0 = arith.muli %arg0, %c2_i32 : i32
    %1 = arith.addi %0, %arg1 : i32
    %c0_i32 = arith.constant 0 : i32
    %c0_i32_0 = arith.constant 0 : i32
    return %1, %c0_i32 : i32, i32
  }
  func.func @transform_7(%arg0: i32, %arg1: i32) -> (i32, i32) {
    %c2_i32 = arith.constant 2 : i32
    %0 = arith.muli %arg0, %c2_i32 : i32
    %1 = arith.addi %0, %arg1 : i32
    %c0_i32 = arith.constant 0 : i32
    %c0_i32_0 = arith.constant 0 : i32
    return %1, %c0_i32 : i32, i32
  }
}

module attributes {stable_mosaic.version = 11 : i64} {
  func.func @conv_bn_stats_kernel(%arg0: i32, %arg1: i32, %arg2: memref<1x1x16x4xbf16, #tpu.memory_space<vmem>>, %arg3: memref<1x8x16x4xbf16, #tpu.memory_space<vmem>>, %arg4: memref<1x1x16x4xbf16, #tpu.memory_space<vmem>>, %arg5: memref<1x4xf32, #tpu.memory_space<vmem>>, %arg6: memref<1x4xf32, #tpu.memory_space<vmem>>, %arg7: memref<36x4xbf16, #tpu.memory_space<vmem>>, %arg8: memref<128x4xbf16, #tpu.memory_space<vmem>>, %arg9: memref<8x4xf32, #tpu.memory_space<vmem>>, %arg10: memref<10x18x4xbf16, #tpu.memory_space<vmem>>, %arg11: memref<8x16x36xbf16, #tpu.memory_space<vmem>>) attributes {dimension_semantics = [#tpu.dimension_semantics<parallel>, #tpu.dimension_semantics<parallel>], iteration_bounds = array<i64: 2, 2>, scalar_prefetch = 0 : i64, scratch_operands = 2 : i64, tpu.core_type = #tpu.core_type<tc>, window_params = [{transform_indices = @transform_0, window_bounds = array<i64: 1, 1, 16, 4>}, {transform_indices = @transform_1, window_bounds = array<i64: 1, 8, 16, 4>}, {transform_indices = @transform_2, window_bounds = array<i64: 1, 1, 16, 4>}, {pipeline_mode = #tpu.pipeline_mode<synchronous>, transform_indices = @transform_3, window_bounds = array<i64: 1, 4>}, {pipeline_mode = #tpu.pipeline_mode<synchronous>, transform_indices = @transform_4, window_bounds = array<i64: 1, 4>}, {pipeline_mode = #tpu.pipeline_mode<synchronous>, transform_indices = @transform_5, window_bounds = array<i64: 36, 4>}, {transform_indices = @transform_6, window_bounds = array<i64: 128, 4>}, {transform_indices = @transform_7, window_bounds = array<i64: 8, 4>}]} {
    %c0 = arith.constant 0 : index
    %c0_0 = arith.constant 0 : index
    %c0_1 = arith.constant 0 : index
    %c0_2 = arith.constant 0 : index
    %0 = vector.load %arg2[%c0, %c0_0, %c0_1, %c0_2] : memref<1x1x16x4xbf16, #tpu.memory_space<vmem>>, vector<1x1x16x4xbf16>
    %1 = vector.shape_cast %0 : vector<1x1x16x4xbf16> to vector<1x16x4xbf16>
    %2 = arith.extf %1 : vector<1x16x4xbf16> to vector<1x16x4xf32>
    %c0_3 = arith.constant 0 : index
    %c0_4 = arith.constant 0 : index
    %3 = vector.load %arg5[%c0_3, %c0_4] : memref<1x4xf32, #tpu.memory_space<vmem>>, vector<1x4xf32>
    %4 = vector.shape_cast %3 : vector<1x4xf32> to vector<1x1x4xf32>
    %5 = vector.broadcast %4 : vector<1x1x4xf32> to vector<1x16x4xf32>
    %6 = arith.mulf %2, %5 : vector<1x16x4xf32>
    %c0_5 = arith.constant 0 : index
    %c0_6 = arith.constant 0 : index
    %7 = vector.load %arg6[%c0_5, %c0_6] : memref<1x4xf32, #tpu.memory_space<vmem>>, vector<1x4xf32>
    %8 = vector.shape_cast %7 : vector<1x4xf32> to vector<1x1x4xf32>
    %9 = vector.broadcast %8 : vector<1x1x4xf32> to vector<1x16x4xf32>
    %10 = arith.addf %6, %9 : vector<1x16x4xf32>
    %cst = arith.constant 0.000000e+00 : f32
    %11 = vector.broadcast %cst : f32 to vector<1x16x4xf32>
    %12 = arith.maximumf %10, %11 : vector<1x16x4xf32>
    %13 = arith.truncf %12 : vector<1x16x4xf32> to vector<1x16x4xbf16>
    %c0_7 = arith.constant 0 : index
    %c1 = arith.constant 1 : index
    %c0_8 = arith.constant 0 : index
    %14 = vector.load %arg10[%c0_7, %c1, %c0_8] : memref<10x18x4xbf16, #tpu.memory_space<vmem>>, vector<1x16x4xbf16>
    tpu.vector_store %arg10[%c0_7, %c1, %c0_8], %13 {strides = array<i32>} : memref<10x18x4xbf16, #tpu.memory_space<vmem>>, vector<1x16x4xbf16>,
    %c0_9 = arith.constant 0 : index
    %c0_10 = arith.constant 0 : index
    %c0_11 = arith.constant 0 : index
    %c0_12 = arith.constant 0 : index
    %15 = vector.load %arg3[%c0_9, %c0_10, %c0_11, %c0_12] : memref<1x8x16x4xbf16, #tpu.memory_space<vmem>>, vector<1x8x16x4xbf16>
    %16 = vector.shape_cast %15 : vector<1x8x16x4xbf16> to vector<8x16x4xbf16>
    %17 = arith.extf %16 : vector<8x16x4xbf16> to vector<8x16x4xf32>
    %c0_13 = arith.constant 0 : index
    %c0_14 = arith.constant 0 : index
    %18 = vector.load %arg5[%c0_13, %c0_14] : memref<1x4xf32, #tpu.memory_space<vmem>>, vector<1x4xf32>
    %19 = vector.shape_cast %18 : vector<1x4xf32> to vector<1x1x4xf32>
    %20 = vector.broadcast %19 : vector<1x1x4xf32> to vector<8x16x4xf32>
    %21 = arith.mulf %17, %20 : vector<8x16x4xf32>
    %c0_15 = arith.constant 0 : index
    %c0_16 = arith.constant 0 : index
    %22 = vector.load %arg6[%c0_15, %c0_16] : memref<1x4xf32, #tpu.memory_space<vmem>>, vector<1x4xf32>
    %23 = vector.shape_cast %22 : vector<1x4xf32> to vector<1x1x4xf32>
    %24 = vector.broadcast %23 : vector<1x1x4xf32> to vector<8x16x4xf32>
    %25 = arith.addf %21, %24 : vector<8x16x4xf32>
    %cst_17 = arith.constant 0.000000e+00 : f32
    %26 = vector.broadcast %cst_17 : f32 to vector<8x16x4xf32>
    %27 = arith.maximumf %25, %26 : vector<8x16x4xf32>
    %28 = arith.truncf %27 : vector<8x16x4xf32> to vector<8x16x4xbf16>
    %c1_18 = arith.constant 1 : index
    %c1_19 = arith.constant 1 : index
    %c0_20 = arith.constant 0 : index
    %29 = vector.load %arg10[%c1_18, %c1_19, %c0_20] : memref<10x18x4xbf16, #tpu.memory_space<vmem>>, vector<8x16x4xbf16>
    tpu.vector_store %arg10[%c1_18, %c1_19, %c0_20], %28 {strides = array<i32>} : memref<10x18x4xbf16, #tpu.memory_space<vmem>>, vector<8x16x4xbf16>,
    %c0_21 = arith.constant 0 : index
    %c0_22 = arith.constant 0 : index
    %c0_23 = arith.constant 0 : index
    %c0_24 = arith.constant 0 : index
    %30 = vector.load %arg4[%c0_21, %c0_22, %c0_23, %c0_24] : memref<1x1x16x4xbf16, #tpu.memory_space<vmem>>, vector<1x1x16x4xbf16>
    %31 = vector.shape_cast %30 : vector<1x1x16x4xbf16> to vector<1x16x4xbf16>
    %32 = arith.extf %31 : vector<1x16x4xbf16> to vector<1x16x4xf32>
    %c0_25 = arith.constant 0 : index
    %c0_26 = arith.constant 0 : index
    %33 = vector.load %arg5[%c0_25, %c0_26] : memref<1x4xf32, #tpu.memory_space<vmem>>, vector<1x4xf32>
    %34 = vector.shape_cast %33 : vector<1x4xf32> to vector<1x1x4xf32>
    %35 = vector.broadcast %34 : vector<1x1x4xf32> to vector<1x16x4xf32>
    %36 = arith.mulf %32, %35 : vector<1x16x4xf32>
    %c0_27 = arith.constant 0 : index
    %c0_28 = arith.constant 0 : index
    %37 = vector.load %arg6[%c0_27, %c0_28] : memref<1x4xf32, #tpu.memory_space<vmem>>, vector<1x4xf32>
    %38 = vector.shape_cast %37 : vector<1x4xf32> to vector<1x1x4xf32>
    %39 = vector.broadcast %38 : vector<1x1x4xf32> to vector<1x16x4xf32>
    %40 = arith.addf %36, %39 : vector<1x16x4xf32>
    %cst_29 = arith.constant 0.000000e+00 : f32
    %41 = vector.broadcast %cst_29 : f32 to vector<1x16x4xf32>
    %42 = arith.maximumf %40, %41 : vector<1x16x4xf32>
    %43 = arith.truncf %42 : vector<1x16x4xf32> to vector<1x16x4xbf16>
    %c9 = arith.constant 9 : index
    %c1_30 = arith.constant 1 : index
    %c0_31 = arith.constant 0 : index
    %44 = vector.load %arg10[%c9, %c1_30, %c0_31] : memref<10x18x4xbf16, #tpu.memory_space<vmem>>, vector<1x16x4xbf16>
    tpu.vector_store %arg10[%c9, %c1_30, %c0_31], %43 {strides = array<i32>} : memref<10x18x4xbf16, #tpu.memory_space<vmem>>, vector<1x16x4xbf16>,
    %cst_32 = arith.constant 0.000000e+00 : bf16
    %45 = vector.broadcast %cst_32 : bf16 to vector<10x1x4xbf16>
    %c0_33 = arith.constant 0 : index
    %c0_34 = arith.constant 0 : index
    %c0_35 = arith.constant 0 : index
    %46 = vector.load %arg10[%c0_33, %c0_34, %c0_35] : memref<10x18x4xbf16, #tpu.memory_space<vmem>>, vector<10x1x4xbf16>
    tpu.vector_store %arg10[%c0_33, %c0_34, %c0_35], %45 {strides = array<i32>} : memref<10x18x4xbf16, #tpu.memory_space<vmem>>, vector<10x1x4xbf16>,
    %c0_36 = arith.constant 0 : index
    %c17 = arith.constant 17 : index
    %c0_37 = arith.constant 0 : index
    %47 = vector.load %arg10[%c0_36, %c17, %c0_37] : memref<10x18x4xbf16, #tpu.memory_space<vmem>>, vector<10x1x4xbf16>
    tpu.vector_store %arg10[%c0_36, %c17, %c0_37], %45 {strides = array<i32>} : memref<10x18x4xbf16, #tpu.memory_space<vmem>>, vector<10x1x4xbf16>,
    %cst_38 = arith.constant 0.000000e+00 : bf16
    %48 = vector.broadcast %cst_38 : bf16 to vector<1x18x4xbf16>
    %c0_i32 = arith.constant 0 : i32
    %49 = arith.cmpi eq, %arg1, %c0_i32 : i32
    %50 = arith.extui %49 : i1 to i32
    %c0_i32_39 = arith.constant 0 : i32
    %51 = arith.cmpi ne, %50, %c0_i32_39 : i32
    scf.if %51 {
      %c0_104 = arith.constant 0 : index
      %c0_105 = arith.constant 0 : index
      %c0_106 = arith.constant 0 : index
      %92 = vector.load %arg10[%c0_104, %c0_105, %c0_106] : memref<10x18x4xbf16, #tpu.memory_space<vmem>>, vector<1x18x4xbf16>
      tpu.vector_store %arg10[%c0_104, %c0_105, %c0_106], %48 {strides = array<i32>} : memref<10x18x4xbf16, #tpu.memory_space<vmem>>, vector<1x18x4xbf16>,
    } else {
    }
    %c1_i32 = arith.constant 1 : i32
    %52 = arith.cmpi eq, %arg1, %c1_i32 : i32
    %53 = arith.extui %52 : i1 to i32
    %c0_i32_40 = arith.constant 0 : i32
    %54 = arith.cmpi ne, %53, %c0_i32_40 : i32
    scf.if %54 {
      %c9_104 = arith.constant 9 : index
      %c0_105 = arith.constant 0 : index
      %c0_106 = arith.constant 0 : index
      %92 = vector.load %arg10[%c9_104, %c0_105, %c0_106] : memref<10x18x4xbf16, #tpu.memory_space<vmem>>, vector<1x18x4xbf16>
      tpu.vector_store %arg10[%c9_104, %c0_105, %c0_106], %48 {strides = array<i32>} : memref<10x18x4xbf16, #tpu.memory_space<vmem>>, vector<1x18x4xbf16>,
    } else {
    }
    %c0_41 = arith.constant 0 : index
    %c0_42 = arith.constant 0 : index
    %c0_43 = arith.constant 0 : index
    %55 = vector.load %arg10[%c0_41, %c0_42, %c0_43] : memref<10x18x4xbf16, #tpu.memory_space<vmem>>, vector<8x16x4xbf16>
    %c0_44 = arith.constant 0 : index
    %c0_45 = arith.constant 0 : index
    %c0_46 = arith.constant 0 : index
    %56 = vector.load %arg11[%c0_44, %c0_45, %c0_46] : memref<8x16x36xbf16, #tpu.memory_space<vmem>>, vector<8x16x4xbf16>
    tpu.vector_store %arg11[%c0_44, %c0_45, %c0_46], %55 {strides = array<i32>} : memref<8x16x36xbf16, #tpu.memory_space<vmem>>, vector<8x16x4xbf16>,
    %c0_47 = arith.constant 0 : index
    %c1_48 = arith.constant 1 : index
    %c0_49 = arith.constant 0 : index
    %57 = vector.load %arg10[%c0_47, %c1_48, %c0_49] : memref<10x18x4xbf16, #tpu.memory_space<vmem>>, vector<8x16x4xbf16>
    %c0_50 = arith.constant 0 : index
    %c0_51 = arith.constant 0 : index
    %c4 = arith.constant 4 : index
    %58 = vector.load %arg11[%c0_50, %c0_51, %c4] : memref<8x16x36xbf16, #tpu.memory_space<vmem>>, vector<8x16x4xbf16>
    tpu.vector_store %arg11[%c0_50, %c0_51, %c4], %57 {strides = array<i32>} : memref<8x16x36xbf16, #tpu.memory_space<vmem>>, vector<8x16x4xbf16>,
    %c0_52 = arith.constant 0 : index
    %c2 = arith.constant 2 : index
    %c0_53 = arith.constant 0 : index
    %59 = vector.load %arg10[%c0_52, %c2, %c0_53] : memref<10x18x4xbf16, #tpu.memory_space<vmem>>, vector<8x16x4xbf16>
    %c0_54 = arith.constant 0 : index
    %c0_55 = arith.constant 0 : index
    %c8 = arith.constant 8 : index
    %60 = vector.load %arg11[%c0_54, %c0_55, %c8] : memref<8x16x36xbf16, #tpu.memory_space<vmem>>, vector<8x16x4xbf16>
    tpu.vector_store %arg11[%c0_54, %c0_55, %c8], %59 {strides = array<i32>} : memref<8x16x36xbf16, #tpu.memory_space<vmem>>, vector<8x16x4xbf16>,
    %c1_56 = arith.constant 1 : index
    %c0_57 = arith.constant 0 : index
    %c0_58 = arith.constant 0 : index
    %61 = vector.load %arg10[%c1_56, %c0_57, %c0_58] : memref<10x18x4xbf16, #tpu.memory_space<vmem>>, vector<8x16x4xbf16>
    %c0_59 = arith.constant 0 : index
    %c0_60 = arith.constant 0 : index
    %c12 = arith.constant 12 : index
    %62 = vector.load %arg11[%c0_59, %c0_60, %c12] : memref<8x16x36xbf16, #tpu.memory_space<vmem>>, vector<8x16x4xbf16>
    tpu.vector_store %arg11[%c0_59, %c0_60, %c12], %61 {strides = array<i32>} : memref<8x16x36xbf16, #tpu.memory_space<vmem>>, vector<8x16x4xbf16>,
    %c1_61 = arith.constant 1 : index
    %c1_62 = arith.constant 1 : index
    %c0_63 = arith.constant 0 : index
    %63 = vector.load %arg10[%c1_61, %c1_62, %c0_63] : memref<10x18x4xbf16, #tpu.memory_space<vmem>>, vector<8x16x4xbf16>
    %c0_64 = arith.constant 0 : index
    %c0_65 = arith.constant 0 : index
    %c16 = arith.constant 16 : index
    %64 = vector.load %arg11[%c0_64, %c0_65, %c16] : memref<8x16x36xbf16, #tpu.memory_space<vmem>>, vector<8x16x4xbf16>
    tpu.vector_store %arg11[%c0_64, %c0_65, %c16], %63 {strides = array<i32>} : memref<8x16x36xbf16, #tpu.memory_space<vmem>>, vector<8x16x4xbf16>,
    %c1_66 = arith.constant 1 : index
    %c2_67 = arith.constant 2 : index
    %c0_68 = arith.constant 0 : index
    %65 = vector.load %arg10[%c1_66, %c2_67, %c0_68] : memref<10x18x4xbf16, #tpu.memory_space<vmem>>, vector<8x16x4xbf16>
    %c0_69 = arith.constant 0 : index
    %c0_70 = arith.constant 0 : index
    %c20 = arith.constant 20 : index
    %66 = vector.load %arg11[%c0_69, %c0_70, %c20] : memref<8x16x36xbf16, #tpu.memory_space<vmem>>, vector<8x16x4xbf16>
    tpu.vector_store %arg11[%c0_69, %c0_70, %c20], %65 {strides = array<i32>} : memref<8x16x36xbf16, #tpu.memory_space<vmem>>, vector<8x16x4xbf16>,
    %c2_71 = arith.constant 2 : index
    %c0_72 = arith.constant 0 : index
    %c0_73 = arith.constant 0 : index
    %67 = vector.load %arg10[%c2_71, %c0_72, %c0_73] : memref<10x18x4xbf16, #tpu.memory_space<vmem>>, vector<8x16x4xbf16>
    %c0_74 = arith.constant 0 : index
    %c0_75 = arith.constant 0 : index
    %c24 = arith.constant 24 : index
    %68 = vector.load %arg11[%c0_74, %c0_75, %c24] : memref<8x16x36xbf16, #tpu.memory_space<vmem>>, vector<8x16x4xbf16>
    tpu.vector_store %arg11[%c0_74, %c0_75, %c24], %67 {strides = array<i32>} : memref<8x16x36xbf16, #tpu.memory_space<vmem>>, vector<8x16x4xbf16>,
    %c2_76 = arith.constant 2 : index
    %c1_77 = arith.constant 1 : index
    %c0_78 = arith.constant 0 : index
    %69 = vector.load %arg10[%c2_76, %c1_77, %c0_78] : memref<10x18x4xbf16, #tpu.memory_space<vmem>>, vector<8x16x4xbf16>
    %c0_79 = arith.constant 0 : index
    %c0_80 = arith.constant 0 : index
    %c28 = arith.constant 28 : index
    %70 = vector.load %arg11[%c0_79, %c0_80, %c28] : memref<8x16x36xbf16, #tpu.memory_space<vmem>>, vector<8x16x4xbf16>
    tpu.vector_store %arg11[%c0_79, %c0_80, %c28], %69 {strides = array<i32>} : memref<8x16x36xbf16, #tpu.memory_space<vmem>>, vector<8x16x4xbf16>,
    %c2_81 = arith.constant 2 : index
    %c2_82 = arith.constant 2 : index
    %c0_83 = arith.constant 0 : index
    %71 = vector.load %arg10[%c2_81, %c2_82, %c0_83] : memref<10x18x4xbf16, #tpu.memory_space<vmem>>, vector<8x16x4xbf16>
    %c0_84 = arith.constant 0 : index
    %c0_85 = arith.constant 0 : index
    %c32 = arith.constant 32 : index
    %72 = vector.load %arg11[%c0_84, %c0_85, %c32] : memref<8x16x36xbf16, #tpu.memory_space<vmem>>, vector<8x16x4xbf16>
    tpu.vector_store %arg11[%c0_84, %c0_85, %c32], %71 {strides = array<i32>} : memref<8x16x36xbf16, #tpu.memory_space<vmem>>, vector<8x16x4xbf16>,
    %c0_86 = arith.constant 0 : index
    %c0_87 = arith.constant 0 : index
    %c0_88 = arith.constant 0 : index
    %73 = vector.load %arg11[%c0_86, %c0_87, %c0_88] : memref<8x16x36xbf16, #tpu.memory_space<vmem>>, vector<8x16x36xbf16>
    %74 = vector.shape_cast %73 : vector<8x16x36xbf16> to vector<128x36xbf16>
    %c0_89 = arith.constant 0 : index
    %c0_90 = arith.constant 0 : index
    %75 = vector.load %arg7[%c0_89, %c0_90] : memref<36x4xbf16, #tpu.memory_space<vmem>>, vector<36x4xbf16>
    %cst_91 = arith.constant dense<0.000000e+00> : vector<128x4xf32>
    %76 = tpu.matmul %74, %75, %cst_91 {dimension_numbers = #tpu.dot_dimension_numbers<[1], [0], [0], [1], [0, 0, 1, 1], [], []>} : vector<128x36xbf16>, vector<36x4xbf16>, vector<128x4xf32> -> vector<128x4xf32>
    %77 = arith.truncf %76 : vector<128x4xf32> to vector<128x4xbf16>
    %c0_92 = arith.constant 0 : index
    %c0_93 = arith.constant 0 : index
    %78 = vector.load %arg8[%c0_92, %c0_93] : memref<128x4xbf16, #tpu.memory_space<vmem>>, vector<128x4xbf16>
    tpu.vector_store %arg8[%c0_92, %c0_93], %77 {strides = array<i32>} : memref<128x4xbf16, #tpu.memory_space<vmem>>, vector<128x4xbf16>,
    %cst_94 = arith.constant dense<0.000000e+00> : vector<4xf32>
    %79 = vector.multi_reduction <add>, %76, %cst_94 [0] : vector<128x4xf32> to vector<4xf32>
    %80 = vector.shape_cast %79 : vector<4xf32> to vector<1x4xf32>
    %cst_95 = arith.constant 1.280000e+02 : f32
    %81 = vector.broadcast %cst_95 : f32 to vector<1x4xf32>
    %82 = arith.divf %80, %81 : vector<1x4xf32>
    %83 = vector.broadcast %82 : vector<1x4xf32> to vector<128x4xf32>
    %84 = arith.subf %76, %83 : vector<128x4xf32>
    %85 = arith.mulf %84, %84 : vector<128x4xf32>
    %cst_96 = arith.constant dense<0.000000e+00> : vector<4xf32>
    %86 = vector.multi_reduction <add>, %85, %cst_96 [0] : vector<128x4xf32> to vector<4xf32>
    %87 = vector.shape_cast %86 : vector<4xf32> to vector<1x4xf32>
    %cst_97 = arith.constant 0.000000e+00 : f32
    %88 = vector.broadcast %cst_97 : f32 to vector<8x4xf32>
    %c0_98 = arith.constant 0 : index
    %c0_99 = arith.constant 0 : index
    %89 = vector.load %arg9[%c0_98, %c0_99] : memref<8x4xf32, #tpu.memory_space<vmem>>, vector<8x4xf32>
    tpu.vector_store %arg9[%c0_98, %c0_99], %88 {strides = array<i32>} : memref<8x4xf32, #tpu.memory_space<vmem>>, vector<8x4xf32>,
    %c0_100 = arith.constant 0 : index
    %c0_101 = arith.constant 0 : index
    %90 = vector.load %arg9[%c0_100, %c0_101] : memref<8x4xf32, #tpu.memory_space<vmem>>, vector<1x4xf32>
    tpu.vector_store %arg9[%c0_100, %c0_101], %80 {strides = array<i32>} : memref<8x4xf32, #tpu.memory_space<vmem>>, vector<1x4xf32>,
    %c1_102 = arith.constant 1 : index
    %c0_103 = arith.constant 0 : index
    %91 = vector.load %arg9[%c1_102, %c0_103] : memref<8x4xf32, #tpu.memory_space<vmem>>, vector<1x4xf32>
    tpu.vector_store %arg9[%c1_102, %c0_103], %87 {strides = array<i32>} : memref<8x4xf32, #tpu.memory_space<vmem>>, vector<1x4xf32>,
    return
  }
  func.func @transform_0(%arg0: i32, %arg1: i32) -> (i32, i32, i32, i32) {
    %c8_i32 = arith.constant 8 : i32
    %0 = arith.muli %arg1, %c8_i32 : i32
    %c1_i32 = arith.constant 1 : i32
    %1 = arith.subi %0, %c1_i32 : i32
    %c0_i32 = arith.constant 0 : i32
    %2 = arith.maxsi %1, %c0_i32 : i32
    %c0_i32_0 = arith.constant 0 : i32
    %c0_i32_1 = arith.constant 0 : i32
    %c0_i32_2 = arith.constant 0 : i32
    return %arg0, %2, %c0_i32_0, %c0_i32_1 : i32, i32, i32, i32
  }
  func.func @transform_1(%arg0: i32, %arg1: i32) -> (i32, i32, i32, i32) {
    %c0_i32 = arith.constant 0 : i32
    %c0_i32_0 = arith.constant 0 : i32
    %c0_i32_1 = arith.constant 0 : i32
    return %arg0, %arg1, %c0_i32, %c0_i32_0 : i32, i32, i32, i32
  }
  func.func @transform_2(%arg0: i32, %arg1: i32) -> (i32, i32, i32, i32) {
    %c8_i32 = arith.constant 8 : i32
    %0 = arith.muli %arg1, %c8_i32 : i32
    %c8_i32_0 = arith.constant 8 : i32
    %1 = arith.addi %0, %c8_i32_0 : i32
    %c15_i32 = arith.constant 15 : i32
    %2 = arith.minsi %1, %c15_i32 : i32
    %c0_i32 = arith.constant 0 : i32
    %c0_i32_1 = arith.constant 0 : i32
    %c0_i32_2 = arith.constant 0 : i32
    return %arg0, %2, %c0_i32, %c0_i32_1 : i32, i32, i32, i32
  }
  func.func @transform_3(%arg0: i32, %arg1: i32) -> (i32, i32) {
    %c0_i32 = arith.constant 0 : i32
    %c0_i32_0 = arith.constant 0 : i32
    %c0_i32_1 = arith.constant 0 : i32
    return %c0_i32, %c0_i32_0 : i32, i32
  }
  func.func @transform_4(%arg0: i32, %arg1: i32) -> (i32, i32) {
    %c0_i32 = arith.constant 0 : i32
    %c0_i32_0 = arith.constant 0 : i32
    %c0_i32_1 = arith.constant 0 : i32
    return %c0_i32, %c0_i32_0 : i32, i32
  }
  func.func @transform_5(%arg0: i32, %arg1: i32) -> (i32, i32) {
    %c0_i32 = arith.constant 0 : i32
    %c0_i32_0 = arith.constant 0 : i32
    %c0_i32_1 = arith.constant 0 : i32
    return %c0_i32, %c0_i32_0 : i32, i32
  }
  func.func @transform_6(%arg0: i32, %arg1: i32) -> (i32, i32) {
    %c2_i32 = arith.constant 2 : i32
    %0 = arith.muli %arg0, %c2_i32 : i32
    %1 = arith.addi %0, %arg1 : i32
    %c0_i32 = arith.constant 0 : i32
    %c0_i32_0 = arith.constant 0 : i32
    return %1, %c0_i32 : i32, i32
  }
  func.func @transform_7(%arg0: i32, %arg1: i32) -> (i32, i32) {
    %c2_i32 = arith.constant 2 : i32
    %0 = arith.muli %arg0, %c2_i32 : i32
    %1 = arith.addi %0, %arg1 : i32
    %c0_i32 = arith.constant 0 : i32
    %c0_i32_0 = arith.constant 0 : i32
    return %1, %c0_i32 : i32, i32
  }
}

module attributes {stable_mosaic.version = 11 : i64} {
  func.func @bn_add_act_kernel(%arg0: i32, %arg1: memref<32x64xbf16, #tpu.memory_space<vmem>>, %arg2: memref<32x64xbf16, #tpu.memory_space<vmem>>, %arg3: memref<1x64xf32, #tpu.memory_space<vmem>>, %arg4: memref<1x64xf32, #tpu.memory_space<vmem>>, %arg5: memref<32x64xf32, #tpu.memory_space<vmem>>) attributes {dimension_semantics = [#tpu.dimension_semantics<parallel>], iteration_bounds = array<i64: 1>, scalar_prefetch = 0 : i64, scratch_operands = 0 : i64, tpu.core_type = #tpu.core_type<tc>, window_params = [{transform_indices = @transform_0, window_bounds = array<i64: 32, 64>}, {transform_indices = @transform_1, window_bounds = array<i64: 32, 64>}, {pipeline_mode = #tpu.pipeline_mode<synchronous>, transform_indices = @transform_2, window_bounds = array<i64: 1, 64>}, {pipeline_mode = #tpu.pipeline_mode<synchronous>, transform_indices = @transform_3, window_bounds = array<i64: 1, 64>}, {transform_indices = @transform_4, window_bounds = array<i64: 32, 64>}]} {
    %c0 = arith.constant 0 : index
    %c0_0 = arith.constant 0 : index
    %0 = vector.load %arg1[%c0, %c0_0] : memref<32x64xbf16, #tpu.memory_space<vmem>>, vector<32x64xbf16>
    %1 = arith.extf %0 : vector<32x64xbf16> to vector<32x64xf32>
    %c0_1 = arith.constant 0 : index
    %c0_2 = arith.constant 0 : index
    %2 = vector.load %arg3[%c0_1, %c0_2] : memref<1x64xf32, #tpu.memory_space<vmem>>, vector<1x64xf32>
    %3 = vector.broadcast %2 : vector<1x64xf32> to vector<32x64xf32>
    %4 = arith.mulf %1, %3 : vector<32x64xf32>
    %c0_3 = arith.constant 0 : index
    %c0_4 = arith.constant 0 : index
    %5 = vector.load %arg4[%c0_3, %c0_4] : memref<1x64xf32, #tpu.memory_space<vmem>>, vector<1x64xf32>
    %6 = vector.broadcast %5 : vector<1x64xf32> to vector<32x64xf32>
    %7 = arith.addf %4, %6 : vector<32x64xf32>
    %c0_5 = arith.constant 0 : index
    %c0_6 = arith.constant 0 : index
    %8 = vector.load %arg2[%c0_5, %c0_6] : memref<32x64xbf16, #tpu.memory_space<vmem>>, vector<32x64xbf16>
    %9 = arith.extf %8 : vector<32x64xbf16> to vector<32x64xf32>
    %10 = arith.addf %7, %9 : vector<32x64xf32>
    %cst = arith.constant 0.000000e+00 : f32
    %11 = vector.broadcast %cst : f32 to vector<32x64xf32>
    %12 = arith.maximumf %10, %11 : vector<32x64xf32>
    %c0_7 = arith.constant 0 : index
    %c0_8 = arith.constant 0 : index
    %13 = vector.load %arg5[%c0_7, %c0_8] : memref<32x64xf32, #tpu.memory_space<vmem>>, vector<32x64xf32>
    tpu.vector_store %arg5[%c0_7, %c0_8], %12 {strides = array<i32>} : memref<32x64xf32, #tpu.memory_space<vmem>>, vector<32x64xf32>,
    return
  }
  func.func @transform_0(%arg0: i32) -> (i32, i32) {
    %c0_i32 = arith.constant 0 : i32
    %c0_i32_0 = arith.constant 0 : i32
    return %arg0, %c0_i32 : i32, i32
  }
  func.func @transform_1(%arg0: i32) -> (i32, i32) {
    %c0_i32 = arith.constant 0 : i32
    %c0_i32_0 = arith.constant 0 : i32
    return %arg0, %c0_i32 : i32, i32
  }
  func.func @transform_2(%arg0: i32) -> (i32, i32) {
    %c0_i32 = arith.constant 0 : i32
    %c0_i32_0 = arith.constant 0 : i32
    %c0_i32_1 = arith.constant 0 : i32
    return %c0_i32, %c0_i32_0 : i32, i32
  }
  func.func @transform_3(%arg0: i32) -> (i32, i32) {
    %c0_i32 = arith.constant 0 : i32
    %c0_i32_0 = arith.constant 0 : i32
    %c0_i32_1 = arith.constant 0 : i32
    return %c0_i32, %c0_i32_0 : i32, i32
  }
  func.func @transform_4(%arg0: i32) -> (i32, i32) {
    %c0_i32 = arith.constant 0 : i32
    %c0_i32_0 = arith.constant 0 : i32
    return %arg0, %c0_i32 : i32, i32
  }
}

</mosaic_0001>

<bundles_post_ra>
// kernel: tile.13
= control target key start
LH: loop header
LB: loop body
LE: loop exit
PB: predicated region body
PF: predicated region fallthrough
CT: control target
= control target key end

     0   :  { %s28_s0 = inlined_call_operand.vmem [shape: f32[4], index: 0, kind: input, shape index: {}]   ;;  %s29_s1 = inlined_call_operand.vmem [shape: f32[16,4], index: 1, kind: output, shape index: {}]  }
   0x1   :  { %v4_v0 = vld [vmem:[%s28_s0] ss:$0 sm:$0xff] }
   0x2   :  { %5 = vst [vmem:[%s29_s1] sm:$0xff] %v4_v0  ;;  %8 = vst [vmem:[%s29_s1 + $0x8] sm:$0xff] %v4_v0 }

// kernel: tile.14
= control target key start
LH: loop header
LB: loop body
LE: loop exit
PB: predicated region body
PF: predicated region fallthrough
CT: control target
= control target key end

     0   :  { %s133_s10 = smov 60   ;;  %s134_s11 = smov 52   ;;  %vm3_vm0 = vcmask 31744   ;;  %vm9_vm1 = vcmask 523744   ;;  %vm15_vm2 = vcmask 490944   ;;  %vm21_vm3 = vcmask 458144   ;;  %s209_s0 = inlined_call_operand.vmem [shape: f32[16,4], index: 0, kind: input, shape index: {}]   ;;  %s210_s1 = inlined_call_operand.vmem [shape: f32[1,64], index: 1, kind: output, shape index: {}]  }
   0x1   :  { %v103_v0 = vld [vmem:[%s209_s0 + $0xf] sm:$0x1]   ;;  %v105_v1 = vld [vmem:[%s209_s0 + $0xd] sm:$0x1]   ;;  %v104_v2 = vld [vmem:[%s209_s0 + $0xe] sm:$0x1]  }
   0x2   :  { %7 = vrot.lane.b32.xlu0 %v103_v0, %s133_s10  ;;  %19 = vrot.lane.b32.xlu1 %v105_v1, %s134_s11  ;;  %v106_v3 = vld [vmem:[%s209_s0 + $0xc] sm:$0x1]   ;;  %s135_s16 = smov 56   ;;  %s136_s17 = smov 48   ;;  %v107_v4 = vld [vmem:[%s209_s0 + $0xb] sm:$0x1]  }
   0x3   :  { %v108_v5 = vld [vmem:[%s209_s0 + $0xa] sm:$0x1]   ;;  %v2_v6 = vld [vmem:[%s209_s0] sm:$0x1]   ;;  %s137_s24 = smov 44   ;;  %s138_s25 = smov 40  }
   0x4   :  { %4 = vst.msk [vmem:[#allocation0] sm:$0x1] %vm3_vm0, %v2_v6   ;;  %v109_v7 = vld [vmem:[%s209_s0 + $0x9] sm:$0x1]   ;;  %v110_v8 = vld [vmem:[%s209_s0 + $0x8] sm:$0x1]  }
   0x5   :  { %s139_s30 = smov 36   ;;  %s140_s2 = smov 32   ;;  %v111_v9 = vld [vmem:[%s209_s0 + $0x7] sm:$0x1]   ;;  %v112_v10 = vld [vmem:[%s209_s0 + $0x6] sm:$0x1]  }
   0x6   :  { %13 = vrot.lane.b32.xlu0 %v104_v2, %s135_s16  ;;  %25 = vrot.lane.b32.xlu1 %v106_v3, %s136_s17  ;;  %s141_s7 = smov 28   ;;  %s142_s8 = smov 24   ;;  %v113_v11 = vld [vmem:[%s209_s0 + $0x5] sm:$0x1]   ;;  %v114_v12 = vld [vmem:[%s209_s0 + $0x4] sm:$0x1]  }
   0x7   :  { %s143_s13 = smov 20   ;;  %s144_s14 = smov 16   ;;  %v115_v13 = vld [vmem:[%s209_s0 + $0x3] sm:$0x1]   ;;  %v116_v14 = vld [vmem:[%s209_s0 + $0x2] sm:$0x1]  }
   0x8   :  { %s145_s19 = smov 12   ;;  %s146_s20 = smov 8   ;;  %v117_v15 = vld [vmem:[%s209_s0 + $0x1] sm:$0x1]   ;;  %vm27_vm4 = vcmask 425344   ;;  %vm33_vm5 = vcmask 392544  }
   0x9   :  { %s147_s0 = smov 4   ;;  %vm39_vm6 = vcmask 359744   ;;  %vm45_vm7 = vcmask 326944   ;;  %vm51_vm8 = vcmask 294144   ;;  %vm57_vm9 = vcmask 261344  }
   0xa   :  { %31 = vrot.lane.b32.xlu0 %v107_v4, %s137_s24  ;;  %37 = vrot.lane.b32.xlu1 %v108_v5, %s138_s25  ;;  %vm63_vm10 = vcmask 228544   ;;  %vm69_vm11 = vcmask 195744   ;;  %vm75_vm12 = vcmask 162944   ;;  %vm81_vm13 = vcmask 130144  }
   0xb   :  { %vm87_vm14 = vcmask 97344   ;;  %vm93_vm15 = vcmask 64544  }
   0xe   :  { %43 = vrot.lane.b32.xlu0 %v109_v7, %s139_s30  ;;  %49 = vrot.lane.b32.xlu1 %v110_v8, %s140_s2 }
  0x12   :  { %55 = vrot.lane.b32.xlu0 %v111_v9, %s141_s7  ;;  %61 = vrot.lane.b32.xlu1 %v112_v10, %s142_s8 }
  0x16   :  { %67 = vrot.lane.b32.xlu0 %v113_v11, %s143_s13  ;;  %73 = vrot.lane.b32.xlu1 %v114_v12, %s144_s14 }
  0x1a   :  { %79 = vrot.lane.b32.xlu0 %v115_v13, %s145_s19  ;;  %85 = vrot.lane.b32.xlu1 %v116_v14, %s146_s20 }
  0x1e   :  { %91 = vrot.lane.b32.xlu0 %v117_v15, %s147_s0 }
  0x74   :  { %v8_v16 = vpop.permute.xlu0 %7   ;;  %v20_v17 = vpop.permute.xlu1 %19  }
  0x75   :  { %10 = vst.msk [vmem:[#allocation0] sm:$0x1] %vm9_vm1, %v8_v16  }
  0x78   :  { %v14_v18 = vpop.permute.xlu0 %13   ;;  %v26_v19 = vpop.permute.xlu1 %25  }
  0x79   :  { %16 = vst.msk [vmem:[#allocation0] sm:$0x1] %vm15_vm2, %v14_v18  }
  0x7a   :  { %22 = vst.msk [vmem:[#allocation0] sm:$0x1] %vm21_vm3, %v20_v17  }
  0x7b   :  { %28 = vst.msk [vmem:[#allocation0] sm:$0x1] %vm27_vm4, %v26_v19  }
  0x7c   :  { %v32_v20 = vpop.permute.xlu0 %31   ;;  %v38_v21 = vpop.permute.xlu1 %37  }
  0x7d   :  { %34 = vst.msk [vmem:[#allocation0] sm:$0x1] %vm33_vm5, %v32_v20  }
  0x7e   :  { %40 = vst.msk [vmem:[#allocation0] sm:$0x1] %vm39_vm6, %v38_v21  }
  0x80   :  { %v44_v22 = vpop.permute.xlu0 %43   ;;  %v50_v23 = vpop.permute.xlu1 %49  }
  0x81   :  { %46 = vst.msk [vmem:[#allocation0] sm:$0x1] %vm45_vm7, %v44_v22  }
  0x82   :  { %52 = vst.msk [vmem:[#allocation0] sm:$0x1] %vm51_vm8, %v50_v23  }
  0x84   :  { %v56_v24 = vpop.permute.xlu0 %55   ;;  %v62_v25 = vpop.permute.xlu1 %61  }
  0x85   :  { %58 = vst.msk [vmem:[#allocation0] sm:$0x1] %vm57_vm9, %v56_v24  }
  0x86   :  { %64 = vst.msk [vmem:[#allocation0] sm:$0x1] %vm63_vm10, %v62_v25  }
  0x88   :  { %v68_v26 = vpop.permute.xlu0 %67   ;;  %v74_v27 = vpop.permute.xlu1 %73  }
  0x89   :  { %70 = vst.msk [vmem:[#allocation0] sm:$0x1] %vm69_vm11, %v68_v26  }
  0x8a   :  { %76 = vst.msk [vmem:[#allocation0] sm:$0x1] %vm75_vm12, %v74_v27  }
  0x8c   :  { %v80_v28 = vpop.permute.xlu0 %79   ;;  %v86_v29 = vpop.permute.xlu1 %85  }
  0x8d   :  { %82 = vst.msk [vmem:[#allocation0] sm:$0x1] %vm81_vm13, %v80_v28  }
  0x8e   :  { %88 = vst.msk [vmem:[#allocation0] sm:$0x1] %vm87_vm14, %v86_v29  }
  0x90   :  { %v92_v30 = vpop.permute.xlu0 %91  }
  0x91   :  { %94 = vst.msk [vmem:[#allocation0] sm:$0x1] %vm93_vm15, %v92_v30  }
  0x98   :  { %v99_v31 = vld [vmem:[#allocation0] sm:$0x1] }
  0x99   :  { %102 = vst [vmem:[%s210_s1] sm:$0x1] %v99_v31 }

// kernel: _forward_jit.5
= control target key start
LH: loop header
LB: loop body
LE: loop exit
PB: predicated region body
PF: predicated region fallthrough
CT: control target
= control target key end

     0   :  { %vm63_vm0 = vcmask 523264   ;;  %s147_s0 = inlined_call_operand.vmem [shape: bf16[32,64], index: 0, kind: input, shape index: {}]   ;;  %s148_s1 = inlined_call_operand.vmem [shape: bf16[32,64], index: 1, kind: input, shape index: {}]   ;;  %s149_s2 = inlined_call_operand.vmem [shape: f32[1,64], index: 2, kind: input, shape index: {}]   ;;  %s150_s3 = inlined_call_operand.vmem [shape: f32[1,64], index: 3, kind: input, shape index: {}]   ;;  %s151_s4 = inlined_call_operand.vmem [shape: f32[32,64], index: 4, kind: output, shape index: {}]  }
   0x1   :  { %v75_v0 = vld [vmem:[%s147_s0] sm:$0xff]   ;;  %v90_v5 = vld [vmem:[%s147_s0 + $0x8] sm:$0xff]  }
   0x2   :  { %v72_v1 = vld [vmem:[%s149_s2] ss:$0 sm:$0xff]  ;;  %v76_v2 = vunpack.c.l.bf16 %v75_v0  ;;  %v77_v4 = vunpack.c.h.bf16 %v75_v0  ;;  %v91_v6 = vld [vmem:[%s148_s1 + $0x8] sm:$0xff]   ;;  %v80_v9 = vunpack.c.l.bf16 %v90_v5  ;;  %v81_v13 = vunpack.c.h.bf16 %v90_v5 }
   0x3   :  { %v83_v3 = vld [vmem:[%s148_s1] sm:$0xff]   ;;  %v88_v15 = vunpack.c.l.bf16 %v91_v6  ;;  %v89_v19 = vunpack.c.h.bf16 %v91_v6 }
   0x4   :  { %v73_v7 = vld [vmem:[%s150_s3] ss:$0 sm:$0xff]  ;;  %v84_v8 = vunpack.c.l.bf16 %v83_v3  ;;  %v32_v10 = vmul.f32 %v76_v2, %v72_v1  ;;  %v33_v11 = vmul.f32 %v77_v4, %v72_v1  ;;  %v85_v12 = vunpack.c.h.bf16 %v83_v3 }
   0x5   :  { %v34_v14 = vmul.f32 %v80_v9, %v72_v1  ;;  %v35_v18 = vmul.f32 %v81_v13, %v72_v1 }
   0x6   :  { %v43_v16 = vadd.f32 %v73_v7, %v32_v10  ;;  %v44_v17 = vadd.f32 %v73_v7, %v33_v11 }
   0x7   :  { %v45_v20 = vadd.f32 %v73_v7, %v34_v14  ;;  %v46_v23 = vadd.f32 %v73_v7, %v35_v18 }
   0x8   :  { %v55_v21 = vadd.f32 %v84_v8, %v43_v16  ;;  %v56_v22 = vadd.f32 %v85_v12, %v44_v17 }
   0x9   :  { %v57_v24 = vadd.f32 %v88_v15, %v45_v20  ;;  %v58_v27 = vadd.f32 %v89_v19, %v46_v23 }
   0xa   :  { %v59_v25 = vmax.f32 %v55_v21, 0.0  ;;  %v60_v26 = vmax.f32 %v56_v22, 0.0 }
   0xb   :  { %v61_v28 = vmax.f32 %v57_v24, 0.0  ;;  %v62_v29 = vmax.f32 %v58_v27, 0.0 }
   0xc   :  { %64 = vst.msk [vmem:[%s151_s4] sm:$0xff] %vm63_vm0, %v59_v25  ;;  %65 = vst.msk [vmem:[%s151_s4 + $0x8] sm:$0xff] %vm63_vm0, %v60_v26 }
   0xd   :  { %66 = vst.msk [vmem:[%s151_s4 + $0x10] sm:$0xff] %vm63_vm0, %v61_v28  ;;  %67 = vst.msk [vmem:[%s151_s4 + $0x18] sm:$0xff] %vm63_vm0, %v62_v29 }

// kernel: _forward_jit.3
= control target key start
LH: loop header
LB: loop body
LE: loop exit
PB: predicated region body
PF: predicated region fallthrough
CT: control target
= control target key end

     0   :  { %s3301_s24 = smov 0   ;;  %s3303_s25 = smov 0   ;;  %s4373_s0 = inlined_call_operand.vmem [shape: bf16[2,16,16,4], index: 0, kind: input, shape index: {}, may-alias: {0,1,2}]   ;;  %s4374_s1 = inlined_call_operand.vmem [shape: bf16[2,16,16,4], index: 1, kind: input, shape index: {}, may-alias: {0,1,2}]   ;;  %s4375_s2 = inlined_call_operand.vmem [shape: bf16[2,16,16,4], index: 2, kind: input, shape index: {}, may-alias: {0,1,2}]   ;;  %s4376_s3 = inlined_call_operand.vmem [shape: f32[1,4], index: 3, kind: input, shape index: {}]   ;;  %s4377_s4 = inlined_call_operand.vmem [shape: f32[1,4], index: 4, kind: input, shape index: {}]   ;;  %s4378_s5 = inlined_call_operand.vmem [shape: bf16[36,4], index: 5, kind: input, shape index: {}]   ;;  %s4379_s6 = inlined_call_operand.vmem [shape: bf16[512,4], index: 6, kind: output, shape index: {0}]   ;;  %s4380_s7 = inlined_call_operand.vmem [shape: f32[32,4], index: 7, kind: output, shape index: {1}]  }
   0x1   :  { %s3305_s26 = smov 0   ;;  %s3307_s27 = smov 0  }
   0x2   :  { %s3309_s3 = smov 0  }
   0x3 LB: > { %s27_s4 = sadd.s32 1, %s3240_s26  ;;  %s30_s28 = sadd.s32 1, %s3244_s27  ;;  %s3248_s3 = sphi %s3309_s3, %s18_s3   ;;  %s3244_s27 = sphi %s3307_s27, %s4397_s27   ;;  %s3240_s26 = sphi %s3305_s26, %s4396_s26   ;;  %s3236_s25 = sphi %s3303_s25, %s4395_s25   ;;  %s3232_s24 = sphi %s3301_s24, %s4394_s24  }
   0x4   : > { %p28_p0 = scmp.ge.s32.totalorder %s27_s4, 2  ;;  %p2999_p1 = scmp.ge.s32.totalorder %s3248_s3, 1 }
   0x5   : > { %p332_p2 = scmp.lt.s32.totalorder %s3248_s3, 5 }
   0x6   : > { %s4399_s4 = smov (%p28_p0, %s27_s4), 0  ;;  %s4401_s28 = smov (!%p28_p0, %s30_s28), %s3244_s27 }
   0x7   : > { %p333_p3 = pnand %p2999_p1, %p332_p2  ;;  %p32_p4 = scmp.ge.s32.totalorder %s4401_s28, 2 }
   0x8   : > { %s3336_s29 = sshll.u32 (!%p333_p3), %s3232_s24, 3  ;;  %p407_p5 = scmp.lt.s32.totalorder (!%p333_p3), %s3236_s25, 1 }
   0x9   : > { %s4403_s28 = smov (%p32_p4, %s4401_s28), 0  ;;  %336 = sbr.rel (%p333_p3) target bundleno = 745 (0x2e9), region = 44 }
   0xa   : > { %s3001_s30 = sadd.s32 (!%p333_p3), 4294967295, %s3336_s29  ;;  %p423_p6 = scmp.lt.s32.totalorder (!%p333_p3), %s3336_s29, 15 }
   0xb   : > { %p405_p7 = scmp.gt.s32.totalorder (!%p333_p3), %s3001_s30, 0  ;;  %p3002_p8 = scmp.lt.s32.totalorder (!%p333_p3), %s3001_s30, 15 }
   0xc   : > { %s3021_s10 = sshll.u32 (!%p333_p3), %s3236_s25, 1  ;;  %p3026_p12 = scmp.ne.s32.totalorder (!%p333_p3), %s3232_s24, 0 }
   0xd   : > { %s3347_s13 = sadd.s32 (!%p333_p3), %s3232_s24, %s3021_s10 }
   0xe   : > { %s408_s8 = scalar_select %p407_p5, %s3236_s25, 1  ;;  %vm469_vm0 = vsmask.f32 256  ;;  %vm492_vm1 = vcmask 27648   ;;  %vm493_vm2 = vsmask.f32 7938 }
   0xf   : > { %s4405_s30 = smov (!%p405_p7, %s3001_s30), 0  ;;  %vm500_vm3 = vcmask 24576   ;;  %p460_p10 = scmp.lt.s32.totalorder %s3347_s13, 3  ;;  %v495_v6 = vld [vmem:[#allocation2] sm:$0xf]  ;;  %vm3385_vm5 = vmand %vm492_vm1, %vm493_vm2 }
  0x10   : > { %s3342_s9 = sshll.u32 %s408_s8, 5  ;;  %s4407_s30 = smov (!%p3002_p8, %s4405_s30), 15  ;;  %v502_v7 = vld [vmem:[#allocation2 + $0x8] sm:$0x1]  ;;  %vm3374_vm4 = vmand %vm500_vm3, %vm469_vm0  ;;  %v682_v17 = vld [vmem:[#allocation2 + $0xc] sm:$0xf] }
  0x11   : > { %s424_s11 = scalar_select %p423_p6, %s3336_s29, 15  ;;  %v686_v25 = vld [vmem:[#allocation2 + $0x14] sm:$0x1]  ;;  %v689_v26 = vld [vmem:[#allocation2 + $0x18] sm:$0xf]  ;;  %vm3610_vm8 = vmand %vm500_vm3, %vm493_vm2 }
  0x12   : > { %s3007_s12 = sshll.u32 %s4407_s30, 1  ;;  %s3022_s30 = sshll.u32 %s3347_s13, 4  ;;  %v693_v31 = vld [vmem:[#allocation2 + $0x20] sm:$0x1]  ;;  %v696_v38 = vld [vmem:[#allocation2 + $0x24] sm:$0xf] }
  0x13   : > { %s413_s14 = sadd.s32 %s3342_s9, %s3007_s12  ;;  %s3011_s15 = sshll.u32 %s424_s11, 1  ;;  %v700_v48 = vld [vmem:[#allocation2 + $0x2c] sm:$0x1]  ;;  %v703_v56 = vld [vmem:[#allocation2 + $0x30] sm:$0xf] }
  0x14   : > { %s3009_s16 = sshll.u32 %s413_s14, 2  ;;  %s427_s17 = sadd.s32 %s3011_s15, %s3342_s9  ;;  %vm470_vm6 = vsmask.f32 4368 }
  0x15   : > { %s415_s20 = scalar_lea.vmem %s4373_s0, %s3009_s16  ;;  %s3013_s21 = sshll.u32 %s427_s17, 2  ;;  %vm3536_vm7 = vmor %vm469_vm0, %vm470_vm6 }
  0x16   : > { %s3357_s25 = scalar_lea.vmem %s4374_s1, %s3013_s21  ;;  %v467_v0 = vld [vmem:[%s415_s20] sm:$0xf]  ;;  %v3360_v1 = vld [vmem:[%s415_s20 + $0x4] sm:$0xf]  ;;  %p451_p9 = scmp.lt.s32.totalorder %s3022_s30, 63 }
  0x17   : > { %v473_v2 = vshrl.u32 %v467_v0, 16  ;;  %v476_v3 = vshll.u32 %v467_v0, 16  ;;  %v481_v4 = vshrl.u32 %v3360_v1, 16  ;;  %v484_v5 = vshll.u32 %v3360_v1, 16  ;;  %v505_v8 = vld [vmem:[%s3357_s25] sm:$0xf] }
  0x18   : > { %v3367_v9 = vld [vmem:[%s3357_s25 + $0x4] sm:$0xf]  ;;  %v507_v10 = vld [vmem:[%s3357_s25 + $0x8] sm:$0xf]  ;;  %s4409_s30 = smov (!%p451_p9, %s3022_s30), 63  ;;  %v522_v14 = vshrl.u32 %v505_v8, 16 }
  0x19   : > { %v3370_v11 = vrot.slane %v473_v2, 7  ;;  %v3378_v13 = vrot.slane %v481_v4, 7  ;;  %v525_v15 = vshll.u32 %v505_v8, 16  ;;  %s4411_s13 = smov (!%p460_p10, %s3347_s13), 3  ;;  %v530_v18 = vshrl.u32 %v3367_v9, 16  ;;  %s3023_s8 = sshll.u32 %s4409_s30, 2 }
  0x1a   : > { %v539_v19 = vshrl.u32 %v507_v10, 16  ;;  %v542_v20 = vshll.u32 %v507_v10, 16  ;;  %v3391_v21 = vld [vmem:[%s3357_s25 + $0xc] sm:$0xf]  ;;  %v3395_v24 = vrot.slane %v522_v14, 7  ;;  %s3402_s12 = scalar_lea.vmem %s4379_s6, %s3023_s8  ;;  %s3025_s14 = sshll.u32 %s4411_s13, 3 }
  0x1b   : > { %v478_v22 = vor.u32 %v476_v3, %v3370_v11  ;;  %v488_v23 = vrot.slane %v3378_v13, 4  ;;  %v547_v27 = vshrl.u32 %v3391_v21, 16  ;;  %v509_v28 = vld [vmem:[%s3357_s25 + $0x10] sm:$0xf]  ;;  %v3404_v29 = vrot.slane %v530_v18, 7  ;;  %s3411_s17 = scalar_lea.vmem %s4380_s7, %s3025_s14  ;;  %s432_s13 = sadd.s32 8, %s3336_s29 }
  0x1c   : > { %v3406_v30 = vrot.slane %v539_v19, 7  ;;  %v556_v32 = vshrl.u32 %v509_v28, 16  ;;  %v559_v33 = vshll.u32 %v509_v28, 16  ;;  %v527_v36 = vor.u32 %v525_v15, %v3395_v24  ;;  %v3421_v39 = vld [vmem:[%s3357_s25 + $0x14] sm:$0xf]  ;;  %p3433_p11 = scmp.lt.s32.totalorder %s432_s13, 15 }
  0x1d   : > { %v496_v34 = vsel %vm3385_vm5, %v478_v22, %v495_v6  ;;  %v503_v35 = vsel %vm3374_vm4, %v488_v23, %v502_v7  ;;  %v3418_v37 = vrot.slane %v547_v27, 7  ;;  %v511_v40 = vld [vmem:[%s3357_s25 + $0x18] sm:$0xf]  ;;  %v537_v41 = vrot.slane %v3404_v29, 4  ;;  %v3431_v45 = vld [vmem:[%s3357_s25 + $0x1c] sm:$0xf] }
  0x1e   : > { %497 = vst [vmem:[#allocation2] sm:$0xf] %v496_v34  ;;  %504 = vst [vmem:[#allocation2 + $0x8] sm:$0x1] %v503_v35  ;;  %v544_v42 = vor.u32 %v542_v20, %v3406_v30  ;;  %v3427_v43 = vrot.slane %v556_v32, 7  ;;  %v564_v44 = vshrl.u32 %v3421_v39, 16  ;;  %v683_v46 = vsel %vm3385_vm5, %v527_v36, %v682_v17 }
  0x1f   : > { %v554_v47 = vrot.slane %v3418_v37, 4  ;;  %v573_v49 = vshrl.u32 %v511_v40, 16  ;;  %v576_v50 = vshll.u32 %v511_v40, 16  ;;  %v513_v51 = vld [vmem:[%s3357_s25 + $0x20] sm:$0xf]  ;;  %v687_v52 = vsel %vm3374_vm4, %v537_v41, %v686_v25  ;;  %s4413_s13 = smov (!%p3433_p11, %s432_s13), 15 }
  0x20   : > { %684 = vst [vmem:[#allocation2 + $0xc] sm:$0xf] %v683_v46  ;;  %v690_v53 = vsel %vm3385_vm5, %v544_v42, %v689_v26  ;;  %v561_v54 = vor.u32 %v559_v33, %v3427_v43  ;;  %v3446_v55 = vrot.slane %v564_v44, 7  ;;  %v3449_v57 = vld [vmem:[%s3357_s25 + $0x24] sm:$0xf]  ;;  %v581_v61 = vshrl.u32 %v3431_v45, 16 }
  0x21   : > { %v515_v58 = vld [vmem:[%s3357_s25 + $0x28] sm:$0xf]  ;;  %688 = vst [vmem:[#allocation2 + $0x14] sm:$0x1] %v687_v52  ;;  %691 = vst [vmem:[#allocation2 + $0x18] sm:$0xf] %v690_v53  ;;  %v694_v59 = vsel %vm3374_vm4, %v554_v47, %v693_v31 }
  0x22   : > { %v3458_v60 = vrot.slane %v573_v49, 7  ;;  %v590_v62 = vshrl.u32 %v513_v51, 16  ;;  %v3462_v63 = vld [vmem:[%s3357_s25 + $0x2c] sm:$0xf]  ;;  %695 = vst [vmem:[#allocation2 + $0x20] sm:$0x1] %v694_v59  ;;  %v697_v0 = vsel %vm3385_vm5, %v561_v54, %v696_v38 }
  0x23   : > { %v571_v2 = vrot.slane %v3446_v55, 4  ;;  %v707_v3 = vld [vmem:[#allocation2 + $0x38] sm:$0x1]  ;;  %v593_v4 = vshll.u32 %v513_v51, 16  ;;  %v710_v6 = vld [vmem:[#allocation2 + $0x3c] sm:$0xf] }
  0x24   : > { %v598_v7 = vshrl.u32 %v3449_v57, 16  ;;  %s4415_s13 = smov (!%p3433_p11, %s4413_s13), 15  ;;  %698 = vst [vmem:[#allocation2 + $0x24] sm:$0xf] %v697_v0  ;;  %v578_v8 = vor.u32 %v576_v50, %v3458_v60  ;;  %v3472_v10 = vrot.slane %v581_v61, 7  ;;  %v3474_v14 = vrot.slane %v590_v62, 7 }
  0x25   : > { %v714_v15 = vld [vmem:[#allocation2 + $0x44] sm:$0x1]  ;;  %v607_v17 = vshrl.u32 %v515_v58, 16  ;;  %v517_v18 = vld [vmem:[%s3357_s25 + $0x30] sm:$0xf]  ;;  %v701_v19 = vsel %vm3374_vm4, %v571_v2, %v700_v48  ;;  %v610_v22 = vshll.u32 %v515_v58, 16 }
  0x26   : > { %v3479_v20 = vrot.slane %v598_v7, 7  ;;  %v717_v23 = vld [vmem:[#allocation2 + $0x48] sm:$0xf]  ;;  %v615_v25 = vshrl.u32 %v3462_v63, 16  ;;  %v3483_v26 = vld [vmem:[%s3357_s25 + $0x34] sm:$0xf]  ;;  %v704_v27 = vsel %vm3385_vm5, %v578_v8, %v703_v56  ;;  %v595_v31 = vor.u32 %v593_v4, %v3474_v14 }
  0x27   : > { %s3018_s29 = sshll.u32 %s4415_s13, 1  ;;  %702 = vst [vmem:[#allocation2 + $0x2c] sm:$0x1] %v701_v19  ;;  %v588_v28 = vrot.slane %v3472_v10, 4  ;;  %v3489_v32 = vrot.slane %v607_v17, 7  ;;  %v624_v38 = vshrl.u32 %v517_v18, 16 }
  0x28   : > { %v519_v33 = vld [vmem:[%s3357_s25 + $0x38] sm:$0xf]  ;;  %v3493_v34 = vld [vmem:[%s3357_s25 + $0x3c] sm:$0xf]  ;;  %s441_s19 = sadd.s32 %s3018_s29, %s3342_s9  ;;  %705 = vst [vmem:[#allocation2 + $0x30] sm:$0xf] %v704_v27  ;;  %v711_v42 = vsel %vm3385_vm5, %v595_v31, %v710_v6 }
  0x29   : > { %v605_v35 = vrot.slane %v3479_v20, 4  ;;  %v3497_v36 = vrot.slane %v615_v25, 7  ;;  %v627_v40 = vshll.u32 %v517_v18, 16  ;;  %s3020_s20 = sshll.u32 %s441_s19, 2  ;;  %v708_v41 = vsel %vm3374_vm4, %v588_v28, %v707_v3  ;;  %v721_v46 = vld [vmem:[#allocation2 + $0x50] sm:$0x1] }
  0x2a   : > { %v612_v44 = vor.u32 %v610_v22, %v3489_v32  ;;  %v724_v47 = vld [vmem:[#allocation2 + $0x54] sm:$0xf]  ;;  %v632_v48 = vshrl.u32 %v3483_v26, 16  ;;  %s443_s22 = scalar_lea.vmem %s4375_s2, %s3020_s20  ;;  %709 = vst [vmem:[#allocation2 + $0x38] sm:$0x1] %v708_v41  ;;  %v3511_v51 = vrot.slane %v624_v38, 7  ;;  %v486_v38 = vor.u32 %v484_v5, %v3378_v13 }
  0x2b   : > { %712 = vst [vmem:[#allocation2 + $0x3c] sm:$0xf] %v711_v42  ;;  %v715_v49 = vsel %vm3374_vm4, %v605_v35, %v714_v15  ;;  %v622_v50 = vrot.slane %v3497_v36, 4  ;;  %v641_v52 = vshrl.u32 %v519_v33, 16  ;;  %v738_v53 = vld [vmem:[%s443_s22] sm:$0xf] }
  0x2c   : > { %716 = vst [vmem:[#allocation2 + $0x44] sm:$0x1] %v715_v49  ;;  %v718_v54 = vsel %vm3385_vm5, %v612_v44, %v717_v23  ;;  %v3515_v56 = vrot.slane %v632_v48, 7  ;;  %v644_v58 = vshll.u32 %v519_v33, 16  ;;  %v649_v59 = vshrl.u32 %v3493_v34, 16 }
  0x2d   : > { %v3518_v61 = vld [vmem:[%s443_s22 + $0x4] sm:$0xf]  ;;  %719 = vst [vmem:[#allocation2 + $0x48] sm:$0xf] %v718_v54  ;;  %v722_v62 = vsel %vm3374_vm4, %v622_v50, %v721_v46  ;;  %v629_v0 = vor.u32 %v627_v40, %v3511_v51  ;;  %v728_v2 = vld [vmem:[#allocation2 + $0x5c] sm:$0x1] }
  0x2e   : > { %v3523_v3 = vrot.slane %v641_v52, 7  ;;  %v741_v4 = vshrl.u32 %v738_v53, 16  ;;  %723 = vst [vmem:[#allocation2 + $0x50] sm:$0x1] %v722_v62  ;;  %v639_v6 = vrot.slane %v3515_v56, 4  ;;  %v3526_v8 = vrot.slane %v649_v59, 7 }
  0x2f   : > { %v731_v7 = vld [vmem:[#allocation2 + $0x60] sm:$0xf]  ;;  %v744_v15 = vshll.u32 %v738_v53, 16  ;;  %v749_v17 = vshrl.u32 %v3518_v61, 16  ;;  %v725_v18 = vsel %vm3385_vm5, %v629_v0, %v724_v47  ;;  %v735_v22 = vld [vmem:[#allocation2 + $0x68] sm:$0x1] }
  0x30   : > { %v646_v19 = vor.u32 %v644_v58, %v3523_v3  ;;  %v3532_v23 = vrot.slane %v741_v4, 7  ;;  %v479_v27 = vrot.slane %v3370_v11, 4  ;;  %726 = vst [vmem:[#allocation2 + $0x54] sm:$0xf] %v725_v18  ;;  %v729_v28 = vsel %vm3374_vm4, %v639_v6, %v728_v2  ;;  %v761_v33 = vld [vmem:[#allocation2 + $0x6c] sm:$0xf] }
  0x31   : > { %v656_v31 = vrot.slane %v3526_v8, 4  ;;  %v3544_v35 = vrot.slane %v749_v17, 7  ;;  %730 = vst [vmem:[#allocation2 + $0x5c] sm:$0x1] %v729_v28  ;;  %v765_v11 = vld [vmem:[#allocation2 + $0x74] sm:$0x1] }
  0x32   : > { %v732_v40 = vsel %vm3385_vm5, %v646_v19, %v731_v7  ;;  %v746_v41 = vor.u32 %v744_v15, %v3532_v23  ;;  %v528_v42 = vrot.slane %v3395_v24, 4  ;;  %v533_v44 = vshll.u32 %v3367_v9, 16  ;;  %v768_v54 = vld [vmem:[#allocation2] sm:$0x1]  ;;  %v771_v58 = vld [vmem:[#allocation2 + $0xc] sm:$0x1] }
  0x33   : > { %733 = vst [vmem:[#allocation2 + $0x60] sm:$0xf] %v732_v40  ;;  %v736_v46 = vsel %vm3374_vm4, %v656_v31, %v735_v22  ;;  %v756_v47 = vrot.slane %v3544_v35, 4  ;;  %v487_v1 = vsel %vm3536_vm7, %v479_v27, %v486_v38  ;;  %v545_v5 = vrot.slane %v3406_v30, 4  ;;  %v774_v62 = vld [vmem:[#allocation2 + $0x18] sm:$0x1] }
  0x34   : > { %737 = vst [vmem:[#allocation2 + $0x68] sm:$0x1] %v736_v46  ;;  %v762_v13 = vsel %vm3385_vm5, %v746_v41, %v761_v33  ;;  %499 = vst.msk [vmem:[#allocation2 + $0x4] sm:$0xf] %vm492_vm1, %v487_v1  ;;  %v535_v24 = vor.u32 %v533_v44, %v3404_v29  ;;  %v550_v9 = vshll.u32 %v3391_v21, 16  ;;  %v562_v48 = vrot.slane %v3427_v43, 4 }
  0x35   : > { %763 = vst [vmem:[#allocation2 + $0x6c] sm:$0xf] %v762_v13  ;;  %v766_v49 = vsel %vm3374_vm4, %v756_v47, %v765_v11  ;;  %v567_v50 = vshll.u32 %v3421_v39, 16  ;;  %v579_v30 = vrot.slane %v3458_v60, 4  ;;  %v584_v52 = vshll.u32 %v3431_v45, 16 }
  0x36   : > { %767 = vst [vmem:[#allocation2 + $0x74] sm:$0x1] %v766_v49  ;;  %v536_v16 = vsel %vm3536_vm7, %v528_v42, %v535_v24  ;;  %v552_v29 = vor.u32 %v550_v9, %v3418_v37  ;;  %v596_v21 = vrot.slane %v3474_v14, 4  ;;  %v601_v43 = vshll.u32 %v3449_v57, 16  ;;  %v777_v0 = vld [vmem:[#allocation2 + $0x24] sm:$0x1] }
  0x37   : > { %685 = vst.msk [vmem:[#allocation2 + $0x10] sm:$0xf] %vm492_vm1, %v536_v16  ;;  %v569_v53 = vor.u32 %v567_v50, %v3446_v55  ;;  %v586_v39 = vor.u32 %v584_v52, %v3472_v10  ;;  %v613_v60 = vrot.slane %v3489_v32, 4  ;;  %v618_v45 = vshll.u32 %v3462_v63, 16  ;;  %v780_v2 = vld [vmem:[#allocation2 + $0x30] sm:$0x1] }
  0x38   : > { %v553_v59 = vsel %vm3536_vm7, %v545_v5, %v552_v29  ;;  %v603_v37 = vor.u32 %v601_v43, %v3479_v20  ;;  %v630_v14 = vrot.slane %v3511_v51, 4  ;;  %v635_v57 = vshll.u32 %v3483_v26, 16  ;;  %v783_v20 = vld [vmem:[#allocation2 + $0x3c] sm:$0x1]  ;;  %v786_v7 = vld [vmem:[#allocation2 + $0x48] sm:$0x1] }
  0x39   : > { %692 = vst.msk [vmem:[#allocation2 + $0x1c] sm:$0xf] %vm492_vm1, %v553_v59  ;;  %v570_v55 = vsel %vm3536_vm7, %v562_v48, %v569_v53  ;;  %v587_v63 = vsel %vm3536_vm7, %v579_v30, %v586_v39  ;;  %v620_v10 = vor.u32 %v618_v45, %v3497_v36  ;;  %v647_v32 = vrot.slane %v3523_v3, 4  ;;  %v789_v15 = vld [vmem:[#allocation2 + $0x54] sm:$0x1] }
  0x3a   : > { %699 = vst.msk [vmem:[#allocation2 + $0x28] sm:$0xf] %vm492_vm1, %v570_v55  ;;  %706 = vst.msk [vmem:[#allocation2 + $0x34] sm:$0xf] %vm492_vm1, %v587_v63  ;;  %v604_v26 = vsel %vm3536_vm7, %v596_v21, %v603_v37  ;;  %v637_v51 = vor.u32 %v635_v57, %v3515_v56  ;;  %v652_v4 = vshll.u32 %v3493_v34, 16  ;;  %v747_v6 = vrot.slane %v3532_v23, 4 }
  0x3b   : > { %v799_v36 = vld [vmem:[#allocation2 + $0x8] sm:$0x1]  ;;  %v802_v17 = vld [vmem:[#allocation2 + $0x14] sm:$0x1]  ;;  %v805_v3 = vld [vmem:[#allocation2 + $0x20] sm:$0x1]  ;;  %v621_v18 = vsel %vm3536_vm7, %v613_v60, %v620_v10 }
  0x3c   : > { %713 = vst.msk [vmem:[#allocation2 + $0x40] sm:$0xf] %vm492_vm1, %v604_v26  ;;  %v752_v19 = vshll.u32 %v3518_v61, 16  ;;  %v769_v22 = vsel %vm3374_vm4, 0, %v768_v54  ;;  %v772_v34 = vsel %vm3374_vm4, 0, %v771_v58  ;;  %v638_v61 = vsel %vm3536_vm7, %v630_v14, %v637_v51 }
  0x3d   : > { %v792_v56 = vld [vmem:[#allocation2 + $0x60] sm:$0x1]  ;;  %v808_v23 = vld [vmem:[#allocation2 + $0x2c] sm:$0x1]  ;;  %v811_v27 = vld [vmem:[#allocation2 + $0x38] sm:$0x1]  ;;  %v654_v38 = vor.u32 %v652_v4, %v3526_v8 }
  0x3e   : > { %v814_v28 = vld [vmem:[#allocation2 + $0x44] sm:$0x1]  ;;  %v817_v31 = vld [vmem:[#allocation2 + $0x50] sm:$0x1]  ;;  %720 = vst.msk [vmem:[#allocation2 + $0x4c] sm:$0xf] %vm492_vm1, %v621_v18  ;;  %v754_v44 = vor.u32 %v752_v19, %v3544_v35 }
  0x3f   : > { %770 = vst [vmem:[#allocation2] sm:$0x1] %v769_v22  ;;  %773 = vst [vmem:[#allocation2 + $0xc] sm:$0x1] %v772_v34  ;;  %v775_v40 = vsel %vm3374_vm4, 0, %v774_v62  ;;  %v778_v41 = vsel %vm3374_vm4, 0, %v777_v0  ;;  %v655_v5 = vsel %vm3536_vm7, %v647_v32, %v654_v38 }
  0x40   : > { %v795_v11 = vld [vmem:[#allocation2 + $0x6c] sm:$0x1]  ;;  %v820_v42 = vld [vmem:[#allocation2 + $0x5c] sm:$0x1]  ;;  %727 = vst.msk [vmem:[#allocation2 + $0x58] sm:$0xf] %vm492_vm1, %v638_v61  ;;  %v755_v48 = vsel %vm3536_vm7, %v747_v6, %v754_v44 }
  0x41   : > { %776 = vst [vmem:[#allocation2 + $0x18] sm:$0x1] %v775_v40  ;;  %779 = vst [vmem:[#allocation2 + $0x24] sm:$0x1] %v778_v41  ;;  %v781_v46 = vsel %vm3374_vm4, 0, %v780_v2  ;;  %v784_v8 = vsel %vm3374_vm4, 0, %v783_v20 }
  0x42   : > { %v787_v47 = vsel %vm3374_vm4, 0, %v786_v7  ;;  %v823_v1 = vld [vmem:[#allocation2 + $0x68] sm:$0x1]  ;;  %782 = vst [vmem:[#allocation2 + $0x30] sm:$0x1] %v781_v46  ;;  %v790_v35 = vsel %vm3374_vm4, 0, %v789_v15 }
  0x43   : > { %785 = vst [vmem:[#allocation2 + $0x3c] sm:$0x1] %v784_v8  ;;  %788 = vst [vmem:[#allocation2 + $0x48] sm:$0x1] %v787_v47  ;;  %v793_v13 = vsel %vm3374_vm4, 0, %v792_v56  ;;  %v796_v24 = vsel %vm3374_vm4, 0, %v795_v11 }
  0x44   : > { %v826_v9 = vld [vmem:[#allocation2 + $0x74] sm:$0x1]  ;;  %734 = vst.msk [vmem:[#allocation2 + $0x64] sm:$0xf] %vm492_vm1, %v655_v5  ;;  %791 = vst [vmem:[#allocation2 + $0x54] sm:$0x1] %v790_v35 }
  0x45   : > { %794 = vst [vmem:[#allocation2 + $0x60] sm:$0x1] %v793_v13  ;;  %797 = vst [vmem:[#allocation2 + $0x6c] sm:$0x1] %v796_v24  ;;  %v800_v49 = vsel %vm3610_vm8, 0, %v799_v36  ;;  %v803_v50 = vsel %vm3610_vm8, 0, %v802_v17 }
  0x46   : > { %v806_v30 = vsel %vm3610_vm8, 0, %v805_v3  ;;  %764 = vst.msk [vmem:[#allocation2 + $0x70] sm:$0xf] %vm492_vm1, %v755_v48  ;;  %801 = vst [vmem:[#allocation2 + $0x8] sm:$0x1] %v800_v49  ;;  %v809_v12 = vsel %vm3610_vm8, 0, %v808_v23 }
  0x47   : > { %804 = vst [vmem:[#allocation2 + $0x14] sm:$0x1] %v803_v50  ;;  %807 = vst [vmem:[#allocation2 + $0x20] sm:$0x1] %v806_v30  ;;  %v812_v25 = vsel %vm3610_vm8, 0, %v811_v27  ;;  %v815_v52 = vsel %vm3610_vm8, 0, %v814_v28 }
  0x48   : > { %v818_v16 = vsel %vm3610_vm8, 0, %v817_v31  ;;  %810 = vst [vmem:[#allocation2 + $0x2c] sm:$0x1] %v809_v12  ;;  %813 = vst [vmem:[#allocation2 + $0x38] sm:$0x1] %v812_v25  ;;  %v821_v29 = vsel %vm3610_vm8, 0, %v820_v42 }
  0x49   : > { %816 = vst [vmem:[#allocation2 + $0x44] sm:$0x1] %v815_v52  ;;  %819 = vst [vmem:[#allocation2 + $0x50] sm:$0x1] %v818_v16  ;;  %v824_v21 = vsel %vm3610_vm8, 0, %v823_v1  ;;  %v827_v43 = vsel %vm3610_vm8, 0, %v826_v9 }
  0x4a   : > { %822 = vst [vmem:[#allocation2 + $0x5c] sm:$0x1] %v821_v29  ;;  %825 = vst [vmem:[#allocation2 + $0x68] sm:$0x1] %v824_v21  ;;  %832 = sbr.rel (%p3026_p12) target bundleno = 82 (0x52), region = 48 }
  0x4b   : > { %828 = vst [vmem:[#allocation2 + $0x74] sm:$0x1] %v827_v43 }
  0x4f   : > { %v3250_v53 = vmov 0  }
  0x50   : > { %833 = vst.msk [vmem:[#allocation2] sm:$0xf] %vm492_vm1, %v3250_v53  ;;  %834 = vst.msk [vmem:[#allocation2 + $0x4] sm:$0xf] %vm492_vm1, %v3250_v53 }
  0x51   : > { %836 = vst.msk [vmem:[#allocation2 + $0x8] sm:$0x1] %vm500_vm3, %v3250_v53 }
  0x52 PF: > { %p3027_p13 = scmp.ne.s32.totalorder %s3232_s24, 1 }
  0x54   : > { %840 = sbr.rel (%p3027_p13) target bundleno = 92 (0x5c), region = 52 }
  0x59   : > { %v3251_v39 = vmov 0  }
  0x5a   : > { %841 = vst.msk [vmem:[#allocation2 + $0x6c] sm:$0xf] %vm492_vm1, %v3251_v39  ;;  %842 = vst.msk [vmem:[#allocation2 + $0x70] sm:$0xf] %vm492_vm1, %v3251_v39 }
  0x5b   : > { %844 = vst.msk [vmem:[#allocation2 + $0x74] sm:$0x1] %vm500_vm3, %v3251_v39 }
  0x5c PF: > { %v1162_v60 = vld [vmem:[#allocation2 + $0x4] sm:$0xf]  ;;  %v1163_v45 = vld [vmem:[#allocation2 + $0x8] sm:$0x1]  ;;  %vm1209_vm9 = vcmask 1042432   ;;  %vm1210_vm10 = vcmask 1046532  }
  0x5d   : > { %vm3670_vm11 = vmor %vm1209_vm9, %vm1210_vm10  ;;  %v1214_v58 = vrot.slane %v1162_v60, 5  ;;  %v1217_v59 = vrot.slane %v1163_v45, 5  ;;  %v1161_v37 = vld [vmem:[#allocation2] sm:$0xe]  ;;  %v880_v57 = vld [vmem:[#allocation2 + $0xc] sm:$0xf] }
  0x5e   : > { %v3028_v14 = vrot.slane %v1161_v37, 9  ;;  %v881_v62 = vld [vmem:[#allocation2 + $0x10] sm:$0xf]  ;;  %vm901_vm12 = vsmask.f32 3328  ;;  %v929_v55 = vshrl.u32 %v880_v57, 16 }
  0x5f   : > { %v1216_v0 = vrot.slane %v1214_v58, 4  ;;  %vm902_vm13 = vsmask.f32 7440  ;;  %v932_v10 = vshll.u32 %v880_v57, 16  ;;  %v938_v32 = vshll.u32 %v881_v62, 16  ;;  %s3252_s24 = smov 8  }
  0x60   : > { %v1215_v63 = vsel %vm3670_vm11, %v3028_v14, %v1214_v58  ;;  %v942_v2 = vshrl.u32 %v881_v62, 16  ;;  %v877_v20 = vld [vmem:[#allocation2] sm:$0xf]  ;;  %v931_v51 = vrot.slane %v929_v55, 4  ;;  %v878_v4 = vld [vmem:[#allocation2 + $0x4] sm:$0xf]  ;;  %vm3682_vm14 = vmor %vm901_vm12, %vm902_vm13 }
  0x61   : > { %v1218_v26 = vsel %vm3670_vm11, %v1216_v0, %v1217_v59  ;;  %1268 = vrot.lane.b32.xlu0 %v1215_v63, %s3252_s24  ;;  %v905_v6 = vshrl.u32 %v877_v20, 16  ;;  %v908_v7 = vshll.u32 %v877_v20, 16  ;;  %v934_v15 = vrot.slane %v932_v10, 5  ;;  %v882_v18 = vld [vmem:[#allocation2 + $0x14] sm:$0x1]  ;;  %s3253_s23 = smov 4  }
  0x62   : > { %1270 = vrot.lane.b32.xlu1 %v1218_v26, %s3252_s24  ;;  %v940_v36 = vrot.slane %v938_v32, 5  ;;  %v914_v17 = vshll.u32 %v878_v4, 16  ;;  %v918_v3 = vshrl.u32 %v878_v4, 16  ;;  %v944_v34 = vrot.slane %v942_v2, 4  ;;  %v879_v23 = vld [vmem:[#allocation2 + $0x8] sm:$0x1] }
  0x63   : > { %v907_v19 = vrot.slane %v905_v6, 4  ;;  %v910_v22 = vrot.slane %v908_v7, 5  ;;  %v948_v56 = vshll.u32 %v882_v18, 16  ;;  %v935_v27 = vor.u32 %v934_v15, %v931_v51  ;;  %v1165_v61 = vld [vmem:[#allocation2 + $0x10] sm:$0xf]  ;;  %s3254_s25 = smov 12  }
  0x64   : > { %v916_v28 = vrot.slane %v914_v17, 5  ;;  %v920_v31 = vrot.slane %v918_v3, 4  ;;  %v924_v33 = vshll.u32 %v879_v23, 16  ;;  %v945_v41 = vor.u32 %v944_v34, %v940_v36  ;;  %v1166_v11 = vld [vmem:[#allocation2 + $0x14] sm:$0x1]  ;;  %s3255_s30 = smov 16  }
  0x65   : > { %v911_v40 = vor.u32 %v910_v22, %v907_v19  ;;  %v1221_v42 = vrot.slane %v1165_v61, 5  ;;  %v936_v44 = vrot.slane %v935_v27, 4  ;;  %v950_v46 = vrot.slane %v948_v56, 5  ;;  %v1164_v47 = vld [vmem:[#allocation2 + $0xc] sm:$0xe]  ;;  %s3256_s8 = smov 20  }
  0x66   : > { %v921_v8 = vor.u32 %v920_v31, %v916_v28  ;;  %v946_v5 = vrot.slane %v945_v41, 4  ;;  %v926_v35 = vrot.slane %v924_v33, 5  ;;  %v1224_v9 = vrot.slane %v1166_v11, 5  ;;  %v1431_v30 = vld [vmem:[#allocation2 + $0x10] sm:$0xf]  ;;  %s3257_s10 = smov 24  }
  0x67   : > { %v912_v1 = vrot.slane %v911_v40, 4  ;;  %v941_v13 = vsel %vm3682_vm14, %v936_v44, %v940_v36  ;;  %v1223_v49 = vrot.slane %v1221_v42, 4  ;;  %v3029_v50 = vrot.slane %v1164_v47, 9  ;;  %v1430_v12 = vld [vmem:[#allocation2 + $0xc] sm:$0xf]  ;;  %s3258_s11 = smov 28  }
  0x68   : > { %v922_v24 = vrot.slane %v921_v8, 4  ;;  %1100 = vrot.lane.b32.xlu1 %v941_v13, %s3253_s23  ;;  %v951_v25 = vsel %vm3682_vm14, %v946_v5, %v950_v46  ;;  %v1464_v52 = vshll.u32 %v1431_v30, 16  ;;  %v1468_v16 = vshrl.u32 %v1431_v30, 16  ;;  %v1434_v53 = vld [vmem:[#allocation2 + $0x1c] sm:$0xf]  ;;  %s3259_s14 = smov 32  }
  0x69   : > { %v917_v48 = vsel %vm3682_vm14, %v912_v1, %v916_v28  ;;  %v1455_v21 = vshrl.u32 %v1430_v12, 16  ;;  %v1458_v43 = vshll.u32 %v1430_v12, 16  ;;  %v1433_v39 = vld [vmem:[#allocation2 + $0x18] sm:$0xf]  ;;  %v1225_v60 = vsel %vm3670_vm11, %v1223_v49, %v1224_v9  ;;  %v1432_v57 = vld [vmem:[#allocation2 + $0x14] sm:$0x1] }
  0x6a   : > { %1096 = vrot.lane.b32.xlu0 %v917_v48, %s3253_s23  ;;  %v927_v29 = vsel %vm3682_vm14, %v922_v24, %v926_v35  ;;  %v1222_v45 = vsel %vm3670_vm11, %v3029_v50, %v1221_v42  ;;  %v1466_v58 = vrot.slane %v1464_v52, 5  ;;  %v1470_v59 = vrot.slane %v1468_v16, 4  ;;  %v1334_v10 = vld [vmem:[#allocation2 + $0x10] sm:$0xf]  ;;  %v1333_v51 = vld [vmem:[#allocation2 + $0xc] sm:$0xf] }
  0x6b   : > { %v1488_v37 = vshll.u32 %v1434_v53, 16  ;;  %v1492_v14 = vshrl.u32 %v1434_v53, 16  ;;  %v1457_v62 = vrot.slane %v1455_v21, 4  ;;  %v1460_v0 = vrot.slane %v1458_v43, 5  ;;  %v1435_v6 = vld [vmem:[#allocation2 + $0x20] sm:$0x1] }
  0x6c   : > { %1102 = vrot.lane.b32.xlu1 %v951_v25, %s3253_s23  ;;  %v1479_v55 = vshrl.u32 %v1433_v39, 16  ;;  %v1482_v63 = vshll.u32 %v1433_v39, 16  ;;  %v1471_v32 = vor.u32 %v1470_v59, %v1466_v58  ;;  %v1474_v2 = vshll.u32 %v1432_v57, 16  ;;  %v1336_v36 = vld [vmem:[#allocation2 + $0x1c] sm:$0xf] }
  0x6d   : > { %v1490_v20 = vrot.slane %v1488_v37, 5  ;;  %v1494_v26 = vrot.slane %v1492_v14, 4  ;;  %v1461_v4 = vor.u32 %v1460_v0, %v1457_v62  ;;  %v1498_v19 = vshll.u32 %v1435_v6, 16  ;;  %v1335_v22 = vld [vmem:[#allocation2 + $0x18] sm:$0xf] }
  0x6e   : > { %1098 = vrot.lane.b32.xlu0 %v927_v29, %s3253_s23  ;;  %v1481_v7 = vrot.slane %v1479_v55, 4  ;;  %v1484_v15 = vrot.slane %v1482_v63, 5  ;;  %v1472_v17 = vrot.slane %v1471_v32, 4  ;;  %v1476_v3 = vrot.slane %v1474_v2, 5  ;;  %v1712_v23 = vld [vmem:[#allocation2 + $0x10] sm:$0xf] }
  0x6f   : > { %v1495_v18 = vor.u32 %v1494_v26, %v1490_v20  ;;  %v1462_v34 = vrot.slane %v1461_v4, 4  ;;  %v1500_v31 = vrot.slane %v1498_v19, 5  ;;  %v1761_v33 = vrot.slane %v1712_v23, 5  ;;  %v1715_v61 = vld [vmem:[#allocation2 + $0x1c] sm:$0xf] }
  0x70   : > { %1274 = vrot.lane.b32.xlu1 %v1225_v60, %s3252_s24  ;;  %v1485_v56 = vor.u32 %v1484_v15, %v1481_v7  ;;  %v1477_v27 = vsel %vm3682_vm14, %v1472_v17, %v1476_v3  ;;  %v1713_v11 = vld [vmem:[#allocation2 + $0x14] sm:$0x1]  ;;  %v1711_v42 = vld [vmem:[#allocation2 + $0xc] sm:$0xe]  ;;  %v1768_v44 = vrot.slane %v1715_v61, 5  ;;  %vm2529_vm15 = vcmask 1041408  }
  0x71   : > { %v1496_v28 = vrot.slane %v1495_v18, 4  ;;  %v1467_v40 = vsel %vm3682_vm14, %v1462_v34, %v1466_v58  ;;  %v1763_v8 = vrot.slane %v1761_v33, 4  ;;  %v1764_v47 = vrot.slane %v1713_v11, 5  ;;  %v1716_v1 = vld [vmem:[#allocation2 + $0x20] sm:$0x1] }
  0x72   : > { %1272 = vrot.lane.b32.xlu0 %v1222_v45, %s3252_s24  ;;  %v1486_v41 = vrot.slane %v1485_v56, 4  ;;  %v1714_v5 = vld [vmem:[#allocation2 + $0x18] sm:$0xe]  ;;  %v3036_v13 = vrot.slane %v1711_v42, 9  ;;  %v1979_v24 = vld [vmem:[#allocation2 + $0x1c] sm:$0xf] }
  0x73   : > { %v1501_v46 = vsel %vm3682_vm14, %v1496_v28, %v1500_v31  ;;  %v1978_v9 = vld [vmem:[#allocation2 + $0x18] sm:$0xf]  ;;  %v1770_v48 = vrot.slane %v1768_v44, 4  ;;  %v1771_v49 = vrot.slane %v1716_v1, 5  ;;  %v3037_v50 = vrot.slane %v1714_v5, 9 }
  0x74   : > { %1367 = vrot.lane.b32.xlu1 %v1334_v10, %s3254_s25  ;;  %v1491_v35 = vsel %vm3682_vm14, %v1486_v41, %v1490_v20  ;;  %v1765_v30 = vsel %vm3670_vm11, %v1763_v8, %v1764_v47  ;;  %v2012_v12 = vshll.u32 %v1979_v24, 16  ;;  %v2016_v25 = vshrl.u32 %v1979_v24, 16  ;;  %v1982_v21 = vld [vmem:[#allocation2 + $0x28] sm:$0xf]  ;;  %v1981_v43 = vld [vmem:[#allocation2 + $0x24] sm:$0xf] }
  0x75   : > { %v1762_v52 = vsel %vm3670_vm11, %v3036_v13, %v1761_v33  ;;  %v2003_v16 = vshrl.u32 %v1978_v9, 16  ;;  %v2006_v29 = vshll.u32 %v1978_v9, 16  ;;  %v1772_v53 = vsel %vm3670_vm11, %v1770_v48, %v1771_v49  ;;  %v1980_v60 = vld [vmem:[#allocation2 + $0x20] sm:$0x1]  ;;  %v1882_v63 = vld [vmem:[#allocation2 + $0x1c] sm:$0xf] }
  0x76   : > { %1365 = vrot.lane.b32.xlu0 %v1333_v51, %s3254_s25  ;;  %v1769_v39 = vsel %vm3670_vm11, %v3037_v50, %v1768_v44  ;;  %v2014_v45 = vrot.slane %v2012_v12, 5  ;;  %v2018_v58 = vrot.slane %v2016_v25, 4  ;;  %v2036_v59 = vshll.u32 %v1982_v21, 16  ;;  %v1983_v32 = vld [vmem:[#allocation2 + $0x2c] sm:$0x1] }
  0x77   : > { %v2040_v37 = vshrl.u32 %v1982_v21, 16  ;;  %v2005_v14 = vrot.slane %v2003_v16, 4  ;;  %v2008_v57 = vrot.slane %v2006_v29, 5  ;;  %v2027_v62 = vshrl.u32 %v1981_v43, 16  ;;  %v1881_v26 = vld [vmem:[#allocation2 + $0x18] sm:$0xf] }
  0x78   : > { %1371 = vrot.lane.b32.xlu1 %v1336_v36, %s3254_s25  ;;  %v2030_v0 = vshll.u32 %v1981_v43, 16  ;;  %v2022_v55 = vshll.u32 %v1980_v60, 16  ;;  %v2019_v10 = vor.u32 %v2018_v58, %v2014_v45  ;;  %v2038_v2 = vrot.slane %v2036_v59, 5  ;;  %v884_v7 = vld [vmem:[#allocation2 + $0x1c] sm:$0xf] }
  0x79   : > { %v2042_v20 = vrot.slane %v2040_v37, 4  ;;  %v2009_v51 = vor.u32 %v2008_v57, %v2005_v14  ;;  %v2029_v4 = vrot.slane %v2027_v62, 4  ;;  %v883_v15 = vld [vmem:[#allocation2 + $0x18] sm:$0xf]  ;;  %v1884_v36 = vld [vmem:[#allocation2 + $0x28] sm:$0xf] }
  0x7a   : > { %1369 = vrot.lane.b32.xlu0 %v1335_v22, %s3254_s25  ;;  %v2032_v6 = vrot.slane %v2030_v0, 5  ;;  %v2024_v17 = vrot.slane %v2022_v55, 5  ;;  %v2046_v3 = vshll.u32 %v1983_v32, 16  ;;  %v2020_v18 = vrot.slane %v2019_v10, 4  ;;  %v2260_v22 = vld [vmem:[#allocation2 + $0x1c] sm:$0xf] }
  0x7b   : > { %v2043_v19 = vor.u32 %v2042_v20, %v2038_v2  ;;  %v962_v34 = vshll.u32 %v884_v7, 16  ;;  %v966_v56 = vshrl.u32 %v884_v7, 16  ;;  %v1883_v23 = vld [vmem:[#allocation2 + $0x24] sm:$0xf]  ;;  %v953_v31 = vshrl.u32 %v883_v15, 16 }
  0x7c   : > { %1648 = vrot.lane.b32.xlu1 %v1477_v27, %s3255_s30  ;;  %v2010_v27 = vrot.slane %v2009_v51, 4  ;;  %v2033_v28 = vor.u32 %v2032_v6, %v2029_v4  ;;  %v956_v33 = vshll.u32 %v883_v15, 16  ;;  %v2048_v61 = vrot.slane %v2046_v3, 5  ;;  %v2259_v11 = vld [vmem:[#allocation2 + $0x18] sm:$0xe] }
  0x7d   : > { %v2309_v41 = vrot.slane %v2260_v22, 5  ;;  %v2025_v42 = vsel %vm3682_vm14, %v2020_v18, %v2024_v17  ;;  %v2044_v44 = vrot.slane %v2043_v19, 4  ;;  %v964_v8 = vrot.slane %v962_v34, 5  ;;  %v887_v24 = vld [vmem:[#allocation2 + $0x28] sm:$0xf] }
  0x7e   : > { %1646 = vrot.lane.b32.xlu0 %v1467_v40, %s3255_s30  ;;  %v2261_v40 = vld [vmem:[#allocation2 + $0x20] sm:$0x1]  ;;  %v968_v47 = vrot.slane %v966_v56, 4  ;;  %v2015_v1 = vsel %vm3682_vm14, %v2010_v27, %v2014_v45  ;;  %v2034_v5 = vrot.slane %v2033_v28, 4  ;;  %v958_v13 = vrot.slane %v956_v33, 5 }
  0x7f   : > { %v886_v9 = vld [vmem:[#allocation2 + $0x24] sm:$0xf]  ;;  %v2311_v48 = vrot.slane %v2309_v41, 4  ;;  %v2312_v49 = vrot.slane %v2261_v40, 5  ;;  %v3044_v50 = vrot.slane %v2259_v11, 9  ;;  %v2049_v12 = vsel %vm3682_vm14, %v2044_v44, %v2048_v61 }
  0x80   : > { %1652 = vrot.lane.b32.xlu1 %v1501_v46, %s3255_s30  ;;  %v885_v46 = vld [vmem:[#allocation2 + $0x20] sm:$0x1]  ;;  %v969_v25 = vor.u32 %v968_v47, %v964_v8  ;;  %v986_v16 = vshll.u32 %v887_v24, 16  ;;  %v990_v29 = vshrl.u32 %v887_v24, 16  ;;  %v2039_v21 = vsel %vm3682_vm14, %v2034_v5, %v2038_v2  ;;  %v2264_v45 = vld [vmem:[#allocation2 + $0x2c] sm:$0x1] }
  0x81   : > { %v2313_v60 = vsel %vm3670_vm11, %v2311_v48, %v2312_v49  ;;  %v847_v59 = vld [vmem:[#allocation2 + $0xc] sm:$0xf]  ;;  %v845_v0 = vld [vmem:[#allocation2] sm:$0xf]  ;;  %v2310_v55 = vsel %vm3670_vm11, %v3044_v50, %v2309_v41  ;;  %v2262_v20 = vld [vmem:[#allocation2 + $0x24] sm:$0xe] }
  0x82   : > { %1650 = vrot.lane.b32.xlu0 %v1491_v35, %s3255_s30  ;;  %v955_v35 = vrot.slane %v953_v31, 4  ;;  %v970_v37 = vrot.slane %v969_v25, 4  ;;  %v988_v57 = vrot.slane %v986_v16, 5  ;;  %v992_v62 = vrot.slane %v990_v29, 4  ;;  %863 = vst.msk [vmem:[#allocation3 + $0x8] sm:$0xf] %vm492_vm1, %v847_v59 }
  0x83   : > { %v888_v10 = vld [vmem:[#allocation2 + $0x2c] sm:$0x1]  ;;  %861 = vst.msk [vmem:[#allocation3] sm:$0xf] %vm492_vm1, %v845_v0  ;;  %v848_v15 = vld [vmem:[#allocation2 + $0x10] sm:$0xf] }
  0x84   : > { %1817 = vrot.lane.b32.xlu1 %v1765_v30, %s3256_s8  ;;  %v972_v30 = vshll.u32 %v885_v46, 16  ;;  %v959_v43 = vor.u32 %v958_v13, %v955_v35  ;;  %v993_v6 = vor.u32 %v992_v62, %v988_v57  ;;  %v996_v7 = vshll.u32 %v888_v10, 16  ;;  %v1168_v19 = vld [vmem:[#allocation2 + $0x1c] sm:$0xf]  ;;  %864 = vst.msk [vmem:[#allocation3 + $0xc] sm:$0xf] %vm492_vm1, %v848_v15 }
  0x85   : > { %v3045_v3 = vrot.slane %v2262_v20, 9  ;;  %v1171_v27 = vld [vmem:[#allocation2 + $0x28] sm:$0xf]  ;;  %v1169_v33 = vld [vmem:[#allocation2 + $0x20] sm:$0x1]  ;;  %vm1144_vm0 = vcmask 60448  }
  0x86   : > { %1815 = vrot.lane.b32.xlu0 %v1762_v52, %s3256_s8  ;;  %v2263_v52 = vld [vmem:[#allocation2 + $0x28] sm:$0xf]  ;;  %v974_v14 = vrot.slane %v972_v30, 5  ;;  %v994_v34 = vrot.slane %v993_v6, 4  ;;  %v998_v56 = vrot.slane %v996_v7, 5  ;;  %v1235_v40 = vrot.slane %v1171_v27, 5 }
  0x87   : > { %v2316_v58 = vrot.slane %v2263_v52, 5  ;;  %v1167_v61 = vld [vmem:[#allocation2 + $0x18] sm:$0xe]  ;;  %v1172_v44 = vld [vmem:[#allocation2 + $0x2c] sm:$0x1]  ;;  %vm1316_vm2 = vcmask 93248  }
  0x88   : > { %1821 = vrot.lane.b32.xlu1 %v1772_v53, %s3256_s8  ;;  %v977_v53 = vshrl.u32 %v886_v9, 16  ;;  %v975_v51 = vsel %vm3682_vm14, %v970_v37, %v974_v14  ;;  %v999_v41 = vsel %vm3682_vm14, %v994_v34, %v998_v56  ;;  %v1170_v46 = vld [vmem:[#allocation2 + $0x24] sm:$0xe]  ;;  %v3030_v47 = vrot.slane %v1167_v61, 9  ;;  %v1440_v25 = vld [vmem:[#allocation2 + $0x34] sm:$0xf] }
  0x89   : > { %v2318_v4 = vrot.slane %v2316_v58, 4  ;;  %v2317_v28 = vsel %vm3670_vm11, %v3045_v3, %v2316_v58  ;;  %v1436_v5 = vld [vmem:[#allocation2 + $0x24] sm:$0xf]  ;;  %v1237_v35 = vrot.slane %v1235_v40, 4  ;;  %v1238_v13 = vrot.slane %v1172_v44, 5 }
  0x8a   : > { %1819 = vrot.lane.b32.xlu0 %v1769_v39, %s3256_s8  ;;  %v980_v39 = vshll.u32 %v886_v9, 16  ;;  %v979_v32 = vrot.slane %v977_v53, 4  ;;  %v3031_v24 = vrot.slane %v1170_v46, 9  ;;  %v1503_v30 = vshrl.u32 %v1436_v5, 16  ;;  %v1439_v52 = vld [vmem:[#allocation2 + $0x30] sm:$0xf] }
  0x8b   : > { %v1239_v16 = vsel %vm3670_vm11, %v1237_v35, %v1238_v13  ;;  %v1536_v53 = vshll.u32 %v1440_v25, 16  ;;  %v1527_v59 = vshrl.u32 %v1439_v52, 16  ;;  %v1530_v37 = vshll.u32 %v1439_v52, 16  ;;  %v1338_v14 = vld [vmem:[#allocation2 + $0x28] sm:$0xf] }
  0x8c   : > { %1915 = vrot.lane.b32.xlu1 %v1882_v63, %s3257_s10  ;;  %v960_v63 = vrot.slane %v959_v43, 4  ;;  %v982_v2 = vrot.slane %v980_v39, 5  ;;  %v1236_v29 = vsel %vm3670_vm11, %v3031_v24, %v1235_v40  ;;  %v1540_v39 = vshrl.u32 %v1440_v25, 16  ;;  %v1718_v15 = vld [vmem:[#allocation2 + $0x28] sm:$0xf] }
  0x8d   : > { %v1538_v0 = vrot.slane %v1536_v53, 5  ;;  %v1532_v20 = vrot.slane %v1530_v37, 5  ;;  %v1721_v27 = vld [vmem:[#allocation2 + $0x34] sm:$0xf]  ;;  %v1717_v61 = vld [vmem:[#allocation2 + $0x24] sm:$0xe] }
  0x8e   : > { %1913 = vrot.lane.b32.xlu0 %v1881_v26, %s3257_s10  ;;  %v2319_v26 = vrot.slane %v2264_v45, 5  ;;  %v965_v17 = vsel %vm3682_vm14, %v960_v63, %v964_v8  ;;  %v983_v18 = vor.u32 %v982_v2, %v979_v32  ;;  %v1505_v45 = vrot.slane %v1503_v30, 4  ;;  %v1337_v63 = vld [vmem:[#allocation2 + $0x24] sm:$0xf]  ;;  %v1441_v32 = vld [vmem:[#allocation2 + $0x38] sm:$0x1] }
  0x8f   : > { %v1529_v2 = vrot.slane %v1527_v59, 4  ;;  %v1546_v7 = vshll.u32 %v1441_v32, 16  ;;  %v3199_v40 = vld [vmem:[%s4378_s5 + $0x10] ss:$0 sps:$4 sm:$0x33]   ;;  %v3038_v35 = vrot.slane %v1717_v61, 9 }
  0x90   : > { %1919 = vrot.lane.b32.xlu1 %v1884_v36, %s3257_s10  ;;  %v846_v36 = vld [vmem:[#allocation2 + $0x4] sm:$0xf]  ;;  %v2320_v22 = vsel %vm3670_vm11, %v2318_v4, %v2319_v26  ;;  %v984_v31 = vrot.slane %v983_v18, 4  ;;  %v1340_v26 = vld [vmem:[#allocation2 + $0x34] sm:$0xf]  ;;  %3146 = vmatprep.subr.msk.bf16.mxu0 %vm2529_vm15, %v3199_v40  ;;  %vm1413_vm4 = vcmask 126048  }
  0x91   : > { %862 = vst.msk [vmem:[#allocation3 + $0x4] sm:$0xf] %vm492_vm1, %v846_v36  ;;  %v1339_v36 = vld [vmem:[#allocation2 + $0x30] sm:$0xf]  ;;  %v1533_v3 = vor.u32 %v1532_v20, %v1529_v2  ;;  %v1719_v18 = vld [vmem:[#allocation2 + $0x2c] sm:$0x1]  ;;  %3147 = vmatprep.subr.msk.bf16.mxu1 %vm2529_vm15, %v3199_v40 }
  0x92   : > { %1917 = vrot.lane.b32.xlu0 %v1883_v23, %s3257_s10  ;;  %v1228_v23 = vrot.slane %v1168_v19, 5  ;;  %v989_v8 = vsel %vm3682_vm14, %v984_v31, %v988_v57  ;;  %v1775_v19 = vrot.slane %v1718_v15, 5  ;;  %v1985_v13 = vld [vmem:[#allocation2 + $0x34] sm:$0xf]  ;;  %v1984_v24 = vld [vmem:[#allocation2 + $0x30] sm:$0xf] }
  0x93   : > { %v852_v30 = vld [vmem:[#allocation2 + $0x28] sm:$0xf]  ;;  %v2060_v25 = vshll.u32 %v1985_v13, 16  ;;  %v2064_v52 = vshrl.u32 %v1985_v13, 16  ;;  %v1988_v53 = vld [vmem:[#allocation2 + $0x40] sm:$0xf] }
  0x94   : > { %2196 = vrot.lane.b32.xlu1 %v2025_v42, %s3258_s11  ;;  %v1230_v11 = vrot.slane %v1228_v23, 4  ;;  %v1231_v42 = vrot.slane %v1169_v33, 5  ;;  %v1229_v50 = vsel %vm3670_vm11, %v3030_v47, %v1228_v23  ;;  %v1548_v23 = vrot.slane %v1546_v7, 5  ;;  %v1720_v47 = vld [vmem:[#allocation2 + $0x30] sm:$0xe] }
  0x95   : > { %v1534_v33 = vrot.slane %v1533_v3, 4  ;;  %v1777_v46 = vrot.slane %v1775_v19, 4  ;;  %868 = vst.msk [vmem:[#allocation3 + $0x1c] sm:$0xf] %vm492_vm1, %v852_v30  ;;  %v2062_v59 = vrot.slane %v2060_v25, 5  ;;  %v2066_v37 = vrot.slane %v2064_v52, 4 }
  0x96   : > { %2194 = vrot.lane.b32.xlu0 %v2015_v1, %s3258_s11  ;;  %v1437_v1 = vld [vmem:[#allocation2 + $0x28] sm:$0xf]  ;;  %v1232_v9 = vsel %vm3670_vm11, %v1230_v11, %v1231_v42  ;;  %v1778_v11 = vrot.slane %v1719_v18, 5  ;;  %v1782_v42 = vrot.slane %v1721_v27, 5  ;;  %v1886_v32 = vld [vmem:[#allocation2 + $0x34] sm:$0xf] }
  0x97   : > { %v1512_v48 = vshll.u32 %v1437_v1, 16  ;;  %v1516_v49 = vshrl.u32 %v1437_v1, 16  ;;  %v2531_v1 = vsel %vm2529_vm15, %v3199_v40, 0  ;;  %v2067_v2 = vor.u32 %v2066_v37, %v2062_v59  ;;  %v1989_v20 = vld [vmem:[#allocation2 + $0x44] sm:$0x1] }
  0x98   : > { %2200 = vrot.lane.b32.xlu1 %v2049_v12, %s3258_s11  ;;  %v1506_v12 = vshll.u32 %v1436_v5, 16  ;;  %v1539_v5 = vsel %vm3682_vm14, %v1534_v33, %v1538_v0  ;;  %3119 = vmatpush3.bf16.msra.mxu0 %v2531_v1  ;;  %v1888_v3 = vld [vmem:[#allocation2 + $0x40] sm:$0xf]  ;;  %vm1694_vm5 = vcmask 158848   ;;  %vm1863_vm6 = vcmask 191648  }
  0x99   : > { %v1518_v43 = vrot.slane %v1516_v49, 4  ;;  %3143 = vmatpush3.bf16.msra.mxu1 %v2531_v1  ;;  %vm1961_vm7 = vcmask 224448   ;;  %vm2242_vm8 = vcmask 257248   ;;  %vm2411_vm9 = vcmask 290048  }
  0x9a   : > { %2198 = vrot.lane.b32.xlu0 %v2039_v21, %s3258_s11  ;;  %v1514_v21 = vrot.slane %v1512_v48, 5  ;;  %v1508_v58 = vrot.slane %v1506_v12, 5  ;;  %v1784_v48 = vrot.slane %v1782_v42, 4  ;;  %v1779_v12 = vsel %vm3670_vm11, %v1777_v46, %v1778_v11  ;;  %v2267_v11 = vld [vmem:[#allocation2 + $0x38] sm:$0x1] }
  0x9b   : > { %vm2504_vm10 = vcmask 293888  }
  0x9c   : > { %2365 = vrot.lane.b32.xlu1 %v2313_v60, %s3259_s14  ;;  %v1438_v60 = vld [vmem:[#allocation2 + $0x2c] sm:$0x1]  ;;  %v1519_v57 = vor.u32 %v1518_v43, %v1514_v21  ;;  %v1509_v10 = vor.u32 %v1508_v58, %v1505_v45  ;;  %v2054_v43 = vshll.u32 %v1984_v24, 16  ;;  %v1986_v58 = vld [vmem:[#allocation2 + $0x38] sm:$0x1] }
  0x9d   : > { %v1522_v62 = vshll.u32 %v1438_v60, 16 }
  0x9e   : > { %2363 = vrot.lane.b32.xlu0 %v2310_v55, %s3259_s14  ;;  %v1542_v55 = vrot.slane %v1540_v39, 4  ;;  %v1987_v39 = vld [vmem:[#allocation2 + $0x3c] sm:$0xf] }
  0x9f   : > { %v1524_v4 = vrot.slane %v1522_v62, 5 }
  0xa0   : > { %1106 = vrot.lane.b32.xlu1 %v975_v51, %s3253_s23  ;;  %v1520_v51 = vrot.slane %v1519_v57, 4  ;;  %v1543_v6 = vor.u32 %v1542_v55, %v1538_v0  ;;  %v2088_v57 = vshrl.u32 %v1988_v53, 16  ;;  %v2056_v0 = vrot.slane %v2054_v43, 5 }
  0xa1   : > { %v2075_v55 = vshrl.u32 %v1987_v39, 16 }
  0xa2   : > { %1104 = vrot.lane.b32.xlu0 %v965_v17, %s3253_s23  ;;  %v1510_v17 = vrot.slane %v1509_v10, 4  ;;  %v1525_v34 = vsel %vm3682_vm14, %v1520_v51, %v1524_v4  ;;  %v1544_v56 = vrot.slane %v1543_v6, 4  ;;  %v2070_v10 = vshll.u32 %v1986_v58, 16  ;;  %v1885_v4 = vld [vmem:[#allocation2 + $0x30] sm:$0xf] }
  0xa3   : > { %v2090_v51 = vrot.slane %v2088_v57, 4  ;;  %v2077_v7 = vrot.slane %v2075_v55, 4 }
  0xa4   : > { %2369 = vrot.lane.b32.xlu1 %v2320_v22, %s3259_s14  ;;  %v850_v22 = vld [vmem:[#allocation2 + $0x1c] sm:$0xf]  ;;  %v1515_v31 = vsel %vm3682_vm14, %v1510_v17, %v1514_v21  ;;  %v1549_v44 = vsel %vm3682_vm14, %v1544_v56, %v1548_v23  ;;  %v2051_v21 = vshrl.u32 %v1984_v24, 16  ;;  %v889_v17 = vld [vmem:[#allocation2 + $0x30] sm:$0xf]  ;;  %v2072_v18 = vrot.slane %v2070_v10, 5 }
  0xa5   : > { %866 = vst.msk [vmem:[#allocation3 + $0x14] sm:$0xf] %vm492_vm1, %v850_v22  ;;  %v2068_v22 = vrot.slane %v2067_v2, 4  ;;  %v2266_v56 = vld [vmem:[#allocation2 + $0x34] sm:$0xf]  ;;  %v1001_v61 = vshrl.u32 %v889_v17, 16 }
  0xa6   : > { %2367 = vrot.lane.b32.xlu0 %v2317_v28, %s3259_s14  ;;  %v849_v28 = vld [vmem:[#allocation2 + $0x18] sm:$0xf]  ;;  %v2053_v62 = vrot.slane %v2051_v21, 4  ;;  %v1004_v40 = vshll.u32 %v889_v17, 16 }
  0xa7   : > { %865 = vst.msk [vmem:[#allocation3 + $0x10] sm:$0xf] %vm492_vm1, %v849_v28  ;;  %v1887_v28 = vld [vmem:[#allocation2 + $0x3c] sm:$0xf]  ;;  %v2073_v46 = vsel %vm3682_vm14, %v2068_v22, %v2072_v18  ;;  %v1003_v24 = vrot.slane %v1001_v61, 4 }
  0xa8   : > { %1110 = vrot.lane.b32.xlu1 %v999_v41, %s3253_s23  ;;  %v3200_v41 = vld [vmem:[%s4378_s5 + $0x8] sm:$0xff]   ;;  %v2057_v6 = vor.u32 %v2056_v0, %v2053_v62  ;;  %v2270_v62 = vld [vmem:[#allocation2 + $0x44] sm:$0x1]  ;;  %v854_v18 = vld [vmem:[#allocation2 + $0x34] sm:$0xf] }
  0xa9   : > { %3120 = vmatprep.subr.bf16.mxu0 %v3200_v41  ;;  %3141 = vmatprep.subr.bf16.mxu1 %v3200_v41  ;;  %870 = vst.msk [vmem:[#allocation3 + $0x24] sm:$0xf] %vm492_vm1, %v854_v18 }
  0xaa   : > { %1108 = vrot.lane.b32.xlu0 %v989_v8, %s3253_s23  ;;  %v1722_v8 = vld [vmem:[#allocation2 + $0x38] sm:$0x1]  ;;  %3121 = vmatpush3.bf16.msra.mxu0 %v3200_v41 }
  0xab   : > { %v1785_v49 = vrot.slane %v1722_v8, 5  ;;  %3144 = vmatpush3.bf16.msra.mxu1 %v3200_v41 }
  0xac   : > { %1278 = vrot.lane.b32.xlu1 %v1232_v9, %s3252_s24  ;;  %v3202_v9 = vld [vmem:[%s4378_s5] sm:$0xff]  }
  0xad   : > { %3122 = vmatprep.subr.bf16.mxu0 %v3202_v9  ;;  %v1786_v60 = vsel %vm3670_vm11, %v1784_v48, %v1785_v49  ;;  %3142 = vmatprep.subr.bf16.mxu1 %v3202_v9  ;;  %v893_v48 = vld [vmem:[#allocation2 + $0x40] sm:$0xf]  ;;  %v892_v49 = vld [vmem:[#allocation2 + $0x3c] sm:$0xf] }
  0xae   : > { %1276 = vrot.lane.b32.xlu0 %v1229_v50, %s3252_s24  ;;  %v3039_v50 = vrot.slane %v1720_v47, 9  ;;  %3123 = vmatpush3.bf16.msra.mxu0 %v3202_v9  ;;  %v891_v47 = vld [vmem:[#allocation2 + $0x38] sm:$0x1]  ;;  %v1034_v43 = vshll.u32 %v893_v48, 16  ;;  %v1025_v58 = vshrl.u32 %v892_v49, 16 }
  0xaf   : > { %3145 = vmatpush3.bf16.msra.mxu1 %v3202_v9  ;;  %v1006_v9 = vrot.slane %v1004_v40, 5  ;;  %v1020_v52 = vshll.u32 %v891_v47, 16 }
  0xb0   : > { %1282 = vrot.lane.b32.xlu1 %v1239_v16, %s3252_s24  ;;  %v851_v16 = vld [vmem:[#allocation2 + $0x24] sm:$0xf]  ;;  %v1783_v45 = vsel %vm3670_vm11, %v3039_v50, %v1782_v42  ;;  %v2323_v42 = vrot.slane %v2266_v56, 5  ;;  %v3853_v55 = vrot.slane %v1034_v43, 5 }
  0xb1   : > { %867 = vst.msk [vmem:[#allocation3 + $0x18] sm:$0xf] %vm492_vm1, %v851_v16 }
  0xb2   : > { %1280 = vrot.lane.b32.xlu0 %v1236_v29, %s3252_s24  ;;  %v1776_v29 = vsel %vm3670_vm11, %v3038_v35, %v1775_v19  ;;  %v2094_v19 = vshll.u32 %v1989_v20, 16  ;;  %v2325_v30 = vrot.slane %v2323_v42, 4  ;;  %v894_v20 = vld [vmem:[#allocation2 + $0x44] sm:$0x1] }
  0xb4   : > { %1375 = vrot.lane.b32.xlu1 %v1338_v14, %s3254_s25  ;;  %v2084_v14 = vshll.u32 %v1988_v53, 16  ;;  %v2096_v41 = vrot.slane %v2094_v19, 5  ;;  %v1038_v53 = vshrl.u32 %v893_v48, 16  ;;  %v1178_v48 = vld [vmem:[#allocation2 + $0x44] sm:$0x1] }
  0xb6   : > { %1373 = vrot.lane.b32.xlu0 %v1337_v63, %s3254_s25  ;;  %v2078_v63 = vshll.u32 %v1987_v39, 16 }
  0xb8   : > { %1379 = vrot.lane.b32.xlu1 %v1340_v26, %s3254_s25  ;;  %v2086_v26 = vrot.slane %v2084_v14, 5  ;;  %v2080_v15 = vrot.slane %v2078_v63, 5  ;;  %v1022_v14 = vrot.slane %v1020_v52, 5  ;;  %v1040_v63 = vrot.slane %v1038_v53, 4 }
  0xba   : > { %1377 = vrot.lane.b32.xlu0 %v1339_v36, %s3254_s25  ;;  %v890_v36 = vld [vmem:[#allocation2 + $0x34] sm:$0xf]  ;;  %v2081_v33 = vor.u32 %v2080_v15, %v2077_v7  ;;  %v2333_v7 = vrot.slane %v2270_v62, 5  ;;  %v1041_v17 = vor.u32 %v1040_v63, %v3853_v55  ;;  %v1445_v62 = vld [vmem:[#allocation2 + $0x48] sm:$0xf] }
  0xbb   : > { %v1010_v23 = vshll.u32 %v890_v36, 16  ;;  %v1014_v27 = vshrl.u32 %v890_v36, 16 }
  0xbc   : > { %1656 = vrot.lane.b32.xlu1 %v1525_v34, %s3255_s30  ;;  %v2091_v34 = vor.u32 %v2090_v51, %v2086_v26  ;;  %v2082_v13 = vrot.slane %v2081_v33, 4  ;;  %v1042_v33 = vrot.slane %v1041_v17, 4 }
  0xbd   : > { %v3838_v1 = vrot.slane %v1010_v23, 5  ;;  %v1174_v23 = vld [vmem:[#allocation2 + $0x34] sm:$0xf] }
  0xbe   : > { %1654 = vrot.lane.b32.xlu0 %v1515_v31, %s3255_s30  ;;  %v2058_v31 = vrot.slane %v2057_v6, 4  ;;  %v2092_v8 = vrot.slane %v2091_v34, 4  ;;  %v2087_v39 = vsel %vm3682_vm14, %v2082_v13, %v2086_v26  ;;  %v1027_v26 = vrot.slane %v1025_v58, 4  ;;  %v2268_v6 = vld [vmem:[#allocation2 + $0x3c] sm:$0xe] }
  0xbf   : > { %v3047_v34 = vrot.slane %v2268_v6, 9  ;;  %v1242_v40 = vrot.slane %v1174_v23, 5  ;;  %v1575_v6 = vshrl.u32 %v1445_v62, 16  ;;  %v1447_v23 = vld [vmem:[#allocation2 + $0x50] sm:$0x1] }
  0xc0   : > { %1660 = vrot.lane.b32.xlu1 %v1549_v44, %s3255_s30  ;;  %v2265_v44 = vld [vmem:[#allocation2 + $0x30] sm:$0xe]  ;;  %v2063_v35 = vsel %vm3682_vm14, %v2058_v31, %v2062_v59  ;;  %v1028_v59 = vshll.u32 %v892_v49, 16  ;;  %v1176_v49 = vld [vmem:[#allocation2 + $0x3c] sm:$0xe] }
  0xc1   : > { %v3046_v25 = vrot.slane %v2265_v44, 9  ;;  %v3033_v43 = vrot.slane %v1176_v49, 9 }
  0xc2   : > { %1658 = vrot.lane.b32.xlu0 %v1539_v5, %s3255_s30  ;;  %v1016_v5 = vrot.slane %v1014_v27, 4  ;;  %v1030_v51 = vrot.slane %v1028_v59, 5  ;;  %v853_v27 = vld [vmem:[#allocation2 + $0x30] sm:$0xf] }
  0xc3   : > { %869 = vst.msk [vmem:[#allocation3 + $0x20] sm:$0xf] %vm492_vm1, %v853_v27  ;;  %v1577_v27 = vrot.slane %v1575_v6, 4 }
  0xc4   : > { %1825 = vrot.lane.b32.xlu1 %v1779_v12, %s3256_s8  ;;  %v2326_v12 = vrot.slane %v2267_v11, 5  ;;  %v1017_v21 = vor.u32 %v1016_v5, %v3838_v1  ;;  %v1031_v56 = vor.u32 %v1030_v51, %v1027_v26  ;;  %v855_v5 = vld [vmem:[#allocation2 + $0x3c] sm:$0xf]  ;;  %v1444_v26 = vld [vmem:[#allocation2 + $0x44] sm:$0x1] }
  0xc5   : > { %871 = vst.msk [vmem:[#allocation3 + $0x28] sm:$0xf] %vm492_vm1, %v855_v5 }
  0xc6   : > { %1823 = vrot.lane.b32.xlu0 %v1776_v29, %s3256_s8  ;;  %v2097_v29 = vsel %vm3682_vm14, %v2092_v8, %v2096_v41  ;;  %v2327_v37 = vsel %vm3670_vm11, %v2325_v30, %v2326_v12  ;;  %v1018_v57 = vrot.slane %v1017_v21, 4  ;;  %v1177_v41 = vld [vmem:[#allocation2 + $0x40] sm:$0xf]  ;;  %v1032_v44 = vrot.slane %v1031_v56, 4 }
  0xc7   : > { %v856_v8 = vld [vmem:[#allocation2 + $0x40] sm:$0xf]  ;;  %v1252_v21 = vrot.slane %v1178_v48, 5 }
  0xc8   : > { %1829 = vrot.lane.b32.xlu1 %v1786_v60, %s3256_s8  ;;  %v1007_v60 = vor.u32 %v1006_v9, %v1003_v24  ;;  %v1023_v15 = vsel %vm3682_vm14, %v1018_v57, %v1022_v14  ;;  %872 = vst.msk [vmem:[#allocation3 + $0x2c] sm:$0xf] %vm492_vm1, %v856_v8  ;;  %v1244_v24 = vrot.slane %v1242_v40, 4  ;;  %v1037_v30 = vsel %vm3682_vm14, %v1032_v44, %v3853_v55  ;;  %v1446_v14 = vld [vmem:[#allocation2 + $0x4c] sm:$0xf] }
  0xc9   : > { %v1343_v44 = vld [vmem:[#allocation2 + $0x48] sm:$0xf] }
  0xca   : > { %1827 = vrot.lane.b32.xlu0 %v1783_v45, %s3256_s8  ;;  %v2269_v45 = vld [vmem:[#allocation2 + $0x40] sm:$0xf]  ;;  %v1008_v2 = vrot.slane %v1007_v60, 4 }
  0xcb   : > { %v2330_v0 = vrot.slane %v2269_v45, 5 }
  0xcc   : > { %1923 = vrot.lane.b32.xlu1 %v1886_v32, %s3257_s10  ;;  %v2324_v32 = vsel %vm3670_vm11, %v3046_v25, %v2323_v42  ;;  %v1013_v22 = vsel %vm3682_vm14, %v1008_v2, %v3838_v1  ;;  %v1173_v1 = vld [vmem:[#allocation2 + $0x30] sm:$0xe]  ;;  %v1443_v25 = vld [vmem:[#allocation2 + $0x40] sm:$0xf]  ;;  %v1588_v2 = vshrl.u32 %v1446_v14, 16 }
  0xcd   : > { %v2332_v36 = vrot.slane %v2330_v0, 4  ;;  %v2331_v42 = vsel %vm3670_vm11, %v3047_v34, %v2330_v0  ;;  %v3032_v12 = vrot.slane %v1173_v1, 9  ;;  %v1564_v60 = vshrl.u32 %v1443_v25, 16  ;;  %v1341_v34 = vld [vmem:[#allocation2 + $0x3c] sm:$0xf] }
  0xce   : > { %1921 = vrot.lane.b32.xlu0 %v1885_v4, %s3257_s10 }
  0xcf   : > { %v2334_v31 = vsel %vm3670_vm11, %v2332_v36, %v2333_v7  ;;  %v1243_v58 = vsel %vm3670_vm11, %v3032_v12, %v1242_v40  ;;  %v1578_v7 = vshll.u32 %v1445_v62, 16  ;;  %v1342_v36 = vld [vmem:[#allocation2 + $0x40] sm:$0xf] }
  0xd0   : > { %1927 = vrot.lane.b32.xlu1 %v1888_v3, %s3257_s10  ;;  %v1044_v3 = vshll.u32 %v894_v20, 16 }
  0xd2   : > { %1925 = vrot.lane.b32.xlu0 %v1887_v28, %s3257_s10  ;;  %v1046_v61 = vrot.slane %v1044_v3, 5  ;;  %v1570_v3 = vshll.u32 %v1444_v26, 16 }
  0xd3   : > { %v1269_v16 = vpop.permute.xlu0 %1268 }
  0xd4   : > { %2204 = vrot.lane.b32.xlu1 %v2073_v46, %s3258_s11  ;;  %v1271_v50 = vpop.permute.xlu1 %1270  ;;  %v1175_v46 = vld [vmem:[#allocation2 + $0x38] sm:$0x1]  ;;  %v1047_v13 = vsel %vm3682_vm14, %v1042_v33, %v1046_v61  ;;  %v1344_v33 = vld [vmem:[#allocation2 + $0x4c] sm:$0xf]  ;;  %v1572_v40 = vrot.slane %v1570_v3, 5 }
  0xd5   : > { %v1245_v9 = vrot.slane %v1175_v46, 5 }
  0xd6   : > { %2202 = vrot.lane.b32.xlu0 %v2063_v35, %s3258_s11  ;;  %v1249_v35 = vrot.slane %v1177_v41, 5 }
  0xd7   : > { %v1246_v53 = vsel %vm3670_vm11, %v1244_v24, %v1245_v9  ;;  %v1727_v9 = vld [vmem:[#allocation2 + $0x4c] sm:$0xf] }
  0xd8   : > { %2208 = vrot.lane.b32.xlu1 %v2097_v29, %s3258_s11  ;;  %v1251_v29 = vrot.slane %v1249_v35, 4  ;;  %v1250_v55 = vsel %vm3670_vm11, %v3033_v43, %v1249_v35  ;;  %v1728_v43 = vld [vmem:[#allocation2 + $0x50] sm:$0x1] }
  0xda   : > { %2206 = vrot.lane.b32.xlu0 %v2087_v39, %s3258_s11  ;;  %v1101_v10 = vpop.permute.xlu1 %1100  ;;  %v1560_v39 = vshll.u32 %v1443_v25, 16  ;;  %v1253_v0 = vsel %vm3670_vm11, %v1251_v29, %v1252_v21  ;;  %v1723_v25 = vld [vmem:[#allocation2 + $0x3c] sm:$0xe] }
  0xdb   : > { %1147 = vst.msk [vmem:[#allocation3 + $0x8] sm:$0xf] %vm1144_vm0, %v1101_v10  ;;  %v1566_v10 = vrot.slane %v1564_v60, 4  ;;  %v3040_v60 = vrot.slane %v1723_v25, 9 }
  0xdc   : > { %v1097_v4 = vpop.permute.xlu0 %1096  ;;  %2373 = vrot.lane.b32.xlu1 %v2327_v37, %s3259_s14  ;;  %v3906_v63 = vrot.slane %v1560_v39, 5 }
  0xdd   : > { %1145 = vst.msk [vmem:[#allocation3] sm:$0xf] %vm1144_vm0, %v1097_v4 }
  0xde   : > { %2371 = vrot.lane.b32.xlu0 %v2324_v32, %s3259_s14  ;;  %1317 = vst.msk [vmem:[#allocation3] sm:$0xf] %vm1316_vm2, %v1269_v16  ;;  %v1103_v19 = vpop.permute.xlu1 %1102  ;;  %v1442_v16 = vld [vmem:[#allocation2 + $0x3c] sm:$0xf]  ;;  %v1584_v32 = vshll.u32 %v1446_v14, 16  ;;  %v1567_v17 = vor.u32 %v1566_v10, %v3906_v63 }
  0xdf   : > { %1148 = vst.msk [vmem:[#allocation3 + $0xc] sm:$0xf] %vm1144_vm0, %v1103_v19  ;;  %v1551_v59 = vshrl.u32 %v1442_v16, 16  ;;  %v1554_v37 = vshll.u32 %v1442_v16, 16  ;;  %v1590_v19 = vrot.slane %v1588_v2, 4 }
  0xe0   : > { %v1099_v28 = vpop.permute.xlu0 %1098  ;;  %1114 = vrot.lane.b32.xlu1 %v1023_v15, %s3253_s23  ;;  %v1586_v18 = vrot.slane %v1584_v32, 5  ;;  %v1568_v61 = vrot.slane %v1567_v17, 4  ;;  %v1993_v10 = vld [vmem:[#allocation2 + $0x54] sm:$0xf] }
  0xe1   : > { %1146 = vst.msk [vmem:[#allocation3 + $0x4] sm:$0xf] %vm1144_vm0, %v1099_v28  ;;  %v1553_v51 = vrot.slane %v1551_v59, 4  ;;  %v1556_v4 = vrot.slane %v1554_v37, 5  ;;  %v1580_v28 = vrot.slane %v1578_v7, 5 }
  0xe2   : > { %1112 = vrot.lane.b32.xlu0 %v1013_v22, %s3253_s23  ;;  %1318 = vst.msk [vmem:[#allocation3 + $0x4] sm:$0xf] %vm1316_vm2, %v1271_v50  ;;  %v1275_v11 = vpop.permute.xlu1 %1274  ;;  %v1591_v41 = vor.u32 %v1590_v19, %v1586_v18  ;;  %v1573_v5 = vsel %vm3682_vm14, %v1568_v61, %v1572_v40  ;;  %v1726_v59 = vld [vmem:[#allocation2 + $0x48] sm:$0xe]  ;;  %v1890_v40 = vld [vmem:[#allocation2 + $0x4c] sm:$0xf] }
  0xe3   : > { %1320 = vst.msk [vmem:[#allocation3 + $0xc] sm:$0xf] %vm1316_vm2, %v1275_v11  ;;  %v1557_v56 = vor.u32 %v1556_v4, %v1553_v51  ;;  %v1594_v11 = vshll.u32 %v1447_v23, 16  ;;  %v1581_v8 = vor.u32 %v1580_v28, %v1577_v27  ;;  %v1990_v37 = vld [vmem:[#allocation2 + $0x48] sm:$0xf] }
  0xe4   : > { %v1273_v47 = vpop.permute.xlu0 %1272  ;;  %2377 = vrot.lane.b32.xlu1 %v2334_v31, %s3259_s14  ;;  %v1592_v35 = vrot.slane %v1591_v41, 4  ;;  %v2099_v26 = vshrl.u32 %v1990_v37, 16  ;;  %v2102_v51 = vshll.u32 %v1990_v37, 16 }
  0xe5   : > { %1319 = vst.msk [vmem:[#allocation3 + $0x8] sm:$0xf] %vm1316_vm2, %v1273_v47  ;;  %v1558_v46 = vrot.slane %v1557_v56, 4  ;;  %v1724_v47 = vld [vmem:[#allocation2 + $0x40] sm:$0xf] }
  0xe6   : > { %2375 = vrot.lane.b32.xlu0 %v2331_v42, %s3259_s14  ;;  %v1368_v50 = vpop.permute.xlu1 %1367  ;;  %v1789_v24 = vrot.slane %v1724_v47, 5  ;;  %v2101_v56 = vrot.slane %v2099_v26, 4  ;;  %v2104_v23 = vrot.slane %v2102_v51, 5  ;;  %v896_v47 = vld [vmem:[#allocation2 + $0x4c] sm:$0xf] }
  0xe7   : > { %1415 = vst.msk [vmem:[#allocation3 + $0x4] sm:$0xf] %vm1413_vm4, %v1368_v50  ;;  %v1563_v49 = vsel %vm3682_vm14, %v1558_v46, %v3906_v63  ;;  %v1582_v50 = vrot.slane %v1581_v8, 4  ;;  %v1994_v63 = vld [vmem:[#allocation2 + $0x58] sm:$0xf] }
  0xe8   : > { %v1366_v52 = vpop.permute.xlu0 %1365  ;;  %1118 = vrot.lane.b32.xlu1 %v1047_v13, %s3253_s23  ;;  %v1596_v13 = vrot.slane %v1594_v11, 5  ;;  %v1791_v29 = vrot.slane %v1789_v24, 4  ;;  %v1790_v2 = vsel %vm3670_vm11, %v3040_v60, %v1789_v24  ;;  %v2132_v6 = vshll.u32 %v1994_v63, 16  ;;  %v1889_v46 = vld [vmem:[#allocation2 + $0x48] sm:$0xf] }
  0xe9   : > { %1414 = vst.msk [vmem:[#allocation3] sm:$0xf] %vm1413_vm4, %v1366_v52  ;;  %v1796_v52 = vrot.slane %v1727_v9, 5  ;;  %v1587_v39 = vsel %vm3682_vm14, %v1582_v50, %v1586_v18  ;;  %v2136_v7 = vshrl.u32 %v1994_v63, 16  ;;  %v2105_v8 = vor.u32 %v2104_v23, %v2101_v56  ;;  %v3964_v50 = vld [vmem:[#allocation2 + $0x4c] sm:$0xf] }
  0xea   : > { %1116 = vrot.lane.b32.xlu0 %v1037_v30, %s3253_s23  ;;  %v1372_v45 = vpop.permute.xlu1 %1371  ;;  %v1725_v30 = vld [vmem:[#allocation2 + $0x44] sm:$0x1]  ;;  %v1597_v16 = vsel %vm3682_vm14, %v1592_v35, %v1596_v13  ;;  %v3955_v28 = vrot.slane %v2132_v6, 5  ;;  %v1892_v35 = vld [vmem:[#allocation2 + $0x58] sm:$0xf] }
  0xeb   : > { %1417 = vst.msk [vmem:[#allocation3 + $0xc] sm:$0xf] %vm1413_vm4, %v1372_v45  ;;  %v1792_v21 = vrot.slane %v1725_v30, 5  ;;  %v1991_v45 = vld [vmem:[#allocation2 + $0x4c] sm:$0xf]  ;;  %v1798_v14 = vrot.slane %v1796_v52, 4 }
  0xec   : > { %v1370_v57 = vpop.permute.xlu0 %1369  ;;  %1286 = vrot.lane.b32.xlu1 %v1246_v53, %s3252_s24  ;;  %v1058_v30 = vshll.u32 %v896_v47, 16  ;;  %v2271_v51 = vld [vmem:[#allocation2 + $0x48] sm:$0xe] }
  0xed   : > { %1416 = vst.msk [vmem:[#allocation3 + $0x8] sm:$0xf] %vm1413_vm4, %v1370_v57  ;;  %v1799_v57 = vrot.slane %v1728_v43, 5  ;;  %v1793_v62 = vsel %vm3670_vm11, %v1791_v29, %v1792_v21  ;;  %v3048_v56 = vrot.slane %v2271_v51, 9  ;;  %v1182_v51 = vld [vmem:[#allocation2 + $0x54] sm:$0xe] }
  0xee   : > { %1284 = vrot.lane.b32.xlu0 %v1243_v58, %s3252_s24  ;;  %v1649_v20 = vpop.permute.xlu1 %1648 }
  0xef   : > { %1696 = vst.msk [vmem:[#allocation3 + $0x4] sm:$0xf] %vm1694_vm5, %v1649_v20  ;;  %v3041_v20 = vrot.slane %v1726_v59, 9  ;;  %v1800_v17 = vsel %vm3670_vm11, %v1798_v14, %v1799_v57  ;;  %v897_v59 = vld [vmem:[#allocation2 + $0x50] sm:$0x1]  ;;  %v3973_v14 = vrot.slane %v1058_v30, 5 }
  0xf0   : > { %v1647_v15 = vpop.permute.xlu0 %1646  ;;  %1290 = vrot.lane.b32.xlu1 %v1253_v0, %s3252_s24  ;;  %v2108_v0 = vshll.u32 %v1991_v45, 16 }
  0xf1   : > { %1695 = vst.msk [vmem:[#allocation3] sm:$0xf] %vm1694_vm5, %v1647_v15  ;;  %v2123_v15 = vshrl.u32 %v1993_v10, 16 }
  0xf2   : > { %1288 = vrot.lane.b32.xlu0 %v1250_v55, %s3252_s24  ;;  %v1653_v22 = vpop.permute.xlu1 %1652  ;;  %v2112_v55 = vshrl.u32 %v1991_v45, 16  ;;  %v3948_v3 = vrot.slane %v2108_v0, 5  ;;  %v898_v0 = vld [vmem:[#allocation2 + $0x54] sm:$0xf] }
  0xf3   : > { %1698 = vst.msk [vmem:[#allocation3 + $0xc] sm:$0xf] %vm1694_vm5, %v1653_v22  ;;  %v1797_v22 = vsel %vm3670_vm11, %v3041_v20, %v1796_v52  ;;  %v1891_v52 = vld [vmem:[#allocation2 + $0x54] sm:$0xf]  ;;  %v857_v20 = vld [vmem:[#allocation2 + $0x48] sm:$0xf] }
  0xf4   : > { %v1651_v31 = vpop.permute.xlu0 %1650  ;;  %1383 = vrot.lane.b32.xlu1 %v1342_v36, %s3254_s25  ;;  %v2126_v36 = vshll.u32 %v1993_v10, 16  ;;  %v2114_v18 = vrot.slane %v2112_v55, 4  ;;  %873 = vst.msk [vmem:[#allocation3 + $0x30] sm:$0xf] %vm492_vm1, %v857_v20 }
  0xf5   : > { %1697 = vst.msk [vmem:[#allocation3 + $0x8] sm:$0xf] %vm1694_vm5, %v1651_v31  ;;  %v2138_v31 = vrot.slane %v2136_v7, 4 }
  0xf6   : > { %1381 = vrot.lane.b32.xlu0 %v1341_v34, %s3254_s25  ;;  %v1818_v42 = vpop.permute.xlu1 %1817  ;;  %v1992_v34 = vld [vmem:[#allocation2 + $0x50] sm:$0x1]  ;;  %v2128_v61 = vrot.slane %v2126_v36, 5  ;;  %v2115_v41 = vor.u32 %v2114_v18, %v3948_v3 }
  0xf7   : > { %1865 = vst.msk [vmem:[#allocation3 + $0x4] sm:$0xf] %vm1863_vm6, %v1818_v42  ;;  %v2118_v11 = vshll.u32 %v1992_v34, 16  ;;  %v1995_v42 = vld [vmem:[#allocation2 + $0x5c] sm:$0x1]  ;;  %v2139_v13 = vor.u32 %v2138_v31, %v3955_v28 }
  0xf8   : > { %v1816_v1 = vpop.permute.xlu0 %1815  ;;  %1387 = vrot.lane.b32.xlu1 %v1344_v33, %s3254_s25  ;;  %v2125_v33 = vrot.slane %v2123_v15, 4  ;;  %v2142_v24 = vshll.u32 %v1995_v42, 16  ;;  %v1068_v15 = vshll.u32 %v897_v59, 16  ;;  %v900_v42 = vld [vmem:[#allocation2 + $0x5c] sm:$0x1] }
  0xf9   : > { %1864 = vst.msk [vmem:[#allocation3] sm:$0xf] %vm1863_vm6, %v1816_v1 }
  0xfa   : > { %1385 = vrot.lane.b32.xlu0 %v1343_v44, %s3254_s25  ;;  %v1822_v48 = vpop.permute.xlu1 %1821  ;;  %v2129_v9 = vor.u32 %v2128_v61, %v2125_v33  ;;  %v2144_v60 = vrot.slane %v2142_v24, 5  ;;  %v859_v24 = vld [vmem:[#allocation2 + $0x54] sm:$0xf] }
  0xfb   : > { %1867 = vst.msk [vmem:[#allocation3 + $0xc] sm:$0xf] %vm1863_vm6, %v1822_v48  ;;  %v2116_v48 = vrot.slane %v2115_v41, 4  ;;  %v2276_v41 = vld [vmem:[#allocation2 + $0x5c] sm:$0x1] }
  0xfc   : > { %v1820_v12 = vpop.permute.xlu0 %1819  ;;  %1664 = vrot.lane.b32.xlu1 %v1573_v5, %s3255_s30  ;;  %v895_v5 = vld [vmem:[#allocation2 + $0x48] sm:$0xf]  ;;  %v2130_v45 = vrot.slane %v2129_v9, 4  ;;  %875 = vst.msk [vmem:[#allocation3 + $0x38] sm:$0xf] %vm492_vm1, %v859_v24 }
  0xfd   : > { %1866 = vst.msk [vmem:[#allocation3 + $0x8] sm:$0xf] %vm1863_vm6, %v1820_v12  ;;  %v1062_v12 = vshrl.u32 %v896_v47, 16  ;;  %v1049_v29 = vshrl.u32 %v895_v5, 16  ;;  %v1052_v21 = vshll.u32 %v895_v5, 16 }
  0xfe   : > { %1662 = vrot.lane.b32.xlu0 %v1563_v49, %s3255_s30  ;;  %v1916_v53 = vpop.permute.xlu1 %1915  ;;  %v2120_v49 = vrot.slane %v2118_v11, 5  ;;  %v2135_v34 = vsel %vm3682_vm14, %v2130_v45, %v3955_v28 }
  0xff   : > { %1963 = vst.msk [vmem:[#allocation3 + $0x4] sm:$0xf] %vm1961_vm7, %v1916_v53  ;;  %v2273_v53 = vld [vmem:[#allocation2 + $0x50] sm:$0x1]  ;;  %v1064_v57 = vrot.slane %v1062_v12, 4  ;;  %v1051_v10 = vrot.slane %v1049_v29, 4 }
 0x100   : > { %v1914_v58 = vpop.permute.xlu0 %1913  ;;  %1668 = vrot.lane.b32.xlu1 %v1597_v16, %s3255_s30  ;;  %v2106_v16 = vrot.slane %v2105_v8, 4  ;;  %v2121_v37 = vsel %vm3682_vm14, %v2116_v48, %v2120_v49  ;;  %v2340_v7 = vrot.slane %v2273_v53, 5  ;;  %v2274_v48 = vld [vmem:[#allocation2 + $0x54] sm:$0xe]  ;;  %v2347_v49 = vrot.slane %v2276_v41, 5 }
 0x101   : > { %1962 = vst.msk [vmem:[#allocation3] sm:$0xf] %vm1961_vm7, %v1914_v58  ;;  %v2337_v58 = vrot.slane %v3964_v50, 5  ;;  %v1065_v36 = vor.u32 %v1064_v57, %v3973_v14  ;;  %v3049_v29 = vrot.slane %v2274_v48, 9  ;;  %v1451_v41 = vld [vmem:[#allocation2 + $0x60] sm:$0xf] }
 0x102   : > { %1666 = vrot.lane.b32.xlu0 %v1587_v39, %s3255_s30  ;;  %v1920_v32 = vpop.permute.xlu1 %1919  ;;  %v2140_v39 = vrot.slane %v2139_v13, 4  ;;  %v2111_v63 = vsel %vm3682_vm14, %v2106_v16, %v3948_v3  ;;  %v860_v13 = vld [vmem:[#allocation2 + $0x58] sm:$0xf]  ;;  %v1626_v24 = vshll.u32 %v1451_v41, 16 }
 0x103   : > { %1965 = vst.msk [vmem:[#allocation3 + $0xc] sm:$0xf] %vm1961_vm7, %v1920_v32  ;;  %v1054_v32 = vrot.slane %v1052_v21, 5  ;;  %v2339_v6 = vrot.slane %v2337_v58, 4  ;;  %v1066_v28 = vrot.slane %v1065_v36, 4 }
 0x104   : > { %v1918_v4 = vpop.permute.xlu0 %1917  ;;  %1833 = vrot.lane.b32.xlu1 %v1793_v62, %s3256_s8  ;;  %v899_v62 = vld [vmem:[#allocation2 + $0x58] sm:$0xf]  ;;  %876 = vst.msk [vmem:[#allocation3 + $0x3c] sm:$0xf] %vm492_vm1, %v860_v13  ;;  %v1623_v13 = vshrl.u32 %v1451_v41, 16 }
 0x105   : > { %1964 = vst.msk [vmem:[#allocation3 + $0x8] sm:$0xf] %vm1961_vm7, %v1918_v4  ;;  %v2145_v4 = vsel %vm3682_vm14, %v2140_v39, %v2144_v60  ;;  %v1082_v3 = vshll.u32 %v899_v62, 16  ;;  %v1086_v18 = vshrl.u32 %v899_v62, 16  ;;  %v1055_v23 = vor.u32 %v1054_v32, %v1051_v10  ;;  %v1346_v48 = vld [vmem:[#allocation2 + $0x58] sm:$0xf] }
 0x106   : > { %1831 = vrot.lane.b32.xlu0 %v1790_v2, %s3256_s8  ;;  %v2197_v19 = vpop.permute.xlu1 %2196  ;;  %v858_v2 = vld [vmem:[#allocation2 + $0x4c] sm:$0xf]  ;;  %v2341_v61 = vsel %vm3670_vm11, %v2339_v6, %v2340_v7 }
 0x107   : > { %2244 = vst.msk [vmem:[#allocation3 + $0x4] sm:$0xf] %vm2242_vm8, %v2197_v19  ;;  %v1073_v19 = vshrl.u32 %v898_v0, 16  ;;  %v1056_v5 = vrot.slane %v1055_v23, 4 }
 0x108   : > { %v2195_v27 = vpop.permute.xlu0 %2194  ;;  %1837 = vrot.lane.b32.xlu1 %v1800_v17, %s3256_s8  ;;  %874 = vst.msk [vmem:[#allocation3 + $0x34] sm:$0xf] %vm492_vm1, %v858_v2  ;;  %v3987_v17 = vld [vmem:[#allocation2 + $0x58] sm:$0xf] }
 0x109   : > { %2243 = vst.msk [vmem:[#allocation3] sm:$0xf] %vm2242_vm8, %v2195_v27  ;;  %v1076_v27 = vshll.u32 %v898_v0, 16  ;;  %v2344_v11 = vrot.slane %v3987_v17, 5  ;;  %v1075_v8 = vrot.slane %v1073_v19, 4  ;;  %v1061_v16 = vsel %vm3682_vm14, %v1056_v5, %v3973_v14 }
 0x10a   : > { %1835 = vrot.lane.b32.xlu0 %v1797_v22, %s3256_s8  ;;  %v2201_v44 = vpop.permute.xlu1 %2200  ;;  %v1181_v0 = vld [vmem:[#allocation2 + $0x50] sm:$0x1]  ;;  %v1448_v17 = vld [vmem:[#allocation2 + $0x54] sm:$0xf]  ;;  %v3035_v19 = vrot.slane %v1182_v51, 9 }
 0x10b   : > { %2246 = vst.msk [vmem:[#allocation3 + $0xc] sm:$0xf] %vm2242_vm8, %v2201_v44  ;;  %v4000_v44 = vrot.slane %v1082_v3, 5  ;;  %v2346_v30 = vrot.slane %v2344_v11, 4  ;;  %v2345_v57 = vsel %vm3670_vm11, %v3049_v29, %v2344_v11  ;;  %v1259_v20 = vrot.slane %v1181_v0, 5 }
 0x10c   : > { %v2199_v1 = vpop.permute.xlu0 %2198  ;;  %1931 = vrot.lane.b32.xlu1 %v1890_v40, %s3257_s10  ;;  %v1070_v40 = vrot.slane %v1068_v15, 5  ;;  %v1449_v15 = vld [vmem:[#allocation2 + $0x58] sm:$0xf]  ;;  %v1453_v29 = vld [vmem:[#allocation2 + $0x68] sm:$0x1] }
 0x10d   : > { %2245 = vst.msk [vmem:[#allocation3 + $0x8] sm:$0xf] %vm2242_vm8, %v2199_v1  ;;  %v2338_v1 = vsel %vm3670_vm11, %v3048_v56, %v2337_v58  ;;  %v2348_v60 = vsel %vm3670_vm11, %v2346_v30, %v2347_v49  ;;  %v1612_v56 = vshrl.u32 %v1449_v15, 16  ;;  %v1730_v0 = vld [vmem:[#allocation2 + $0x58] sm:$0xf] }
 0x10e   : > { %1929 = vrot.lane.b32.xlu0 %v1889_v46, %s3257_s10  ;;  %v2366_v25 = vpop.permute.xlu1 %2365  ;;  %v1088_v46 = vrot.slane %v1086_v18, 4  ;;  %v1071_v50 = vsel %vm3682_vm14, %v1066_v28, %v1070_v40 }
 0x10f   : > { %2413 = vst.msk [vmem:[#allocation3 + $0x4] sm:$0xf] %vm2411_vm9, %v2366_v25  ;;  %v1092_v25 = vshll.u32 %v900_v42, 16 }
 0x110   : > { %v2364_v43 = vpop.permute.xlu0 %2363  ;;  %1935 = vrot.lane.b32.xlu1 %v1892_v35, %s3257_s10  ;;  %v1078_v35 = vrot.slane %v1076_v27, 5  ;;  %v1089_v12 = vor.u32 %v1088_v46, %v4000_v44 }
 0x111   : > { %2412 = vst.msk [vmem:[#allocation3] sm:$0xf] %vm2411_vm9, %v2364_v43  ;;  %v1180_v43 = vld [vmem:[#allocation2 + $0x4c] sm:$0xf]  ;;  %v1094_v58 = vrot.slane %v1092_v25, 5 }
 0x112   : > { %1933 = vrot.lane.b32.xlu0 %v1891_v52, %s3257_s10  ;;  %v1107_v55 = vpop.permute.xlu1 %1106  ;;  %v1079_v21 = vor.u32 %v1078_v35, %v1075_v8  ;;  %v1090_v45 = vrot.slane %v1089_v12, 4  ;;  %v1256_v59 = vrot.slane %v1180_v43, 5  ;;  %v1628_v43 = vrot.slane %v1626_v24, 5 }
 0x113   : > { %1150 = vst.msk [vmem:[#allocation3 + $0x14] sm:$0xf] %vm1144_vm0, %v1107_v55 }
 0x114   : > { %v1105_v26 = vpop.permute.xlu0 %1104  ;;  %2212 = vrot.lane.b32.xlu1 %v2121_v37, %s3258_s11  ;;  %v1183_v37 = vld [vmem:[#allocation2 + $0x58] sm:$0xf]  ;;  %v1080_v62 = vrot.slane %v1079_v21, 4  ;;  %v1095_v32 = vsel %vm3682_vm14, %v1090_v45, %v1094_v58  ;;  %v1258_v2 = vrot.slane %v1256_v59, 4  ;;  %v1625_v21 = vrot.slane %v1623_v13, 4 }
 0x115   : > { %1149 = vst.msk [vmem:[#allocation3 + $0x10] sm:$0xf] %vm1144_vm0, %v1105_v26  ;;  %v1263_v10 = vrot.slane %v1183_v37, 5  ;;  %v1184_v26 = vld [vmem:[#allocation2 + $0x5c] sm:$0x1] }
 0x116   : > { %2210 = vrot.lane.b32.xlu0 %v2111_v63, %s3258_s11  ;;  %v2370_v22 = vpop.permute.xlu1 %2369  ;;  %v1179_v63 = vld [vmem:[#allocation2 + $0x48] sm:$0xe]  ;;  %v1085_v6 = vsel %vm3682_vm14, %v1080_v62, %v4000_v44  ;;  %v1266_v18 = vrot.slane %v1184_v26, 5  ;;  %v1614_v44 = vrot.slane %v1612_v56, 4  ;;  %v1629_v62 = vor.u32 %v1628_v43, %v1625_v21  ;;  %v1894_v43 = vld [vmem:[#allocation2 + $0x64] sm:$0xf] }
 0x117   : > { %2415 = vst.msk [vmem:[#allocation3 + $0xc] sm:$0xf] %vm2411_vm9, %v2370_v22  ;;  %v3034_v7 = vrot.slane %v1179_v63, 9  ;;  %v1265_v3 = vrot.slane %v1263_v10, 4  ;;  %v1260_v22 = vsel %vm3670_vm11, %v1258_v2, %v1259_v20  ;;  %v1264_v28 = vsel %vm3670_vm11, %v3035_v19, %v1263_v10  ;;  %v1733_v20 = vld [vmem:[#allocation2 + $0x64] sm:$0xf] }
 0x118   : > { %v2368_v31 = vpop.permute.xlu0 %2367  ;;  %v3201_v33 = vld [vmem:[#allocation3] sm:$0xff]   ;;  %2216 = vrot.lane.b32.xlu1 %v2145_v4, %s3258_s11  ;;  %v1803_v2 = vrot.slane %v1730_v0, 5  ;;  %v1734_v19 = vld [vmem:[#allocation2 + $0x68] sm:$0x1] }
 0x119   : > { %2414 = vst.msk [vmem:[#allocation3 + $0x8] sm:$0xf] %vm2411_vm9, %v2368_v31  ;;  %3124 = vmatprep.mubr.msk.bf16.mxu0 %vm2504_vm10, %v3201_v33  ;;  %v1257_v27 = vsel %vm3670_vm11, %v3034_v7, %v1256_v59  ;;  %v1599_v31 = vshrl.u32 %v1448_v17, 16  ;;  %v1602_v33 = vshll.u32 %v1448_v17, 16  ;;  %v1267_v11 = vsel %vm3670_vm11, %v1265_v3, %v1266_v18 }
 0x11a   : > { %2214 = vrot.lane.b32.xlu0 %v2135_v34, %s3258_s11  ;;  %v1111_v47 = vpop.permute.xlu1 %1110  ;;  %v1608_v34 = vshll.u32 %v1449_v15, 16  ;;  %v1642_v59 = vshll.u32 %v1453_v29, 16  ;;  %v1729_v15 = vld [vmem:[#allocation2 + $0x54] sm:$0xe]  ;;  %v1805_v3 = vrot.slane %v1803_v2, 4 }
 0x11b   : > { %1152 = vst.msk [vmem:[#allocation3 + $0x1c] sm:$0xf] %vm1144_vm0, %v1111_v47  ;;  %v1601_v5 = vrot.slane %v1599_v31, 4  ;;  %v1604_v35 = vrot.slane %v1602_v33, 5  ;;  %v1996_v33 = vld [vmem:[#allocation2 + $0x60] sm:$0xf] }
 0x11c   : > { %v1109_v9 = vpop.permute.xlu0 %1108  ;;  %2381 = vrot.lane.b32.xlu1 %v2341_v61, %s3259_s14  ;;  %v1452_v61 = vld [vmem:[#allocation2 + $0x64] sm:$0xf]  ;;  %v1610_v42 = vrot.slane %v1608_v34, 5 }
 0x11d   : > { %1151 = vst.msk [vmem:[#allocation3 + $0x18] sm:$0xf] %vm1144_vm0, %v1109_v9  ;;  %v1632_v46 = vshll.u32 %v1452_v61, 16  ;;  %v1636_v8 = vshrl.u32 %v1452_v61, 16 }
 0x11e   : > { %2379 = vrot.lane.b32.xlu0 %v2338_v1, %s3259_s14  ;;  %v1279_v52 = vpop.permute.xlu1 %1278  ;;  %v1450_v1 = vld [vmem:[#allocation2 + $0x5c] sm:$0x1]  ;;  %v1615_v49 = vor.u32 %v1614_v44, %v1610_v42 }
 0x11f   : > { %1322 = vst.msk [vmem:[#allocation3 + $0x14] sm:$0xf] %vm1316_vm2, %v1279_v52  ;;  %v1634_v30 = vrot.slane %v1632_v46, 5  ;;  %v1638_v12 = vrot.slane %v1636_v8, 4  ;;  %v1345_v52 = vld [vmem:[#allocation2 + $0x54] sm:$0xf] }
 0x120   : > { %v1277_v53 = vpop.permute.xlu0 %1276  ;;  %v3203_v39 = vld [vmem:[#allocation3 + $0x8] sm:$0xff]   ;;  %1122 = vrot.lane.b32.xlu1 %v1071_v50, %s3253_s23  ;;  %v1618_v50 = vshll.u32 %v1450_v1, 16  ;;  %v2147_v8 = vshrl.u32 %v1996_v33, 16  ;;  %v2000_v1 = vld [vmem:[#allocation2 + $0x70] sm:$0xf] }
 0x121   : > { %1321 = vst.msk [vmem:[#allocation3 + $0x10] sm:$0xf] %vm1316_vm2, %v1277_v53  ;;  %3125 = vmatmul.mubr.msk.bf16.vlgmr.msra.gmra.mxu0 %vm2504_vm10, %v3203_v39  ;;  %v1348_v39 = vld [vmem:[#allocation2 + $0x64] sm:$0xf]  ;;  %v1639_v58 = vor.u32 %v1638_v12, %v1634_v30  ;;  %v1998_v12 = vld [vmem:[#allocation2 + $0x68] sm:$0x1] }
 0x122   : > { %1120 = vrot.lane.b32.xlu0 %v1061_v16, %s3253_s23  ;;  %v1283_v14 = vpop.permute.xlu1 %1282  ;;  %v1605_v16 = vor.u32 %v1604_v35, %v1601_v5  ;;  %v1620_v45 = vrot.slane %v1618_v50, 5  ;;  %v1999_v35 = vld [vmem:[#allocation2 + $0x6c] sm:$0xf]  ;;  %v2184_v50 = vshrl.u32 %v2000_v1, 16 }
 0x123   : > { %1324 = vst.msk [vmem:[#allocation3 + $0x1c] sm:$0xf] %vm1316_vm2, %v1283_v14  ;;  %v1347_v14 = vld [vmem:[#allocation2 + $0x60] sm:$0xf]  ;;  %v1640_v10 = vrot.slane %v1639_v58, 4  ;;  %v2174_v29 = vshll.u32 %v1999_v35, 16 }
 0x124   : > { %v1281_v55 = vpop.permute.xlu0 %1280  ;;  %2385 = vrot.lane.b32.xlu1 %v2348_v60, %s3259_s14  ;;  %v1616_v60 = vrot.slane %v1615_v49, 4  ;;  %v2180_v49 = vshll.u32 %v2000_v1, 16 }
 0x125   : > { %1323 = vst.msk [vmem:[#allocation3 + $0x18] sm:$0xf] %vm1316_vm2, %v1281_v55 }
 0x126   : > { %2383 = vrot.lane.b32.xlu0 %v2345_v57, %s3259_s14  ;;  %v1376_v4 = vpop.permute.xlu1 %1375  ;;  %v1606_v57 = vrot.slane %v1605_v16, 4  ;;  %v1621_v63 = vsel %vm3682_vm14, %v1616_v60, %v1620_v45  ;;  %v2171_v16 = vshrl.u32 %v1999_v35, 16  ;;  %v2182_v60 = vrot.slane %v2180_v49, 5 }
 0x127   : > { %1419 = vst.msk [vmem:[#allocation3 + $0x14] sm:$0xf] %vm1413_vm4, %v1376_v4  ;;  %v1630_v4 = vrot.slane %v1629_v62, 4  ;;  %v2186_v45 = vrot.slane %v2184_v50, 4  ;;  %v2176_v62 = vrot.slane %v2174_v29, 5 }
 0x128   : > { %v1374_v36 = vpop.permute.xlu0 %1373  ;;  %1126 = vrot.lane.b32.xlu1 %v1095_v32, %s3253_s23  ;;  %v1644_v32 = vrot.slane %v1642_v59, 5  ;;  %v1611_v51 = vsel %vm3682_vm14, %v1606_v57, %v1610_v42  ;;  %v1893_v59 = vld [vmem:[#allocation2 + $0x60] sm:$0xf]  ;;  %v2173_v57 = vrot.slane %v2171_v16, 4 }
 0x129   : > { %1418 = vst.msk [vmem:[#allocation3 + $0x10] sm:$0xf] %vm1413_vm4, %v1374_v36  ;;  %v1810_v36 = vrot.slane %v1733_v20, 5  ;;  %v1635_v56 = vsel %vm3682_vm14, %v1630_v4, %v1634_v30 }
 0x12a   : > { %1124 = vrot.lane.b32.xlu0 %v1085_v6, %s3253_s23  ;;  %v1380_v23 = vpop.permute.xlu1 %1379  ;;  %v1731_v6 = vld [vmem:[#allocation2 + $0x5c] sm:$0x1]  ;;  %v1645_v17 = vsel %vm3682_vm14, %v1640_v10, %v1644_v32  ;;  %v2187_v32 = vor.u32 %v2186_v45, %v2182_v60  ;;  %v2177_v4 = vor.u32 %v2176_v62, %v2173_v57 }
 0x12b   : > { %1421 = vst.msk [vmem:[#allocation3 + $0x1c] sm:$0xf] %vm1413_vm4, %v1380_v23  ;;  %v1806_v18 = vrot.slane %v1731_v6, 5  ;;  %v3042_v23 = vrot.slane %v1729_v15, 9  ;;  %v1812_v61 = vrot.slane %v1810_v36, 4 }
 0x12c   : > { %v1378_v40 = vpop.permute.xlu0 %1377  ;;  %1294 = vrot.lane.b32.xlu1 %v1260_v22, %s3252_s24  ;;  %v1732_v22 = vld [vmem:[#allocation2 + $0x60] sm:$0xe]  ;;  %v2278_v6 = vld [vmem:[#allocation2 + $0x64] sm:$0xf] }
 0x12d   : > { %1420 = vst.msk [vmem:[#allocation3 + $0x18] sm:$0xf] %vm1413_vm4, %v1378_v40  ;;  %v1813_v40 = vrot.slane %v1734_v19, 5  ;;  %v3043_v41 = vrot.slane %v1732_v22, 9  ;;  %v1804_v46 = vsel %vm3670_vm11, %v3042_v23, %v1803_v2  ;;  %v2178_v22 = vrot.slane %v2177_v4, 4 }
 0x12e   : > { %1292 = vrot.lane.b32.xlu0 %v1257_v27, %s3252_s24  ;;  %v1657_v47 = vpop.permute.xlu1 %1656  ;;  %v1997_v27 = vld [vmem:[#allocation2 + $0x64] sm:$0xf] }
 0x12f   : > { %1700 = vst.msk [vmem:[#allocation3 + $0x14] sm:$0xf] %vm1694_vm5, %v1657_v47  ;;  %v2160_v42 = vshrl.u32 %v1997_v27, 16  ;;  %v2150_v47 = vshll.u32 %v1996_v33, 16  ;;  %v1814_v13 = vsel %vm3670_vm11, %v1812_v61, %v1813_v40  ;;  %v1811_v24 = vsel %vm3670_vm11, %v3043_v41, %v1810_v36 }
 0x130   : > { %v1655_v9 = vpop.permute.xlu0 %1654  ;;  %1298 = vrot.lane.b32.xlu1 %v1267_v11, %s3252_s24  ;;  %v1807_v11 = vsel %vm3670_vm11, %v1805_v3, %v1806_v18  ;;  %v2188_v36 = vrot.slane %v2187_v32, 4  ;;  %v2351_v3 = vrot.slane %v2278_v6, 5 }
 0x131   : > { %1699 = vst.msk [vmem:[#allocation3 + $0x10] sm:$0xf] %vm1694_vm5, %v1655_v9 }
 0x132   : > { %1296 = vrot.lane.b32.xlu0 %v1264_v28, %s3252_s24  ;;  %v1661_v25 = vpop.permute.xlu1 %1660  ;;  %v2156_v28 = vshll.u32 %v1997_v27, 16  ;;  %v2277_v27 = vld [vmem:[#allocation2 + $0x60] sm:$0xe]  ;;  %v2353_v33 = vrot.slane %v2351_v3, 4 }
 0x133   : > { %1702 = vst.msk [vmem:[#allocation3 + $0x1c] sm:$0xf] %vm1694_vm5, %v1661_v25  ;;  %v2149_v25 = vrot.slane %v2147_v8, 4  ;;  %v2280_v8 = vld [vmem:[#allocation2 + $0x6c] sm:$0xe] }
 0x134   : > { %v1659_v53 = vpop.permute.xlu0 %1658  ;;  %1391 = vrot.lane.b32.xlu1 %v1346_v48, %s3254_s25  ;;  %v2158_v9 = vrot.slane %v2156_v28, 5  ;;  %v2162_v48 = vrot.slane %v2160_v42, 4  ;;  %v3050_v28 = vrot.slane %v2277_v27, 9  ;;  %v2282_v42 = vld [vmem:[#allocation2 + $0x74] sm:$0x1] }
 0x135   : > { %1701 = vst.msk [vmem:[#allocation3 + $0x18] sm:$0xf] %vm1694_vm5, %v1659_v53  ;;  %v2361_v1 = vrot.slane %v2282_v42, 5 }
 0x136   : > { %1389 = vrot.lane.b32.xlu0 %v1345_v52, %s3254_s25  ;;  %v1826_v37 = vpop.permute.xlu1 %1825  ;;  %v2152_v52 = vrot.slane %v2150_v47, 5  ;;  %v2163_v53 = vor.u32 %v2162_v48, %v2158_v9  ;;  %v2352_v35 = vsel %vm3670_vm11, %v3050_v28, %v2351_v3 }
 0x137   : > { %1869 = vst.msk [vmem:[#allocation3 + $0x14] sm:$0xf] %vm1863_vm6, %v1826_v37 }
 0x138   : > { %v1824_v55 = vpop.permute.xlu0 %1823  ;;  %1395 = vrot.lane.b32.xlu1 %v1348_v39, %s3254_s25  ;;  %v2166_v39 = vshll.u32 %v1998_v12, 16  ;;  %v2153_v37 = vor.u32 %v2152_v52, %v2149_v25 }
 0x139   : > { %1868 = vst.msk [vmem:[#allocation3 + $0x10] sm:$0xf] %vm1863_vm6, %v1824_v55  ;;  %v1896_v55 = vld [vmem:[#allocation2 + $0x70] sm:$0xf] }
 0x13a   : > { %1393 = vrot.lane.b32.xlu0 %v1347_v14, %s3254_s25  ;;  %v1830_v26 = vpop.permute.xlu1 %1829  ;;  %v2001_v14 = vld [vmem:[#allocation2 + $0x74] sm:$0x1]  ;;  %v2168_v10 = vrot.slane %v2166_v39, 5 }
 0x13b   : > { %1871 = vst.msk [vmem:[#allocation3 + $0x1c] sm:$0xf] %vm1863_vm6, %v1830_v26  ;;  %v2190_v2 = vshll.u32 %v2001_v14, 16  ;;  %v1895_v26 = vld [vmem:[#allocation2 + $0x6c] sm:$0xf] }
 0x13c   : > { %v1828_v7 = vpop.permute.xlu0 %1827  ;;  %1672 = vrot.lane.b32.xlu1 %v1621_v63, %s3255_s30  ;;  %v2164_v63 = vrot.slane %v2163_v53, 4 }
 0x13d   : > { %1870 = vst.msk [vmem:[#allocation3 + $0x18] sm:$0xf] %vm1863_vm6, %v1828_v7 }
 0x13e   : > { %1670 = vrot.lane.b32.xlu0 %v1611_v51, %s3255_s30  ;;  %v1924_v34 = vpop.permute.xlu1 %1923  ;;  %v2154_v51 = vrot.slane %v2153_v37, 4  ;;  %v2169_v15 = vsel %vm3682_vm14, %v2164_v63, %v2168_v10 }
 0x13f   : > { %1967 = vst.msk [vmem:[#allocation3 + $0x14] sm:$0xf] %vm1961_vm7, %v1924_v34  ;;  %v2279_v34 = vld [vmem:[#allocation2 + $0x68] sm:$0x1] }
 0x140   : > { %v1922_v31 = vpop.permute.xlu0 %1921  ;;  %1676 = vrot.lane.b32.xlu1 %v1645_v17, %s3255_s30  ;;  %v2192_v17 = vrot.slane %v2190_v2, 5  ;;  %v2159_v19 = vsel %vm3682_vm14, %v2154_v51, %v2158_v9  ;;  %v2354_v61 = vrot.slane %v2279_v34, 5 }
 0x141   : > { %1966 = vst.msk [vmem:[#allocation3 + $0x10] sm:$0xf] %vm1961_vm7, %v1922_v31 }
 0x142   : > { %1674 = vrot.lane.b32.xlu0 %v1635_v56, %s3255_s30  ;;  %v1928_v44 = vpop.permute.xlu1 %1927  ;;  %v2281_v56 = vld [vmem:[#allocation2 + $0x70] sm:$0xf]  ;;  %v2193_v31 = vsel %vm3682_vm14, %v2188_v36, %v2192_v17  ;;  %v2355_v47 = vsel %vm3670_vm11, %v2353_v33, %v2354_v61 }
 0x143   : > { %1969 = vst.msk [vmem:[#allocation3 + $0x1c] sm:$0xf] %vm1961_vm7, %v1928_v44  ;;  %v2358_v40 = vrot.slane %v2281_v56, 5 }
 0x144   : > { %v1926_v5 = vpop.permute.xlu0 %1925  ;;  %1841 = vrot.lane.b32.xlu1 %v1807_v11, %s3256_s8  ;;  %v2183_v11 = vsel %vm3682_vm14, %v2178_v22, %v2182_v60 }
 0x145   : > { %1968 = vst.msk [vmem:[#allocation3 + $0x18] sm:$0xf] %vm1961_vm7, %v1926_v5  ;;  %v2360_v38 = vrot.slane %v2358_v40, 4 }
 0x146   : > { %1839 = vrot.lane.b32.xlu0 %v1804_v46, %s3256_s8  ;;  %v2205_v30 = vpop.permute.xlu1 %2204 }
 0x147   : > { %2248 = vst.msk [vmem:[#allocation3 + $0x14] sm:$0xf] %vm2242_vm8, %v2205_v30  ;;  %v2362_v9 = vsel %vm3670_vm11, %v2360_v38, %v2361_v1 }
 0x148   : > { %v2203_v21 = vpop.permute.xlu0 %2202  ;;  %1845 = vrot.lane.b32.xlu1 %v1814_v13, %s3256_s8  ;;  %v3051_v13 = vrot.slane %v2280_v8, 9 }
 0x149   : > { %2247 = vst.msk [vmem:[#allocation3 + $0x10] sm:$0xf] %vm2242_vm8, %v2203_v21 }
 0x14a   : > { %1843 = vrot.lane.b32.xlu0 %v1811_v24, %s3256_s8  ;;  %v2209_v58 = vpop.permute.xlu1 %2208  ;;  %v2359_v49 = vsel %vm3670_vm11, %v3051_v13, %v2358_v40  ;;  %vm2710_vm11 = vcmask 31744  }
 0x14b   : > { %2250 = vst.msk [vmem:[#allocation3 + $0x1c] sm:$0xf] %vm2242_vm8, %v2209_v58 }
 0x14c   : > { %v2207_v0 = vpop.permute.xlu0 %2206  ;;  %1939 = vrot.lane.b32.xlu1 %v1894_v43, %s3257_s10 }
 0x14d   : > { %2249 = vst.msk [vmem:[#allocation3 + $0x18] sm:$0xf] %vm2242_vm8, %v2207_v0 }
 0x14e   : > { %1937 = vrot.lane.b32.xlu0 %v1893_v59, %s3257_s10  ;;  %v2374_v20 = vpop.permute.xlu1 %2373 }
 0x14f   : > { %2417 = vst.msk [vmem:[#allocation3 + $0x14] sm:$0xf] %vm2411_vm9, %v2374_v20 }
 0x150   : > { %v2372_v7 = vpop.permute.xlu0 %2371  ;;  %1943 = vrot.lane.b32.xlu1 %v1896_v55, %s3257_s10 }
 0x151   : > { %2416 = vst.msk [vmem:[#allocation3 + $0x10] sm:$0xf] %vm2411_vm9, %v2372_v7 }
 0x152   : > { %1941 = vrot.lane.b32.xlu0 %v1895_v26, %s3257_s10  ;;  %v1115_v18 = vpop.permute.xlu1 %1114 }
 0x153   : > { %1154 = vst.msk [vmem:[#allocation3 + $0x24] sm:$0xf] %vm1144_vm0, %v1115_v18 }
 0x154   : > { %v1113_v23 = vpop.permute.xlu0 %1112  ;;  %2220 = vrot.lane.b32.xlu1 %v2169_v15, %s3258_s11 }
 0x155   : > { %1153 = vst.msk [vmem:[#allocation3 + $0x20] sm:$0xf] %vm1144_vm0, %v1113_v23 }
 0x156   : > { %2218 = vrot.lane.b32.xlu0 %v2159_v19, %s3258_s11  ;;  %v2378_v41 = vpop.permute.xlu1 %2377 }
 0x157   : > { %2419 = vst.msk [vmem:[#allocation3 + $0x1c] sm:$0xf] %vm2411_vm9, %v2378_v41 }
 0x158   : > { %v2376_v44 = vpop.permute.xlu0 %2375  ;;  %v3204_v46 = vld [vmem:[#allocation3 + $0x10] sm:$0xff]   ;;  %2224 = vrot.lane.b32.xlu1 %v2193_v31, %s3258_s11 }
 0x159   : > { %2418 = vst.msk [vmem:[#allocation3 + $0x18] sm:$0xf] %vm2411_vm9, %v2376_v44  ;;  %3128 = vmatprep.mubr.msk.bf16.mxu0 %vm2504_vm10, %v3204_v46 }
 0x15a   : > { %2222 = vrot.lane.b32.xlu0 %v2183_v11, %s3258_s11  ;;  %v1119_v5 = vpop.permute.xlu1 %1118 }
 0x15b   : > { %1156 = vst.msk [vmem:[#allocation3 + $0x2c] sm:$0xf] %vm1144_vm0, %v1119_v5 }
 0x15c   : > { %v1117_v24 = vpop.permute.xlu0 %1116  ;;  %2389 = vrot.lane.b32.xlu1 %v2355_v47, %s3259_s14 }
 0x15d   : > { %1155 = vst.msk [vmem:[#allocation3 + $0x28] sm:$0xf] %vm1144_vm0, %v1117_v24 }
 0x15e   : > { %2387 = vrot.lane.b32.xlu0 %v2352_v35, %s3259_s14  ;;  %v1287_v48 = vpop.permute.xlu1 %1286 }
 0x15f   : > { %1326 = vst.msk [vmem:[#allocation3 + $0x24] sm:$0xf] %vm1316_vm2, %v1287_v48 }
 0x160   : > { %v1285_v50 = vpop.permute.xlu0 %1284  ;;  %v3205_v30 = vld [vmem:[#allocation3 + $0x18] sm:$0xff]   ;;  %2393 = vrot.lane.b32.xlu1 %v2362_v9, %s3259_s14 }
 0x161   : > { %1325 = vst.msk [vmem:[#allocation3 + $0x20] sm:$0xf] %vm1316_vm2, %v1285_v50  ;;  %3129 = vmatmul.mubr.msk.bf16.gmra.mxu0 %vm2504_vm10, %v3205_v30 }
 0x162   : > { %2391 = vrot.lane.b32.xlu0 %v2359_v49, %s3259_s14  ;;  %v1291_v12 = vpop.permute.xlu1 %1290 }
 0x163   : > { %1328 = vst.msk [vmem:[#allocation3 + $0x2c] sm:$0xf] %vm1316_vm2, %v1291_v12 }
 0x164   : > { %v1289_v25 = vpop.permute.xlu0 %1288 }
 0x165   : > { %1327 = vst.msk [vmem:[#allocation3 + $0x28] sm:$0xf] %vm1316_vm2, %v1289_v25 }
 0x166   : > { %v1384_v54 = vpop.permute.xlu1 %1383 }
 0x167   : > { %1423 = vst.msk [vmem:[#allocation3 + $0x24] sm:$0xf] %vm1413_vm4, %v1384_v54 }
 0x168   : > { %v1382_v52 = vpop.permute.xlu0 %1381 }
 0x169   : > { %1422 = vst.msk [vmem:[#allocation3 + $0x20] sm:$0xf] %vm1413_vm4, %v1382_v52 }
 0x16a   : > { %v1388_v16 = vpop.permute.xlu1 %1387 }
 0x16b   : > { %1425 = vst.msk [vmem:[#allocation3 + $0x2c] sm:$0xf] %vm1413_vm4, %v1388_v16 }
 0x16c   : > { %v1386_v29 = vpop.permute.xlu0 %1385 }
 0x16d   : > { %1424 = vst.msk [vmem:[#allocation3 + $0x28] sm:$0xf] %vm1413_vm4, %v1386_v29 }
 0x16e   : > { %v1665_v21 = vpop.permute.xlu1 %1664 }
 0x16f   : > { %1704 = vst.msk [vmem:[#allocation3 + $0x24] sm:$0xf] %vm1694_vm5, %v1665_v21 }
 0x170   : > { %v1663_v43 = vpop.permute.xlu0 %1662 }
 0x171   : > { %1703 = vst.msk [vmem:[#allocation3 + $0x20] sm:$0xf] %vm1694_vm5, %v1663_v43 }
 0x172   : > { %v1669_v53 = vpop.permute.xlu1 %1668 }
 0x173   : > { %1706 = vst.msk [vmem:[#allocation3 + $0x2c] sm:$0xf] %vm1694_vm5, %v1669_v53 }
 0x174   : > { %v1667_v39 = vpop.permute.xlu0 %1666 }
 0x175   : > { %1705 = vst.msk [vmem:[#allocation3 + $0x28] sm:$0xf] %vm1694_vm5, %v1667_v39 }
 0x176   : > { %v1834_v60 = vpop.permute.xlu1 %1833 }
 0x177   : > { %1873 = vst.msk [vmem:[#allocation3 + $0x24] sm:$0xf] %vm1863_vm6, %v1834_v60 }
 0x178   : > { %v1832_v45 = vpop.permute.xlu0 %1831 }
 0x179   : > { %1872 = vst.msk [vmem:[#allocation3 + $0x20] sm:$0xf] %vm1863_vm6, %v1832_v45 }
 0x17a   : > { %v1838_v58 = vpop.permute.xlu1 %1837 }
 0x17b   : > { %1875 = vst.msk [vmem:[#allocation3 + $0x2c] sm:$0xf] %vm1863_vm6, %v1838_v58 }
 0x17c   : > { %v1836_v59 = vpop.permute.xlu0 %1835 }
 0x17d   : > { %1874 = vst.msk [vmem:[#allocation3 + $0x28] sm:$0xf] %vm1863_vm6, %v1836_v59 }
 0x17e   : > { %v1932_v37 = vpop.permute.xlu1 %1931 }
 0x17f   : > { %1971 = vst.msk [vmem:[#allocation3 + $0x24] sm:$0xf] %vm1961_vm7, %v1932_v37  ;;  %v3260_v37 = vmov 0.0  }
 0x180   : > { %v1930_v14 = vpop.permute.xlu0 %1929  ;;  %2819 = vst.msk [vmem:[%s3411_s17] sm:$0xff] %vm2710_vm11, %v3260_v37 }
 0x181   : > { %1970 = vst.msk [vmem:[#allocation3 + $0x20] sm:$0xf] %vm1961_vm7, %v1930_v14 }
 0x182   : > { %v1936_v57 = vpop.permute.xlu1 %1935 }
 0x183   : > { %1973 = vst.msk [vmem:[#allocation3 + $0x2c] sm:$0xf] %vm1961_vm7, %v1936_v57 }
 0x184   : > { %v1934_v62 = vpop.permute.xlu0 %1933 }
 0x185   : > { %1972 = vst.msk [vmem:[#allocation3 + $0x28] sm:$0xf] %vm1961_vm7, %v1934_v62 }
 0x186   : > { %v2213_v0 = vpop.permute.xlu1 %2212 }
 0x187   : > { %2252 = vst.msk [vmem:[#allocation3 + $0x24] sm:$0xf] %vm2242_vm8, %v2213_v0 }
 0x188   : > { %v2211_v55 = vpop.permute.xlu0 %2210 }
 0x189   : > { %2251 = vst.msk [vmem:[#allocation3 + $0x20] sm:$0xf] %vm2242_vm8, %v2211_v55 }
 0x18a   : > { %v2217_v63 = vpop.permute.xlu1 %2216 }
 0x18b   : > { %2254 = vst.msk [vmem:[#allocation3 + $0x2c] sm:$0xf] %vm2242_vm8, %v2217_v63 }
 0x18c   : > { %v2215_v10 = vpop.permute.xlu0 %2214 }
 0x18d   : > { %2253 = vst.msk [vmem:[#allocation3 + $0x28] sm:$0xf] %vm2242_vm8, %v2215_v10 }
 0x18e   : > { %v2382_v32 = vpop.permute.xlu1 %2381 }
 0x18f   : > { %2421 = vst.msk [vmem:[#allocation3 + $0x24] sm:$0xf] %vm2411_vm9, %v2382_v32 }
 0x190   : > { %v2380_v2 = vpop.permute.xlu0 %2379 }
 0x191   : > { %2420 = vst.msk [vmem:[#allocation3 + $0x20] sm:$0xf] %vm2411_vm9, %v2380_v2 }
 0x192   : > { %v1123_v20 = vpop.permute.xlu1 %1122 }
 0x193   : > { %1158 = vst.msk [vmem:[#allocation3 + $0x34] sm:$0xf] %vm1144_vm0, %v1123_v20 }
 0x194   : > { %v1121_v26 = vpop.permute.xlu0 %1120 }
 0x195   : > { %1157 = vst.msk [vmem:[#allocation3 + $0x30] sm:$0xf] %vm1144_vm0, %v1121_v26 }
 0x196   : > { %v2386_v51 = vpop.permute.xlu1 %2385 }
 0x197   : > { %2423 = vst.msk [vmem:[#allocation3 + $0x2c] sm:$0xf] %vm2411_vm9, %v2386_v51 }
 0x198   : > { %v2384_v4 = vpop.permute.xlu0 %2383  ;;  %v3206_v6 = vld [vmem:[#allocation3 + $0x20] sm:$0xff]  }
 0x199   : > { %2422 = vst.msk [vmem:[#allocation3 + $0x28] sm:$0xf] %vm2411_vm9, %v2384_v4  ;;  %3132 = vmatprep.mubr.msk.bf16.mxu1 %vm2504_vm10, %v3206_v6 }
 0x19a   : > { %v1127_v7 = vpop.permute.xlu1 %1126 }
 0x19b   : > { %1160 = vst.msk [vmem:[#allocation3 + $0x3c] sm:$0xf] %vm1144_vm0, %v1127_v7 }
 0x19c   : > { %v1125_v15 = vpop.permute.xlu0 %1124 }
 0x19d   : > { %1159 = vst.msk [vmem:[#allocation3 + $0x38] sm:$0xf] %vm1144_vm0, %v1125_v15 }
 0x19e   : > { %v1295_v36 = vpop.permute.xlu1 %1294 }
 0x19f   : > { %1330 = vst.msk [vmem:[#allocation3 + $0x34] sm:$0xf] %vm1316_vm2, %v1295_v36 }
 0x1a0   : > { %v1293_v17 = vpop.permute.xlu0 %1292  ;;  %v3207_v3 = vld [vmem:[#allocation3 + $0x28] sm:$0xff]  }
 0x1a1   : > { %1329 = vst.msk [vmem:[#allocation3 + $0x30] sm:$0xf] %vm1316_vm2, %v1293_v17  ;;  %3133 = vmatmul.mubr.msk.bf16.vlgmr.msra.gmra.mxu1 %vm2504_vm10, %v3207_v3 }
 0x1a2   : > { %v1299_v18 = vpop.permute.xlu1 %1298 }
 0x1a3   : > { %1332 = vst.msk [vmem:[#allocation3 + $0x3c] sm:$0xf] %vm1316_vm2, %v1299_v18 }
 0x1a4   : > { %v1297_v19 = vpop.permute.xlu0 %1296 }
 0x1a5   : > { %1331 = vst.msk [vmem:[#allocation3 + $0x38] sm:$0xf] %vm1316_vm2, %v1297_v19 }
 0x1a6   : > { %v1392_v22 = vpop.permute.xlu1 %1391 }
 0x1a7   : > { %1427 = vst.msk [vmem:[#allocation3 + $0x34] sm:$0xf] %vm1413_vm4, %v1392_v22 }
 0x1a8   : > { %v1390_v34 = vpop.permute.xlu0 %1389 }
 0x1a9   : > { %1426 = vst.msk [vmem:[#allocation3 + $0x30] sm:$0xf] %vm1413_vm4, %v1390_v34 }
 0x1aa   : > { %v1396_v56 = vpop.permute.xlu1 %1395 }
 0x1ab   : > { %1429 = vst.msk [vmem:[#allocation3 + $0x3c] sm:$0xf] %vm1413_vm4, %v1396_v56 }
 0x1ac   : > { %v1394_v23 = vpop.permute.xlu0 %1393 }
 0x1ad   : > { %1428 = vst.msk [vmem:[#allocation3 + $0x38] sm:$0xf] %vm1413_vm4, %v1394_v23 }
 0x1ae   : > { %v1673_v27 = vpop.permute.xlu1 %1672 }
 0x1af   : > { %1708 = vst.msk [vmem:[#allocation3 + $0x34] sm:$0xf] %vm1694_vm5, %v1673_v27 }
 0x1b0   : > { %v1671_v31 = vpop.permute.xlu0 %1670 }
 0x1b1   : > { %1707 = vst.msk [vmem:[#allocation3 + $0x30] sm:$0xf] %vm1694_vm5, %v1671_v31 }
 0x1b2   : > { %v1677_v33 = vpop.permute.xlu1 %1676 }
 0x1b3   : > { %1710 = vst.msk [vmem:[#allocation3 + $0x3c] sm:$0xf] %vm1694_vm5, %v1677_v33 }
 0x1b4   : > { %v1675_v61 = vpop.permute.xlu0 %1674 }
 0x1b5   : > { %1709 = vst.msk [vmem:[#allocation3 + $0x38] sm:$0xf] %vm1694_vm5, %v1675_v61 }
 0x1b6   : > { %v1842_v40 = vpop.permute.xlu1 %1841 }
 0x1b7   : > { %1877 = vst.msk [vmem:[#allocation3 + $0x34] sm:$0xf] %vm1863_vm6, %v1842_v40 }
 0x1b8   : > { %v1840_v41 = vpop.permute.xlu0 %1839 }
 0x1b9   : > { %1876 = vst.msk [vmem:[#allocation3 + $0x30] sm:$0xf] %vm1863_vm6, %v1840_v41 }
 0x1ba   : > { %v1846_v11 = vpop.permute.xlu1 %1845 }
 0x1bb   : > { %1879 = vst.msk [vmem:[#allocation3 + $0x3c] sm:$0xf] %vm1863_vm6, %v1846_v11 }
 0x1bc   : > { %v1844_v28 = vpop.permute.xlu0 %1843 }
 0x1bd   : > { %1878 = vst.msk [vmem:[#allocation3 + $0x38] sm:$0xf] %vm1863_vm6, %v1844_v28 }
 0x1be   : > { %v1940_v42 = vpop.permute.xlu1 %1939 }
 0x1bf   : > { %1975 = vst.msk [vmem:[#allocation3 + $0x34] sm:$0xf] %vm1961_vm7, %v1940_v42 }
 0x1c0   : > { %v1938_v44 = vpop.permute.xlu0 %1937 }
 0x1c1   : > { %1974 = vst.msk [vmem:[#allocation3 + $0x30] sm:$0xf] %vm1961_vm7, %v1938_v44 }
 0x1c2   : > { %v1944_v46 = vpop.permute.xlu1 %1943 }
 0x1c3   : > { %1977 = vst.msk [vmem:[#allocation3 + $0x3c] sm:$0xf] %vm1961_vm7, %v1944_v46 }
 0x1c4   : > { %v1942_v8 = vpop.permute.xlu0 %1941 }
 0x1c5   : > { %1976 = vst.msk [vmem:[#allocation3 + $0x38] sm:$0xf] %vm1961_vm7, %v1942_v8 }
 0x1c6   : > { %v2221_v47 = vpop.permute.xlu1 %2220 }
 0x1c7   : > { %2256 = vst.msk [vmem:[#allocation3 + $0x34] sm:$0xf] %vm2242_vm8, %v2221_v47 }
 0x1c8   : > { %v2219_v38 = vpop.permute.xlu0 %2218 }
 0x1c9   : > { %2255 = vst.msk [vmem:[#allocation3 + $0x30] sm:$0xf] %vm2242_vm8, %v2219_v38 }
 0x1ca   : > { %v2225_v1 = vpop.permute.xlu1 %2224 }
 0x1cb   : > { %2258 = vst.msk [vmem:[#allocation3 + $0x3c] sm:$0xf] %vm2242_vm8, %v2225_v1 }
 0x1cc   : > { %v2223_v5 = vpop.permute.xlu0 %2222 }
 0x1cd   : > { %2257 = vst.msk [vmem:[#allocation3 + $0x38] sm:$0xf] %vm2242_vm8, %v2223_v5 }
 0x1ce   : > { %v2390_v35 = vpop.permute.xlu1 %2389 }
 0x1cf   : > { %2425 = vst.msk [vmem:[#allocation3 + $0x34] sm:$0xf] %vm2411_vm9, %v2390_v35 }
 0x1d0   : > { %v2388_v13 = vpop.permute.xlu0 %2387 }
 0x1d1   : > { %2424 = vst.msk [vmem:[#allocation3 + $0x30] sm:$0xf] %vm2411_vm9, %v2388_v13 }
 0x1d2   : > { %v2394_v24 = vpop.permute.xlu1 %2393 }
 0x1d3   : > { %2427 = vst.msk [vmem:[#allocation3 + $0x3c] sm:$0xf] %vm2411_vm9, %v2394_v24 }
 0x1d4   : > { %v2392_v9 = vpop.permute.xlu0 %2391 }
 0x1d5   : > { %2426 = vst.msk [vmem:[#allocation3 + $0x38] sm:$0xf] %vm2411_vm9, %v2392_v9 }
 0x1d8   : > { %v3208_v48 = vld [vmem:[#allocation3 + $0x30] sm:$0xff]  }
 0x1d9   : > { %3136 = vmatprep.mubr.msk.bf16.mxu1 %vm2504_vm10, %v3208_v48 }
 0x1dc   : > { %v3209_v49 = vld [vmem:[#allocation3 + $0x38] sm:$0xff]  }
 0x1dd   : > { %3137 = vmatmul.mubr.msk.bf16.gmra.mxu1 %vm2504_vm10, %v3209_v49 }
 0x1e1   : > { %v4198_v50 = vpop.f32.mrf.mxu0 }
 0x1e2   : > { %v3093_v30 = vpack.c.bf16 %v4198_v50, %v4198_v50  ;;  %v2714_v51 = vsel %vm2710_vm11, %v4198_v50, 0.0 }
 0x1e3   : > { %v4202_v12 = vpop.f32.mrf.mxu0 }
 0x1e4   : > { %2696 = vst.msk [vmem:[%s3402_s12 + $0x8] sm:$0xf] %vm492_vm1, %v3093_v30  ;;  %v3091_v25 = vpack.c.bf16 %v4202_v12, %v4202_v12  ;;  %v2711_v20 = vsel %vm2710_vm11, %v4202_v12, 0.0 }
 0x1e5   : > { %v4208_v54 = vpop.f32.mrf.mxu0 }
 0x1e6   : > { %2694 = vst.msk [vmem:[%s3402_s12] sm:$0xf] %vm492_vm1, %v3091_v25  ;;  %v3094_v52 = vpack.c.bf16 %v4208_v54, %v4208_v54  ;;  %v2716_v6 = vsel %vm2710_vm11, %v4208_v54, 0.0 }
 0x1e7   : > { %v4214_v16 = vpop.f32.mrf.mxu0 }
 0x1e8   : > { %2697 = vst.msk [vmem:[%s3402_s12 + $0xc] sm:$0xf] %vm492_vm1, %v3094_v52  ;;  %v3092_v29 = vpack.c.bf16 %v4214_v16, %v4214_v16  ;;  %v2712_v2 = vsel %vm2710_vm11, %v4214_v16, 0.0 }
 0x1e9   : > { %v2713_v26 = vadd.f32 %v2712_v2, %v2711_v20 }
 0x1ea   : > { %2695 = vst.msk [vmem:[%s3402_s12 + $0x4] sm:$0xf] %vm492_vm1, %v3092_v29 }
 0x1eb   : > { %v2715_v4 = vadd.f32 %v2714_v51, %v2713_v26 }
 0x1ed   : > { %v2717_v15 = vadd.f32 %v2716_v6, %v2715_v4 }
 0x221   : > { %v4222_v21 = vpop.f32.mrf.mxu0 }
 0x222   : > { %v3097_v43 = vpack.c.bf16 %v4222_v21, %v4222_v21  ;;  %v2722_v18 = vsel %vm2710_vm11, %v4222_v21, 0.0 }
 0x223   : > { %v4226_v53 = vpop.f32.mrf.mxu0 }
 0x224   : > { %2700 = vst.msk [vmem:[%s3402_s12 + $0x18] sm:$0xf] %vm492_vm1, %v3097_v43  ;;  %v3095_v39 = vpack.c.bf16 %v4226_v53, %v4226_v53  ;;  %v2718_v7 = vsel %vm2710_vm11, %v4226_v53, 0.0 }
 0x225   : > { %v4232_v60 = vpop.f32.mrf.mxu0  ;;  %v2719_v17 = vadd.f32 %v2718_v7, %v2717_v15 }
 0x226   : > { %2698 = vst.msk [vmem:[%s3402_s12 + $0x10] sm:$0xf] %vm492_vm1, %v3095_v39  ;;  %v3098_v45 = vpack.c.bf16 %v4232_v60, %v4232_v60  ;;  %v2724_v22 = vsel %vm2710_vm11, %v4232_v60, 0.0 }
 0x227   : > { %v4238_v58 = vpop.f32.mrf.mxu0 }
 0x228   : > { %2701 = vst.msk [vmem:[%s3402_s12 + $0x1c] sm:$0xf] %vm492_vm1, %v3098_v45  ;;  %v3096_v59 = vpack.c.bf16 %v4238_v58, %v4238_v58  ;;  %v2720_v36 = vsel %vm2710_vm11, %v4238_v58, 0.0 }
 0x229   : > { %v2721_v3 = vadd.f32 %v2720_v36, %v2719_v17 }
 0x22a   : > { %2699 = vst.msk [vmem:[%s3402_s12 + $0x14] sm:$0xf] %vm492_vm1, %v3096_v59 }
 0x22b   : > { %v2723_v19 = vadd.f32 %v2722_v18, %v2721_v3 }
 0x22d   : > { %v2725_v56 = vadd.f32 %v2724_v22, %v2723_v19 }
 0x261   : > { %v4248_v14 = vpop.f32.mrf.mxu1 }
 0x262   : > { %v3101_v57 = vpack.c.bf16 %v4248_v14, %v4248_v14  ;;  %v2730_v33 = vsel %vm2710_vm11, %v4248_v14, 0.0 }
 0x263   : > { %v4252_v62 = vpop.f32.mrf.mxu1 }
 0x264   : > { %2704 = vst.msk [vmem:[%s3402_s12 + $0x28] sm:$0xf] %vm492_vm1, %v3101_v57  ;;  %v3099_v0 = vpack.c.bf16 %v4252_v62, %v4252_v62  ;;  %v2726_v34 = vsel %vm2710_vm11, %v4252_v62, 0.0 }
 0x265   : > { %v4258_v55 = vpop.f32.mrf.mxu1  ;;  %v2727_v27 = vadd.f32 %v2726_v34, %v2725_v56 }
 0x266   : > { %2702 = vst.msk [vmem:[%s3402_s12 + $0x20] sm:$0xf] %vm492_vm1, %v3099_v0  ;;  %v3102_v63 = vpack.c.bf16 %v4258_v55, %v4258_v55  ;;  %v2732_v28 = vsel %vm2710_vm11, %v4258_v55, 0.0 }
 0x267   : > { %v4264_v10 = vpop.f32.mrf.mxu1 }
 0x268   : > { %2705 = vst.msk [vmem:[%s3402_s12 + $0x2c] sm:$0xf] %vm492_vm1, %v3102_v63  ;;  %v3100_v32 = vpack.c.bf16 %v4264_v10, %v4264_v10  ;;  %v2728_v23 = vsel %vm2710_vm11, %v4264_v10, 0.0 }
 0x269   : > { %v2729_v31 = vadd.f32 %v2728_v23, %v2727_v27 }
 0x26a   : > { %2703 = vst.msk [vmem:[%s3402_s12 + $0x24] sm:$0xf] %vm492_vm1, %v3100_v32 }
 0x26b   : > { %v2731_v61 = vadd.f32 %v2730_v33, %v2729_v31 }
 0x26d   : > { %v2733_v46 = vadd.f32 %v2732_v28, %v2731_v61 }
 0x29d   : > { %v4294_v40 = vpop.f32.mrf.mxu1 }
 0x29e   : > { %v3105_v41 = vpack.c.bf16 %v4294_v40, %v4294_v40  ;;  %v2738_v24 = vsel %vm2710_vm11, %v4294_v40, 0.0 }
 0x29f   : > { %v4298_v11 = vpop.f32.mrf.mxu1 }
 0x2a0   : > { %2708 = vst.msk [vmem:[%s3402_s12 + $0x38] sm:$0xf] %vm492_vm1, %v3105_v41  ;;  %v3103_v42 = vpack.c.bf16 %v4298_v11, %v4298_v11  ;;  %v2734_v44 = vsel %vm2710_vm11, %v4298_v11, 0.0 }
 0x2a1   : > { %v4308_v8 = vpop.f32.mrf.mxu1  ;;  %v2735_v38 = vadd.f32 %v2734_v44, %v2733_v46 }
 0x2a2   : > { %2706 = vst.msk [vmem:[%s3402_s12 + $0x30] sm:$0xf] %vm492_vm1, %v3103_v42  ;;  %v3106_v47 = vpack.c.bf16 %v4308_v8, %v4308_v8  ;;  %v2740_v48 = vsel %vm2710_vm11, %v4308_v8, 0.0 }
 0x2a3   : > { %v2618_v1 = vpop.f32.mrf.mxu1 }
 0x2a4   : > { %2709 = vst.msk [vmem:[%s3402_s12 + $0x3c] sm:$0xf] %vm492_vm1, %v3106_v47  ;;  %v3104_v5 = vpack.c.bf16 %v2618_v1, %v2618_v1  ;;  %v2736_v35 = vsel %vm2710_vm11, %v2618_v1, 0.0 }
 0x2a5   : > { %v2737_v13 = vadd.f32 %v2736_v35, %v2735_v38 }
 0x2a6   : > { %2707 = vst.msk [vmem:[%s3402_s12 + $0x34] sm:$0xf] %vm492_vm1, %v3104_v5 }
 0x2a7   : > { %v2739_v9 = vadd.f32 %v2738_v24, %v2737_v13 }
 0x2a9   : > { %v2741_v49 = vadd.f32 %v2740_v48, %v2739_v9 }
 0x2ab   : > { %v2742_v30 = vrot.slane %v2741_v49, 4 }
 0x2ad   : > { %v2743_v25 = vadd.f32 %v2742_v30, %v2741_v49 }
 0x2af   : > { %v2744_v52 = vrot.slane %v2743_v25, 2 }
 0x2b1   : > { %v2745_v29 = vadd.f32 %v2744_v52, %v2743_v25 }
 0x2b3   : > { %v2746_v43 = vrot.slane %v2745_v29, 1 }
 0x2b5   : > { %v2747_v39 = vadd.f32 %v2746_v43, %v2745_v29 }
 0x2b7   : > { %v2749_v45 = vmul.f32 0.0078125, %v2747_v39  ;;  %2821 = vst.msk [vmem:[%s3411_s17] sm:$0x1] %vm500_vm3, %v2747_v39 }
 0x2b9   : > { %v2750_v59 = vsub.f32 %v4202_v12, %v2749_v45  ;;  %v2751_v37 = vsub.f32 %v4214_v16, %v2749_v45  ;;  %v2752_v57 = vsub.f32 %v4198_v50, %v2749_v45  ;;  %v2753_v0 = vsub.f32 %v4208_v54, %v2749_v45 }
 0x2ba   : > { %v2754_v2 = vsub.f32 %v4226_v53, %v2749_v45  ;;  %v2755_v26 = vsub.f32 %v4238_v58, %v2749_v45  ;;  %v2756_v12 = vsub.f32 %v4222_v21, %v2749_v45  ;;  %v2757_v54 = vsub.f32 %v4232_v60, %v2749_v45 }
 0x2bb   : > { %v2766_v63 = vmul.f32 %v2750_v59, %v2750_v59  ;;  %v2767_v32 = vmul.f32 %v2751_v37, %v2751_v37  ;;  %v2768_v20 = vmul.f32 %v2752_v57, %v2752_v57  ;;  %v2769_v51 = vmul.f32 %v2753_v0, %v2753_v0 }
 0x2bc   : > { %v2770_v16 = vmul.f32 %v2754_v2, %v2754_v2  ;;  %v2771_v36 = vmul.f32 %v2755_v26, %v2755_v26  ;;  %v2758_v58 = vsub.f32 %v4252_v62, %v2749_v45  ;;  %v2772_v3 = vmul.f32 %v2756_v12, %v2756_v12 }
 0x2bd   : > { %v2782_v4 = vsel %vm2710_vm11, %v2766_v63, 0.0  ;;  %v2783_v6 = vsel %vm2710_vm11, %v2767_v32, 0.0  ;;  %v2785_v50 = vsel %vm2710_vm11, %v2768_v20, 0.0  ;;  %v2787_v53 = vsel %vm2710_vm11, %v2769_v51, 0.0 }
 0x2be   : > { %v2784_v7 = vadd.f32 %v2783_v6, %v2782_v4  ;;  %v2789_v18 = vsel %vm2710_vm11, %v2770_v16, 0.0  ;;  %v2759_v22 = vsub.f32 %v4264_v10, %v2749_v45  ;;  %v2773_v34 = vmul.f32 %v2757_v54, %v2757_v54 }
 0x2bf   : > { %v2791_v21 = vsel %vm2710_vm11, %v2771_v36, 0.0  ;;  %v2760_v23 = vsub.f32 %v4248_v14, %v2749_v45  ;;  %v2774_v27 = vmul.f32 %v2758_v58, %v2758_v58  ;;  %v2793_v60 = vsel %vm2710_vm11, %v2772_v3, 0.0 }
 0x2c0   : > { %v2786_v15 = vadd.f32 %v2785_v50, %v2784_v7  ;;  %v2761_v33 = vsub.f32 %v4258_v55, %v2749_v45  ;;  %v2775_v61 = vmul.f32 %v2759_v22, %v2759_v22  ;;  %v2795_v62 = vsel %vm2710_vm11, %v2773_v34, 0.0 }
 0x2c1   : > { %v2762_v28 = vsub.f32 %v4298_v11, %v2749_v45  ;;  %v2776_v42 = vmul.f32 %v2760_v23, %v2760_v23  ;;  %v2797_v10 = vsel %vm2710_vm11, %v2774_v27, 0.0  ;;  %v2763_v46 = vsub.f32 %v2618_v1, %v2749_v45 }
 0x2c2   : > { %v2788_v17 = vadd.f32 %v2787_v53, %v2786_v15  ;;  %v2777_v47 = vmul.f32 %v2761_v33, %v2761_v33  ;;  %v2799_v14 = vsel %vm2710_vm11, %v2775_v61, 0.0  ;;  %v2764_v5 = vsub.f32 %v4294_v40, %v2749_v45 }
 0x2c3   : > { %v2778_v35 = vmul.f32 %v2762_v28, %v2762_v28  ;;  %v2801_v55 = vsel %vm2710_vm11, %v2776_v42, 0.0  ;;  %v2765_v24 = vsub.f32 %v4308_v8, %v2749_v45  ;;  %v2779_v9 = vmul.f32 %v2763_v46, %v2763_v46 }
 0x2c4   : > { %v2790_v19 = vadd.f32 %v2789_v18, %v2788_v17  ;;  %v2803_v11 = vsel %vm2710_vm11, %v2777_v47, 0.0  ;;  %v2780_v49 = vmul.f32 %v2764_v5, %v2764_v5 }
 0x2c5   : > { %v2805_v1 = vsel %vm2710_vm11, %v2778_v35, 0.0  ;;  %v2781_v25 = vmul.f32 %v2765_v24, %v2765_v24  ;;  %v2807_v52 = vsel %vm2710_vm11, %v2779_v9, 0.0 }
 0x2c6   : > { %v2792_v56 = vadd.f32 %v2791_v21, %v2790_v19  ;;  %v2809_v40 = vsel %vm2710_vm11, %v2780_v49, 0.0 }
 0x2c7   : > { %v2811_v39 = vsel %vm2710_vm11, %v2781_v25, 0.0 }
 0x2c8   : > { %v2794_v31 = vadd.f32 %v2793_v60, %v2792_v56 }
 0x2ca   : > { %v2796_v41 = vadd.f32 %v2795_v62, %v2794_v31 }
 0x2cc   : > { %v2798_v44 = vadd.f32 %v2797_v10, %v2796_v41 }
 0x2ce   : > { %v2800_v38 = vadd.f32 %v2799_v14, %v2798_v44 }
 0x2d0   : > { %v2802_v13 = vadd.f32 %v2801_v55, %v2800_v38 }
 0x2d2   : > { %v2804_v48 = vadd.f32 %v2803_v11, %v2802_v13 }
 0x2d4   : > { %v2806_v30 = vadd.f32 %v2805_v1, %v2804_v48 }
 0x2d6   : > { %v2808_v29 = vadd.f32 %v2807_v52, %v2806_v30 }
 0x2d8   : > { %v2810_v43 = vadd.f32 %v2809_v40, %v2808_v29 }
 0x2da   : > { %v2812_v59 = vadd.f32 %v2811_v39, %v2810_v43 }
 0x2dc   : > { %v2813_v8 = vrot.slane %v2812_v59, 4 }
 0x2de   : > { %v2814_v45 = vadd.f32 %v2813_v8, %v2812_v59 }
 0x2e0   : > { %v2815_v37 = vrot.slane %v2814_v45, 2 }
 0x2e2   : > { %v2816_v57 = vadd.f32 %v2815_v37, %v2814_v45 }
 0x2e4   : > { %v2817_v0 = vrot.slane %v2816_v57, 1 }
 0x2e6   : > { %v2818_v63 = vadd.f32 %v2817_v0, %v2816_v57 }
 0x2e8   : > { %2822 = vst.msk [vmem:[%s3411_s17 + $0x1] sm:$0x1] %vm500_vm3, %v2818_v63 }
 0x2e9 PF: > { %s18_s3 = sadd.s32 1, %s3248_s3   ;;  %s4394_s24 = smov %s3240_s26 }
 0x2ea   : > { %p15_p0 = scmp.ge.s32.totalorder %s18_s3, 6   ;;  %s4395_s25 = smov %s3244_s27 }
 0x2eb   : > { %s4396_s26 = smov %s4399_s4  ;;  %s4397_s27 = smov %s4403_s28 }
 0x2ec   :  { %17 = sbr.rel (!%p15_p0) target bundleno = 3 (0x3), region = 103 }

// kernel: _forward_jit.4
= control target key start
LH: loop header
LB: loop body
LE: loop exit
PB: predicated region body
PF: predicated region fallthrough
CT: control target
= control target key end

     0   :  { %s3576_s24 = smov 0   ;;  %s3578_s25 = smov 0   ;;  %s4697_s0 = inlined_call_operand.vmem [shape: bf16[2,16,16,4], index: 0, kind: input, shape index: {}, may-alias: {0,1,2}]   ;;  %s4698_s1 = inlined_call_operand.vmem [shape: bf16[2,16,16,4], index: 1, kind: input, shape index: {}, may-alias: {0,1,2}]   ;;  %s4699_s2 = inlined_call_operand.vmem [shape: bf16[2,16,16,4], index: 2, kind: input, shape index: {}, may-alias: {0,1,2}]   ;;  %s4700_s3 = inlined_call_operand.vmem [shape: f32[1,4], index: 3, kind: input, shape index: {}]   ;;  %s4701_s4 = inlined_call_operand.vmem [shape: f32[1,4], index: 4, kind: input, shape index: {}]   ;;  %s4702_s5 = inlined_call_operand.vmem [shape: bf16[36,4], index: 5, kind: input, shape index: {}]   ;;  %s4703_s6 = inlined_call_operand.vmem [shape: bf16[512,4], index: 6, kind: output, shape index: {0}]   ;;  %s4704_s7 = inlined_call_operand.vmem [shape: f32[32,4], index: 7, kind: output, shape index: {1}]  }
   0x1   :  { %s3580_s26 = smov 0   ;;  %s3582_s27 = smov 0  }
   0x2   :  { %s3584_s28 = smov 0  }
   0x3 LB: > { %s27_s29 = sadd.s32 1, %s3515_s26  ;;  %s30_s30 = sadd.s32 1, %s3519_s27  ;;  %s3523_s28 = sphi %s3584_s28, %s18_s28   ;;  %s3519_s27 = sphi %s3582_s27, %s4724_s27   ;;  %s3515_s26 = sphi %s3580_s26, %s4723_s26   ;;  %s3511_s25 = sphi %s3578_s25, %s4722_s25   ;;  %s3507_s24 = sphi %s3576_s24, %s4721_s24  }
   0x4   : > { %p28_p0 = scmp.ge.s32.totalorder %s27_s29, 2  ;;  %p3181_p1 = scmp.ge.s32.totalorder %s3523_s28, 1 }
   0x5   : > { %p332_p2 = scmp.lt.s32.totalorder %s3523_s28, 5 }
   0x6   : > { %s4726_s29 = smov (%p28_p0, %s27_s29), 0  ;;  %s4728_s30 = smov (!%p28_p0, %s30_s30), %s3519_s27 }
   0x7   : > { %p333_p3 = pnand %p3181_p1, %p332_p2  ;;  %p32_p4 = scmp.ge.s32.totalorder %s4728_s30, 2 }
   0x8   : > { %s3611_s8 = sshll.u32 (!%p333_p3), %s3507_s24, 3  ;;  %p407_p5 = scmp.lt.s32.totalorder (!%p333_p3), %s3511_s25, 1 }
   0x9   : > { %s4730_s30 = smov (%p32_p4, %s4728_s30), 0  ;;  %336 = sbr.rel (%p333_p3) target bundleno = 764 (0x2fc), region = 44 }
   0xa   : > { %4705 = sst [smem:[#allocation4_spill]] %s4730_s30  ;;  %s3183_s9 = sadd.s32 (!%p333_p3), 4294967295, %s3611_s8 }
   0xb   : > { %p423_p6 = scmp.lt.s32.totalorder (!%p333_p3), %s3611_s8, 15  ;;  %p405_p7 = scmp.gt.s32.totalorder (!%p333_p3), %s3183_s9, 0 }
   0xc   : > { %p3184_p8 = scmp.lt.s32.totalorder (!%p333_p3), %s3183_s9, 15  ;;  %s3203_s12 = sshll.u32 (!%p333_p3), %s3511_s25, 1 }
   0xd   : > { %s3622_s15 = sadd.s32 (!%p333_p3), %s3507_s24, %s3203_s12  ;;  %p3234_p12 = scmp.ne.s32.totalorder (!%p333_p3), %s3507_s24, 0 }
   0xe   : > { %s408_s10 = scalar_select %p407_p5, %s3511_s25, 1  ;;  %v3638_v1 = vld [vmem:[%s4700_s3] ss:$0 sm:$0xff]  ;;  %vm497_vm0 = vsmask.f32 256  ;;  %vm528_vm1 = vcmask 24576  }
   0xf   : > { %s4732_s9 = smov (!%p405_p7, %s3183_s9), 0  ;;  %p460_p10 = scmp.lt.s32.totalorder %s3622_s15, 3  ;;  %v3651_v7 = vld [vmem:[%s4701_s4] ss:$0 sm:$0xff]  ;;  %vm520_vm2 = vcmask 27648   ;;  %vm3703_vm4 = vmand %vm528_vm1, %vm497_vm0 }
  0x10   : > { %s3617_s11 = sshll.u32 %s408_s10, 5  ;;  %s4734_s9 = smov (!%p3184_p8, %s4732_s9), 15  ;;  %vm521_vm3 = vsmask.f32 7938  ;;  %v523_v48 = vld [vmem:[#allocation2] sm:$0xf] }
  0x11   : > { %s424_s13 = scalar_select %p423_p6, %s3611_s8, 15  ;;  %v530_v49 = vld [vmem:[#allocation2 + $0x8] sm:$0x1]  ;;  %v836_v57 = vld [vmem:[#allocation2 + $0xc] sm:$0xf]  ;;  %vm3712_vm5 = vmand %vm520_vm2, %vm521_vm3 }
  0x12   : > { %s3189_s14 = sshll.u32 %s4734_s9, 1  ;;  %s3204_s9 = sshll.u32 %s3622_s15, 4  ;;  %v840_v63 = vld [vmem:[#allocation2 + $0x14] sm:$0x1]  ;;  %vm498_vm6 = vsmask.f32 4368  ;;  %vm3934_vm8 = vmand %vm528_vm1, %vm521_vm3 }
  0x13   : > { %s413_s16 = sadd.s32 %s3617_s11, %s3189_s14  ;;  %s3193_s17 = sshll.u32 %s424_s13, 1  ;;  %vm3848_vm7 = vmor %vm497_vm0, %vm498_vm6 }
  0x14   : > { %s3191_s18 = sshll.u32 %s413_s16, 2  ;;  %s427_s19 = sadd.s32 %s3193_s17, %s3617_s11 }
  0x15   : > { %s415_s22 = scalar_lea.vmem %s4697_s0, %s3191_s18  ;;  %s3195_s23 = sshll.u32 %s427_s19, 2 }
  0x16   : > { %s3632_s25 = scalar_lea.vmem %s4698_s1, %s3195_s23  ;;  %v3336_v0 = vld [vmem:[%s415_s22] sm:$0xff]   ;;  %p3640_p9 = scmp.lt.s32.totalorder %s3204_s9, 63 }
  0x17   : > { %v3337_v2 = vunpack.c.l.bf16 %v3336_v0  ;;  %v3338_v3 = vunpack.c.h.bf16 %v3336_v0  ;;  %v3340_v4 = vld [vmem:[%s3632_s25] sm:$0xff]   ;;  %v3375_v5 = vld [vmem:[%s3632_s25 + $0x8] sm:$0xff]   ;;  %v3376_v6 = vld [vmem:[%s3632_s25 + $0x10] sm:$0xff]   ;;  %s4738_s15 = smov (!%p460_p10, %s3622_s15), 3 }
  0x18   : > { %v3341_v8 = vunpack.c.l.bf16 %v3340_v4  ;;  %v3342_v9 = vunpack.c.h.bf16 %v3340_v4  ;;  %v3345_v10 = vunpack.c.l.bf16 %v3375_v5  ;;  %v3346_v11 = vunpack.c.h.bf16 %v3375_v5  ;;  %s4736_s9 = smov (!%p3640_p9, %s3204_s9), 63  ;;  %s3207_s21 = sshll.u32 %s4738_s15, 3  ;;  %v843_v5 = vld [vmem:[#allocation2 + $0x18] sm:$0xf] }
  0x19   : > { %v478_v12 = vmul.f32 %v3337_v2, %v3638_v1  ;;  %v479_v13 = vmul.f32 %v3338_v3, %v3638_v1  ;;  %v3349_v14 = vunpack.c.l.bf16 %v3376_v6  ;;  %v3350_v15 = vunpack.c.h.bf16 %v3376_v6  ;;  %s3205_s17 = sshll.u32 %s4736_s9, 2  ;;  %s3680_s10 = scalar_lea.vmem %s4704_s7, %s3207_s21 }
  0x1a   : > { %v572_v16 = vmul.f32 %v3341_v8, %v3638_v1  ;;  %v573_v17 = vmul.f32 %v3342_v9, %v3638_v1  ;;  %v574_v18 = vmul.f32 %v3345_v10, %v3638_v1  ;;  %v575_v19 = vmul.f32 %v3346_v11, %v3638_v1  ;;  %s3671_s20 = scalar_lea.vmem %s4703_s6, %s3205_s17  ;;  %s432_s15 = sadd.s32 8, %s3611_s8 }
  0x1b   : > { %v487_v20 = vadd.f32 %v3651_v7, %v478_v12  ;;  %v488_v21 = vadd.f32 %v3651_v7, %v479_v13  ;;  %v576_v22 = vmul.f32 %v3349_v14, %v3638_v1  ;;  %v577_v23 = vmul.f32 %v3350_v15, %v3638_v1  ;;  %p3694_p11 = scmp.lt.s32.totalorder %s432_s15, 15  ;;  %v847_v12 = vld [vmem:[#allocation2 + $0x20] sm:$0x1]  ;;  %v3377_v14 = vld [vmem:[%s3632_s25 + $0x18] sm:$0xff]  }
  0x1c   : > { %v595_v24 = vadd.f32 %v3651_v7, %v572_v16  ;;  %v596_v25 = vadd.f32 %v3651_v7, %v573_v17  ;;  %v597_v26 = vadd.f32 %v3651_v7, %v574_v18  ;;  %v598_v27 = vadd.f32 %v3651_v7, %v575_v19  ;;  %v850_v18 = vld [vmem:[#allocation2 + $0x24] sm:$0xf] }
  0x1d   : > { %v489_v28 = vmax.f32 %v487_v20, 0.0  ;;  %v490_v29 = vmax.f32 %v488_v21, 0.0  ;;  %v599_v30 = vadd.f32 %v3651_v7, %v576_v22  ;;  %v600_v31 = vadd.f32 %v3651_v7, %v577_v23  ;;  %s4740_s15 = smov (!%p3694_p11, %s432_s15), 15  ;;  %v3378_v20 = vld [vmem:[%s3632_s25 + $0x20] sm:$0xff]   ;;  %v3379_v21 = vld [vmem:[%s3632_s25 + $0x28] sm:$0xff]  }
  0x1e   : > { %v611_v32 = vmax.f32 %v595_v24, 0.0  ;;  %v612_v33 = vmax.f32 %v596_v25, 0.0  ;;  %v613_v34 = vmax.f32 %v597_v26, 0.0  ;;  %v614_v35 = vmax.f32 %v598_v27, 0.0  ;;  %s4742_s15 = smov (!%p3694_p11, %s4740_s15), 15 }
  0x1f   : > { %v3299_v36 = vpack.c.bf16 %v489_v28, %v489_v28  ;;  %v3685_v37 = vpack.c.bf16 %v490_v29, %v490_v29  ;;  %v615_v38 = vmax.f32 %v599_v30, 0.0  ;;  %v616_v39 = vmax.f32 %v600_v31, 0.0  ;;  %v3758_v30 = vld [vmem:[%s3632_s25 + $0x30] sm:$0xff]   ;;  %s3200_s8 = sshll.u32 %s4742_s15, 1 }
  0x20   : > { %v3301_v40 = vpack.c.bf16 %v611_v32, %v611_v32  ;;  %v3687_v41 = vpack.c.bf16 %v612_v33, %v612_v33  ;;  %v3303_v42 = vpack.c.bf16 %v613_v34, %v613_v34  ;;  %v3689_v43 = vpack.c.bf16 %v614_v35, %v614_v35  ;;  %s441_s12 = sadd.s32 %s3200_s8, %s3617_s11 }
  0x21   : > { %v501_v44 = vshrl.u32 %v3299_v36, 16  ;;  %v504_v45 = vshll.u32 %v3299_v36, 16  ;;  %v509_v46 = vshrl.u32 %v3685_v37, 16  ;;  %v3305_v47 = vpack.c.bf16 %v615_v38, %v615_v38  ;;  %s3794_s14 = sshll.u32 %s441_s12, 2 }
  0x22   : > { %v676_v50 = vshrl.u32 %v3301_v40, 16  ;;  %v679_v51 = vshll.u32 %v3301_v40, 16  ;;  %v684_v52 = vshrl.u32 %v3687_v41, 16  ;;  %v693_v53 = vshrl.u32 %v3303_v42, 16  ;;  %v854_v40 = vld [vmem:[#allocation2 + $0x2c] sm:$0x1]  ;;  %s443_s30 = scalar_lea.vmem %s4699_s2, %s3794_s14 }
  0x23   : > { %v3699_v54 = vrot.slane %v501_v44, 7  ;;  %v3707_v56 = vrot.slane %v509_v46, 7  ;;  %v696_v58 = vshll.u32 %v3303_v42, 16  ;;  %v701_v59 = vshrl.u32 %v3689_v43, 16 }
  0x24   : > { %v3716_v61 = vrot.slane %v676_v50, 7  ;;  %v3718_v62 = vrot.slane %v684_v52, 7  ;;  %v3720_v0 = vrot.slane %v693_v53, 7  ;;  %v710_v2 = vshrl.u32 %v3305_v47, 16 }
  0x25   : > { %v506_v3 = vor.u32 %v504_v45, %v3699_v54  ;;  %v516_v4 = vrot.slane %v3707_v56, 4  ;;  %v3724_v6 = vrot.slane %v701_v59, 7  ;;  %v713_v8 = vshll.u32 %v3305_v47, 16 }
  0x26   : > { %v681_v9 = vor.u32 %v679_v51, %v3716_v61  ;;  %v691_v10 = vrot.slane %v3718_v62, 4  ;;  %v698_v11 = vor.u32 %v696_v58, %v3720_v0  ;;  %v3735_v13 = vrot.slane %v710_v2, 7 }
  0x27   : > { %v524_v15 = vsel %vm3712_vm5, %v506_v3, %v523_v48  ;;  %v531_v16 = vsel %vm3703_vm4, %v516_v4, %v530_v49  ;;  %v708_v17 = vrot.slane %v3724_v6, 4  ;;  %v3743_v19 = vpack.c.bf16 %v616_v39, %v616_v39 }
  0x28   : > { %525 = vst [vmem:[#allocation2] sm:$0xf] %v524_v15  ;;  %532 = vst [vmem:[#allocation2 + $0x8] sm:$0x1] %v531_v16  ;;  %v837_v22 = vsel %vm3712_vm5, %v681_v9, %v836_v57  ;;  %v841_v23 = vsel %vm3703_vm4, %v691_v10, %v840_v63  ;;  %v844_v24 = vsel %vm3712_vm5, %v698_v11, %v843_v5  ;;  %v3353_v28 = vunpack.c.l.bf16 %v3377_v14 }
  0x29   : > { %v715_v25 = vor.u32 %v713_v8, %v3735_v13  ;;  %838 = vst [vmem:[#allocation2 + $0xc] sm:$0xf] %v837_v22  ;;  %842 = vst [vmem:[#allocation2 + $0x14] sm:$0x1] %v841_v23  ;;  %v848_v26 = vsel %vm3703_vm4, %v708_v17, %v847_v12  ;;  %v718_v27 = vshrl.u32 %v3743_v19, 16  ;;  %v3354_v29 = vunpack.c.h.bf16 %v3377_v14 }
  0x2a   : > { %845 = vst [vmem:[#allocation2 + $0x18] sm:$0xf] %v844_v24  ;;  %849 = vst [vmem:[#allocation2 + $0x20] sm:$0x1] %v848_v26  ;;  %v3357_v32 = vunpack.c.l.bf16 %v3378_v20  ;;  %v3358_v33 = vunpack.c.h.bf16 %v3378_v20  ;;  %v3361_v34 = vunpack.c.l.bf16 %v3379_v21  ;;  %v578_v36 = vmul.f32 %v3353_v28, %v3638_v1  ;;  %v857_v23 = vld [vmem:[#allocation2 + $0x30] sm:$0xf] }
  0x2b   : > { %v851_v31 = vsel %vm3712_vm5, %v715_v25, %v850_v18  ;;  %v3765_v35 = vrot.slane %v718_v27, 7  ;;  %v579_v38 = vmul.f32 %v3354_v29, %v3638_v1  ;;  %v3362_v39 = vunpack.c.h.bf16 %v3379_v21 }
  0x2c   : > { %852 = vst [vmem:[#allocation2 + $0x24] sm:$0xf] %v851_v31  ;;  %v580_v42 = vmul.f32 %v3357_v32, %v3638_v1  ;;  %v581_v44 = vmul.f32 %v3358_v33, %v3638_v1  ;;  %v582_v45 = vmul.f32 %v3361_v34, %v3638_v1  ;;  %v3365_v46 = vunpack.c.l.bf16 %v3758_v30  ;;  %v864_v34 = vld [vmem:[#allocation2 + $0x3c] sm:$0xf] }
  0x2d   : > { %v725_v47 = vrot.slane %v3765_v35, 4  ;;  %v601_v48 = vadd.f32 %v3651_v7, %v578_v36  ;;  %v602_v49 = vadd.f32 %v3651_v7, %v579_v38  ;;  %v583_v50 = vmul.f32 %v3362_v39, %v3638_v1 }
  0x2e   : > { %v603_v51 = vadd.f32 %v3651_v7, %v580_v42  ;;  %v604_v52 = vadd.f32 %v3651_v7, %v581_v44  ;;  %v605_v53 = vadd.f32 %v3651_v7, %v582_v45  ;;  %v584_v57 = vmul.f32 %v3365_v46, %v3638_v1  ;;  %v868_v44 = vld [vmem:[#allocation2 + $0x44] sm:$0x1]  ;;  %v871_v45 = vld [vmem:[#allocation2 + $0x48] sm:$0xf] }
  0x2f   : > { %v855_v58 = vsel %vm3703_vm4, %v725_v47, %v854_v40  ;;  %v617_v59 = vmax.f32 %v601_v48, 0.0  ;;  %v618_v63 = vmax.f32 %v602_v49, 0.0  ;;  %v606_v2 = vadd.f32 %v3651_v7, %v583_v50 }
  0x30   : > { %856 = vst [vmem:[#allocation2 + $0x2c] sm:$0x1] %v855_v58  ;;  %v619_v3 = vmax.f32 %v603_v51, 0.0  ;;  %v620_v4 = vmax.f32 %v604_v52, 0.0  ;;  %v621_v5 = vmax.f32 %v605_v53, 0.0  ;;  %v607_v8 = vadd.f32 %v3651_v7, %v584_v57  ;;  %v3381_v53 = vld [vmem:[%s3632_s25 + $0x38] sm:$0xff]  }
  0x31   : > { %v3307_v9 = vpack.c.bf16 %v617_v59, %v617_v59  ;;  %v3786_v10 = vpack.c.bf16 %v618_v63, %v618_v63  ;;  %v622_v11 = vmax.f32 %v606_v2, 0.0  ;;  %v3366_v12 = vunpack.c.h.bf16 %v3758_v30  ;;  %v861_v30 = vld [vmem:[#allocation2 + $0x38] sm:$0x1]  ;;  %v875_v51 = vld [vmem:[#allocation2 + $0x50] sm:$0x1]  ;;  %v3372_v2 = vld [vmem:[%s443_s30] sm:$0xff]  }
  0x32   : > { %v3309_v14 = vpack.c.bf16 %v619_v3, %v619_v3  ;;  %v3789_v15 = vpack.c.bf16 %v620_v4, %v620_v4  ;;  %v3311_v16 = vpack.c.bf16 %v621_v5, %v621_v5  ;;  %v623_v17 = vmax.f32 %v607_v8, 0.0 }
  0x33   : > { %v727_v18 = vshrl.u32 %v3307_v9, 16  ;;  %v730_v20 = vshll.u32 %v3307_v9, 16  ;;  %v735_v21 = vshrl.u32 %v3786_v10, 16  ;;  %v3792_v22 = vpack.c.bf16 %v622_v11, %v622_v11  ;;  %v878_v11 = vld [vmem:[#allocation2 + $0x54] sm:$0xf] }
  0x34   : > { %v744_v24 = vshrl.u32 %v3309_v14, 16  ;;  %v747_v25 = vshll.u32 %v3309_v14, 16  ;;  %v752_v26 = vshrl.u32 %v3789_v15, 16  ;;  %v761_v27 = vshrl.u32 %v3311_v16, 16 }
  0x35   : > { %v3797_v28 = vrot.slane %v727_v18, 7  ;;  %v3799_v29 = vrot.slane %v735_v21, 7  ;;  %v764_v31 = vshll.u32 %v3311_v16, 16  ;;  %v769_v32 = vshrl.u32 %v3792_v22, 16 }
  0x36   : > { %v3802_v33 = vrot.slane %v744_v24, 7  ;;  %v3804_v36 = vrot.slane %v752_v26, 7  ;;  %v3806_v38 = vrot.slane %v761_v27, 7  ;;  %v3313_v39 = vpack.c.bf16 %v623_v17, %v623_v17 }
  0x37   : > { %v732_v40 = vor.u32 %v730_v20, %v3797_v28  ;;  %v742_v42 = vrot.slane %v3799_v29, 4  ;;  %v3814_v46 = vrot.slane %v769_v32, 7  ;;  %v585_v47 = vmul.f32 %v3366_v12, %v3638_v1 }
  0x38   : > { %v749_v48 = vor.u32 %v747_v25, %v3802_v33  ;;  %v759_v49 = vrot.slane %v3804_v36, 4  ;;  %v766_v50 = vor.u32 %v764_v31, %v3806_v38  ;;  %v778_v52 = vshrl.u32 %v3313_v39, 16 }
  0x39   : > { %v858_v57 = vsel %vm3712_vm5, %v732_v40, %v857_v23  ;;  %v862_v58 = vsel %vm3703_vm4, %v742_v42, %v861_v30  ;;  %v776_v59 = vrot.slane %v3814_v46, 4  ;;  %v781_v63 = vshll.u32 %v3313_v39, 16 }
  0x3a   : > { %859 = vst [vmem:[#allocation2 + $0x30] sm:$0xf] %v858_v57  ;;  %863 = vst [vmem:[#allocation2 + $0x38] sm:$0x1] %v862_v58  ;;  %v865_v3 = vsel %vm3712_vm5, %v749_v48, %v864_v34  ;;  %v869_v4 = vsel %vm3703_vm4, %v759_v49, %v868_v44  ;;  %v872_v5 = vsel %vm3712_vm5, %v766_v50, %v871_v45  ;;  %v3832_v8 = vrot.slane %v778_v52, 7 }
  0x3b   : > { %866 = vst [vmem:[#allocation2 + $0x3c] sm:$0xf] %v865_v3  ;;  %870 = vst [vmem:[#allocation2 + $0x44] sm:$0x1] %v869_v4  ;;  %v876_v9 = vsel %vm3703_vm4, %v776_v59, %v875_v51  ;;  %v608_v12 = vadd.f32 %v3651_v7, %v585_v47  ;;  %v3369_v14 = vunpack.c.l.bf16 %v3381_v53  ;;  %v3370_v16 = vunpack.c.h.bf16 %v3381_v53  ;;  %v882_v57 = vld [vmem:[#allocation2 + $0x5c] sm:$0x1] }
  0x3c   : > { %873 = vst [vmem:[#allocation2 + $0x48] sm:$0xf] %v872_v5  ;;  %877 = vst [vmem:[#allocation2 + $0x50] sm:$0x1] %v876_v9  ;;  %v783_v17 = vor.u32 %v781_v63, %v3832_v8  ;;  %v3373_v18 = vunpack.c.l.bf16 %v3372_v2  ;;  %v3374_v20 = vunpack.c.h.bf16 %v3372_v2  ;;  %v507_v21 = vrot.slane %v3699_v54, 4 }
  0x3d   : > { %v624_v23 = vmax.f32 %v608_v12, 0.0  ;;  %v586_v24 = vmul.f32 %v3369_v14, %v3638_v1  ;;  %v587_v25 = vmul.f32 %v3370_v16, %v3638_v1  ;;  %v512_v26 = vshll.u32 %v3685_v37, 16 }
  0x3e   : > { %v879_v27 = vsel %vm3712_vm5, %v783_v17, %v878_v11  ;;  %v903_v30 = vmul.f32 %v3373_v18, %v3638_v1  ;;  %v904_v31 = vmul.f32 %v3374_v20, %v3638_v1  ;;  %v682_v54 = vrot.slane %v3716_v61, 4  ;;  %v889_v18 = vld [vmem:[#allocation2 + $0x68] sm:$0x1] }
  0x3f   : > { %880 = vst [vmem:[#allocation2 + $0x54] sm:$0xf] %v879_v27  ;;  %v3853_v34 = vpack.c.bf16 %v624_v23, %v624_v23  ;;  %v609_v37 = vadd.f32 %v3651_v7, %v586_v24  ;;  %v610_v39 = vadd.f32 %v3651_v7, %v587_v25  ;;  %v514_v40 = vor.u32 %v512_v26, %v3707_v56  ;;  %v943_v27 = vld [vmem:[#allocation2 + $0x6c] sm:$0xf] }
  0x40   : > { %v912_v42 = vadd.f32 %v3651_v7, %v903_v30  ;;  %v913_v1 = vadd.f32 %v3651_v7, %v904_v31  ;;  %v687_v44 = vshll.u32 %v3687_v41, 16  ;;  %v699_v45 = vrot.slane %v3720_v0, 4  ;;  %v947_v30 = vld [vmem:[#allocation2 + $0x74] sm:$0x1] }
  0x41   : > { %v786_v47 = vshrl.u32 %v3853_v34, 16  ;;  %v625_v61 = vmax.f32 %v609_v37, 0.0  ;;  %v626_v48 = vmax.f32 %v610_v39, 0.0  ;;  %v515_v49 = vsel %vm3848_vm7, %v507_v21, %v514_v40 }
  0x42   : > { %v914_v50 = vmax.f32 %v912_v42, 0.0  ;;  %v915_v51 = vmax.f32 %v913_v1, 0.0  ;;  %527 = vst.msk [vmem:[#allocation2 + $0x4] sm:$0xf] %vm520_vm2, %v515_v49  ;;  %v689_v56 = vor.u32 %v687_v44, %v3718_v62  ;;  %v704_v52 = vshll.u32 %v3689_v43, 16 }
  0x43   : > { %v3868_v7 = vrot.slane %v786_v47, 7  ;;  %v3315_v41 = vpack.c.bf16 %v625_v61, %v625_v61  ;;  %v3870_v53 = vpack.c.bf16 %v626_v48, %v626_v48  ;;  %v716_v0 = vrot.slane %v3735_v13, 4  ;;  %v950_v1 = vld [vmem:[#allocation2] sm:$0x1]  ;;  %v956_v47 = vld [vmem:[#allocation2 + $0x18] sm:$0x1] }
  0x44   : > { %v3317_v58 = vpack.c.bf16 %v914_v50, %v914_v50  ;;  %v3873_v59 = vpack.c.bf16 %v915_v51, %v915_v51  ;;  %v690_v63 = vsel %vm3848_vm7, %v682_v54, %v689_v56  ;;  %v706_v2 = vor.u32 %v704_v52, %v3724_v6  ;;  %v885_v6 = vld [vmem:[#allocation2 + $0x60] sm:$0xf]  ;;  %v959_v61 = vld [vmem:[#allocation2 + $0x24] sm:$0x1]  ;;  %v962_v50 = vld [vmem:[#allocation2 + $0x30] sm:$0x1] }
  0x45   : > { %v793_v62 = vrot.slane %v3868_v7, 4  ;;  %v795_v3 = vshrl.u32 %v3315_v41, 16  ;;  %v798_v43 = vshll.u32 %v3315_v41, 16  ;;  %v803_v4 = vshrl.u32 %v3870_v53, 16  ;;  %839 = vst.msk [vmem:[#allocation2 + $0x10] sm:$0xf] %vm520_vm2, %v690_v63 }
  0x46   : > { %v923_v5 = vshrl.u32 %v3317_v58, 16  ;;  %v926_v9 = vshll.u32 %v3317_v58, 16  ;;  %v931_v13 = vshrl.u32 %v3873_v59, 16  ;;  %v707_v11 = vsel %vm3848_vm7, %v699_v45, %v706_v2  ;;  %v953_v45 = vld [vmem:[#allocation2 + $0xc] sm:$0x1] }
  0x47   : > { %v883_v12 = vsel %vm3703_vm4, %v793_v62, %v882_v57  ;;  %v3886_v14 = vrot.slane %v795_v3, 7  ;;  %v805_v16 = vrot.slane %v803_v4, 7  ;;  %846 = vst.msk [vmem:[#allocation2 + $0x1c] sm:$0xf] %vm520_vm2, %v707_v11  ;;  %v721_v17 = vshll.u32 %v3743_v19, 16 }
  0x48   : > { %884 = vst [vmem:[#allocation2 + $0x5c] sm:$0x1] %v883_v12  ;;  %v3890_v20 = vrot.slane %v923_v5, 7  ;;  %v933_v21 = vrot.slane %v931_v13, 7  ;;  %v733_v23 = vrot.slane %v3797_v28, 4  ;;  %v738_v24 = vshll.u32 %v3786_v10, 16 }
  0x49   : > { %v800_v25 = vor.u32 %v798_v43, %v3886_v14  ;;  %v810_v26 = vrot.slane %v805_v16, 4  ;;  %v723_v31 = vor.u32 %v721_v17, %v3765_v35  ;;  %v750_v54 = vrot.slane %v3802_v33, 4  ;;  %v965_v41 = vld [vmem:[#allocation2 + $0x3c] sm:$0x1]  ;;  %v984_v57 = vld [vmem:[#allocation2 + $0x14] sm:$0x1] }
  0x4a   : > { %v928_v19 = vor.u32 %v926_v9, %v3890_v20  ;;  %v938_v37 = vrot.slane %v933_v21, 4  ;;  %v740_v39 = vor.u32 %v738_v24, %v3799_v29  ;;  %v755_v40 = vshll.u32 %v3789_v15, 16  ;;  %v968_v63 = vld [vmem:[#allocation2 + $0x48] sm:$0x1]  ;;  %v971_v2 = vld [vmem:[#allocation2 + $0x54] sm:$0x1] }
  0x4b   : > { %v886_v28 = vsel %vm3712_vm5, %v800_v25, %v885_v6  ;;  %v890_v10 = vsel %vm3703_vm4, %v810_v26, %v889_v18  ;;  %v724_v42 = vsel %vm3848_vm7, %v716_v0, %v723_v31  ;;  %v767_v35 = vrot.slane %v3806_v38, 4  ;;  %v981_v0 = vld [vmem:[#allocation2 + $0x8] sm:$0x1]  ;;  %v990_v43 = vld [vmem:[#allocation2 + $0x2c] sm:$0x1] }
  0x4c   : > { %887 = vst [vmem:[#allocation2 + $0x60] sm:$0xf] %v886_v28  ;;  %891 = vst [vmem:[#allocation2 + $0x68] sm:$0x1] %v890_v10  ;;  %v944_v33 = vsel %vm3712_vm5, %v928_v19, %v943_v27  ;;  %v948_v15 = vsel %vm3703_vm4, %v938_v37, %v947_v30  ;;  %v741_v29 = vsel %vm3848_vm7, %v733_v23, %v740_v39  ;;  %v772_v60 = vshll.u32 %v3792_v22, 16 }
  0x4d   : > { %853 = vst.msk [vmem:[#allocation2 + $0x28] sm:$0xf] %vm520_vm2, %v724_v42  ;;  %v757_v44 = vor.u32 %v755_v40, %v3804_v36  ;;  %945 = vst [vmem:[#allocation2 + $0x6c] sm:$0xf] %v944_v33  ;;  %v784_v38 = vrot.slane %v3832_v8, 4  ;;  %v789_v48 = vshll.u32 %v3853_v34, 16 }
  0x4e   : > { %949 = vst [vmem:[#allocation2 + $0x74] sm:$0x1] %v948_v15  ;;  %860 = vst.msk [vmem:[#allocation2 + $0x34] sm:$0xf] %vm520_vm2, %v741_v29  ;;  %v801_v49 = vrot.slane %v3886_v14, 4  ;;  %v806_v36 = vshll.u32 %v3870_v53, 16  ;;  %v774_v8 = vor.u32 %v772_v60, %v3814_v46 }
  0x4f   : > { %v758_v51 = vsel %vm3848_vm7, %v750_v54, %v757_v44  ;;  %v929_v56 = vrot.slane %v3890_v20, 4  ;;  %v934_v52 = vshll.u32 %v3873_v59, 16  ;;  %v987_v22 = vld [vmem:[#allocation2 + $0x20] sm:$0x1]  ;;  %v791_v34 = vor.u32 %v789_v48, %v3868_v7  ;;  %v993_v4 = vld [vmem:[#allocation2 + $0x38] sm:$0x1] }
  0x50   : > { %867 = vst.msk [vmem:[#allocation2 + $0x40] sm:$0xf] %vm520_vm2, %v758_v51  ;;  %v951_v58 = vsel %vm3703_vm4, 0, %v950_v1  ;;  %v954_v53 = vsel %vm3703_vm4, 0, %v953_v45  ;;  %v808_v62 = vor.u32 %v806_v36, %v805_v16  ;;  %v957_v46 = vsel %vm3703_vm4, 0, %v956_v47 }
  0x51   : > { %v936_v3 = vor.u32 %v934_v52, %v933_v21  ;;  %952 = vst [vmem:[#allocation2] sm:$0x1] %v951_v58  ;;  %955 = vst [vmem:[#allocation2 + $0xc] sm:$0x1] %v954_v53  ;;  %v960_v7 = vsel %vm3703_vm4, 0, %v959_v61  ;;  %v775_v5 = vsel %vm3848_vm7, %v767_v35, %v774_v8  ;;  %v792_v9 = vsel %vm3848_vm7, %v784_v38, %v791_v34 }
  0x52   : > { %958 = vst [vmem:[#allocation2 + $0x18] sm:$0x1] %v957_v46  ;;  %961 = vst [vmem:[#allocation2 + $0x24] sm:$0x1] %v960_v7  ;;  %v963_v13 = vsel %vm3703_vm4, 0, %v962_v50  ;;  %v966_v11 = vsel %vm3703_vm4, 0, %v965_v41  ;;  %v809_v6 = vsel %vm3848_vm7, %v801_v49, %v808_v62 }
  0x53   : > { %v996_v12 = vld [vmem:[#allocation2 + $0x44] sm:$0x1]  ;;  %v999_v14 = vld [vmem:[#allocation2 + $0x50] sm:$0x1]  ;;  %874 = vst.msk [vmem:[#allocation2 + $0x4c] sm:$0xf] %vm520_vm2, %v775_v5  ;;  %v937_v16 = vsel %vm3848_vm7, %v929_v56, %v936_v3 }
  0x54   : > { %881 = vst.msk [vmem:[#allocation2 + $0x58] sm:$0xf] %vm520_vm2, %v792_v9  ;;  %964 = vst [vmem:[#allocation2 + $0x30] sm:$0x1] %v963_v13  ;;  %v969_v17 = vsel %vm3703_vm4, 0, %v968_v63  ;;  %v972_v18 = vsel %vm3703_vm4, 0, %v971_v2 }
  0x55   : > { %967 = vst [vmem:[#allocation2 + $0x3c] sm:$0x1] %v966_v11  ;;  %v1002_v20 = vld [vmem:[#allocation2 + $0x5c] sm:$0x1]  ;;  %888 = vst.msk [vmem:[#allocation2 + $0x64] sm:$0xf] %vm520_vm2, %v809_v6 }
  0x56   : > { %946 = vst.msk [vmem:[#allocation2 + $0x70] sm:$0xf] %vm520_vm2, %v937_v16  ;;  %970 = vst [vmem:[#allocation2 + $0x48] sm:$0x1] %v969_v17  ;;  %v974_v21 = vld [vmem:[#allocation2 + $0x60] sm:$0x1] }
  0x57   : > { %973 = vst [vmem:[#allocation2 + $0x54] sm:$0x1] %v972_v18  ;;  %v982_v32 = vsel %vm3934_vm8, 0, %v981_v0  ;;  %v985_v23 = vsel %vm3934_vm8, 0, %v984_v57  ;;  %v988_v24 = vsel %vm3934_vm8, 0, %v987_v22  ;;  %v991_v25 = vsel %vm3934_vm8, 0, %v990_v43 }
  0x58   : > { %v975_v26 = vsel %vm3703_vm4, 0, %v974_v21  ;;  %v977_v27 = vld [vmem:[#allocation2 + $0x6c] sm:$0x1]  ;;  %983 = vst [vmem:[#allocation2 + $0x8] sm:$0x1] %v982_v32  ;;  %v994_v30 = vsel %vm3934_vm8, 0, %v993_v4 }
  0x59   : > { %986 = vst [vmem:[#allocation2 + $0x14] sm:$0x1] %v985_v23  ;;  %989 = vst [vmem:[#allocation2 + $0x20] sm:$0x1] %v988_v24  ;;  %v997_v31 = vsel %vm3934_vm8, 0, %v996_v12  ;;  %v1000_v54 = vsel %vm3934_vm8, 0, %v999_v14 }
  0x5a   : > { %992 = vst [vmem:[#allocation2 + $0x2c] sm:$0x1] %v991_v25  ;;  %976 = vst [vmem:[#allocation2 + $0x60] sm:$0x1] %v975_v26  ;;  %v978_v19 = vsel %vm3703_vm4, 0, %v977_v27  ;;  %v1003_v37 = vsel %vm3934_vm8, 0, %v1002_v20 }
  0x5b   : > { %995 = vst [vmem:[#allocation2 + $0x38] sm:$0x1] %v994_v30  ;;  %998 = vst [vmem:[#allocation2 + $0x44] sm:$0x1] %v997_v31  ;;  %v1005_v39 = vld [vmem:[#allocation2 + $0x68] sm:$0x1] }
  0x5c   : > { %1001 = vst [vmem:[#allocation2 + $0x50] sm:$0x1] %v1000_v54  ;;  %v1008_v40 = vld [vmem:[#allocation2 + $0x74] sm:$0x1]  ;;  %979 = vst [vmem:[#allocation2 + $0x6c] sm:$0x1] %v978_v19 }
  0x5d   : > { %1004 = vst [vmem:[#allocation2 + $0x5c] sm:$0x1] %v1003_v37  ;;  %v1006_v28 = vsel %vm3934_vm8, 0, %v1005_v39  ;;  %v1009_v10 = vsel %vm3934_vm8, 0, %v1008_v40  ;;  %1014 = sbr.rel (%p3234_p12) target bundleno = 101 (0x65), region = 48 }
  0x5e   : > { %1007 = vst [vmem:[#allocation2 + $0x68] sm:$0x1] %v1006_v28  ;;  %1010 = vst [vmem:[#allocation2 + $0x74] sm:$0x1] %v1009_v10 }
  0x62   : > { %v3525_v55 = vmov 0  }
  0x63   : > { %1015 = vst.msk [vmem:[#allocation2] sm:$0xf] %vm520_vm2, %v3525_v55  ;;  %1016 = vst.msk [vmem:[#allocation2 + $0x4] sm:$0xf] %vm520_vm2, %v3525_v55 }
  0x64   : > { %1018 = vst.msk [vmem:[#allocation2 + $0x8] sm:$0x1] %vm528_vm1, %v3525_v55 }
  0x65 PF: > { %p3235_p13 = scmp.ne.s32.totalorder %s3507_s24, 1 }
  0x67   : > { %1022 = sbr.rel (%p3235_p13) target bundleno = 111 (0x6f), region = 52 }
  0x6c   : > { %v3526_v42 = vmov 0  }
  0x6d   : > { %1023 = vst.msk [vmem:[#allocation2 + $0x6c] sm:$0xf] %vm520_vm2, %v3526_v42  ;;  %1024 = vst.msk [vmem:[#allocation2 + $0x70] sm:$0xf] %vm520_vm2, %v3526_v42 }
  0x6e   : > { %1026 = vst.msk [vmem:[#allocation2 + $0x74] sm:$0x1] %vm528_vm1, %v3526_v42 }
  0x6f PF: > { %v1344_v35 = vld [vmem:[#allocation2 + $0x4] sm:$0xf]  ;;  %v1345_v1 = vld [vmem:[#allocation2 + $0x8] sm:$0x1]  ;;  %vm1391_vm9 = vcmask 1042432   ;;  %vm1392_vm10 = vcmask 1046532  }
  0x70   : > { %vm3994_vm11 = vmor %vm1391_vm9, %vm1392_vm10  ;;  %v1396_v15 = vrot.slane %v1344_v35, 5  ;;  %v1399_v29 = vrot.slane %v1345_v1, 5  ;;  %v1343_v44 = vld [vmem:[#allocation2] sm:$0xe]  ;;  %v1062_v47 = vld [vmem:[#allocation2 + $0xc] sm:$0xf] }
  0x71   : > { %v3236_v45 = vrot.slane %v1343_v44, 9  ;;  %v1063_v61 = vld [vmem:[#allocation2 + $0x10] sm:$0xf]  ;;  %vm1083_vm12 = vsmask.f32 3328  ;;  %v1111_v38 = vshrl.u32 %v1062_v47, 16 }
  0x72   : > { %v1398_v60 = vrot.slane %v1396_v15, 4  ;;  %vm1084_vm13 = vsmask.f32 7440  ;;  %v1114_v49 = vshll.u32 %v1062_v47, 16  ;;  %v1120_v50 = vshll.u32 %v1063_v61, 16  ;;  %s3527_s24 = smov 8  }
  0x73   : > { %v1397_v48 = vsel %vm3994_vm11, %v3236_v45, %v1396_v15  ;;  %v1124_v51 = vshrl.u32 %v1063_v61, 16  ;;  %v1059_v36 = vld [vmem:[#allocation2] sm:$0xf]  ;;  %v1113_v52 = vrot.slane %v1111_v38, 4  ;;  %v1060_v41 = vld [vmem:[#allocation2 + $0x4] sm:$0xf]  ;;  %vm4006_vm14 = vmor %vm1083_vm12, %vm1084_vm13 }
  0x74   : > { %v1400_v56 = vsel %vm3994_vm11, %v1398_v60, %v1399_v29  ;;  %1450 = vrot.lane.b32.xlu0 %v1397_v48, %s3527_s24  ;;  %v1087_v0 = vshrl.u32 %v1059_v36, 16  ;;  %v1090_v57 = vshll.u32 %v1059_v36, 16  ;;  %v1116_v22 = vrot.slane %v1114_v49, 5  ;;  %v1064_v53 = vld [vmem:[#allocation2 + $0x14] sm:$0x1]  ;;  %s3528_s25 = smov 4  }
  0x75   : > { %1452 = vrot.lane.b32.xlu1 %v1400_v56, %s3527_s24  ;;  %v1122_v8 = vrot.slane %v1120_v50, 5  ;;  %v1096_v34 = vshll.u32 %v1060_v41, 16  ;;  %v1100_v58 = vshrl.u32 %v1060_v41, 16  ;;  %v1126_v59 = vrot.slane %v1124_v51, 4  ;;  %v1061_v3 = vld [vmem:[#allocation2 + $0x8] sm:$0x1] }
  0x76   : > { %v1089_v63 = vrot.slane %v1087_v0, 4  ;;  %v1092_v2 = vrot.slane %v1090_v57, 5  ;;  %v1130_v62 = vshll.u32 %v1064_v53, 16  ;;  %v1117_v46 = vor.u32 %v1116_v22, %v1113_v52  ;;  %v1347_v5 = vld [vmem:[#allocation2 + $0x10] sm:$0xf]  ;;  %s3529_s16 = smov 12  }
  0x77   : > { %v1098_v7 = vrot.slane %v1096_v34, 5  ;;  %v1102_v43 = vrot.slane %v1100_v58, 4  ;;  %v1106_v4 = vshll.u32 %v1061_v3, 16  ;;  %v1127_v11 = vor.u32 %v1126_v59, %v1122_v8  ;;  %v1348_v12 = vld [vmem:[#allocation2 + $0x14] sm:$0x1]  ;;  %s3530_s17 = smov 16  }
  0x78   : > { %v1093_v13 = vor.u32 %v1092_v2, %v1089_v63  ;;  %v1403_v14 = vrot.slane %v1347_v5, 5  ;;  %v1118_v6 = vrot.slane %v1117_v46, 4  ;;  %v1132_v16 = vrot.slane %v1130_v62, 5  ;;  %v1346_v18 = vld [vmem:[#allocation2 + $0xc] sm:$0xe]  ;;  %s3531_s18 = smov 20  }
  0x79   : > { %v1103_v17 = vor.u32 %v1102_v43, %v1098_v7  ;;  %v1128_v21 = vrot.slane %v1127_v11, 4  ;;  %v1108_v32 = vrot.slane %v1106_v4, 5  ;;  %v1406_v25 = vrot.slane %v1348_v12, 5  ;;  %v1613_v31 = vld [vmem:[#allocation2 + $0x10] sm:$0xf]  ;;  %s3532_s19 = smov 24  }
  0x7a   : > { %v1094_v20 = vrot.slane %v1093_v13, 4  ;;  %v1123_v23 = vsel %vm4006_vm14, %v1118_v6, %v1122_v8  ;;  %v1405_v27 = vrot.slane %v1403_v14, 4  ;;  %v3237_v30 = vrot.slane %v1346_v18, 9  ;;  %v1612_v54 = vld [vmem:[#allocation2 + $0xc] sm:$0xf]  ;;  %s3533_s21 = smov 28  }
  0x7b   : > { %v1104_v24 = vrot.slane %v1103_v17, 4  ;;  %1282 = vrot.lane.b32.xlu1 %v1123_v23, %s3528_s25  ;;  %v1133_v19 = vsel %vm4006_vm14, %v1128_v21, %v1132_v16  ;;  %v1646_v37 = vshll.u32 %v1613_v31, 16  ;;  %v1650_v39 = vshrl.u32 %v1613_v31, 16  ;;  %v1616_v55 = vld [vmem:[#allocation2 + $0x1c] sm:$0xf]  ;;  %s3534_s22 = smov 32  }
  0x7c   : > { %v1099_v26 = vsel %vm4006_vm14, %v1094_v20, %v1098_v7  ;;  %v1637_v28 = vshrl.u32 %v1612_v54, 16  ;;  %v1640_v10 = vshll.u32 %v1612_v54, 16  ;;  %v1615_v42 = vld [vmem:[#allocation2 + $0x18] sm:$0xf]  ;;  %v1407_v35 = vsel %vm3994_vm11, %v1405_v27, %v1406_v25  ;;  %v1614_v47 = vld [vmem:[#allocation2 + $0x14] sm:$0x1] }
  0x7d   : > { %1278 = vrot.lane.b32.xlu0 %v1099_v26, %s3528_s25  ;;  %v1109_v40 = vsel %vm4006_vm14, %v1104_v24, %v1108_v32  ;;  %v1404_v1 = vsel %vm3994_vm11, %v3237_v30, %v1403_v14  ;;  %v1648_v15 = vrot.slane %v1646_v37, 5  ;;  %v1652_v29 = vrot.slane %v1650_v39, 4  ;;  %v1516_v49 = vld [vmem:[#allocation2 + $0x10] sm:$0xf]  ;;  %v1515_v52 = vld [vmem:[#allocation2 + $0xc] sm:$0xf] }
  0x7e   : > { %v1670_v44 = vshll.u32 %v1616_v55, 16  ;;  %v1674_v45 = vshrl.u32 %v1616_v55, 16  ;;  %v1639_v61 = vrot.slane %v1637_v28, 4  ;;  %v1642_v60 = vrot.slane %v1640_v10, 5  ;;  %v1617_v0 = vld [vmem:[#allocation2 + $0x20] sm:$0x1] }
  0x7f   : > { %1284 = vrot.lane.b32.xlu1 %v1133_v19, %s3528_s25  ;;  %v1661_v38 = vshrl.u32 %v1615_v42, 16  ;;  %v1664_v48 = vshll.u32 %v1615_v42, 16  ;;  %v1653_v50 = vor.u32 %v1652_v29, %v1648_v15  ;;  %v1656_v51 = vshll.u32 %v1614_v47, 16  ;;  %v1518_v8 = vld [vmem:[#allocation2 + $0x1c] sm:$0xf] }
  0x80   : > { %v1672_v36 = vrot.slane %v1670_v44, 5  ;;  %v1676_v56 = vrot.slane %v1674_v45, 4  ;;  %v1643_v41 = vor.u32 %v1642_v60, %v1639_v61  ;;  %v1680_v63 = vshll.u32 %v1617_v0, 16  ;;  %v1517_v2 = vld [vmem:[#allocation2 + $0x18] sm:$0xf] }
  0x81   : > { %1280 = vrot.lane.b32.xlu0 %v1109_v40, %s3528_s25  ;;  %v1663_v57 = vrot.slane %v1661_v38, 4  ;;  %v1666_v22 = vrot.slane %v1664_v48, 5  ;;  %v1654_v34 = vrot.slane %v1653_v50, 4  ;;  %v1658_v58 = vrot.slane %v1656_v51, 5  ;;  %v1894_v3 = vld [vmem:[#allocation2 + $0x10] sm:$0xf] }
  0x82   : > { %v1677_v53 = vor.u32 %v1676_v56, %v1672_v36  ;;  %v1644_v59 = vrot.slane %v1643_v41, 4  ;;  %v1682_v43 = vrot.slane %v1680_v63, 5  ;;  %v1943_v4 = vrot.slane %v1894_v3, 5  ;;  %v1897_v5 = vld [vmem:[#allocation2 + $0x1c] sm:$0xf] }
  0x83   : > { %1456 = vrot.lane.b32.xlu1 %v1407_v35, %s3527_s24  ;;  %v1667_v62 = vor.u32 %v1666_v22, %v1663_v57  ;;  %v1659_v46 = vsel %vm4006_vm14, %v1654_v34, %v1658_v58  ;;  %v1895_v12 = vld [vmem:[#allocation2 + $0x14] sm:$0x1]  ;;  %v1893_v14 = vld [vmem:[#allocation2 + $0xc] sm:$0xe]  ;;  %v1950_v6 = vrot.slane %v1897_v5, 5  ;;  %vm2711_vm15 = vcmask 1041408  }
  0x84   : > { %v1678_v7 = vrot.slane %v1677_v53, 4  ;;  %v1649_v13 = vsel %vm4006_vm14, %v1644_v59, %v1648_v15  ;;  %v1945_v17 = vrot.slane %v1943_v4, 4  ;;  %v1946_v18 = vrot.slane %v1895_v12, 5  ;;  %v1898_v20 = vld [vmem:[#allocation2 + $0x20] sm:$0x1] }
  0x85   : > { %1454 = vrot.lane.b32.xlu0 %v1404_v1, %s3527_s24  ;;  %v1668_v11 = vrot.slane %v1667_v62, 4  ;;  %v1896_v21 = vld [vmem:[#allocation2 + $0x18] sm:$0xe]  ;;  %v3244_v23 = vrot.slane %v1893_v14, 9  ;;  %v2161_v24 = vld [vmem:[#allocation2 + $0x1c] sm:$0xf] }
  0x86   : > { %v1683_v16 = vsel %vm4006_vm14, %v1678_v7, %v1682_v43  ;;  %v2160_v25 = vld [vmem:[#allocation2 + $0x18] sm:$0xf]  ;;  %v1952_v26 = vrot.slane %v1950_v6, 4  ;;  %v1953_v27 = vrot.slane %v1898_v20, 5  ;;  %v3245_v30 = vrot.slane %v1896_v21, 9 }
  0x87   : > { %1549 = vrot.lane.b32.xlu1 %v1516_v49, %s3529_s16  ;;  %v1673_v32 = vsel %vm4006_vm14, %v1668_v11, %v1672_v36  ;;  %v1947_v31 = vsel %vm3994_vm11, %v1945_v17, %v1946_v18  ;;  %v2194_v54 = vshll.u32 %v2161_v24, 16  ;;  %v2198_v19 = vshrl.u32 %v2161_v24, 16  ;;  %v2164_v28 = vld [vmem:[#allocation2 + $0x28] sm:$0xf]  ;;  %v2163_v10 = vld [vmem:[#allocation2 + $0x24] sm:$0xf] }
  0x88   : > { %v1944_v37 = vsel %vm3994_vm11, %v3244_v23, %v1943_v4  ;;  %v2185_v39 = vshrl.u32 %v2160_v25, 16  ;;  %v2188_v40 = vshll.u32 %v2160_v25, 16  ;;  %v1954_v55 = vsel %vm3994_vm11, %v1952_v26, %v1953_v27  ;;  %v2162_v35 = vld [vmem:[#allocation2 + $0x20] sm:$0x1]  ;;  %v2064_v48 = vld [vmem:[#allocation2 + $0x1c] sm:$0xf] }
  0x89   : > { %1547 = vrot.lane.b32.xlu0 %v1515_v52, %s3529_s16  ;;  %v1951_v42 = vsel %vm3994_vm11, %v3245_v30, %v1950_v6  ;;  %v2196_v1 = vrot.slane %v2194_v54, 5  ;;  %v2200_v15 = vrot.slane %v2198_v19, 4  ;;  %v2218_v29 = vshll.u32 %v2164_v28, 16  ;;  %v2165_v50 = vld [vmem:[#allocation2 + $0x2c] sm:$0x1] }
  0x8a   : > { %v2222_v44 = vshrl.u32 %v2164_v28, 16  ;;  %v2187_v45 = vrot.slane %v2185_v39, 4  ;;  %v2190_v47 = vrot.slane %v2188_v40, 5  ;;  %v2209_v61 = vshrl.u32 %v2163_v10, 16  ;;  %v2063_v56 = vld [vmem:[#allocation2 + $0x18] sm:$0xf] }
  0x8b   : > { %1553 = vrot.lane.b32.xlu1 %v1518_v8, %s3529_s16  ;;  %v2212_v60 = vshll.u32 %v2163_v10, 16  ;;  %v2204_v38 = vshll.u32 %v2162_v35, 16  ;;  %v2201_v49 = vor.u32 %v2200_v15, %v2196_v1  ;;  %v2220_v51 = vrot.slane %v2218_v29, 5  ;;  %v1066_v57 = vld [vmem:[#allocation2 + $0x1c] sm:$0xf] }
  0x8c   : > { %v2224_v36 = vrot.slane %v2222_v44, 4  ;;  %v2191_v52 = vor.u32 %v2190_v47, %v2187_v45  ;;  %v2211_v41 = vrot.slane %v2209_v61, 4  ;;  %v1065_v22 = vld [vmem:[#allocation2 + $0x18] sm:$0xf]  ;;  %v2066_v8 = vld [vmem:[#allocation2 + $0x28] sm:$0xf] }
  0x8d   : > { %1551 = vrot.lane.b32.xlu0 %v1517_v2, %s3529_s16  ;;  %v2214_v0 = vrot.slane %v2212_v60, 5  ;;  %v2206_v34 = vrot.slane %v2204_v38, 5  ;;  %v2228_v58 = vshll.u32 %v2165_v50, 16  ;;  %v2202_v53 = vrot.slane %v2201_v49, 4  ;;  %v2442_v2 = vld [vmem:[#allocation2 + $0x1c] sm:$0xf] }
  0x8e   : > { %v2225_v63 = vor.u32 %v2224_v36, %v2220_v51  ;;  %v1144_v59 = vshll.u32 %v1066_v57, 16  ;;  %v1148_v62 = vshrl.u32 %v1066_v57, 16  ;;  %v2065_v3 = vld [vmem:[#allocation2 + $0x24] sm:$0xf]  ;;  %v1135_v43 = vshrl.u32 %v1065_v22, 16 }
  0x8f   : > { %1830 = vrot.lane.b32.xlu1 %v1659_v46, %s3530_s17  ;;  %v2192_v46 = vrot.slane %v2191_v52, 4  ;;  %v2215_v7 = vor.u32 %v2214_v0, %v2211_v41  ;;  %v1138_v4 = vshll.u32 %v1065_v22, 16  ;;  %v2230_v5 = vrot.slane %v2228_v58, 5  ;;  %v2441_v12 = vld [vmem:[#allocation2 + $0x18] sm:$0xe] }
  0x90   : > { %v2491_v11 = vrot.slane %v2442_v2, 5  ;;  %v2207_v14 = vsel %vm4006_vm14, %v2202_v53, %v2206_v34  ;;  %v2226_v6 = vrot.slane %v2225_v63, 4  ;;  %v1146_v17 = vrot.slane %v1144_v59, 5  ;;  %v1069_v24 = vld [vmem:[#allocation2 + $0x28] sm:$0xf] }
  0x91   : > { %1828 = vrot.lane.b32.xlu0 %v1649_v13, %s3530_s17  ;;  %v2443_v13 = vld [vmem:[#allocation2 + $0x20] sm:$0x1]  ;;  %v1150_v18 = vrot.slane %v1148_v62, 4  ;;  %v2197_v20 = vsel %vm4006_vm14, %v2192_v46, %v2196_v1  ;;  %v2216_v21 = vrot.slane %v2215_v7, 4  ;;  %v1140_v23 = vrot.slane %v1138_v4, 5 }
  0x92   : > { %v1068_v25 = vld [vmem:[#allocation2 + $0x24] sm:$0xf]  ;;  %v2493_v26 = vrot.slane %v2491_v11, 4  ;;  %v2494_v27 = vrot.slane %v2443_v13, 5  ;;  %v3252_v30 = vrot.slane %v2441_v12, 9  ;;  %v2231_v54 = vsel %vm4006_vm14, %v2226_v6, %v2230_v5 }
  0x93   : > { %1834 = vrot.lane.b32.xlu1 %v1683_v16, %s3530_s17  ;;  %v1067_v16 = vld [vmem:[#allocation2 + $0x20] sm:$0x1]  ;;  %v1151_v19 = vor.u32 %v1150_v18, %v1146_v17  ;;  %v1168_v39 = vshll.u32 %v1069_v24, 16  ;;  %v1172_v40 = vshrl.u32 %v1069_v24, 16  ;;  %v2221_v28 = vsel %vm4006_vm14, %v2216_v21, %v2220_v51  ;;  %v2446_v1 = vld [vmem:[#allocation2 + $0x2c] sm:$0x1] }
  0x94   : > { %v2495_v35 = vsel %vm3994_vm11, %v2493_v26, %v2494_v27  ;;  %v1029_v29 = vld [vmem:[#allocation2 + $0xc] sm:$0xf]  ;;  %v1027_v60 = vld [vmem:[#allocation2] sm:$0xf]  ;;  %v2492_v38 = vsel %vm3994_vm11, %v3252_v30, %v2491_v11  ;;  %v2444_v36 = vld [vmem:[#allocation2 + $0x24] sm:$0xe] }
  0x95   : > { %1832 = vrot.lane.b32.xlu0 %v1673_v32, %s3530_s17  ;;  %v1137_v32 = vrot.slane %v1135_v43, 4  ;;  %v1152_v44 = vrot.slane %v1151_v19, 4  ;;  %v1170_v47 = vrot.slane %v1168_v39, 5  ;;  %v1174_v61 = vrot.slane %v1172_v40, 4  ;;  %1045 = vst.msk [vmem:[#allocation3 + $0x8] sm:$0xf] %vm520_vm2, %v1029_v29 }
  0x96   : > { %v1070_v49 = vld [vmem:[#allocation2 + $0x2c] sm:$0x1]  ;;  %1043 = vst.msk [vmem:[#allocation3] sm:$0xf] %vm520_vm2, %v1027_v60  ;;  %v1030_v22 = vld [vmem:[#allocation2 + $0x10] sm:$0xf] }
  0x97   : > { %1999 = vrot.lane.b32.xlu1 %v1947_v31, %s3531_s18  ;;  %v1154_v31 = vshll.u32 %v1067_v16, 16  ;;  %v1141_v10 = vor.u32 %v1140_v23, %v1137_v32  ;;  %v1175_v0 = vor.u32 %v1174_v61, %v1170_v47  ;;  %v1178_v57 = vshll.u32 %v1070_v49, 16  ;;  %v1350_v63 = vld [vmem:[#allocation2 + $0x1c] sm:$0xf]  ;;  %1046 = vst.msk [vmem:[#allocation3 + $0xc] sm:$0xf] %vm520_vm2, %v1030_v22 }
  0x98   : > { %v3253_v58 = vrot.slane %v2444_v36, 9  ;;  %v1353_v46 = vld [vmem:[#allocation2 + $0x28] sm:$0xf]  ;;  %v1351_v4 = vld [vmem:[#allocation2 + $0x20] sm:$0x1]  ;;  %vm1326_vm0 = vcmask 60448  }
  0x99   : > { %1997 = vrot.lane.b32.xlu0 %v1944_v37, %s3531_s18  ;;  %v2445_v37 = vld [vmem:[#allocation2 + $0x28] sm:$0xf]  ;;  %v1156_v45 = vrot.slane %v1154_v31, 5  ;;  %v1176_v59 = vrot.slane %v1175_v0, 4  ;;  %v1180_v62 = vrot.slane %v1178_v57, 5  ;;  %v1417_v13 = vrot.slane %v1353_v46, 5 }
  0x9a   : > { %v2498_v15 = vrot.slane %v2445_v37, 5  ;;  %v1349_v5 = vld [vmem:[#allocation2 + $0x18] sm:$0xe]  ;;  %v1354_v6 = vld [vmem:[#allocation2 + $0x2c] sm:$0x1]  ;;  %vm1498_vm3 = vcmask 93248  }
  0x9b   : > { %2003 = vrot.lane.b32.xlu1 %v1954_v55, %s3531_s18  ;;  %v1159_v55 = vshrl.u32 %v1068_v25, 16  ;;  %v1157_v52 = vsel %vm4006_vm14, %v1152_v44, %v1156_v45  ;;  %v1181_v11 = vsel %vm4006_vm14, %v1176_v59, %v1180_v62  ;;  %v1352_v16 = vld [vmem:[#allocation2 + $0x24] sm:$0xe]  ;;  %v3238_v18 = vrot.slane %v1349_v5, 9  ;;  %v1622_v19 = vld [vmem:[#allocation2 + $0x34] sm:$0xf] }
  0x9c   : > { %v2500_v41 = vrot.slane %v2498_v15, 4  ;;  %v2499_v7 = vsel %vm3994_vm11, %v3253_v58, %v2498_v15  ;;  %v1618_v21 = vld [vmem:[#allocation2 + $0x24] sm:$0xf]  ;;  %v1419_v32 = vrot.slane %v1417_v13, 4  ;;  %v1420_v23 = vrot.slane %v1354_v6, 5 }
  0x9d   : > { %2001 = vrot.lane.b32.xlu0 %v1951_v42, %s3531_s18  ;;  %v1162_v42 = vshll.u32 %v1068_v25, 16  ;;  %v1161_v50 = vrot.slane %v1159_v55, 4  ;;  %v3239_v24 = vrot.slane %v1352_v16, 9  ;;  %v1685_v31 = vshrl.u32 %v1618_v21, 16  ;;  %v1621_v37 = vld [vmem:[#allocation2 + $0x30] sm:$0xf] }
  0x9e   : > { %v1421_v39 = vsel %vm3994_vm11, %v1419_v32, %v1420_v23  ;;  %v1718_v55 = vshll.u32 %v1622_v19, 16  ;;  %v1709_v29 = vshrl.u32 %v1621_v37, 16  ;;  %v1712_v44 = vshll.u32 %v1621_v37, 16  ;;  %v1520_v45 = vld [vmem:[#allocation2 + $0x28] sm:$0xf] }
  0x9f   : > { %2097 = vrot.lane.b32.xlu1 %v2064_v48, %s3532_s19  ;;  %v1142_v48 = vrot.slane %v1141_v10, 4  ;;  %v1164_v51 = vrot.slane %v1162_v42, 5  ;;  %v1418_v40 = vsel %vm3994_vm11, %v3239_v24, %v1417_v13  ;;  %v1722_v42 = vshrl.u32 %v1622_v19, 16  ;;  %v1900_v22 = vld [vmem:[#allocation2 + $0x28] sm:$0xf] }
  0xa0   : > { %v1720_v60 = vrot.slane %v1718_v55, 5  ;;  %v1714_v36 = vrot.slane %v1712_v44, 5  ;;  %v1903_v46 = vld [vmem:[#allocation2 + $0x34] sm:$0xf]  ;;  %v1899_v5 = vld [vmem:[#allocation2 + $0x24] sm:$0xe] }
  0xa1   : > { %2095 = vrot.lane.b32.xlu0 %v2063_v56, %s3532_s19  ;;  %v2501_v56 = vrot.slane %v2446_v1, 5  ;;  %v1147_v34 = vsel %vm4006_vm14, %v1142_v48, %v1146_v17  ;;  %v1165_v53 = vor.u32 %v1164_v51, %v1161_v50  ;;  %v1687_v1 = vrot.slane %v1685_v31, 4  ;;  %v1519_v48 = vld [vmem:[#allocation2 + $0x24] sm:$0xf]  ;;  %v1623_v50 = vld [vmem:[#allocation2 + $0x38] sm:$0x1] }
  0xa2   : > { %v1711_v51 = vrot.slane %v1709_v29, 4  ;;  %v1728_v57 = vshll.u32 %v1623_v50, 16  ;;  %v3474_v13 = vld [vmem:[%s4702_s5 + $0x10] ss:$0 sps:$4 sm:$0x33]   ;;  %v3246_v32 = vrot.slane %v1899_v5, 9 }
  0xa3   : > { %2101 = vrot.lane.b32.xlu1 %v2066_v8, %s3532_s19  ;;  %v1028_v8 = vld [vmem:[#allocation2 + $0x4] sm:$0xf]  ;;  %v2502_v2 = vsel %vm3994_vm11, %v2500_v41, %v2501_v56  ;;  %v1166_v43 = vrot.slane %v1165_v53, 4  ;;  %v1522_v56 = vld [vmem:[#allocation2 + $0x34] sm:$0xf]  ;;  %3421 = vmatprep.subr.msk.bf16.mxu0 %vm2711_vm15, %v3474_v13  ;;  %vm1595_vm4 = vcmask 126048  }
  0xa4   : > { %1044 = vst.msk [vmem:[#allocation3 + $0x4] sm:$0xf] %vm520_vm2, %v1028_v8  ;;  %v1521_v8 = vld [vmem:[#allocation2 + $0x30] sm:$0xf]  ;;  %v1715_v58 = vor.u32 %v1714_v36, %v1711_v51  ;;  %v1901_v53 = vld [vmem:[#allocation2 + $0x2c] sm:$0x1]  ;;  %3422 = vmatprep.subr.msk.bf16.mxu1 %vm2711_vm15, %v3474_v13 }
  0xa5   : > { %2099 = vrot.lane.b32.xlu0 %v2065_v3, %s3532_s19  ;;  %v1410_v3 = vrot.slane %v1350_v63, 5  ;;  %v1171_v17 = vsel %vm4006_vm14, %v1166_v43, %v1170_v47  ;;  %v1957_v63 = vrot.slane %v1900_v22, 5  ;;  %v2167_v23 = vld [vmem:[#allocation2 + $0x34] sm:$0xf]  ;;  %v2166_v24 = vld [vmem:[#allocation2 + $0x30] sm:$0xf] }
  0xa6   : > { %v1034_v31 = vld [vmem:[#allocation2 + $0x28] sm:$0xf]  ;;  %v2242_v19 = vshll.u32 %v2167_v23, 16  ;;  %v2246_v37 = vshrl.u32 %v2167_v23, 16  ;;  %v2170_v55 = vld [vmem:[#allocation2 + $0x40] sm:$0xf] }
  0xa7   : > { %2378 = vrot.lane.b32.xlu1 %v2207_v14, %s3533_s21  ;;  %v1412_v12 = vrot.slane %v1410_v3, 4  ;;  %v1413_v14 = vrot.slane %v1351_v4, 5  ;;  %v1411_v30 = vsel %vm3994_vm11, %v3238_v18, %v1410_v3  ;;  %v1730_v3 = vrot.slane %v1728_v57, 5  ;;  %v1902_v18 = vld [vmem:[#allocation2 + $0x30] sm:$0xe] }
  0xa8   : > { %v1716_v4 = vrot.slane %v1715_v58, 4  ;;  %v1959_v16 = vrot.slane %v1957_v63, 4  ;;  %1050 = vst.msk [vmem:[#allocation3 + $0x1c] sm:$0xf] %vm520_vm2, %v1034_v31  ;;  %v2244_v29 = vrot.slane %v2242_v19, 5  ;;  %v2248_v44 = vrot.slane %v2246_v37, 4 }
  0xa9   : > { %2376 = vrot.lane.b32.xlu0 %v2197_v20, %s3533_s21  ;;  %v1619_v20 = vld [vmem:[#allocation2 + $0x28] sm:$0xf]  ;;  %v1414_v25 = vsel %vm3994_vm11, %v1412_v12, %v1413_v14  ;;  %v1960_v12 = vrot.slane %v1901_v53, 5  ;;  %v1964_v14 = vrot.slane %v1903_v46, 5  ;;  %v2068_v50 = vld [vmem:[#allocation2 + $0x34] sm:$0xf] }
  0xaa   : > { %v1694_v26 = vshll.u32 %v1619_v20, 16  ;;  %v1698_v27 = vshrl.u32 %v1619_v20, 16  ;;  %v2713_v20 = vsel %vm2711_vm15, %v3474_v13, 0  ;;  %v2249_v51 = vor.u32 %v2248_v44, %v2244_v29  ;;  %v2171_v36 = vld [vmem:[#allocation2 + $0x44] sm:$0x1] }
  0xab   : > { %2382 = vrot.lane.b32.xlu1 %v2231_v54, %s3533_s21  ;;  %v1688_v54 = vshll.u32 %v1618_v21, 16  ;;  %v1721_v21 = vsel %vm4006_vm14, %v1716_v4, %v1720_v60  ;;  %3394 = vmatpush3.bf16.msra.mxu0 %v2713_v20  ;;  %v2070_v58 = vld [vmem:[#allocation2 + $0x40] sm:$0xf]  ;;  %vm1876_vm5 = vcmask 158848   ;;  %vm2045_vm6 = vcmask 191648  }
  0xac   : > { %v1700_v10 = vrot.slane %v1698_v27, 4  ;;  %3418 = vmatpush3.bf16.msra.mxu1 %v2713_v20  ;;  %vm2143_vm7 = vcmask 224448   ;;  %vm2424_vm8 = vcmask 257248   ;;  %vm2593_vm9 = vcmask 290048  }
  0xad   : > { %2380 = vrot.lane.b32.xlu0 %v2221_v28, %s3533_s21  ;;  %v1696_v28 = vrot.slane %v1694_v26, 5  ;;  %v1690_v15 = vrot.slane %v1688_v54, 5  ;;  %v1966_v26 = vrot.slane %v1964_v14, 4  ;;  %v1961_v54 = vsel %vm3994_vm11, %v1959_v16, %v1960_v12  ;;  %v2449_v12 = vld [vmem:[#allocation2 + $0x38] sm:$0x1] }
  0xae   : > { %vm2686_vm10 = vcmask 293888  }
  0xaf   : > { %2547 = vrot.lane.b32.xlu1 %v2495_v35, %s3534_s22  ;;  %v1620_v35 = vld [vmem:[#allocation2 + $0x2c] sm:$0x1]  ;;  %v1701_v47 = vor.u32 %v1700_v10, %v1696_v28  ;;  %v1691_v49 = vor.u32 %v1690_v15, %v1687_v1  ;;  %v2236_v10 = vshll.u32 %v2166_v24, 16  ;;  %v2168_v15 = vld [vmem:[#allocation2 + $0x38] sm:$0x1] }
  0xb0   : > { %v1704_v61 = vshll.u32 %v1620_v35, 16 }
  0xb1   : > { %2545 = vrot.lane.b32.xlu0 %v2492_v38, %s3534_s22  ;;  %v1724_v38 = vrot.slane %v1722_v42, 4  ;;  %v2169_v42 = vld [vmem:[#allocation2 + $0x3c] sm:$0xf] }
  0xb2   : > { %v1706_v41 = vrot.slane %v1704_v61, 5 }
  0xb3   : > { %1288 = vrot.lane.b32.xlu1 %v1157_v52, %s3528_s25  ;;  %v1702_v52 = vrot.slane %v1701_v47, 4  ;;  %v1725_v0 = vor.u32 %v1724_v38, %v1720_v60  ;;  %v2270_v47 = vshrl.u32 %v2170_v55, 16  ;;  %v2238_v60 = vrot.slane %v2236_v10, 5 }
  0xb4   : > { %v2257_v38 = vshrl.u32 %v2169_v42, 16 }
  0xb5   : > { %1286 = vrot.lane.b32.xlu0 %v1147_v34, %s3528_s25  ;;  %v1692_v34 = vrot.slane %v1691_v49, 4  ;;  %v1707_v59 = vsel %vm4006_vm14, %v1702_v52, %v1706_v41  ;;  %v1726_v62 = vrot.slane %v1725_v0, 4  ;;  %v2252_v49 = vshll.u32 %v2168_v15, 16  ;;  %v2067_v41 = vld [vmem:[#allocation2 + $0x30] sm:$0xf] }
  0xb6   : > { %v2272_v52 = vrot.slane %v2270_v47, 4  ;;  %v2259_v57 = vrot.slane %v2257_v38, 4 }
  0xb7   : > { %2551 = vrot.lane.b32.xlu1 %v2502_v2, %s3534_s22  ;;  %v1032_v2 = vld [vmem:[#allocation2 + $0x1c] sm:$0xf]  ;;  %v1697_v43 = vsel %vm4006_vm14, %v1692_v34, %v1696_v28  ;;  %v1731_v6 = vsel %vm4006_vm14, %v1726_v62, %v1730_v3  ;;  %v2233_v28 = vshrl.u32 %v2166_v24, 16  ;;  %v1071_v34 = vld [vmem:[#allocation2 + $0x30] sm:$0xf]  ;;  %v2254_v53 = vrot.slane %v2252_v49, 5 }
  0xb8   : > { %1048 = vst.msk [vmem:[#allocation3 + $0x14] sm:$0xf] %vm520_vm2, %v1032_v2  ;;  %v2250_v2 = vrot.slane %v2249_v51, 4  ;;  %v2448_v62 = vld [vmem:[#allocation2 + $0x34] sm:$0xf]  ;;  %v1183_v5 = vshrl.u32 %v1071_v34, 16 }
  0xb9   : > { %2549 = vrot.lane.b32.xlu0 %v2499_v7, %s3534_s22  ;;  %v1031_v7 = vld [vmem:[#allocation2 + $0x18] sm:$0xf]  ;;  %v2235_v61 = vrot.slane %v2233_v28, 4  ;;  %v1186_v13 = vshll.u32 %v1071_v34, 16 }
  0xba   : > { %1047 = vst.msk [vmem:[#allocation3 + $0x10] sm:$0xf] %vm520_vm2, %v1031_v7  ;;  %v2069_v7 = vld [vmem:[#allocation2 + $0x3c] sm:$0xf]  ;;  %v2255_v16 = vsel %vm4006_vm14, %v2250_v2, %v2254_v53  ;;  %v1185_v24 = vrot.slane %v1183_v5, 4 }
  0xbb   : > { %1292 = vrot.lane.b32.xlu1 %v1181_v11, %s3528_s25  ;;  %v3475_v11 = vld [vmem:[%s4702_s5 + $0x8] sm:$0xff]   ;;  %v2239_v0 = vor.u32 %v2238_v60, %v2235_v61  ;;  %v2452_v61 = vld [vmem:[#allocation2 + $0x44] sm:$0x1]  ;;  %v1036_v53 = vld [vmem:[#allocation2 + $0x34] sm:$0xf] }
  0xbc   : > { %3395 = vmatprep.subr.bf16.mxu0 %v3475_v11  ;;  %3416 = vmatprep.subr.bf16.mxu1 %v3475_v11  ;;  %1052 = vst.msk [vmem:[#allocation3 + $0x24] sm:$0xf] %vm520_vm2, %v1036_v53 }
  0xbd   : > { %1290 = vrot.lane.b32.xlu0 %v1171_v17, %s3528_s25  ;;  %v1904_v17 = vld [vmem:[#allocation2 + $0x38] sm:$0x1]  ;;  %3396 = vmatpush3.bf16.msra.mxu0 %v3475_v11 }
  0xbe   : > { %v1967_v27 = vrot.slane %v1904_v17, 5  ;;  %3419 = vmatpush3.bf16.msra.mxu1 %v3475_v11 }
  0xbf   : > { %1460 = vrot.lane.b32.xlu1 %v1414_v25, %s3527_s24  ;;  %v3477_v25 = vld [vmem:[%s4702_s5] sm:$0xff]  }
  0xc0   : > { %3397 = vmatprep.subr.bf16.mxu0 %v3477_v25  ;;  %v1968_v35 = vsel %vm3994_vm11, %v1966_v26, %v1967_v27  ;;  %3417 = vmatprep.subr.bf16.mxu1 %v3477_v25  ;;  %v1075_v26 = vld [vmem:[#allocation2 + $0x40] sm:$0xf]  ;;  %v1074_v27 = vld [vmem:[#allocation2 + $0x3c] sm:$0xf] }
  0xc1   : > { %1458 = vrot.lane.b32.xlu0 %v1411_v30, %s3527_s24  ;;  %v3247_v30 = vrot.slane %v1902_v18, 9  ;;  %3398 = vmatpush3.bf16.msra.mxu0 %v3477_v25  ;;  %v1073_v18 = vld [vmem:[#allocation2 + $0x38] sm:$0x1]  ;;  %v1216_v10 = vshll.u32 %v1075_v26, 16  ;;  %v1207_v15 = vshrl.u32 %v1074_v27, 16 }
  0xc2   : > { %3420 = vmatpush3.bf16.msra.mxu1 %v3477_v25  ;;  %v1188_v25 = vrot.slane %v1186_v13, 5  ;;  %v1202_v37 = vshll.u32 %v1073_v18, 16 }
  0xc3   : > { %1464 = vrot.lane.b32.xlu1 %v1421_v39, %s3527_s24  ;;  %v1033_v39 = vld [vmem:[#allocation2 + $0x24] sm:$0xf]  ;;  %v1965_v1 = vsel %vm3994_vm11, %v3247_v30, %v1964_v14  ;;  %v2505_v14 = vrot.slane %v2448_v62, 5  ;;  %v4177_v38 = vrot.slane %v1216_v10, 5 }
  0xc4   : > { %1049 = vst.msk [vmem:[#allocation3 + $0x18] sm:$0xf] %vm520_vm2, %v1033_v39 }
  0xc5   : > { %1462 = vrot.lane.b32.xlu0 %v1418_v40, %s3527_s24  ;;  %v1958_v40 = vsel %vm3994_vm11, %v3246_v32, %v1957_v63  ;;  %v2276_v63 = vshll.u32 %v2171_v36, 16  ;;  %v2507_v31 = vrot.slane %v2505_v14, 4  ;;  %v1076_v36 = vld [vmem:[#allocation2 + $0x44] sm:$0x1] }
  0xc7   : > { %1557 = vrot.lane.b32.xlu1 %v1520_v45, %s3529_s16  ;;  %v2266_v45 = vshll.u32 %v2170_v55, 16  ;;  %v2278_v11 = vrot.slane %v2276_v63, 5  ;;  %v1220_v55 = vshrl.u32 %v1075_v26, 16  ;;  %v1360_v26 = vld [vmem:[#allocation2 + $0x44] sm:$0x1] }
  0xc9   : > { %1555 = vrot.lane.b32.xlu0 %v1519_v48, %s3529_s16  ;;  %v2260_v48 = vshll.u32 %v2169_v42, 16 }
  0xcb   : > { %1561 = vrot.lane.b32.xlu1 %v1522_v56, %s3529_s16  ;;  %v2268_v56 = vrot.slane %v2266_v45, 5  ;;  %v2262_v22 = vrot.slane %v2260_v48, 5  ;;  %v1204_v45 = vrot.slane %v1202_v37, 5  ;;  %v1222_v48 = vrot.slane %v1220_v55, 4 }
  0xcd   : > { %1559 = vrot.lane.b32.xlu0 %v1521_v8, %s3529_s16  ;;  %v1072_v8 = vld [vmem:[#allocation2 + $0x34] sm:$0xf]  ;;  %v2263_v4 = vor.u32 %v2262_v22, %v2259_v57  ;;  %v2515_v57 = vrot.slane %v2452_v61, 5  ;;  %v1223_v34 = vor.u32 %v1222_v48, %v4177_v38  ;;  %v1627_v61 = vld [vmem:[#allocation2 + $0x48] sm:$0xf] }
  0xce   : > { %v1192_v3 = vshll.u32 %v1072_v8, 16  ;;  %v1196_v46 = vshrl.u32 %v1072_v8, 16 }
  0xcf   : > { %1838 = vrot.lane.b32.xlu1 %v1707_v59, %s3530_s17  ;;  %v2273_v59 = vor.u32 %v2272_v52, %v2268_v56  ;;  %v2264_v23 = vrot.slane %v2263_v4, 4  ;;  %v1224_v4 = vrot.slane %v1223_v34, 4 }
  0xd0   : > { %v4162_v20 = vrot.slane %v1192_v3, 5  ;;  %v1356_v3 = vld [vmem:[#allocation2 + $0x34] sm:$0xf] }
  0xd1   : > { %1836 = vrot.lane.b32.xlu0 %v1697_v43, %s3530_s17  ;;  %v2240_v43 = vrot.slane %v2239_v0, 4  ;;  %v2274_v17 = vrot.slane %v2273_v59, 4  ;;  %v2269_v42 = vsel %vm4006_vm14, %v2264_v23, %v2268_v56  ;;  %v1209_v56 = vrot.slane %v1207_v15, 4  ;;  %v2450_v0 = vld [vmem:[#allocation2 + $0x3c] sm:$0xe] }
  0xd2   : > { %v3255_v59 = vrot.slane %v2450_v0, 9  ;;  %v1424_v13 = vrot.slane %v1356_v3, 5  ;;  %v1757_v0 = vshrl.u32 %v1627_v61, 16  ;;  %v1629_v3 = vld [vmem:[#allocation2 + $0x50] sm:$0x1] }
  0xd3   : > { %1842 = vrot.lane.b32.xlu1 %v1731_v6, %s3530_s17  ;;  %v2447_v6 = vld [vmem:[#allocation2 + $0x30] sm:$0xe]  ;;  %v2245_v32 = vsel %vm4006_vm14, %v2240_v43, %v2244_v29  ;;  %v1210_v29 = vshll.u32 %v1074_v27, 16  ;;  %v1358_v27 = vld [vmem:[#allocation2 + $0x3c] sm:$0xe] }
  0xd4   : > { %v3254_v19 = vrot.slane %v2447_v6, 9  ;;  %v3241_v10 = vrot.slane %v1358_v27, 9 }
  0xd5   : > { %1840 = vrot.lane.b32.xlu0 %v1721_v21, %s3530_s17  ;;  %v1198_v21 = vrot.slane %v1196_v46, 4  ;;  %v1212_v52 = vrot.slane %v1210_v29, 5  ;;  %v1035_v46 = vld [vmem:[#allocation2 + $0x30] sm:$0xf] }
  0xd6   : > { %1051 = vst.msk [vmem:[#allocation3 + $0x20] sm:$0xf] %vm520_vm2, %v1035_v46  ;;  %v1759_v46 = vrot.slane %v1757_v0, 4 }
  0xd7   : > { %2007 = vrot.lane.b32.xlu1 %v1961_v54, %s3531_s18  ;;  %v2508_v54 = vrot.slane %v2449_v12, 5  ;;  %v1199_v28 = vor.u32 %v1198_v21, %v4162_v20  ;;  %v1213_v62 = vor.u32 %v1212_v52, %v1209_v56  ;;  %v1037_v21 = vld [vmem:[#allocation2 + $0x3c] sm:$0xf]  ;;  %v1626_v56 = vld [vmem:[#allocation2 + $0x44] sm:$0x1] }
  0xd8   : > { %1053 = vst.msk [vmem:[#allocation3 + $0x28] sm:$0xf] %vm520_vm2, %v1037_v21 }
  0xd9   : > { %2005 = vrot.lane.b32.xlu0 %v1958_v40, %s3531_s18  ;;  %v2279_v40 = vsel %vm4006_vm14, %v2274_v17, %v2278_v11  ;;  %v2509_v44 = vsel %vm3994_vm11, %v2507_v31, %v2508_v54  ;;  %v1200_v47 = vrot.slane %v1199_v28, 4  ;;  %v1359_v11 = vld [vmem:[#allocation2 + $0x40] sm:$0xf]  ;;  %v1214_v6 = vrot.slane %v1213_v62, 4 }
  0xda   : > { %v1038_v17 = vld [vmem:[#allocation2 + $0x40] sm:$0xf]  ;;  %v1434_v28 = vrot.slane %v1360_v26, 5 }
  0xdb   : > { %2011 = vrot.lane.b32.xlu1 %v1968_v35, %s3531_s18  ;;  %v1189_v35 = vor.u32 %v1188_v25, %v1185_v24  ;;  %v1205_v22 = vsel %vm4006_vm14, %v1200_v47, %v1204_v45  ;;  %1054 = vst.msk [vmem:[#allocation3 + $0x2c] sm:$0xf] %vm520_vm2, %v1038_v17  ;;  %v1426_v24 = vrot.slane %v1424_v13, 4  ;;  %v1219_v31 = vsel %vm4006_vm14, %v1214_v6, %v4177_v38  ;;  %v1628_v45 = vld [vmem:[#allocation2 + $0x4c] sm:$0xf] }
  0xdc   : > { %v1525_v6 = vld [vmem:[#allocation2 + $0x48] sm:$0xf] }
  0xdd   : > { %2009 = vrot.lane.b32.xlu0 %v1965_v1, %s3531_s18  ;;  %v2451_v1 = vld [vmem:[#allocation2 + $0x40] sm:$0xf]  ;;  %v1190_v51 = vrot.slane %v1189_v35, 4 }
  0xde   : > { %v2512_v60 = vrot.slane %v2451_v1, 5 }
  0xdf   : > { %2105 = vrot.lane.b32.xlu1 %v2068_v50, %s3532_s19  ;;  %v2506_v50 = vsel %vm3994_vm11, %v3254_v19, %v2505_v14  ;;  %v1195_v2 = vsel %vm4006_vm14, %v1190_v51, %v4162_v20  ;;  %v1355_v20 = vld [vmem:[#allocation2 + $0x30] sm:$0xe]  ;;  %v1625_v19 = vld [vmem:[#allocation2 + $0x40] sm:$0xf]  ;;  %v1770_v51 = vshrl.u32 %v1628_v45, 16 }
  0xe0   : > { %v2514_v8 = vrot.slane %v2512_v60, 4  ;;  %v2513_v14 = vsel %vm3994_vm11, %v3255_v59, %v2512_v60  ;;  %v3240_v54 = vrot.slane %v1355_v20, 9  ;;  %v1746_v35 = vshrl.u32 %v1625_v19, 16  ;;  %v1523_v59 = vld [vmem:[#allocation2 + $0x3c] sm:$0xf] }
  0xe1   : > { %2103 = vrot.lane.b32.xlu0 %v2067_v41, %s3532_s19 }
  0xe2   : > { %v2516_v43 = vsel %vm3994_vm11, %v2514_v8, %v2515_v57  ;;  %v1425_v15 = vsel %vm3994_vm11, %v3240_v54, %v1424_v13  ;;  %v1760_v57 = vshll.u32 %v1627_v61, 16  ;;  %v1524_v8 = vld [vmem:[#allocation2 + $0x40] sm:$0xf] }
  0xe3   : > { %2109 = vrot.lane.b32.xlu1 %v2070_v58, %s3532_s19  ;;  %v1226_v58 = vshll.u32 %v1076_v36, 16 }
  0xe5   : > { %2107 = vrot.lane.b32.xlu0 %v2069_v7, %s3532_s19  ;;  %v1228_v5 = vrot.slane %v1226_v58, 5  ;;  %v1752_v58 = vshll.u32 %v1626_v56, 16 }
  0xe6   : > { %v1451_v39 = vpop.permute.xlu0 %1450 }
  0xe7   : > { %2386 = vrot.lane.b32.xlu1 %v2255_v16, %s3533_s21  ;;  %v1453_v30 = vpop.permute.xlu1 %1452  ;;  %v1357_v16 = vld [vmem:[#allocation2 + $0x38] sm:$0x1]  ;;  %v1229_v23 = vsel %vm4006_vm14, %v1224_v4, %v1228_v5  ;;  %v1526_v4 = vld [vmem:[#allocation2 + $0x4c] sm:$0xf]  ;;  %v1754_v13 = vrot.slane %v1752_v58, 5 }
  0xe8   : > { %v1427_v25 = vrot.slane %v1357_v16, 5 }
  0xe9   : > { %2384 = vrot.lane.b32.xlu0 %v2245_v32, %s3533_s21  ;;  %v1431_v32 = vrot.slane %v1359_v11, 5 }
  0xea   : > { %v1428_v55 = vsel %vm3994_vm11, %v1426_v24, %v1427_v25  ;;  %v1909_v25 = vld [vmem:[#allocation2 + $0x4c] sm:$0xf] }
  0xeb   : > { %2390 = vrot.lane.b32.xlu1 %v2279_v40, %s3533_s21  ;;  %v1433_v40 = vrot.slane %v1431_v32, 4  ;;  %v1432_v38 = vsel %vm3994_vm11, %v3241_v10, %v1431_v32  ;;  %v1910_v10 = vld [vmem:[#allocation2 + $0x50] sm:$0x1] }
  0xed   : > { %2388 = vrot.lane.b32.xlu0 %v2269_v42, %s3533_s21  ;;  %v1283_v49 = vpop.permute.xlu1 %1282  ;;  %v1742_v42 = vshll.u32 %v1625_v19, 16  ;;  %v1435_v60 = vsel %vm3994_vm11, %v1433_v40, %v1434_v28  ;;  %v1905_v19 = vld [vmem:[#allocation2 + $0x3c] sm:$0xe] }
  0xee   : > { %1329 = vst.msk [vmem:[#allocation3 + $0x8] sm:$0xf] %vm1326_vm0, %v1283_v49  ;;  %v1748_v49 = vrot.slane %v1746_v35, 4  ;;  %v3248_v35 = vrot.slane %v1905_v19, 9 }
  0xef   : > { %v1279_v41 = vpop.permute.xlu0 %1278  ;;  %2555 = vrot.lane.b32.xlu1 %v2509_v44, %s3534_s22  ;;  %v4230_v48 = vrot.slane %v1742_v42, 5 }
  0xf0   : > { %1327 = vst.msk [vmem:[#allocation3] sm:$0xf] %vm1326_vm0, %v1279_v41 }
  0xf1   : > { %2553 = vrot.lane.b32.xlu0 %v2506_v50, %s3534_s22  ;;  %1499 = vst.msk [vmem:[#allocation3] sm:$0xf] %vm1498_vm3, %v1451_v39  ;;  %v1285_v63 = vpop.permute.xlu1 %1284  ;;  %v1624_v39 = vld [vmem:[#allocation2 + $0x3c] sm:$0xf]  ;;  %v1766_v50 = vshll.u32 %v1628_v45, 16  ;;  %v1749_v34 = vor.u32 %v1748_v49, %v4230_v48 }
  0xf2   : > { %1330 = vst.msk [vmem:[#allocation3 + $0xc] sm:$0xf] %vm1326_vm0, %v1285_v63  ;;  %v1733_v29 = vshrl.u32 %v1624_v39, 16  ;;  %v1736_v44 = vshll.u32 %v1624_v39, 16  ;;  %v1772_v63 = vrot.slane %v1770_v51, 4 }
  0xf3   : > { %v1281_v7 = vpop.permute.xlu0 %1280  ;;  %1296 = vrot.lane.b32.xlu1 %v1205_v22, %s3528_s25  ;;  %v1768_v53 = vrot.slane %v1766_v50, 5  ;;  %v1750_v5 = vrot.slane %v1749_v34, 4  ;;  %v2175_v49 = vld [vmem:[#allocation2 + $0x54] sm:$0xf] }
  0xf4   : > { %1328 = vst.msk [vmem:[#allocation3 + $0x4] sm:$0xf] %vm1326_vm0, %v1281_v7  ;;  %v1735_v52 = vrot.slane %v1733_v29, 4  ;;  %v1738_v41 = vrot.slane %v1736_v44, 5  ;;  %v1762_v7 = vrot.slane %v1760_v57, 5 }
  0xf5   : > { %1294 = vrot.lane.b32.xlu0 %v1195_v2, %s3528_s25  ;;  %1500 = vst.msk [vmem:[#allocation3 + $0x4] sm:$0xf] %vm1498_vm3, %v1453_v30  ;;  %v1457_v12 = vpop.permute.xlu1 %1456  ;;  %v1773_v11 = vor.u32 %v1772_v63, %v1768_v53  ;;  %v1755_v21 = vsel %vm4006_vm14, %v1750_v5, %v1754_v13  ;;  %v1908_v29 = vld [vmem:[#allocation2 + $0x48] sm:$0xe]  ;;  %v2072_v13 = vld [vmem:[#allocation2 + $0x4c] sm:$0xf] }
  0xf6   : > { %1502 = vst.msk [vmem:[#allocation3 + $0xc] sm:$0xf] %vm1498_vm3, %v1457_v12  ;;  %v1739_v62 = vor.u32 %v1738_v41, %v1735_v52  ;;  %v1776_v12 = vshll.u32 %v1629_v3, 16  ;;  %v1763_v17 = vor.u32 %v1762_v7, %v1759_v46  ;;  %v2172_v44 = vld [vmem:[#allocation2 + $0x48] sm:$0xf] }
  0xf7   : > { %v1455_v18 = vpop.permute.xlu0 %1454  ;;  %2559 = vrot.lane.b32.xlu1 %v2516_v43, %s3534_s22  ;;  %v1774_v32 = vrot.slane %v1773_v11, 4  ;;  %v2281_v56 = vshrl.u32 %v2172_v44, 16  ;;  %v2284_v52 = vshll.u32 %v2172_v44, 16 }
  0xf8   : > { %1501 = vst.msk [vmem:[#allocation3 + $0x8] sm:$0xf] %vm1498_vm3, %v1455_v18  ;;  %v1740_v16 = vrot.slane %v1739_v62, 4  ;;  %v1906_v18 = vld [vmem:[#allocation2 + $0x40] sm:$0xf] }
  0xf9   : > { %2557 = vrot.lane.b32.xlu0 %v2513_v14, %s3534_s22  ;;  %v1550_v30 = vpop.permute.xlu1 %1549  ;;  %v1971_v24 = vrot.slane %v1906_v18, 5  ;;  %v2283_v62 = vrot.slane %v2281_v56, 4  ;;  %v2286_v3 = vrot.slane %v2284_v52, 5  ;;  %v1078_v18 = vld [vmem:[#allocation2 + $0x4c] sm:$0xf] }
  0xfa   : > { %1597 = vst.msk [vmem:[#allocation3 + $0x4] sm:$0xf] %vm1595_vm4, %v1550_v30  ;;  %v1745_v27 = vsel %vm4006_vm14, %v1740_v16, %v4230_v48  ;;  %v1764_v30 = vrot.slane %v1763_v17, 4  ;;  %v2176_v48 = vld [vmem:[#allocation2 + $0x58] sm:$0xf] }
  0xfb   : > { %v1548_v37 = vpop.permute.xlu0 %1547  ;;  %1300 = vrot.lane.b32.xlu1 %v1229_v23, %s3528_s25  ;;  %v1778_v23 = vrot.slane %v1776_v12, 5  ;;  %v1973_v40 = vrot.slane %v1971_v24, 4  ;;  %v1972_v51 = vsel %vm3994_vm11, %v3248_v35, %v1971_v24  ;;  %v2314_v0 = vshll.u32 %v2176_v48, 16  ;;  %v2071_v16 = vld [vmem:[#allocation2 + $0x48] sm:$0xf] }
  0xfc   : > { %1596 = vst.msk [vmem:[#allocation3] sm:$0xf] %vm1595_vm4, %v1548_v37  ;;  %v1978_v37 = vrot.slane %v1909_v25, 5  ;;  %v1769_v42 = vsel %vm4006_vm14, %v1764_v30, %v1768_v53  ;;  %v2318_v57 = vshrl.u32 %v2176_v48, 16  ;;  %v2287_v17 = vor.u32 %v2286_v3, %v2283_v62  ;;  %v4288_v30 = vld [vmem:[#allocation2 + $0x4c] sm:$0xf] }
  0xfd   : > { %1298 = vrot.lane.b32.xlu0 %v1219_v31, %s3528_s25  ;;  %v1554_v1 = vpop.permute.xlu1 %1553  ;;  %v1907_v31 = vld [vmem:[#allocation2 + $0x44] sm:$0x1]  ;;  %v1779_v39 = vsel %vm4006_vm14, %v1774_v32, %v1778_v23  ;;  %v4279_v7 = vrot.slane %v2314_v0, 5  ;;  %v2074_v32 = vld [vmem:[#allocation2 + $0x58] sm:$0xf] }
  0xfe   : > { %1599 = vst.msk [vmem:[#allocation3 + $0xc] sm:$0xf] %vm1595_vm4, %v1554_v1  ;;  %v1974_v28 = vrot.slane %v1907_v31, 5  ;;  %v2173_v1 = vld [vmem:[#allocation2 + $0x4c] sm:$0xf]  ;;  %v1980_v45 = vrot.slane %v1978_v37, 4 }
  0xff   : > { %v1552_v47 = vpop.permute.xlu0 %1551  ;;  %1468 = vrot.lane.b32.xlu1 %v1428_v55, %s3527_s24  ;;  %v1240_v31 = vshll.u32 %v1078_v18, 16  ;;  %v2453_v52 = vld [vmem:[#allocation2 + $0x48] sm:$0xe] }
 0x100   : > { %1598 = vst.msk [vmem:[#allocation3 + $0x8] sm:$0xf] %vm1595_vm4, %v1552_v47  ;;  %v1981_v47 = vrot.slane %v1910_v10, 5  ;;  %v1975_v61 = vsel %vm3994_vm11, %v1973_v40, %v1974_v28  ;;  %v3256_v62 = vrot.slane %v2453_v52, 9  ;;  %v1364_v52 = vld [vmem:[#allocation2 + $0x54] sm:$0xe] }
 0x101   : > { %1466 = vrot.lane.b32.xlu0 %v1425_v15, %s3527_s24  ;;  %v1831_v36 = vpop.permute.xlu1 %1830 }
 0x102   : > { %1878 = vst.msk [vmem:[#allocation3 + $0x4] sm:$0xf] %vm1876_vm5, %v1831_v36  ;;  %v3249_v36 = vrot.slane %v1908_v29, 9  ;;  %v1982_v34 = vsel %vm3994_vm11, %v1980_v45, %v1981_v47  ;;  %v1079_v29 = vld [vmem:[#allocation2 + $0x50] sm:$0x1]  ;;  %v4297_v45 = vrot.slane %v1240_v31, 5 }
 0x103   : > { %v1829_v22 = vpop.permute.xlu0 %1828  ;;  %1472 = vrot.lane.b32.xlu1 %v1435_v60, %s3527_s24  ;;  %v2290_v60 = vshll.u32 %v2173_v1, 16 }
 0x104   : > { %1877 = vst.msk [vmem:[#allocation3] sm:$0xf] %vm1876_vm5, %v1829_v22  ;;  %v2305_v22 = vshrl.u32 %v2175_v49, 16 }
 0x105   : > { %1470 = vrot.lane.b32.xlu0 %v1432_v38, %s3527_s24  ;;  %v1835_v2 = vpop.permute.xlu1 %1834  ;;  %v2294_v38 = vshrl.u32 %v2173_v1, 16  ;;  %v4272_v58 = vrot.slane %v2290_v60, 5  ;;  %v1080_v60 = vld [vmem:[#allocation2 + $0x54] sm:$0xf] }
 0x106   : > { %1880 = vst.msk [vmem:[#allocation3 + $0xc] sm:$0xf] %vm1876_vm5, %v1835_v2  ;;  %v1979_v2 = vsel %vm3994_vm11, %v3249_v36, %v1978_v37  ;;  %v2073_v37 = vld [vmem:[#allocation2 + $0x54] sm:$0xf]  ;;  %v1039_v36 = vld [vmem:[#allocation2 + $0x48] sm:$0xf] }
 0x107   : > { %v1833_v43 = vpop.permute.xlu0 %1832  ;;  %1565 = vrot.lane.b32.xlu1 %v1524_v8, %s3529_s16  ;;  %v2308_v8 = vshll.u32 %v2175_v49, 16  ;;  %v2296_v53 = vrot.slane %v2294_v38, 4  ;;  %1055 = vst.msk [vmem:[#allocation3 + $0x30] sm:$0xf] %vm520_vm2, %v1039_v36 }
 0x108   : > { %1879 = vst.msk [vmem:[#allocation3 + $0x8] sm:$0xf] %vm1876_vm5, %v1833_v43  ;;  %v2320_v43 = vrot.slane %v2318_v57, 4 }
 0x109   : > { %1563 = vrot.lane.b32.xlu0 %v1523_v59, %s3529_s16  ;;  %v2000_v14 = vpop.permute.xlu1 %1999  ;;  %v2174_v59 = vld [vmem:[#allocation2 + $0x50] sm:$0x1]  ;;  %v2310_v5 = vrot.slane %v2308_v8, 5  ;;  %v2297_v11 = vor.u32 %v2296_v53, %v4272_v58 }
 0x10a   : > { %2047 = vst.msk [vmem:[#allocation3 + $0x4] sm:$0xf] %vm2045_vm6, %v2000_v14  ;;  %v2300_v12 = vshll.u32 %v2174_v59, 16  ;;  %v2177_v14 = vld [vmem:[#allocation2 + $0x5c] sm:$0x1]  ;;  %v2321_v23 = vor.u32 %v2320_v43, %v4279_v7 }
 0x10b   : > { %v1998_v20 = vpop.permute.xlu0 %1997  ;;  %1569 = vrot.lane.b32.xlu1 %v1526_v4, %s3529_s16  ;;  %v2307_v4 = vrot.slane %v2305_v22, 4  ;;  %v2324_v24 = vshll.u32 %v2177_v14, 16  ;;  %v1250_v22 = vshll.u32 %v1079_v29, 16  ;;  %v1082_v14 = vld [vmem:[#allocation2 + $0x5c] sm:$0x1] }
 0x10c   : > { %2046 = vst.msk [vmem:[#allocation3] sm:$0xf] %vm2045_vm6, %v1998_v20 }
 0x10d   : > { %1567 = vrot.lane.b32.xlu0 %v1525_v6, %s3529_s16  ;;  %v2004_v26 = vpop.permute.xlu1 %2003  ;;  %v2311_v25 = vor.u32 %v2310_v5, %v2307_v4  ;;  %v2326_v35 = vrot.slane %v2324_v24, 5  ;;  %v1041_v24 = vld [vmem:[#allocation2 + $0x54] sm:$0xf] }
 0x10e   : > { %2049 = vst.msk [vmem:[#allocation3 + $0xc] sm:$0xf] %vm2045_vm6, %v2004_v26  ;;  %v2298_v26 = vrot.slane %v2297_v11, 4  ;;  %v2458_v11 = vld [vmem:[#allocation2 + $0x5c] sm:$0x1] }
 0x10f   : > { %v2002_v54 = vpop.permute.xlu0 %2001  ;;  %1846 = vrot.lane.b32.xlu1 %v1755_v21, %s3530_s17  ;;  %v1077_v21 = vld [vmem:[#allocation2 + $0x48] sm:$0xf]  ;;  %v2312_v1 = vrot.slane %v2311_v25, 4  ;;  %1057 = vst.msk [vmem:[#allocation3 + $0x38] sm:$0xf] %vm520_vm2, %v1041_v24 }
 0x110   : > { %2048 = vst.msk [vmem:[#allocation3 + $0x8] sm:$0xf] %vm2045_vm6, %v2002_v54  ;;  %v1244_v54 = vshrl.u32 %v1078_v18, 16  ;;  %v1231_v40 = vshrl.u32 %v1077_v21, 16  ;;  %v1234_v28 = vshll.u32 %v1077_v21, 16 }
 0x111   : > { %1844 = vrot.lane.b32.xlu0 %v1745_v27, %s3530_s17  ;;  %v2098_v55 = vpop.permute.xlu1 %2097  ;;  %v2302_v27 = vrot.slane %v2300_v12, 5  ;;  %v2317_v59 = vsel %vm4006_vm14, %v2312_v1, %v4279_v7 }
 0x112   : > { %2145 = vst.msk [vmem:[#allocation3 + $0x4] sm:$0xf] %vm2143_vm7, %v2098_v55  ;;  %v2455_v55 = vld [vmem:[#allocation2 + $0x50] sm:$0x1]  ;;  %v1246_v47 = vrot.slane %v1244_v54, 4  ;;  %v1233_v49 = vrot.slane %v1231_v40, 4 }
 0x113   : > { %v2096_v15 = vpop.permute.xlu0 %2095  ;;  %1850 = vrot.lane.b32.xlu1 %v1779_v39, %s3530_s17  ;;  %v2288_v39 = vrot.slane %v2287_v17, 4  ;;  %v2303_v44 = vsel %vm4006_vm14, %v2298_v26, %v2302_v27  ;;  %v2522_v57 = vrot.slane %v2455_v55, 5  ;;  %v2456_v26 = vld [vmem:[#allocation2 + $0x54] sm:$0xe]  ;;  %v2529_v27 = vrot.slane %v2458_v11, 5 }
 0x114   : > { %2144 = vst.msk [vmem:[#allocation3] sm:$0xf] %vm2143_vm7, %v2096_v15  ;;  %v2519_v15 = vrot.slane %v4288_v30, 5  ;;  %v1247_v8 = vor.u32 %v1246_v47, %v4297_v45  ;;  %v3257_v40 = vrot.slane %v2456_v26, 9  ;;  %v1633_v11 = vld [vmem:[#allocation2 + $0x60] sm:$0xf] }
 0x115   : > { %1848 = vrot.lane.b32.xlu0 %v1769_v42, %s3530_s17  ;;  %v2102_v50 = vpop.permute.xlu1 %2101  ;;  %v2322_v42 = vrot.slane %v2321_v23, 4  ;;  %v2293_v48 = vsel %vm4006_vm14, %v2288_v39, %v4272_v58  ;;  %v1042_v23 = vld [vmem:[#allocation2 + $0x58] sm:$0xf]  ;;  %v1808_v24 = vshll.u32 %v1633_v11, 16 }
 0x116   : > { %2147 = vst.msk [vmem:[#allocation3 + $0xc] sm:$0xf] %vm2143_vm7, %v2102_v50  ;;  %v1236_v50 = vrot.slane %v1234_v28, 5  ;;  %v2521_v0 = vrot.slane %v2519_v15, 4  ;;  %v1248_v7 = vrot.slane %v1247_v8, 4 }
 0x117   : > { %v2100_v41 = vpop.permute.xlu0 %2099  ;;  %2015 = vrot.lane.b32.xlu1 %v1975_v61, %s3531_s18  ;;  %v1081_v61 = vld [vmem:[#allocation2 + $0x58] sm:$0xf]  ;;  %1058 = vst.msk [vmem:[#allocation3 + $0x3c] sm:$0xf] %vm520_vm2, %v1042_v23  ;;  %v1805_v23 = vshrl.u32 %v1633_v11, 16 }
 0x118   : > { %2146 = vst.msk [vmem:[#allocation3 + $0x8] sm:$0xf] %vm2143_vm7, %v2100_v41  ;;  %v2327_v41 = vsel %vm4006_vm14, %v2322_v42, %v2326_v35  ;;  %v1264_v58 = vshll.u32 %v1081_v61, 16  ;;  %v1268_v53 = vshrl.u32 %v1081_v61, 16  ;;  %v1237_v3 = vor.u32 %v1236_v50, %v1233_v49  ;;  %v1528_v26 = vld [vmem:[#allocation2 + $0x58] sm:$0xf] }
 0x119   : > { %2013 = vrot.lane.b32.xlu0 %v1972_v51, %s3531_s18  ;;  %v2379_v63 = vpop.permute.xlu1 %2378  ;;  %v1040_v51 = vld [vmem:[#allocation2 + $0x4c] sm:$0xf]  ;;  %v2523_v5 = vsel %vm3994_vm11, %v2521_v0, %v2522_v57 }
 0x11a   : > { %2426 = vst.msk [vmem:[#allocation3 + $0x4] sm:$0xf] %vm2424_vm8, %v2379_v63  ;;  %v1255_v63 = vshrl.u32 %v1080_v60, 16  ;;  %v1238_v21 = vrot.slane %v1237_v3, 4 }
 0x11b   : > { %v2377_v46 = vpop.permute.xlu0 %2376  ;;  %2019 = vrot.lane.b32.xlu1 %v1982_v34, %s3531_s18  ;;  %1056 = vst.msk [vmem:[#allocation3 + $0x34] sm:$0xf] %vm520_vm2, %v1040_v51  ;;  %v4311_v34 = vld [vmem:[#allocation2 + $0x58] sm:$0xf] }
 0x11c   : > { %2425 = vst.msk [vmem:[#allocation3] sm:$0xf] %vm2424_vm8, %v2377_v46  ;;  %v1258_v46 = vshll.u32 %v1080_v60, 16  ;;  %v2526_v12 = vrot.slane %v4311_v34, 5  ;;  %v1257_v17 = vrot.slane %v1255_v63, 4  ;;  %v1243_v39 = vsel %vm4006_vm14, %v1238_v21, %v4297_v45 }
 0x11d   : > { %2017 = vrot.lane.b32.xlu0 %v1979_v2, %s3531_s18  ;;  %v2383_v6 = vpop.permute.xlu1 %2382  ;;  %v1363_v60 = vld [vmem:[#allocation2 + $0x50] sm:$0x1]  ;;  %v1630_v34 = vld [vmem:[#allocation2 + $0x54] sm:$0xf]  ;;  %v3243_v63 = vrot.slane %v1364_v52, 9 }
 0x11e   : > { %2428 = vst.msk [vmem:[#allocation3 + $0xc] sm:$0xf] %vm2424_vm8, %v2383_v6  ;;  %v4324_v6 = vrot.slane %v1264_v58, 5  ;;  %v2528_v31 = vrot.slane %v2526_v12, 4  ;;  %v2527_v47 = vsel %vm3994_vm11, %v3257_v40, %v2526_v12  ;;  %v1441_v36 = vrot.slane %v1363_v60, 5 }
 0x11f   : > { %v2381_v20 = vpop.permute.xlu0 %2380  ;;  %2113 = vrot.lane.b32.xlu1 %v2072_v13, %s3532_s19  ;;  %v1252_v13 = vrot.slane %v1250_v22, 5  ;;  %v1631_v22 = vld [vmem:[#allocation2 + $0x58] sm:$0xf]  ;;  %v1635_v40 = vld [vmem:[#allocation2 + $0x68] sm:$0x1] }
 0x120   : > { %2427 = vst.msk [vmem:[#allocation3 + $0x8] sm:$0xf] %vm2424_vm8, %v2381_v20  ;;  %v2520_v20 = vsel %vm3994_vm11, %v3256_v62, %v2519_v15  ;;  %v2530_v35 = vsel %vm3994_vm11, %v2528_v31, %v2529_v27  ;;  %v1794_v62 = vshrl.u32 %v1631_v22, 16  ;;  %v1912_v60 = vld [vmem:[#allocation2 + $0x58] sm:$0xf] }
 0x121   : > { %2111 = vrot.lane.b32.xlu0 %v2071_v16, %s3532_s19  ;;  %v2548_v19 = vpop.permute.xlu1 %2547  ;;  %v1270_v16 = vrot.slane %v1268_v53, 4  ;;  %v1253_v30 = vsel %vm4006_vm14, %v1248_v7, %v1252_v13 }
 0x122   : > { %2595 = vst.msk [vmem:[#allocation3 + $0x4] sm:$0xf] %vm2593_vm9, %v2548_v19  ;;  %v1274_v19 = vshll.u32 %v1082_v14, 16 }
 0x123   : > { %v2546_v10 = vpop.permute.xlu0 %2545  ;;  %2117 = vrot.lane.b32.xlu1 %v2074_v32, %s3532_s19  ;;  %v1260_v32 = vrot.slane %v1258_v46, 5  ;;  %v1271_v54 = vor.u32 %v1270_v16, %v4324_v6 }
 0x124   : > { %2594 = vst.msk [vmem:[#allocation3] sm:$0xf] %vm2593_vm9, %v2546_v10  ;;  %v1362_v10 = vld [vmem:[#allocation2 + $0x4c] sm:$0xf]  ;;  %v1276_v15 = vrot.slane %v1274_v19, 5 }
 0x125   : > { %2115 = vrot.lane.b32.xlu0 %v2073_v37, %s3532_s19  ;;  %v1289_v38 = vpop.permute.xlu1 %1288  ;;  %v1261_v28 = vor.u32 %v1260_v32, %v1257_v17  ;;  %v1272_v1 = vrot.slane %v1271_v54, 4  ;;  %v1438_v29 = vrot.slane %v1362_v10, 5  ;;  %v1810_v10 = vrot.slane %v1808_v24, 5 }
 0x126   : > { %1332 = vst.msk [vmem:[#allocation3 + $0x14] sm:$0xf] %vm1326_vm0, %v1289_v38 }
 0x127   : > { %v1287_v56 = vpop.permute.xlu0 %1286  ;;  %2394 = vrot.lane.b32.xlu1 %v2303_v44, %s3533_s21  ;;  %v1365_v44 = vld [vmem:[#allocation2 + $0x58] sm:$0xf]  ;;  %v1262_v61 = vrot.slane %v1261_v28, 4  ;;  %v1277_v50 = vsel %vm4006_vm14, %v1272_v1, %v1276_v15  ;;  %v1440_v51 = vrot.slane %v1438_v29, 4  ;;  %v1807_v28 = vrot.slane %v1805_v23, 4 }
 0x128   : > { %1331 = vst.msk [vmem:[#allocation3 + $0x10] sm:$0xf] %vm1326_vm0, %v1287_v56  ;;  %v1445_v49 = vrot.slane %v1365_v44, 5  ;;  %v1366_v56 = vld [vmem:[#allocation2 + $0x5c] sm:$0x1] }
 0x129   : > { %2392 = vrot.lane.b32.xlu0 %v2293_v48, %s3533_s21  ;;  %v2552_v2 = vpop.permute.xlu1 %2551  ;;  %v1361_v48 = vld [vmem:[#allocation2 + $0x48] sm:$0xe]  ;;  %v1267_v0 = vsel %vm4006_vm14, %v1262_v61, %v4324_v6  ;;  %v1448_v53 = vrot.slane %v1366_v56, 5  ;;  %v1796_v6 = vrot.slane %v1794_v62, 4  ;;  %v1811_v61 = vor.u32 %v1810_v10, %v1807_v28  ;;  %v2076_v10 = vld [vmem:[#allocation2 + $0x64] sm:$0xf] }
 0x12a   : > { %2597 = vst.msk [vmem:[#allocation3 + $0xc] sm:$0xf] %vm2593_vm9, %v2552_v2  ;;  %v3242_v57 = vrot.slane %v1361_v48, 9  ;;  %v1447_v58 = vrot.slane %v1445_v49, 4  ;;  %v1442_v2 = vsel %vm3994_vm11, %v1440_v51, %v1441_v36  ;;  %v1446_v7 = vsel %vm3994_vm11, %v3243_v63, %v1445_v49  ;;  %v1915_v36 = vld [vmem:[#allocation2 + $0x64] sm:$0xf] }
 0x12b   : > { %v2550_v43 = vpop.permute.xlu0 %2549  ;;  %v3476_v4 = vld [vmem:[#allocation3] sm:$0xff]   ;;  %2398 = vrot.lane.b32.xlu1 %v2327_v41, %s3533_s21  ;;  %v1985_v51 = vrot.slane %v1912_v60, 5  ;;  %v1916_v63 = vld [vmem:[#allocation2 + $0x68] sm:$0x1] }
 0x12c   : > { %2596 = vst.msk [vmem:[#allocation3 + $0x8] sm:$0xf] %vm2593_vm9, %v2550_v43  ;;  %3399 = vmatprep.mubr.msk.bf16.mxu0 %vm2686_vm10, %v3476_v4  ;;  %v1439_v46 = vsel %vm3994_vm11, %v3242_v57, %v1438_v29  ;;  %v1781_v43 = vshrl.u32 %v1630_v34, 16  ;;  %v1784_v4 = vshll.u32 %v1630_v34, 16  ;;  %v1449_v12 = vsel %vm3994_vm11, %v1447_v58, %v1448_v53 }
 0x12d   : > { %2396 = vrot.lane.b32.xlu0 %v2317_v59, %s3533_s21  ;;  %v1293_v18 = vpop.permute.xlu1 %1292  ;;  %v1790_v59 = vshll.u32 %v1631_v22, 16  ;;  %v1824_v29 = vshll.u32 %v1635_v40, 16  ;;  %v1911_v22 = vld [vmem:[#allocation2 + $0x54] sm:$0xe]  ;;  %v1987_v58 = vrot.slane %v1985_v51, 4 }
 0x12e   : > { %1334 = vst.msk [vmem:[#allocation3 + $0x1c] sm:$0xf] %vm1326_vm0, %v1293_v18  ;;  %v1783_v21 = vrot.slane %v1781_v43, 4  ;;  %v1786_v32 = vrot.slane %v1784_v4, 5  ;;  %v2178_v4 = vld [vmem:[#allocation2 + $0x60] sm:$0xf] }
 0x12f   : > { %v1291_v25 = vpop.permute.xlu0 %1290  ;;  %2563 = vrot.lane.b32.xlu1 %v2523_v5, %s3534_s22  ;;  %v1634_v5 = vld [vmem:[#allocation2 + $0x64] sm:$0xf]  ;;  %v1792_v14 = vrot.slane %v1790_v59, 5 }
 0x130   : > { %1333 = vst.msk [vmem:[#allocation3 + $0x18] sm:$0xf] %vm1326_vm0, %v1291_v25  ;;  %v1814_v16 = vshll.u32 %v1634_v5, 16  ;;  %v1818_v17 = vshrl.u32 %v1634_v5, 16 }
 0x131   : > { %2561 = vrot.lane.b32.xlu0 %v2520_v20, %s3534_s22  ;;  %v1461_v37 = vpop.permute.xlu1 %1460  ;;  %v1632_v20 = vld [vmem:[#allocation2 + $0x5c] sm:$0x1]  ;;  %v1797_v27 = vor.u32 %v1796_v6, %v1792_v14 }
 0x132   : > { %1504 = vst.msk [vmem:[#allocation3 + $0x14] sm:$0xf] %vm1498_vm3, %v1461_v37  ;;  %v1816_v31 = vrot.slane %v1814_v16, 5  ;;  %v1820_v54 = vrot.slane %v1818_v17, 4  ;;  %v1527_v37 = vld [vmem:[#allocation2 + $0x54] sm:$0xf] }
 0x133   : > { %v1459_v55 = vpop.permute.xlu0 %1458  ;;  %v3478_v42 = vld [vmem:[#allocation3 + $0x8] sm:$0xff]   ;;  %1304 = vrot.lane.b32.xlu1 %v1253_v30, %s3528_s25  ;;  %v1800_v30 = vshll.u32 %v1632_v20, 16  ;;  %v2329_v17 = vshrl.u32 %v2178_v4, 16  ;;  %v2182_v20 = vld [vmem:[#allocation2 + $0x70] sm:$0xf] }
 0x134   : > { %1503 = vst.msk [vmem:[#allocation3 + $0x10] sm:$0xf] %vm1498_vm3, %v1459_v55  ;;  %3400 = vmatmul.mubr.msk.bf16.vlgmr.msra.gmra.mxu0 %vm2686_vm10, %v3478_v42  ;;  %v1530_v42 = vld [vmem:[#allocation2 + $0x64] sm:$0xf]  ;;  %v1821_v15 = vor.u32 %v1820_v54, %v1816_v31  ;;  %v2180_v54 = vld [vmem:[#allocation2 + $0x68] sm:$0x1] }
 0x135   : > { %1302 = vrot.lane.b32.xlu0 %v1243_v39, %s3528_s25  ;;  %v1465_v45 = vpop.permute.xlu1 %1464  ;;  %v1787_v39 = vor.u32 %v1786_v32, %v1783_v21  ;;  %v1802_v1 = vrot.slane %v1800_v30, 5  ;;  %v2181_v32 = vld [vmem:[#allocation2 + $0x6c] sm:$0xf]  ;;  %v2366_v30 = vshrl.u32 %v2182_v20, 16 }
 0x136   : > { %1506 = vst.msk [vmem:[#allocation3 + $0x1c] sm:$0xf] %vm1498_vm3, %v1465_v45  ;;  %v1529_v45 = vld [vmem:[#allocation2 + $0x60] sm:$0xf]  ;;  %v1822_v49 = vrot.slane %v1821_v15, 4  ;;  %v2356_v40 = vshll.u32 %v2181_v32, 16 }
 0x137   : > { %v1463_v38 = vpop.permute.xlu0 %1462  ;;  %2567 = vrot.lane.b32.xlu1 %v2530_v35, %s3534_s22  ;;  %v1798_v35 = vrot.slane %v1797_v27, 4  ;;  %v2362_v27 = vshll.u32 %v2182_v20, 16 }
 0x138   : > { %1505 = vst.msk [vmem:[#allocation3 + $0x18] sm:$0xf] %vm1498_vm3, %v1463_v38 }
 0x139   : > { %2565 = vrot.lane.b32.xlu0 %v2527_v47, %s3534_s22  ;;  %v1558_v41 = vpop.permute.xlu1 %1557  ;;  %v1788_v47 = vrot.slane %v1787_v39, 4  ;;  %v1803_v48 = vsel %vm4006_vm14, %v1798_v35, %v1802_v1  ;;  %v2353_v39 = vshrl.u32 %v2181_v32, 16  ;;  %v2364_v35 = vrot.slane %v2362_v27, 5 }
 0x13a   : > { %1601 = vst.msk [vmem:[#allocation3 + $0x14] sm:$0xf] %vm1595_vm4, %v1558_v41  ;;  %v1812_v41 = vrot.slane %v1811_v61, 4  ;;  %v2368_v1 = vrot.slane %v2366_v30, 4  ;;  %v2358_v61 = vrot.slane %v2356_v40, 5 }
 0x13b   : > { %v1556_v8 = vpop.permute.xlu0 %1555  ;;  %1308 = vrot.lane.b32.xlu1 %v1277_v50, %s3528_s25  ;;  %v1826_v50 = vrot.slane %v1824_v29, 5  ;;  %v1793_v52 = vsel %vm4006_vm14, %v1788_v47, %v1792_v14  ;;  %v2075_v29 = vld [vmem:[#allocation2 + $0x60] sm:$0xf]  ;;  %v2355_v47 = vrot.slane %v2353_v39, 4 }
 0x13c   : > { %1600 = vst.msk [vmem:[#allocation3 + $0x10] sm:$0xf] %vm1595_vm4, %v1556_v8  ;;  %v1992_v8 = vrot.slane %v1915_v36, 5  ;;  %v1817_v62 = vsel %vm4006_vm14, %v1812_v41, %v1816_v31 }
 0x13d   : > { %1306 = vrot.lane.b32.xlu0 %v1267_v0, %s3528_s25  ;;  %v1562_v3 = vpop.permute.xlu1 %1561  ;;  %v1913_v0 = vld [vmem:[#allocation2 + $0x5c] sm:$0x1]  ;;  %v1827_v34 = vsel %vm4006_vm14, %v1822_v49, %v1826_v50  ;;  %v2369_v50 = vor.u32 %v2368_v1, %v2364_v35  ;;  %v2359_v41 = vor.u32 %v2358_v61, %v2355_v47 }
 0x13e   : > { %1603 = vst.msk [vmem:[#allocation3 + $0x1c] sm:$0xf] %vm1595_vm4, %v1562_v3  ;;  %v1988_v53 = vrot.slane %v1913_v0, 5  ;;  %v3250_v3 = vrot.slane %v1911_v22, 9  ;;  %v1994_v5 = vrot.slane %v1992_v8, 4 }
 0x13f   : > { %v1560_v13 = vpop.permute.xlu0 %1559  ;;  %1476 = vrot.lane.b32.xlu1 %v1442_v2, %s3527_s24  ;;  %v1914_v2 = vld [vmem:[#allocation2 + $0x60] sm:$0xe]  ;;  %v2460_v0 = vld [vmem:[#allocation2 + $0x64] sm:$0xf] }
 0x140   : > { %1602 = vst.msk [vmem:[#allocation3 + $0x18] sm:$0xf] %vm1595_vm4, %v1560_v13  ;;  %v1995_v13 = vrot.slane %v1916_v63, 5  ;;  %v3251_v11 = vrot.slane %v1914_v2, 9  ;;  %v1986_v16 = vsel %vm3994_vm11, %v3250_v3, %v1985_v51  ;;  %v2360_v2 = vrot.slane %v2359_v41, 4 }
 0x141   : > { %1474 = vrot.lane.b32.xlu0 %v1439_v46, %s3527_s24  ;;  %v1839_v18 = vpop.permute.xlu1 %1838  ;;  %v2179_v46 = vld [vmem:[#allocation2 + $0x64] sm:$0xf] }
 0x142   : > { %1882 = vst.msk [vmem:[#allocation3 + $0x14] sm:$0xf] %vm1876_vm5, %v1839_v18  ;;  %v2342_v14 = vshrl.u32 %v2179_v46, 16  ;;  %v2332_v18 = vshll.u32 %v2178_v4, 16  ;;  %v1996_v23 = vsel %vm3994_vm11, %v1994_v5, %v1995_v13  ;;  %v1993_v24 = vsel %vm3994_vm11, %v3251_v11, %v1992_v8 }
 0x143   : > { %v1837_v25 = vpop.permute.xlu0 %1836  ;;  %1480 = vrot.lane.b32.xlu1 %v1449_v12, %s3527_s24  ;;  %v1989_v12 = vsel %vm3994_vm11, %v1987_v58, %v1988_v53  ;;  %v2370_v8 = vrot.slane %v2369_v50, 4  ;;  %v2533_v58 = vrot.slane %v2460_v0, 5 }
 0x144   : > { %1881 = vst.msk [vmem:[#allocation3 + $0x10] sm:$0xf] %vm1876_vm5, %v1837_v25 }
 0x145   : > { %1478 = vrot.lane.b32.xlu0 %v1446_v7, %s3527_s24  ;;  %v1843_v19 = vpop.permute.xlu1 %1842  ;;  %v2338_v7 = vshll.u32 %v2179_v46, 16  ;;  %v2459_v46 = vld [vmem:[#allocation2 + $0x60] sm:$0xe]  ;;  %v2535_v4 = vrot.slane %v2533_v58, 4 }
 0x146   : > { %1884 = vst.msk [vmem:[#allocation3 + $0x1c] sm:$0xf] %vm1876_vm5, %v1843_v19  ;;  %v2331_v19 = vrot.slane %v2329_v17, 4  ;;  %v2462_v17 = vld [vmem:[#allocation2 + $0x6c] sm:$0xe] }
 0x147   : > { %v1841_v55 = vpop.permute.xlu0 %1840  ;;  %1573 = vrot.lane.b32.xlu1 %v1528_v26, %s3529_s16  ;;  %v2340_v25 = vrot.slane %v2338_v7, 5  ;;  %v2344_v26 = vrot.slane %v2342_v14, 4  ;;  %v3258_v7 = vrot.slane %v2459_v46, 9  ;;  %v2464_v14 = vld [vmem:[#allocation2 + $0x74] sm:$0x1] }
 0x148   : > { %1883 = vst.msk [vmem:[#allocation3 + $0x18] sm:$0xf] %vm1876_vm5, %v1841_v55  ;;  %v2543_v20 = vrot.slane %v2464_v14, 5 }
 0x149   : > { %1571 = vrot.lane.b32.xlu0 %v1527_v37, %s3529_s16  ;;  %v2008_v44 = vpop.permute.xlu1 %2007  ;;  %v2334_v37 = vrot.slane %v2332_v18, 5  ;;  %v2345_v55 = vor.u32 %v2344_v26, %v2340_v25  ;;  %v2534_v32 = vsel %vm3994_vm11, %v3258_v7, %v2533_v58 }
 0x14a   : > { %2051 = vst.msk [vmem:[#allocation3 + $0x14] sm:$0xf] %vm2045_vm6, %v2008_v44 }
 0x14b   : > { %v2006_v38 = vpop.permute.xlu0 %2005  ;;  %1577 = vrot.lane.b32.xlu1 %v1530_v42, %s3529_s16  ;;  %v2348_v42 = vshll.u32 %v2180_v54, 16  ;;  %v2335_v44 = vor.u32 %v2334_v37, %v2331_v19 }
 0x14c   : > { %2050 = vst.msk [vmem:[#allocation3 + $0x10] sm:$0xf] %vm2045_vm6, %v2006_v38  ;;  %v2078_v38 = vld [vmem:[#allocation2 + $0x70] sm:$0xf] }
 0x14d   : > { %1575 = vrot.lane.b32.xlu0 %v1529_v45, %s3529_s16  ;;  %v2012_v56 = vpop.permute.xlu1 %2011  ;;  %v2183_v45 = vld [vmem:[#allocation2 + $0x74] sm:$0x1]  ;;  %v2350_v49 = vrot.slane %v2348_v42, 5 }
 0x14e   : > { %2053 = vst.msk [vmem:[#allocation3 + $0x1c] sm:$0xf] %vm2045_vm6, %v2012_v56  ;;  %v2372_v51 = vshll.u32 %v2183_v45, 16  ;;  %v2077_v56 = vld [vmem:[#allocation2 + $0x6c] sm:$0xf] }
 0x14f   : > { %v2010_v57 = vpop.permute.xlu0 %2009  ;;  %1854 = vrot.lane.b32.xlu1 %v1803_v48, %s3530_s17  ;;  %v2346_v48 = vrot.slane %v2345_v55, 4 }
 0x150   : > { %2052 = vst.msk [vmem:[#allocation3 + $0x18] sm:$0xf] %vm2045_vm6, %v2010_v57 }
 0x151   : > { %1852 = vrot.lane.b32.xlu0 %v1793_v52, %s3530_s17  ;;  %v2106_v59 = vpop.permute.xlu1 %2105  ;;  %v2336_v52 = vrot.slane %v2335_v44, 4  ;;  %v2351_v22 = vsel %vm4006_vm14, %v2346_v48, %v2350_v49 }
 0x152   : > { %2149 = vst.msk [vmem:[#allocation3 + $0x14] sm:$0xf] %vm2143_vm7, %v2106_v59  ;;  %v2461_v59 = vld [vmem:[#allocation2 + $0x68] sm:$0x1] }
 0x153   : > { %v2104_v43 = vpop.permute.xlu0 %2103  ;;  %1858 = vrot.lane.b32.xlu1 %v1827_v34, %s3530_s17  ;;  %v2374_v34 = vrot.slane %v2372_v51, 5  ;;  %v2341_v63 = vsel %vm4006_vm14, %v2336_v52, %v2340_v25  ;;  %v2536_v5 = vrot.slane %v2461_v59, 5 }
 0x154   : > { %2148 = vst.msk [vmem:[#allocation3 + $0x10] sm:$0xf] %vm2143_vm7, %v2104_v43 }
 0x155   : > { %1856 = vrot.lane.b32.xlu0 %v1817_v62, %s3530_s17  ;;  %v2110_v6 = vpop.permute.xlu1 %2109  ;;  %v2463_v62 = vld [vmem:[#allocation2 + $0x70] sm:$0xf]  ;;  %v2375_v43 = vsel %vm4006_vm14, %v2370_v8, %v2374_v34  ;;  %v2537_v18 = vsel %vm3994_vm11, %v2535_v4, %v2536_v5 }
 0x156   : > { %2151 = vst.msk [vmem:[#allocation3 + $0x1c] sm:$0xf] %vm2143_vm7, %v2110_v6  ;;  %v2540_v13 = vrot.slane %v2463_v62, 5 }
 0x157   : > { %v2108_v21 = vpop.permute.xlu0 %2107  ;;  %2023 = vrot.lane.b32.xlu1 %v1989_v12, %s3531_s18  ;;  %v2365_v12 = vsel %vm4006_vm14, %v2360_v2, %v2364_v35 }
 0x158   : > { %2150 = vst.msk [vmem:[#allocation3 + $0x18] sm:$0xf] %vm2143_vm7, %v2108_v21  ;;  %v2542_v9 = vrot.slane %v2540_v13, 4 }
 0x159   : > { %2021 = vrot.lane.b32.xlu0 %v1986_v16, %s3531_s18  ;;  %v2387_v31 = vpop.permute.xlu1 %2386 }
 0x15a   : > { %2430 = vst.msk [vmem:[#allocation3 + $0x14] sm:$0xf] %vm2424_vm8, %v2387_v31  ;;  %v2544_v25 = vsel %vm3994_vm11, %v2542_v9, %v2543_v20 }
 0x15b   : > { %v2385_v28 = vpop.permute.xlu0 %2384  ;;  %2027 = vrot.lane.b32.xlu1 %v1996_v23, %s3531_s18  ;;  %v3259_v23 = vrot.slane %v2462_v17, 9 }
 0x15c   : > { %2429 = vst.msk [vmem:[#allocation3 + $0x10] sm:$0xf] %vm2424_vm8, %v2385_v28 }
 0x15d   : > { %2025 = vrot.lane.b32.xlu0 %v1993_v24, %s3531_s18  ;;  %v2391_v15 = vpop.permute.xlu1 %2390  ;;  %v2541_v27 = vsel %vm3994_vm11, %v3259_v23, %v2540_v13  ;;  %vm2892_vm11 = vcmask 31744  }
 0x15e   : > { %2432 = vst.msk [vmem:[#allocation3 + $0x1c] sm:$0xf] %vm2424_vm8, %v2391_v15 }
 0x15f   : > { %v2389_v60 = vpop.permute.xlu0 %2388  ;;  %2121 = vrot.lane.b32.xlu1 %v2076_v10, %s3532_s19 }
 0x160   : > { %2431 = vst.msk [vmem:[#allocation3 + $0x18] sm:$0xf] %vm2424_vm8, %v2389_v60 }
 0x161   : > { %2119 = vrot.lane.b32.xlu0 %v2075_v29, %s3532_s19  ;;  %v2556_v36 = vpop.permute.xlu1 %2555 }
 0x162   : > { %2599 = vst.msk [vmem:[#allocation3 + $0x14] sm:$0xf] %vm2593_vm9, %v2556_v36 }
 0x163   : > { %v2554_v57 = vpop.permute.xlu0 %2553  ;;  %2125 = vrot.lane.b32.xlu1 %v2078_v38, %s3532_s19 }
 0x164   : > { %2598 = vst.msk [vmem:[#allocation3 + $0x10] sm:$0xf] %vm2593_vm9, %v2554_v57 }
 0x165   : > { %2123 = vrot.lane.b32.xlu0 %v2077_v56, %s3532_s19  ;;  %v1297_v53 = vpop.permute.xlu1 %1296 }
 0x166   : > { %1336 = vst.msk [vmem:[#allocation3 + $0x24] sm:$0xf] %vm1326_vm0, %v1297_v53 }
 0x167   : > { %v1295_v3 = vpop.permute.xlu0 %1294  ;;  %2402 = vrot.lane.b32.xlu1 %v2351_v22, %s3533_s21 }
 0x168   : > { %1335 = vst.msk [vmem:[#allocation3 + $0x20] sm:$0xf] %vm1326_vm0, %v1295_v3 }
 0x169   : > { %2400 = vrot.lane.b32.xlu0 %v2341_v63, %s3533_s21  ;;  %v2560_v11 = vpop.permute.xlu1 %2559 }
 0x16a   : > { %2601 = vst.msk [vmem:[#allocation3 + $0x1c] sm:$0xf] %vm2593_vm9, %v2560_v11 }
 0x16b   : > { %v2558_v6 = vpop.permute.xlu0 %2557  ;;  %v3479_v16 = vld [vmem:[#allocation3 + $0x10] sm:$0xff]   ;;  %2406 = vrot.lane.b32.xlu1 %v2375_v43, %s3533_s21 }
 0x16c   : > { %2600 = vst.msk [vmem:[#allocation3 + $0x18] sm:$0xf] %vm2593_vm9, %v2558_v6  ;;  %3403 = vmatprep.mubr.msk.bf16.mxu0 %vm2686_vm10, %v3479_v16 }
 0x16d   : > { %2404 = vrot.lane.b32.xlu0 %v2365_v12, %s3533_s21  ;;  %v1301_v21 = vpop.permute.xlu1 %1300 }
 0x16e   : > { %1338 = vst.msk [vmem:[#allocation3 + $0x2c] sm:$0xf] %vm1326_vm0, %v1301_v21 }
 0x16f   : > { %v1299_v24 = vpop.permute.xlu0 %1298  ;;  %2571 = vrot.lane.b32.xlu1 %v2537_v18, %s3534_s22 }
 0x170   : > { %1337 = vst.msk [vmem:[#allocation3 + $0x28] sm:$0xf] %vm1326_vm0, %v1299_v24 }
 0x171   : > { %2569 = vrot.lane.b32.xlu0 %v2534_v32, %s3534_s22  ;;  %v1469_v26 = vpop.permute.xlu1 %1468 }
 0x172   : > { %1508 = vst.msk [vmem:[#allocation3 + $0x24] sm:$0xf] %vm1498_vm3, %v1469_v26 }
 0x173   : > { %v1467_v30 = vpop.permute.xlu0 %1466  ;;  %v3480_v31 = vld [vmem:[#allocation3 + $0x18] sm:$0xff]   ;;  %2575 = vrot.lane.b32.xlu1 %v2544_v25, %s3534_s22 }
 0x174   : > { %1507 = vst.msk [vmem:[#allocation3 + $0x20] sm:$0xf] %vm1498_vm3, %v1467_v30  ;;  %3404 = vmatmul.mubr.msk.bf16.gmra.mxu0 %vm2686_vm10, %v3480_v31 }
 0x175   : > { %2573 = vrot.lane.b32.xlu0 %v2541_v27, %s3534_s22  ;;  %v1473_v54 = vpop.permute.xlu1 %1472 }
 0x176   : > { %1510 = vst.msk [vmem:[#allocation3 + $0x2c] sm:$0xf] %vm1498_vm3, %v1473_v54 }
 0x177   : > { %v1471_v19 = vpop.permute.xlu0 %1470 }
 0x178   : > { %1509 = vst.msk [vmem:[#allocation3 + $0x28] sm:$0xf] %vm1498_vm3, %v1471_v19 }
 0x179   : > { %v1566_v33 = vpop.permute.xlu1 %1565 }
 0x17a   : > { %1605 = vst.msk [vmem:[#allocation3 + $0x24] sm:$0xf] %vm1595_vm4, %v1566_v33 }
 0x17b   : > { %v1564_v37 = vpop.permute.xlu0 %1563 }
 0x17c   : > { %1604 = vst.msk [vmem:[#allocation3 + $0x20] sm:$0xf] %vm1595_vm4, %v1564_v37 }
 0x17d   : > { %v1570_v39 = vpop.permute.xlu1 %1569 }
 0x17e   : > { %1607 = vst.msk [vmem:[#allocation3 + $0x2c] sm:$0xf] %vm1595_vm4, %v1570_v39 }
 0x17f   : > { %v1568_v40 = vpop.permute.xlu0 %1567 }
 0x180   : > { %1606 = vst.msk [vmem:[#allocation3 + $0x28] sm:$0xf] %vm1595_vm4, %v1568_v40 }
 0x181   : > { %v1847_v28 = vpop.permute.xlu1 %1846 }
 0x182   : > { %1886 = vst.msk [vmem:[#allocation3 + $0x24] sm:$0xf] %vm1876_vm5, %v1847_v28 }
 0x183   : > { %v1845_v10 = vpop.permute.xlu0 %1844 }
 0x184   : > { %1885 = vst.msk [vmem:[#allocation3 + $0x20] sm:$0xf] %vm1876_vm5, %v1845_v10 }
 0x185   : > { %v1851_v55 = vpop.permute.xlu1 %1850 }
 0x186   : > { %1888 = vst.msk [vmem:[#allocation3 + $0x2c] sm:$0xf] %vm1876_vm5, %v1851_v55 }
 0x187   : > { %v1849_v42 = vpop.permute.xlu0 %1848 }
 0x188   : > { %1887 = vst.msk [vmem:[#allocation3 + $0x28] sm:$0xf] %vm1876_vm5, %v1849_v42 }
 0x189   : > { %v2016_v35 = vpop.permute.xlu1 %2015 }
 0x18a   : > { %2055 = vst.msk [vmem:[#allocation3 + $0x24] sm:$0xf] %vm2045_vm6, %v2016_v35 }
 0x18b   : > { %v2014_v1 = vpop.permute.xlu0 %2013 }
 0x18c   : > { %2054 = vst.msk [vmem:[#allocation3 + $0x20] sm:$0xf] %vm2045_vm6, %v2014_v1 }
 0x18d   : > { %v2020_v15 = vpop.permute.xlu1 %2019 }
 0x18e   : > { %2057 = vst.msk [vmem:[#allocation3 + $0x2c] sm:$0xf] %vm2045_vm6, %v2020_v15 }
 0x18f   : > { %v2018_v29 = vpop.permute.xlu0 %2017 }
 0x190   : > { %2056 = vst.msk [vmem:[#allocation3 + $0x28] sm:$0xf] %vm2045_vm6, %v2018_v29 }
 0x191   : > { %v2114_v44 = vpop.permute.xlu1 %2113 }
 0x192   : > { %2153 = vst.msk [vmem:[#allocation3 + $0x24] sm:$0xf] %vm2143_vm7, %v2114_v44  ;;  %v3535_v44 = vmov 0.0  }
 0x193   : > { %v2112_v45 = vpop.permute.xlu0 %2111  ;;  %3001 = vst.msk [vmem:[%s3680_s10] sm:$0xff] %vm2892_vm11, %v3535_v44 }
 0x194   : > { %2152 = vst.msk [vmem:[#allocation3 + $0x20] sm:$0xf] %vm2143_vm7, %v2112_v45 }
 0x195   : > { %v2118_v47 = vpop.permute.xlu1 %2117 }
 0x196   : > { %2155 = vst.msk [vmem:[#allocation3 + $0x2c] sm:$0xf] %vm2143_vm7, %v2118_v47 }
 0x197   : > { %v2116_v61 = vpop.permute.xlu0 %2115 }
 0x198   : > { %2154 = vst.msk [vmem:[#allocation3 + $0x28] sm:$0xf] %vm2143_vm7, %v2116_v61 }
 0x199   : > { %v2395_v60 = vpop.permute.xlu1 %2394 }
 0x19a   : > { %2434 = vst.msk [vmem:[#allocation3 + $0x24] sm:$0xf] %vm2424_vm8, %v2395_v60 }
 0x19b   : > { %v2393_v38 = vpop.permute.xlu0 %2392 }
 0x19c   : > { %2433 = vst.msk [vmem:[#allocation3 + $0x20] sm:$0xf] %vm2424_vm8, %v2393_v38 }
 0x19d   : > { %v2399_v48 = vpop.permute.xlu1 %2398 }
 0x19e   : > { %2436 = vst.msk [vmem:[#allocation3 + $0x2c] sm:$0xf] %vm2424_vm8, %v2399_v48 }
 0x19f   : > { %v2397_v49 = vpop.permute.xlu0 %2396 }
 0x1a0   : > { %2435 = vst.msk [vmem:[#allocation3 + $0x28] sm:$0xf] %vm2424_vm8, %v2397_v49 }
 0x1a1   : > { %v2564_v50 = vpop.permute.xlu1 %2563 }
 0x1a2   : > { %2603 = vst.msk [vmem:[#allocation3 + $0x24] sm:$0xf] %vm2593_vm9, %v2564_v50 }
 0x1a3   : > { %v2562_v51 = vpop.permute.xlu0 %2561 }
 0x1a4   : > { %2602 = vst.msk [vmem:[#allocation3 + $0x20] sm:$0xf] %vm2593_vm9, %v2562_v51 }
 0x1a5   : > { %v1305_v36 = vpop.permute.xlu1 %1304 }
 0x1a6   : > { %1340 = vst.msk [vmem:[#allocation3 + $0x34] sm:$0xf] %vm1326_vm0, %v1305_v36 }
 0x1a7   : > { %v1303_v56 = vpop.permute.xlu0 %1302 }
 0x1a8   : > { %1339 = vst.msk [vmem:[#allocation3 + $0x30] sm:$0xf] %vm1326_vm0, %v1303_v56 }
 0x1a9   : > { %v2568_v52 = vpop.permute.xlu1 %2567 }
 0x1aa   : > { %2605 = vst.msk [vmem:[#allocation3 + $0x2c] sm:$0xf] %vm2593_vm9, %v2568_v52 }
 0x1ab   : > { %v2566_v41 = vpop.permute.xlu0 %2565  ;;  %v3481_v0 = vld [vmem:[#allocation3 + $0x20] sm:$0xff]  }
 0x1ac   : > { %2604 = vst.msk [vmem:[#allocation3 + $0x28] sm:$0xf] %vm2593_vm9, %v2566_v41  ;;  %3407 = vmatprep.mubr.msk.bf16.mxu1 %vm2686_vm10, %v3481_v0 }
 0x1ad   : > { %v1309_v57 = vpop.permute.xlu1 %1308 }
 0x1ae   : > { %1342 = vst.msk [vmem:[#allocation3 + $0x3c] sm:$0xf] %vm1326_vm0, %v1309_v57 }
 0x1af   : > { %v1307_v22 = vpop.permute.xlu0 %1306 }
 0x1b0   : > { %1341 = vst.msk [vmem:[#allocation3 + $0x38] sm:$0xf] %vm1326_vm0, %v1307_v22 }
 0x1b1   : > { %v1477_v8 = vpop.permute.xlu1 %1476 }
 0x1b2   : > { %1512 = vst.msk [vmem:[#allocation3 + $0x34] sm:$0xf] %vm1498_vm3, %v1477_v8 }
 0x1b3   : > { %v1475_v34 = vpop.permute.xlu0 %1474  ;;  %v3482_v58 = vld [vmem:[#allocation3 + $0x28] sm:$0xff]  }
 0x1b4   : > { %1511 = vst.msk [vmem:[#allocation3 + $0x30] sm:$0xf] %vm1498_vm3, %v1475_v34  ;;  %3408 = vmatmul.mubr.msk.bf16.vlgmr.msra.gmra.mxu1 %vm2686_vm10, %v3482_v58 }
 0x1b5   : > { %v1481_v53 = vpop.permute.xlu1 %1480 }
 0x1b6   : > { %1514 = vst.msk [vmem:[#allocation3 + $0x3c] sm:$0xf] %vm1498_vm3, %v1481_v53 }
 0x1b7   : > { %v1479_v63 = vpop.permute.xlu0 %1478 }
 0x1b8   : > { %1513 = vst.msk [vmem:[#allocation3 + $0x38] sm:$0xf] %vm1498_vm3, %v1479_v63 }
 0x1b9   : > { %v1574_v2 = vpop.permute.xlu1 %1573 }
 0x1ba   : > { %1609 = vst.msk [vmem:[#allocation3 + $0x34] sm:$0xf] %vm1595_vm4, %v1574_v2 }
 0x1bb   : > { %v1572_v59 = vpop.permute.xlu0 %1571 }
 0x1bc   : > { %1608 = vst.msk [vmem:[#allocation3 + $0x30] sm:$0xf] %vm1595_vm4, %v1572_v59 }
 0x1bd   : > { %v1578_v62 = vpop.permute.xlu1 %1577 }
 0x1be   : > { %1611 = vst.msk [vmem:[#allocation3 + $0x3c] sm:$0xf] %vm1595_vm4, %v1578_v62 }
 0x1bf   : > { %v1576_v3 = vpop.permute.xlu0 %1575 }
 0x1c0   : > { %1610 = vst.msk [vmem:[#allocation3 + $0x38] sm:$0xf] %vm1595_vm4, %v1576_v3 }
 0x1c1   : > { %v1855_v46 = vpop.permute.xlu1 %1854 }
 0x1c2   : > { %1890 = vst.msk [vmem:[#allocation3 + $0x34] sm:$0xf] %vm1876_vm5, %v1855_v46 }
 0x1c3   : > { %v1853_v43 = vpop.permute.xlu0 %1852 }
 0x1c4   : > { %1889 = vst.msk [vmem:[#allocation3 + $0x30] sm:$0xf] %vm1876_vm5, %v1853_v43 }
 0x1c5   : > { %v1859_v4 = vpop.permute.xlu1 %1858 }
 0x1c6   : > { %1892 = vst.msk [vmem:[#allocation3 + $0x3c] sm:$0xf] %vm1876_vm5, %v1859_v4 }
 0x1c7   : > { %v1857_v5 = vpop.permute.xlu0 %1856 }
 0x1c8   : > { %1891 = vst.msk [vmem:[#allocation3 + $0x38] sm:$0xf] %vm1876_vm5, %v1857_v5 }
 0x1c9   : > { %v2024_v13 = vpop.permute.xlu1 %2023 }
 0x1ca   : > { %2059 = vst.msk [vmem:[#allocation3 + $0x34] sm:$0xf] %vm2045_vm6, %v2024_v13 }
 0x1cb   : > { %v2022_v11 = vpop.permute.xlu0 %2021 }
 0x1cc   : > { %2058 = vst.msk [vmem:[#allocation3 + $0x30] sm:$0xf] %vm2045_vm6, %v2022_v11 }
 0x1cd   : > { %v2028_v12 = vpop.permute.xlu1 %2027 }
 0x1ce   : > { %2061 = vst.msk [vmem:[#allocation3 + $0x3c] sm:$0xf] %vm2045_vm6, %v2028_v12 }
 0x1cf   : > { %v2026_v7 = vpop.permute.xlu0 %2025 }
 0x1d0   : > { %2060 = vst.msk [vmem:[#allocation3 + $0x38] sm:$0xf] %vm2045_vm6, %v2026_v7 }
 0x1d1   : > { %v2122_v14 = vpop.permute.xlu1 %2121 }
 0x1d2   : > { %2157 = vst.msk [vmem:[#allocation3 + $0x34] sm:$0xf] %vm2143_vm7, %v2122_v14 }
 0x1d3   : > { %v2120_v6 = vpop.permute.xlu0 %2119 }
 0x1d4   : > { %2156 = vst.msk [vmem:[#allocation3 + $0x30] sm:$0xf] %vm2143_vm7, %v2120_v6 }
 0x1d5   : > { %v2126_v16 = vpop.permute.xlu1 %2125 }
 0x1d6   : > { %2159 = vst.msk [vmem:[#allocation3 + $0x3c] sm:$0xf] %vm2143_vm7, %v2126_v16 }
 0x1d7   : > { %v2124_v17 = vpop.permute.xlu0 %2123 }
 0x1d8   : > { %2158 = vst.msk [vmem:[#allocation3 + $0x38] sm:$0xf] %vm2143_vm7, %v2124_v17 }
 0x1d9   : > { %v2403_v18 = vpop.permute.xlu1 %2402 }
 0x1da   : > { %2438 = vst.msk [vmem:[#allocation3 + $0x34] sm:$0xf] %vm2424_vm8, %v2403_v18 }
 0x1db   : > { %v2401_v9 = vpop.permute.xlu0 %2400 }
 0x1dc   : > { %2437 = vst.msk [vmem:[#allocation3 + $0x30] sm:$0xf] %vm2424_vm8, %v2401_v9 }
 0x1dd   : > { %v2407_v20 = vpop.permute.xlu1 %2406 }
 0x1de   : > { %2440 = vst.msk [vmem:[#allocation3 + $0x3c] sm:$0xf] %vm2424_vm8, %v2407_v20 }
 0x1df   : > { %v2405_v21 = vpop.permute.xlu0 %2404 }
 0x1e0   : > { %2439 = vst.msk [vmem:[#allocation3 + $0x38] sm:$0xf] %vm2424_vm8, %v2405_v21 }
 0x1e1   : > { %v2572_v32 = vpop.permute.xlu1 %2571 }
 0x1e2   : > { %2607 = vst.msk [vmem:[#allocation3 + $0x34] sm:$0xf] %vm2593_vm9, %v2572_v32 }
 0x1e3   : > { %v2570_v23 = vpop.permute.xlu0 %2569 }
 0x1e4   : > { %2606 = vst.msk [vmem:[#allocation3 + $0x30] sm:$0xf] %vm2593_vm9, %v2570_v23 }
 0x1e5   : > { %v2576_v24 = vpop.permute.xlu1 %2575 }
 0x1e6   : > { %2609 = vst.msk [vmem:[#allocation3 + $0x3c] sm:$0xf] %vm2593_vm9, %v2576_v24 }
 0x1e7   : > { %v2574_v25 = vpop.permute.xlu0 %2573 }
 0x1e8   : > { %2608 = vst.msk [vmem:[#allocation3 + $0x38] sm:$0xf] %vm2593_vm9, %v2574_v25 }
 0x1eb   : > { %v3483_v26 = vld [vmem:[#allocation3 + $0x30] sm:$0xff]  }
 0x1ec   : > { %3411 = vmatprep.mubr.msk.bf16.mxu1 %vm2686_vm10, %v3483_v26 }
 0x1ef   : > { %v3484_v27 = vld [vmem:[#allocation3 + $0x38] sm:$0xff]  }
 0x1f0   : > { %3412 = vmatmul.mubr.msk.bf16.gmra.mxu1 %vm2686_vm10, %v3484_v27 }
 0x1f4   : > { %v4522_v30 = vpop.f32.mrf.mxu0 }
 0x1f5   : > { %v3321_v31 = vpack.c.bf16 %v4522_v30, %v4522_v30  ;;  %v2896_v52 = vsel %vm2892_vm11, %v4522_v30, 0.0 }
 0x1f6   : > { %v4526_v54 = vpop.f32.mrf.mxu0 }
 0x1f7   : > { %2878 = vst.msk [vmem:[%s3671_s20 + $0x8] sm:$0xf] %vm520_vm2, %v3321_v31  ;;  %v3319_v19 = vpack.c.bf16 %v4526_v54, %v4526_v54  ;;  %v2893_v36 = vsel %vm2892_vm11, %v4526_v54, 0.0 }
 0x1f8   : > { %v4532_v33 = vpop.f32.mrf.mxu0 }
 0x1f9   : > { %2876 = vst.msk [vmem:[%s3671_s20] sm:$0xf] %vm520_vm2, %v3319_v19  ;;  %v3322_v37 = vpack.c.bf16 %v4532_v33, %v4532_v33  ;;  %v2898_v0 = vsel %vm2892_vm11, %v4532_v33, 0.0 }
 0x1fa   : > { %v4538_v39 = vpop.f32.mrf.mxu0 }
 0x1fb   : > { %2879 = vst.msk [vmem:[%s3671_s20 + $0xc] sm:$0xf] %vm520_vm2, %v3322_v37  ;;  %v3320_v40 = vpack.c.bf16 %v4538_v39, %v4538_v39  ;;  %v2894_v51 = vsel %vm2892_vm11, %v4538_v39, 0.0 }
 0x1fc   : > { %v2895_v56 = vadd.f32 %v2894_v51, %v2893_v36 }
 0x1fd   : > { %2877 = vst.msk [vmem:[%s3671_s20 + $0x4] sm:$0xf] %vm520_vm2, %v3320_v40 }
 0x1fe   : > { %v2897_v41 = vadd.f32 %v2896_v52, %v2895_v56 }
 0x200   : > { %v2899_v22 = vadd.f32 %v2898_v0, %v2897_v41 }
 0x234   : > { %v4546_v28 = vpop.f32.mrf.mxu0 }
 0x235   : > { %v3325_v10 = vpack.c.bf16 %v4546_v28, %v4546_v28  ;;  %v2904_v53 = vsel %vm2892_vm11, %v4546_v28, 0.0 }
 0x236   : > { %v4550_v55 = vpop.f32.mrf.mxu0 }
 0x237   : > { %2882 = vst.msk [vmem:[%s3671_s20 + $0x18] sm:$0xf] %vm520_vm2, %v3325_v10  ;;  %v3323_v42 = vpack.c.bf16 %v4550_v55, %v4550_v55  ;;  %v2900_v57 = vsel %vm2892_vm11, %v4550_v55, 0.0 }
 0x238   : > { %v4556_v35 = vpop.f32.mrf.mxu0  ;;  %v2901_v34 = vadd.f32 %v2900_v57, %v2899_v22 }
 0x239   : > { %2880 = vst.msk [vmem:[%s3671_s20 + $0x10] sm:$0xf] %vm520_vm2, %v3323_v42  ;;  %v3326_v1 = vpack.c.bf16 %v4556_v35, %v4556_v35  ;;  %v2906_v2 = vsel %vm2892_vm11, %v4556_v35, 0.0 }
 0x23a   : > { %v4562_v15 = vpop.f32.mrf.mxu0 }
 0x23b   : > { %2883 = vst.msk [vmem:[%s3671_s20 + $0x1c] sm:$0xf] %vm520_vm2, %v3326_v1  ;;  %v3324_v29 = vpack.c.bf16 %v4562_v15, %v4562_v15  ;;  %v2902_v8 = vsel %vm2892_vm11, %v4562_v15, 0.0 }
 0x23c   : > { %v2903_v58 = vadd.f32 %v2902_v8, %v2901_v34 }
 0x23d   : > { %2881 = vst.msk [vmem:[%s3671_s20 + $0x14] sm:$0xf] %vm520_vm2, %v3324_v29 }
 0x23e   : > { %v2905_v63 = vadd.f32 %v2904_v53, %v2903_v58 }
 0x240   : > { %v2907_v62 = vadd.f32 %v2906_v2, %v2905_v63 }
 0x274   : > { %v4572_v45 = vpop.f32.mrf.mxu1 }
 0x275   : > { %v3329_v47 = vpack.c.bf16 %v4572_v45, %v4572_v45  ;;  %v2912_v4 = vsel %vm2892_vm11, %v4572_v45, 0.0 }
 0x276   : > { %v4576_v61 = vpop.f32.mrf.mxu1 }
 0x277   : > { %2886 = vst.msk [vmem:[%s3671_s20 + $0x28] sm:$0xf] %vm520_vm2, %v3329_v47  ;;  %v3327_v60 = vpack.c.bf16 %v4576_v61, %v4576_v61  ;;  %v2908_v59 = vsel %vm2892_vm11, %v4576_v61, 0.0 }
 0x278   : > { %v4582_v38 = vpop.f32.mrf.mxu1  ;;  %v2909_v46 = vadd.f32 %v2908_v59, %v2907_v62 }
 0x279   : > { %2884 = vst.msk [vmem:[%s3671_s20 + $0x20] sm:$0xf] %vm520_vm2, %v3327_v60  ;;  %v3330_v48 = vpack.c.bf16 %v4582_v38, %v4582_v38  ;;  %v2914_v7 = vsel %vm2892_vm11, %v4582_v38, 0.0 }
 0x27a   : > { %v4588_v49 = vpop.f32.mrf.mxu1 }
 0x27b   : > { %2887 = vst.msk [vmem:[%s3671_s20 + $0x2c] sm:$0xf] %vm520_vm2, %v3330_v48  ;;  %v3328_v50 = vpack.c.bf16 %v4588_v49, %v4588_v49  ;;  %v2910_v3 = vsel %vm2892_vm11, %v4588_v49, 0.0 }
 0x27c   : > { %v2911_v43 = vadd.f32 %v2910_v3, %v2909_v46 }
 0x27d   : > { %2885 = vst.msk [vmem:[%s3671_s20 + $0x24] sm:$0xf] %vm520_vm2, %v3328_v50 }
 0x27e   : > { %v2913_v5 = vadd.f32 %v2912_v4, %v2911_v43 }
 0x280   : > { %v2915_v16 = vadd.f32 %v2914_v7, %v2913_v5 }
 0x2b0   : > { %v4618_v13 = vpop.f32.mrf.mxu1 }
 0x2b1   : > { %v3333_v11 = vpack.c.bf16 %v4618_v13, %v4618_v13  ;;  %v2920_v24 = vsel %vm2892_vm11, %v4618_v13, 0.0 }
 0x2b2   : > { %v4622_v12 = vpop.f32.mrf.mxu1 }
 0x2b3   : > { %2890 = vst.msk [vmem:[%s3671_s20 + $0x38] sm:$0xf] %vm520_vm2, %v3333_v11  ;;  %v3331_v14 = vpack.c.bf16 %v4622_v12, %v4622_v12  ;;  %v2916_v6 = vsel %vm2892_vm11, %v4622_v12, 0.0 }
 0x2b4   : > { %v4632_v17 = vpop.f32.mrf.mxu1  ;;  %v2917_v9 = vadd.f32 %v2916_v6, %v2915_v16 }
 0x2b5   : > { %2888 = vst.msk [vmem:[%s3671_s20 + $0x30] sm:$0xf] %vm520_vm2, %v3331_v14  ;;  %v3334_v18 = vpack.c.bf16 %v4632_v17, %v4632_v17  ;;  %v2922_v26 = vsel %vm2892_vm11, %v4632_v17, 0.0 }
 0x2b6   : > { %v2800_v20 = vpop.f32.mrf.mxu1 }
 0x2b7   : > { %2891 = vst.msk [vmem:[%s3671_s20 + $0x3c] sm:$0xf] %vm520_vm2, %v3334_v18  ;;  %v3332_v21 = vpack.c.bf16 %v2800_v20, %v2800_v20  ;;  %v2918_v32 = vsel %vm2892_vm11, %v2800_v20, 0.0 }
 0x2b8   : > { %v2919_v23 = vadd.f32 %v2918_v32, %v2917_v9 }
 0x2b9   : > { %2889 = vst.msk [vmem:[%s3671_s20 + $0x34] sm:$0xf] %vm520_vm2, %v3332_v21 }
 0x2ba   : > { %v2921_v25 = vadd.f32 %v2920_v24, %v2919_v23 }
 0x2bc   : > { %v2923_v27 = vadd.f32 %v2922_v26, %v2921_v25 }
 0x2be   : > { %v2924_v31 = vrot.slane %v2923_v27, 4 }
 0x2c0   : > { %v2925_v19 = vadd.f32 %v2924_v31, %v2923_v27 }
 0x2c2   : > { %v2926_v37 = vrot.slane %v2925_v19, 2 }
 0x2c4   : > { %v2927_v40 = vadd.f32 %v2926_v37, %v2925_v19 }
 0x2c6   : > { %v2928_v10 = vrot.slane %v2927_v40, 1 }
 0x2c8   : > { %v2929_v42 = vadd.f32 %v2928_v10, %v2927_v40 }
 0x2ca   : > { %v2931_v1 = vmul.f32 0.0078125, %v2929_v42  ;;  %3003 = vst.msk [vmem:[%s3680_s10] sm:$0x1] %vm528_vm1, %v2929_v42 }
 0x2cc   : > { %v2932_v29 = vsub.f32 %v4526_v54, %v2931_v1  ;;  %v2933_v44 = vsub.f32 %v4538_v39, %v2931_v1  ;;  %v2934_v47 = vsub.f32 %v4522_v30, %v2931_v1  ;;  %v2935_v60 = vsub.f32 %v4532_v33, %v2931_v1 }
 0x2cd   : > { %v2936_v51 = vsub.f32 %v4550_v55, %v2931_v1  ;;  %v2937_v56 = vsub.f32 %v4562_v15, %v2931_v1  ;;  %v2938_v54 = vsub.f32 %v4546_v28, %v2931_v1  ;;  %v2939_v33 = vsub.f32 %v4556_v35, %v2931_v1 }
 0x2ce   : > { %v2948_v48 = vmul.f32 %v2932_v29, %v2932_v29  ;;  %v2949_v50 = vmul.f32 %v2933_v44, %v2933_v44  ;;  %v2950_v36 = vmul.f32 %v2934_v47, %v2934_v47  ;;  %v2951_v52 = vmul.f32 %v2935_v60, %v2935_v60 }
 0x2cf   : > { %v2952_v39 = vmul.f32 %v2936_v51, %v2936_v51  ;;  %v2953_v8 = vmul.f32 %v2937_v56, %v2937_v56  ;;  %v2940_v15 = vsub.f32 %v4576_v61, %v2931_v1  ;;  %v2954_v58 = vmul.f32 %v2938_v54, %v2938_v54 }
 0x2d0   : > { %v2964_v41 = vsel %vm2892_vm11, %v2948_v48, 0.0  ;;  %v2965_v0 = vsel %vm2892_vm11, %v2949_v50, 0.0  ;;  %v2967_v30 = vsel %vm2892_vm11, %v2950_v36, 0.0  ;;  %v2969_v55 = vsel %vm2892_vm11, %v2951_v52, 0.0 }
 0x2d1   : > { %v2966_v57 = vadd.f32 %v2965_v0, %v2964_v41  ;;  %v2971_v53 = vsel %vm2892_vm11, %v2952_v39, 0.0  ;;  %v2941_v2 = vsub.f32 %v4588_v49, %v2931_v1  ;;  %v2955_v59 = vmul.f32 %v2939_v33, %v2939_v33 }
 0x2d2   : > { %v2973_v28 = vsel %vm2892_vm11, %v2953_v8, 0.0  ;;  %v2942_v3 = vsub.f32 %v4572_v45, %v2931_v1  ;;  %v2956_v46 = vmul.f32 %v2940_v15, %v2940_v15  ;;  %v2975_v35 = vsel %vm2892_vm11, %v2954_v58, 0.0 }
 0x2d3   : > { %v2968_v22 = vadd.f32 %v2967_v30, %v2966_v57  ;;  %v2943_v4 = vsub.f32 %v4582_v38, %v2931_v1  ;;  %v2957_v5 = vmul.f32 %v2941_v2, %v2941_v2  ;;  %v2977_v61 = vsel %vm2892_vm11, %v2955_v59, 0.0 }
 0x2d4   : > { %v2944_v7 = vsub.f32 %v4622_v12, %v2931_v1  ;;  %v2958_v14 = vmul.f32 %v2942_v3, %v2942_v3  ;;  %v2979_v49 = vsel %vm2892_vm11, %v2956_v46, 0.0  ;;  %v2945_v16 = vsub.f32 %v2800_v20, %v2931_v1 }
 0x2d5   : > { %v2970_v34 = vadd.f32 %v2969_v55, %v2968_v22  ;;  %v2959_v18 = vmul.f32 %v2943_v4, %v2943_v4  ;;  %v2981_v45 = vsel %vm2892_vm11, %v2957_v5, 0.0  ;;  %v2946_v21 = vsub.f32 %v4618_v13, %v2931_v1 }
 0x2d6   : > { %v2960_v32 = vmul.f32 %v2944_v7, %v2944_v7  ;;  %v2983_v38 = vsel %vm2892_vm11, %v2958_v14, 0.0  ;;  %v2947_v24 = vsub.f32 %v4632_v17, %v2931_v1  ;;  %v2961_v25 = vmul.f32 %v2945_v16, %v2945_v16 }
 0x2d7   : > { %v2972_v63 = vadd.f32 %v2971_v53, %v2970_v34  ;;  %v2985_v12 = vsel %vm2892_vm11, %v2959_v18, 0.0  ;;  %v2962_v27 = vmul.f32 %v2946_v21, %v2946_v21 }
 0x2d8   : > { %v2987_v20 = vsel %vm2892_vm11, %v2960_v32, 0.0  ;;  %v2963_v19 = vmul.f32 %v2947_v24, %v2947_v24  ;;  %v2989_v37 = vsel %vm2892_vm11, %v2961_v25, 0.0 }
 0x2d9   : > { %v2974_v62 = vadd.f32 %v2973_v28, %v2972_v63  ;;  %v2991_v13 = vsel %vm2892_vm11, %v2962_v27, 0.0 }
 0x2da   : > { %v2993_v42 = vsel %vm2892_vm11, %v2963_v19, 0.0 }
 0x2db   : > { %v2976_v43 = vadd.f32 %v2975_v35, %v2974_v62 }
 0x2dd   : > { %v2978_v11 = vadd.f32 %v2977_v61, %v2976_v43 }
 0x2df   : > { %v2980_v6 = vadd.f32 %v2979_v49, %v2978_v11 }
 0x2e1   : > { %v2982_v9 = vadd.f32 %v2981_v45, %v2980_v6 }
 0x2e3   : > { %v2984_v23 = vadd.f32 %v2983_v38, %v2982_v9 }
 0x2e5   : > { %v2986_v26 = vadd.f32 %v2985_v12, %v2984_v23 }
 0x2e7   : > { %v2988_v31 = vadd.f32 %v2987_v20, %v2986_v26 }
 0x2e9   : > { %v2990_v40 = vadd.f32 %v2989_v37, %v2988_v31 }
 0x2eb   : > { %v2992_v10 = vadd.f32 %v2991_v13, %v2990_v40 }
 0x2ed   : > { %v2994_v29 = vadd.f32 %v2993_v42, %v2992_v10 }
 0x2ef   : > { %v2995_v17 = vrot.slane %v2994_v29, 4 }
 0x2f1   : > { %v2996_v1 = vadd.f32 %v2995_v17, %v2994_v29 }
 0x2f3   : > { %v2997_v44 = vrot.slane %v2996_v1, 2 }
 0x2f5   : > { %v2998_v47 = vadd.f32 %v2997_v44, %v2996_v1 }
 0x2f7   : > { %v2999_v60 = vrot.slane %v2998_v47, 1 }
 0x2f9   : > { %v3000_v48 = vadd.f32 %v2999_v60, %v2998_v47 }
 0x2fb   : > { %3004 = vst.msk [vmem:[%s3680_s10 + $0x1] sm:$0x1] %vm528_vm1, %v3000_v48 }
 0x2fc PF: > { %s18_s28 = sadd.s32 1, %s3523_s28   ;;  %s4720_s20 = sld [smem:[#allocation4_spill]] }
 0x2fd   : > { %p15_p0 = scmp.ge.s32.totalorder %s18_s28, 6   ;;  %s4721_s24 = smov %s3515_s26 }
 0x2fe   : > { %s4722_s25 = smov %s3519_s27  ;;  %s4723_s26 = smov %s4726_s29 }
 0x2ff   :  { %17 = sbr.rel (!%p15_p0) target bundleno = 3 (0x3), region = 103 }
 0x302   : > { %s4724_s27 = smov %s4720_s20 }

</bundles_post_ra>
